<compile_context>
chip_gen: v5e
topology: v5e:2x2
jax: 0.10.0
libtpu: 0.0.40
codegen_flags: <defaults>
</compile_context>

<pallas_src>
import functools

import jax
import jax.numpy as jnp
from jax.experimental import pallas as pl
from jax.experimental.pallas import tpu as pltpu

LN_EPS = 1e-12  # matches nn.LayerNorm(embed_dim, eps=1e-12) in the reference.


# ---------------------------------------------------------------------------
# Fused DSTRNN chain kernel: full time recurrence + predictor/skip conv.
# ---------------------------------------------------------------------------
def _chain_kernel(
    # per-batch streamed inputs
    x_ref, xt_ref, temb_ref, bz_ref, br_ref, bu_ref,
    # chain-constant inputs (DMA'd once)
    nemb_ref, nexp_g_ref, selz_ref, selr_ref, nexp_u_ref, selu_ref,
    gWx_ref, gWs_ref, gWx2_ref, gWs2_ref, gGam_ref, gBet_ref,
    uWx_ref, uWs_ref, uWx2_ref, uWs2_ref, uGam_ref, uBet_ref,
    wconv_ref, bconv_ref,
    # output
    out_ref,
    *, T, G, H, Ci, conv_steps):
  bf16 = jnp.bfloat16

  nemb = nemb_ref[...]                      # [N, D] f32
  N = nemb.shape[0]
  nexp_g = nexp_g_ref[...]                  # [N, D*2H] bf16
  nexp_u = nexp_u_ref[...]                  # [N, D*H]  bf16
  selz = selz_ref[...]                      # [D*2H, H] bf16
  selr = selr_ref[...]                      # [D*2H, H] bf16
  selu = selu_ref[...]                      # [D*H,  H] bf16

  # GRU hidden states (zero init, matches init_hidden) kept as SSA values:
  # the whole recurrence is inside this kernel invocation, no HBM round-trip.
  states = [jnp.zeros((N, H), jnp.float32) for _ in range(G)]
  hist = []                                 # last conv_steps hidden states

  def adjacency(ehat, gamma, beta):
    # supports2 = softmax(LN(nemb + temb) @ LN(...)^T) ; stats shared, affine
    # (gamma/beta) per GCN.
    eh = (ehat * gamma + beta).astype(bf16)
    logits = jax.lax.dot_general(
        eh, eh, (((1,), (1,)), ((), ())),
        preferred_element_type=jnp.float32)                   # [N, N]
    m = jnp.max(logits, axis=-1, keepdims=True)
    p = jnp.exp(logits - m)
    denom = jnp.sum(p, axis=-1, keepdims=True)
    return p * pl.reciprocal(denom, approx=True)              # row softmax

  def gcn_tmp(x_col, x_row, s, sup, Wx, Ws, Wx2, Ws2, nexp):
    # tmp[n, d*Cout+o] = sum_i [x|s][n,i] W0[d,i,o] + sum_i (sup@[x|s])[n,i] W1[d,i,o]
    s_b = s.astype(bf16)
    sup_b = sup.astype(bf16)
    if Ci == 1:
      # K=1 contractions -> VPU broadcast multiplies; sup@x -> XLU lane reduce.
      x_term = x_col * Wx                                     # [N,1]*[1,DC]
      ax = jnp.sum(sup * x_row, axis=-1, keepdims=True)       # [N,1]
      ax_term = ax * Wx2                                      # [N,1]*[1,DC]
    else:
      x_b = x_col.astype(bf16)
      x_term = jnp.dot(x_b, Wx, preferred_element_type=jnp.float32)
      ax = jnp.dot(sup_b, x_b, preferred_element_type=jnp.float32)
      ax_term = jnp.dot(ax.astype(bf16), Wx2,
                        preferred_element_type=jnp.float32)
    asn = jnp.dot(sup_b, s_b, preferred_element_type=jnp.float32)   # [N, H]
    tmp = (x_term
           + jnp.dot(s_b, Ws, preferred_element_type=jnp.float32)
           + ax_term
           + jnp.dot(asn.astype(bf16), Ws2,
                     preferred_element_type=jnp.float32))           # [N, DC]
    # out[n, o] = sum_d nemb[n, d] * tmp[n, d*Cout + o]  (finished by caller
    # with the bf16 selection matmul).
    return (tmp * nexp).astype(bf16)

  # ---- unrolled time recurrence (T is a static compile-time constant) ----
  for t in range(T):
    g = t % G
    x_t = x_ref[0, t]                       # [N, Ci] f32
    x_row = xt_ref[0, t]                    # [Ci, N] f32 (used when Ci == 1)
    temb_t = temb_ref[:, t]                 # [1, D]  f32
    st = states[g]                          # [N, H]  f32

    # Shared LayerNorm statistics of (node_emb + time_emb).
    e = nemb + temb_t
    mu = jnp.mean(e, axis=-1, keepdims=True)
    var = jnp.mean(jnp.square(e - mu), axis=-1, keepdims=True)
    ehat = (e - mu) * jax.lax.rsqrt(var + LN_EPS)

    # --- gate GCN: z, r produced directly (no lane-offset 2H split) ---
    sup_g = adjacency(ehat, gGam_ref[g], gBet_ref[g])
    tg = gcn_tmp(x_t, x_row, st, sup_g,
                 gWx_ref[g], gWs_ref[g], gWx2_ref[g], gWs2_ref[g], nexp_g)
    z = jax.nn.sigmoid(
        jnp.dot(tg, selz, preferred_element_type=jnp.float32) + bz_ref[:, t])
    r = jax.nn.sigmoid(
        jnp.dot(tg, selr, preferred_element_type=jnp.float32) + br_ref[:, t])

    # --- update GCN on (x, z * state) ---
    sup_u = adjacency(ehat, uGam_ref[g], uBet_ref[g])
    tu = gcn_tmp(x_t, x_row, z * st, sup_u,
                 uWx_ref[g], uWs_ref[g], uWx2_ref[g], uWs2_ref[g], nexp_u)
    hc = jnp.tanh(
        jnp.dot(tu, selu, preferred_element_type=jnp.float32) + bu_ref[:, t])

    h = r * st + (1.0 - r) * hc
    states[g] = h
    if t >= T - conv_steps:
      hist.append(h)

  # ---- fused predictor(+skip) Conv2d(conv_steps, OC, (1, H)) epilogue ----
  acc = bconv_ref[...]                      # [1, OC] f32
  for c in range(conv_steps):
    acc = acc + jnp.dot(hist[c].astype(bf16), wconv_ref[c],
                        preferred_element_type=jnp.float32)
  out_ref[0] = acc


def _const_spec(arr):
  nd = arr.ndim
  return pl.BlockSpec(arr.shape, lambda b, _nd=nd: (0,) * _nd)


def run_chain(x, temb, nemb, ch, bz, br, bu, conv_steps):
  """Run one fused GRU chain.  x: [B,T,N,Ci], temb: [B,T,D] -> [B,N,OC]."""
  B, T, N, Ci = x.shape
  D = nemb.shape[-1]
  G, H = ch["G"], ch["H"]
  OC = ch["wconv"].shape[-1]
  assert T >= conv_steps, "predict_time (conv_steps) must be <= in_steps"

  # Pre-transposed x so the Ci==1 path can use an XLU lane reduce for sup@x.
  xT = jnp.transpose(x, (0, 1, 3, 2))       # [B, T, Ci, N]

  kernel = functools.partial(_chain_kernel, T=T, G=G, H=H, Ci=Ci,
                             conv_steps=conv_steps)

  ins = [x, xT, temb, bz, br, bu,
         nemb, ch["nexp_g"], ch["sel_z"], ch["sel_r"], ch["nexp_u"], ch["sel_u"],
         ch["gWx"], ch["gWs"], ch["gWx2"], ch["gWs2"], ch["gGam"], ch["gBet"],
         ch["uWx"], ch["uWs"], ch["uWx2"], ch["uWs2"], ch["uGam"], ch["uBet"],
         ch["wconv"], ch["bconv"]]

  in_specs = [
      pl.BlockSpec((1, T, N, Ci), lambda b: (b, 0, 0, 0)),   # x
      pl.BlockSpec((1, T, Ci, N), lambda b: (b, 0, 0, 0)),   # x transposed
      pl.BlockSpec((1, T, D), lambda b: (b, 0, 0)),          # dyn time emb
      pl.BlockSpec((1, T, H), lambda b: (b, 0, 0)),          # gate z bias
      pl.BlockSpec((1, T, H), lambda b: (b, 0, 0)),          # gate r bias
      pl.BlockSpec((1, T, H), lambda b: (b, 0, 0)),          # update bias
  ] + [_const_spec(a) for a in ins[6:]]

  return pl.pallas_call(
      kernel,
      out_shape=jax.ShapeDtypeStruct((B, N, OC), jnp.float32),
      grid=(B,),
      in_specs=in_specs,
      out_specs=pl.BlockSpec((1, N, OC), lambda b: (b, 0, 0)),
      compiler_params=pltpu.CompilerParams(
          dimension_semantics=("parallel",),     # batch -> megacore on v7x
          vmem_limit_bytes=48 * 1024 * 1024,     # safe on v7x's 64 MiB VMEM
      ),
  )(*ins)


# ---------------------------------------------------------------------------
# Parameter restructuring (torch layout -> kernel-friendly flattened layout).
# ---------------------------------------------------------------------------
def _split_wpool(wpool, Ci, H):
  # wpool: [D, 2, Ci+H, Cout] -> Wx [Ci, D*Cout], Ws [H, D*Cout], Wx2, Ws2
  D = wpool.shape[0]
  Cout = wpool.shape[-1]

  def seg(k, lo, hi):
    w = wpool[:, k, lo:hi, :]                               # [D, seg, Cout]
    return jnp.transpose(w, (1, 0, 2)).reshape(hi - lo, D * Cout)

  return seg(0, 0, Ci), seg(0, Ci, Ci + H), seg(1, 0, Ci), seg(1, Ci, Ci + H)


def prepare_chain_params(params, cfg):
  D = cfg["embed_dim"]
  H = cfg["rnn_units"]
  Ci = cfg["num_input_dim"]
  conv_steps = cfg["predict_time"]
  num_grus = cfg["num_grus"]
  nemb = params["node_embeddings"]
  bf = jnp.bfloat16

  # Per-node weight-contraction helpers (hoisted out of the kernel), bf16.
  nexp_g = jnp.repeat(nemb, 2 * H, axis=1).astype(bf)               # [N, D*2H]
  sel_gate = jnp.tile(jnp.eye(2 * H, dtype=jnp.float32), (D, 1))    # [D*2H, 2H]
  sel_z = sel_gate[:, :H].astype(bf)
  sel_r = sel_gate[:, H:].astype(bf)
  nexp_u = jnp.repeat(nemb, H, axis=1).astype(bf)                   # [N, D*H]
  sel_u = jnp.tile(jnp.eye(H, dtype=jnp.float32), (D, 1)).astype(bf)

  chains = []
  idx0 = 0
  for i, G in enumerate(num_grus):
    gate_w, upd_w = [], []
    gateB, updB = [], []
    gGam, gBet, uGam, uBet = [], [], [], []
    for gi in range(G):
      gp = params["grus"][idx0 + gi]
      wpool_g, bpool_g, gam_g, bet_g = gp["gate"]
      wpool_u, bpool_u, gam_u, bet_u = gp["update"]
      gate_w.append(_split_wpool(wpool_g, Ci, H))
      upd_w.append(_split_wpool(wpool_u, Ci, H))
      gateB.append(bpool_g)
      updB.append(bpool_u)
      gGam.append(gam_g.reshape(1, D))
      gBet.append(bet_g.reshape(1, D))
      uGam.append(gam_u.reshape(1, D))
      uBet.append(bet_u.reshape(1, D))
    idx0 += G

    gWx, gWs, gWx2, gWs2 = (jnp.stack(w, 0).astype(bf) for w in zip(*gate_w))
    uWx, uWs, uWx2, uWs2 = (jnp.stack(w, 0).astype(bf) for w in zip(*upd_w))

    # Fused predictor(+skip) conv weights, pre-split per conv step:
    #   wconv[c] : [H, OCp(+OCs)]  (Conv2d(conv_steps, OC, (1, H)) as matmuls)
    wp = params["predictors"][i]["w"]            # [OCp, conv_steps, 1, H]
    bp = params["predictors"][i]["b"]
    wpred = jnp.transpose(wp[:, :, 0, :], (1, 2, 0))   # [conv_steps, H, OCp]
    if i < len(num_grus) - 1:
      ws = params["skips"][i]["w"]               # [OCs, conv_steps, 1, H]
      bs = params["skips"][i]["b"]
      wskip = jnp.transpose(ws[:, :, 0, :], (1, 2, 0))
      wconv = jnp.concatenate([wpred, wskip], axis=-1).astype(bf)
      bconv = jnp.concatenate([bp, bs]).reshape(1, -1)
    else:
      wconv = wpred.astype(bf)
      bconv = bp.reshape(1, -1)

    chains.append(dict(
        G=G, H=H,
        gWx=gWx, gWs=gWs, gWx2=gWx2, gWs2=gWs2,
        gGam=jnp.stack(gGam, 0), gBet=jnp.stack(gBet, 0),
        uWx=uWx, uWs=uWs, uWx2=uWx2, uWs2=uWs2,
        uGam=jnp.stack(uGam, 0), uBet=jnp.stack(uBet, 0),
        gateB=jnp.stack(gateB, 0),               # [G, D, 2H] f32
        updB=jnp.stack(updB, 0),                 # [G, D, H]  f32
        nexp_g=nexp_g, sel_z=sel_z, sel_r=sel_r,
        nexp_u=nexp_u, sel_u=sel_u,
        wconv=wconv, bconv=bconv))
  return chains


# ---------------------------------------------------------------------------
# Full Network / MGSTGNN forward.
# ---------------------------------------------------------------------------
def network_forward(source, params, cfg):
  B, T, N, _ = source.shape
  D = cfg["embed_dim"]
  H = cfg["rnn_units"]
  Ci = cfg["num_input_dim"]
  pe = cfg["periods_embedding_dim"]
  we = cfg["weekend_embedding_dim"]
  # The reference multiplies time_embeddings [B,T,D] elementwise with the
  # node-0 periods/weekend embeddings, which requires pe == we == embed_dim.
  assert pe == D and we == D

  # --- Encoder (tiny gathers: plain JAX glue).  The encoder's input_proj
  # output is never consumed by the forward pass, so it is skipped. ---
  p_idx = (source[:, :, 0, 1] * cfg["periods"]).astype(jnp.int32)   # [B, T]
  w_idx = source[:, :, 0, 2].astype(jnp.int32)                      # [B, T]
  periods_emb0 = params["periods_embedding"][p_idx]                 # [B, T, D]
  weekend_emb0 = params["weekend_embedding"][w_idx]                 # [B, T, D]
  temb = params["time_embeddings"][:B] * periods_emb0 * weekend_emb0

  nemb = params["node_embeddings"]
  chains = prepare_chain_params(params, cfg)

  conv_steps = cfg["predict_time"]
  out_steps = cfg["out_steps"]
  out_dim = cfg["output_dim"]
  OCp = out_steps * out_dim

  x_in = source[..., :Ci]
  skip = x_in
  current = x_in
  predict = None
  for i, ch in enumerate(chains):
    # Precompute per-(b, t) GCN biases with the dynamic time embedding
    # (selects the bias pool of GRU t % G) -> no M=1 matmuls in the kernel.
    g_of_t = jnp.arange(T) % ch["G"]
    bias_gate = jnp.einsum("btd,tdo->bto", temb, ch["gateB"][g_of_t])
    bias_u = jnp.einsum("btd,tdo->bto", temb, ch["updB"][g_of_t])
    bz, br = bias_gate[..., :H], bias_gate[..., H:]

    co = run_chain(current, temb, nemb, ch, bz, br, bias_u, conv_steps)

    # predictor: NCHW [B, OCp, N, 1] -> reshape [B, out_steps, N, out_dim]
    pred = jnp.transpose(co[:, :, :OCp], (0, 2, 1)).reshape(
        B, out_steps, N, out_dim)
    predict = pred if predict is None else predict + pred
    if i < len(chains) - 1:
      # skip conv: NCHW [B, Ci*T, N, 1] -> reshape [B, T, N, Ci]
      sk = jnp.transpose(co[:, :, OCp:], (0, 2, 1)).reshape(B, T, N, Ci)
      current = skip - sk
  return predict


# ---------------------------------------------------------------------------
# Deterministic synthetic parameter init (shapes from the module __init__).
# ---------------------------------------------------------------------------
def init_params(key, cfg):
  N = cfg["num_nodes"]; D = cfg["embed_dim"]; H = cfg["rnn_units"]
  Ci = cfg["num_input_dim"]; B = cfg["batch_size"]; T = cfg["in_steps"]
  pe = cfg["periods_embedding_dim"]; we = cfg["weekend_embedding_dim"]
  num_grus = cfg["num_grus"]
  conv_steps = cfg["predict_time"]
  ks = iter(jax.random.split(key, 128))

  def nrm(shape, s=0.1):
    return s * jax.random.normal(next(ks), shape, jnp.float32)

  params = {}
  params["periods_embedding"] = nrm((cfg["periods"], pe), 1.0)
  params["weekend_embedding"] = nrm((cfg["weekend"], we), 1.0)
  params["node_embeddings"] = nrm((N, D), 1.0)
  params["time_embeddings"] = nrm((B, T, D), 1.0)

  def gcn_params(dim_in, dim_out):
    return (nrm((D, 2, dim_in, dim_out)),           # weights_pool
            nrm((D, dim_out)),                      # bias_pool
            jnp.ones((D,), jnp.float32),            # LayerNorm gamma
            jnp.zeros((D,), jnp.float32))           # LayerNorm beta

  grus = []
  for _ in range(sum(num_grus)):
    grus.append({"gate": gcn_params(Ci + H, 2 * H),
                 "update": gcn_params(Ci + H, H)})
  params["grus"] = grus

  OCp = cfg["output_dim"] * cfg["out_steps"]
  OCs = Ci * T
  params["predictors"] = [{"w": nrm((OCp, conv_steps, 1, H)), "b": nrm((OCp,))}
                          for _ in range(len(num_grus))]
  params["skips"] = [{"w": nrm((OCs, conv_steps, 1, H)), "b": nrm((OCs,))}
                     for _ in range(len(num_grus) - 1)]
  return params


if __name__ == "__main__":
  cfg = dict(num_nodes=16, batch_size=2, input_dim=3, rnn_units=8,
             output_dim=1, num_grus=(1, 1), embed_dim=8, in_steps=4,
             out_steps=4, predict_time=2, periods=288, weekend=7,
             periods_embedding_dim=8, weekend_embedding_dim=8,
             input_embedding_dim=8, num_input_dim=1)

  key = jax.random.PRNGKey(0)
  kx, kp = jax.random.split(key)
  B, T, N = cfg["batch_size"], cfg["in_steps"], cfg["num_nodes"]
  k0, k1, k2 = jax.random.split(kx, 3)
  ch0 = jax.random.normal(k0, (B, T, N, 1), jnp.float32)                 # value
  ch1 = jax.random.uniform(k1, (B, T, N, 1), jnp.float32, 0.0, 0.999)    # time-of-day
  ch2 = jax.random.randint(k2, (B, T, N, 1), 0,
                           cfg["weekend"]).astype(jnp.float32)           # day-of-week
  source = jnp.concatenate([ch0, ch1, ch2], axis=-1)

  params = init_params(kp, cfg)
  fwd = jax.jit(lambda s, p: network_forward(s, p, cfg))
  out = jax.block_until_ready(fwd(source, params))
  assert out.shape == (B, cfg["out_steps"], N, cfg["output_dim"]), out.shape
  assert bool(jnp.all(jnp.isfinite(out)))
  print("KERNEL_OK")
</pallas_src>

<mosaic_0001>
module attributes {stable_mosaic.version = 11 : i64} {
  func.func @_chain_kernel(%arg0: i32, %arg1: memref<1x4x16x1xf32, #tpu.memory_space<vmem>>, %arg2: memref<1x4x1x16xf32, #tpu.memory_space<vmem>>, %arg3: memref<1x4x8xf32, #tpu.memory_space<vmem>>, %arg4: memref<1x4x8xf32, #tpu.memory_space<vmem>>, %arg5: memref<1x4x8xf32, #tpu.memory_space<vmem>>, %arg6: memref<1x4x8xf32, #tpu.memory_space<vmem>>, %arg7: memref<16x8xf32, #tpu.memory_space<vmem>>, %arg8: memref<16x128xbf16, #tpu.memory_space<vmem>>, %arg9: memref<128x8xbf16, #tpu.memory_space<vmem>>, %arg10: memref<128x8xbf16, #tpu.memory_space<vmem>>, %arg11: memref<16x64xbf16, #tpu.memory_space<vmem>>, %arg12: memref<64x8xbf16, #tpu.memory_space<vmem>>, %arg13: memref<1x1x128xbf16, #tpu.memory_space<vmem>>, %arg14: memref<1x8x128xbf16, #tpu.memory_space<vmem>>, %arg15: memref<1x1x128xbf16, #tpu.memory_space<vmem>>, %arg16: memref<1x8x128xbf16, #tpu.memory_space<vmem>>, %arg17: memref<1x1x8xf32, #tpu.memory_space<vmem>>, %arg18: memref<1x1x8xf32, #tpu.memory_space<vmem>>, %arg19: memref<1x1x64xbf16, #tpu.memory_space<vmem>>, %arg20: memref<1x8x64xbf16, #tpu.memory_space<vmem>>, %arg21: memref<1x1x64xbf16, #tpu.memory_space<vmem>>, %arg22: memref<1x8x64xbf16, #tpu.memory_space<vmem>>, %arg23: memref<1x1x8xf32, #tpu.memory_space<vmem>>, %arg24: memref<1x1x8xf32, #tpu.memory_space<vmem>>, %arg25: memref<2x8x8xbf16, #tpu.memory_space<vmem>>, %arg26: memref<1x8xf32, #tpu.memory_space<vmem>>, %arg27: memref<1x16x8xf32, #tpu.memory_space<vmem>>) attributes {dimension_semantics = [#tpu.dimension_semantics<parallel>], iteration_bounds = array<i64: 2>, scalar_prefetch = 0 : i64, scratch_operands = 0 : i64, tpu.core_type = #tpu.core_type<tc>, window_params = [{transform_indices = @transform_0, window_bounds = array<i64: 1, 4, 16, 1>}, {transform_indices = @transform_1, window_bounds = array<i64: 1, 4, 1, 16>}, {transform_indices = @transform_2, window_bounds = array<i64: 1, 4, 8>}, {transform_indices = @transform_3, window_bounds = array<i64: 1, 4, 8>}, {transform_indices = @transform_4, window_bounds = array<i64: 1, 4, 8>}, {transform_indices = @transform_5, window_bounds = array<i64: 1, 4, 8>}, {pipeline_mode = #tpu.pipeline_mode<synchronous>, transform_indices = @transform_6, window_bounds = array<i64: 16, 8>}, {pipeline_mode = #tpu.pipeline_mode<synchronous>, transform_indices = @transform_7, window_bounds = array<i64: 16, 128>}, {pipeline_mode = #tpu.pipeline_mode<synchronous>, transform_indices = @transform_8, window_bounds = array<i64: 128, 8>}, {pipeline_mode = #tpu.pipeline_mode<synchronous>, transform_indices = @transform_9, window_bounds = array<i64: 128, 8>}, {pipeline_mode = #tpu.pipeline_mode<synchronous>, transform_indices = @transform_10, window_bounds = array<i64: 16, 64>}, {pipeline_mode = #tpu.pipeline_mode<synchronous>, transform_indices = @transform_11, window_bounds = array<i64: 64, 8>}, {pipeline_mode = #tpu.pipeline_mode<synchronous>, transform_indices = @transform_12, window_bounds = array<i64: 1, 1, 128>}, {pipeline_mode = #tpu.pipeline_mode<synchronous>, transform_indices = @transform_13, window_bounds = array<i64: 1, 8, 128>}, {pipeline_mode = #tpu.pipeline_mode<synchronous>, transform_indices = @transform_14, window_bounds = array<i64: 1, 1, 128>}, {pipeline_mode = #tpu.pipeline_mode<synchronous>, transform_indices = @transform_15, window_bounds = array<i64: 1, 8, 128>}, {pipeline_mode = #tpu.pipeline_mode<synchronous>, transform_indices = @transform_16, window_bounds = array<i64: 1, 1, 8>}, {pipeline_mode = #tpu.pipeline_mode<synchronous>, transform_indices = @transform_17, window_bounds = array<i64: 1, 1, 8>}, {pipeline_mode = #tpu.pipeline_mode<synchronous>, transform_indices = @transform_18, window_bounds = array<i64: 1, 1, 64>}, {pipeline_mode = #tpu.pipeline_mode<synchronous>, transform_indices = @transform_19, window_bounds = array<i64: 1, 8, 64>}, {pipeline_mode = #tpu.pipeline_mode<synchronous>, transform_indices = @transform_20, window_bounds = array<i64: 1, 1, 64>}, {pipeline_mode = #tpu.pipeline_mode<synchronous>, transform_indices = @transform_21, window_bounds = array<i64: 1, 8, 64>}, {pipeline_mode = #tpu.pipeline_mode<synchronous>, transform_indices = @transform_22, window_bounds = array<i64: 1, 1, 8>}, {pipeline_mode = #tpu.pipeline_mode<synchronous>, transform_indices = @transform_23, window_bounds = array<i64: 1, 1, 8>}, {pipeline_mode = #tpu.pipeline_mode<synchronous>, transform_indices = @transform_24, window_bounds = array<i64: 2, 8, 8>}, {pipeline_mode = #tpu.pipeline_mode<synchronous>, transform_indices = @transform_25, window_bounds = array<i64: 1, 8>}, {transform_indices = @transform_26, window_bounds = array<i64: 1, 16, 8>}]} {
    %c0 = arith.constant 0 : index
    %c0_0 = arith.constant 0 : index
    %0 = vector.load %arg7[%c0, %c0_0] : memref<16x8xf32, #tpu.memory_space<vmem>>, vector<16x8xf32>
    %c0_1 = arith.constant 0 : index
    %c0_2 = arith.constant 0 : index
    %1 = vector.load %arg8[%c0_1, %c0_2] : memref<16x128xbf16, #tpu.memory_space<vmem>>, vector<16x128xbf16>
    %c0_3 = arith.constant 0 : index
    %c0_4 = arith.constant 0 : index
    %2 = vector.load %arg11[%c0_3, %c0_4] : memref<16x64xbf16, #tpu.memory_space<vmem>>, vector<16x64xbf16>
    %c0_5 = arith.constant 0 : index
    %c0_6 = arith.constant 0 : index
    %3 = vector.load %arg9[%c0_5, %c0_6] : memref<128x8xbf16, #tpu.memory_space<vmem>>, vector<128x8xbf16>
    %c0_7 = arith.constant 0 : index
    %c0_8 = arith.constant 0 : index
    %4 = vector.load %arg10[%c0_7, %c0_8] : memref<128x8xbf16, #tpu.memory_space<vmem>>, vector<128x8xbf16>
    %c0_9 = arith.constant 0 : index
    %c0_10 = arith.constant 0 : index
    %5 = vector.load %arg12[%c0_9, %c0_10] : memref<64x8xbf16, #tpu.memory_space<vmem>>, vector<64x8xbf16>
    %cst = arith.constant 0.000000e+00 : f32
    %6 = vector.broadcast %cst : f32 to vector<16x8xf32>
    %c0_11 = arith.constant 0 : index
    %c0_12 = arith.constant 0 : index
    %c0_13 = arith.constant 0 : index
    %c0_14 = arith.constant 0 : index
    %7 = vector.load %arg1[%c0_11, %c0_12, %c0_13, %c0_14] : memref<1x4x16x1xf32, #tpu.memory_space<vmem>>, vector<1x1x16x1xf32>
    %8 = vector.shape_cast %7 : vector<1x1x16x1xf32> to vector<16x1xf32>
    %c0_15 = arith.constant 0 : index
    %c0_16 = arith.constant 0 : index
    %c0_17 = arith.constant 0 : index
    %c0_18 = arith.constant 0 : index
    %9 = vector.load %arg2[%c0_15, %c0_16, %c0_17, %c0_18] : memref<1x4x1x16xf32, #tpu.memory_space<vmem>>, vector<1x1x1x16xf32>
    %10 = vector.shape_cast %9 : vector<1x1x1x16xf32> to vector<1x16xf32>
    %c0_19 = arith.constant 0 : index
    %c0_20 = arith.constant 0 : index
    %c0_21 = arith.constant 0 : index
    %11 = vector.load %arg3[%c0_19, %c0_20, %c0_21] : memref<1x4x8xf32, #tpu.memory_space<vmem>>, vector<1x1x8xf32>
    %12 = vector.shape_cast %11 : vector<1x1x8xf32> to vector<1x8xf32>
    %13 = vector.broadcast %12 : vector<1x8xf32> to vector<16x8xf32>
    %14 = arith.addf %0, %13 : vector<16x8xf32>
    %cst_22 = arith.constant dense<0.000000e+00> : vector<16xf32>
    %15 = vector.multi_reduction <add>, %14, %cst_22 [1] : vector<16x8xf32> to vector<16xf32>
    %16 = vector.shape_cast %15 : vector<16xf32> to vector<16x1xf32>
    %cst_23 = arith.constant 8.000000e+00 : f32
    %17 = vector.broadcast %cst_23 : f32 to vector<16x1xf32>
    %18 = arith.divf %16, %17 : vector<16x1xf32>
    %19 = vector.broadcast %18 : vector<16x1xf32> to vector<16x8xf32>
    %20 = arith.subf %14, %19 : vector<16x8xf32>
    %21 = arith.mulf %20, %20 : vector<16x8xf32>
    %cst_24 = arith.constant dense<0.000000e+00> : vector<16xf32>
    %22 = vector.multi_reduction <add>, %21, %cst_24 [1] : vector<16x8xf32> to vector<16xf32>
    %23 = vector.shape_cast %22 : vector<16xf32> to vector<16x1xf32>
    %cst_25 = arith.constant 8.000000e+00 : f32
    %24 = vector.broadcast %cst_25 : f32 to vector<16x1xf32>
    %25 = arith.divf %23, %24 : vector<16x1xf32>
    %26 = vector.broadcast %18 : vector<16x1xf32> to vector<16x8xf32>
    %27 = arith.subf %14, %26 : vector<16x8xf32>
    %cst_26 = arith.constant 9.99999996E-13 : f32
    %28 = vector.broadcast %cst_26 : f32 to vector<16x1xf32>
    %29 = arith.addf %25, %28 : vector<16x1xf32>
    %30 = math.rsqrt %29 : vector<16x1xf32>
    %31 = vector.broadcast %30 : vector<16x1xf32> to vector<16x8xf32>
    %32 = arith.mulf %27, %31 : vector<16x8xf32>
    %c0_27 = arith.constant 0 : index
    %c0_28 = arith.constant 0 : index
    %c0_29 = arith.constant 0 : index
    %33 = vector.load %arg17[%c0_27, %c0_28, %c0_29] : memref<1x1x8xf32, #tpu.memory_space<vmem>>, vector<1x1x8xf32>
    %34 = vector.shape_cast %33 : vector<1x1x8xf32> to vector<1x8xf32>
    %c0_30 = arith.constant 0 : index
    %c0_31 = arith.constant 0 : index
    %c0_32 = arith.constant 0 : index
    %35 = vector.load %arg18[%c0_30, %c0_31, %c0_32] : memref<1x1x8xf32, #tpu.memory_space<vmem>>, vector<1x1x8xf32>
    %36 = vector.shape_cast %35 : vector<1x1x8xf32> to vector<1x8xf32>
    %37 = vector.broadcast %34 : vector<1x8xf32> to vector<16x8xf32>
    %38 = arith.mulf %32, %37 : vector<16x8xf32>
    %39 = vector.broadcast %36 : vector<1x8xf32> to vector<16x8xf32>
    %40 = arith.addf %38, %39 : vector<16x8xf32>
    %41 = arith.truncf %40 : vector<16x8xf32> to vector<16x8xbf16>
    %cst_33 = arith.constant dense<0.000000e+00> : vector<16x16xf32>
    %42 = tpu.matmul %41, %41, %cst_33 {dimension_numbers = #tpu.dot_dimension_numbers<[1], [1], [0], [0], [0, 0, 1, 0], [], []>} : vector<16x8xbf16>, vector<16x8xbf16>, vector<16x16xf32> -> vector<16x16xf32>
    %cst_34 = arith.constant dense<0xFF800000> : vector<16xf32>
    %43 = vector.multi_reduction <maximumf>, %42, %cst_34 [1] : vector<16x16xf32> to vector<16xf32>
    %44 = vector.shape_cast %43 : vector<16xf32> to vector<16x1xf32>
    %45 = vector.broadcast %44 : vector<16x1xf32> to vector<16x16xf32>
    %46 = arith.subf %42, %45 : vector<16x16xf32>
    %47 = math.exp %46 : vector<16x16xf32>
    %cst_35 = arith.constant dense<0.000000e+00> : vector<16xf32>
    %48 = vector.multi_reduction <add>, %47, %cst_35 [1] : vector<16x16xf32> to vector<16xf32>
    %49 = vector.shape_cast %48 : vector<16xf32> to vector<16x1xf32>
    %50 = tpu.reciprocal %49 {approx = true} : vector<16x1xf32> -> vector<16x1xf32>
    %51 = vector.broadcast %50 : vector<16x1xf32> to vector<16x16xf32>
    %52 = arith.mulf %47, %51 : vector<16x16xf32>
    %c0_36 = arith.constant 0 : index
    %c0_37 = arith.constant 0 : index
    %c0_38 = arith.constant 0 : index
    %53 = vector.load %arg13[%c0_36, %c0_37, %c0_38] : memref<1x1x128xbf16, #tpu.memory_space<vmem>>, vector<1x1x128xbf16>
    %54 = vector.shape_cast %53 : vector<1x1x128xbf16> to vector<1x128xbf16>
    %c0_39 = arith.constant 0 : index
    %c0_40 = arith.constant 0 : index
    %c0_41 = arith.constant 0 : index
    %55 = vector.load %arg14[%c0_39, %c0_40, %c0_41] : memref<1x8x128xbf16, #tpu.memory_space<vmem>>, vector<1x8x128xbf16>
    %56 = vector.shape_cast %55 : vector<1x8x128xbf16> to vector<8x128xbf16>
    %c0_42 = arith.constant 0 : index
    %c0_43 = arith.constant 0 : index
    %c0_44 = arith.constant 0 : index
    %57 = vector.load %arg15[%c0_42, %c0_43, %c0_44] : memref<1x1x128xbf16, #tpu.memory_space<vmem>>, vector<1x1x128xbf16>
    %58 = vector.shape_cast %57 : vector<1x1x128xbf16> to vector<1x128xbf16>
    %c0_45 = arith.constant 0 : index
    %c0_46 = arith.constant 0 : index
    %c0_47 = arith.constant 0 : index
    %59 = vector.load %arg16[%c0_45, %c0_46, %c0_47] : memref<1x8x128xbf16, #tpu.memory_space<vmem>>, vector<1x8x128xbf16>
    %60 = vector.shape_cast %59 : vector<1x8x128xbf16> to vector<8x128xbf16>
    %61 = arith.truncf %6 : vector<16x8xf32> to vector<16x8xbf16>
    %62 = arith.truncf %52 : vector<16x16xf32> to vector<16x16xbf16>
    %63 = arith.extf %54 : vector<1x128xbf16> to vector<1x128xf32>
    %64 = vector.broadcast %8 : vector<16x1xf32> to vector<16x128xf32>
    %65 = vector.broadcast %63 : vector<1x128xf32> to vector<16x128xf32>
    %66 = arith.mulf %64, %65 : vector<16x128xf32>
    %67 = vector.broadcast %10 : vector<1x16xf32> to vector<16x16xf32>
    %68 = arith.mulf %52, %67 : vector<16x16xf32>
    %cst_48 = arith.constant dense<0.000000e+00> : vector<16xf32>
    %69 = vector.multi_reduction <add>, %68, %cst_48 [1] : vector<16x16xf32> to vector<16xf32>
    %70 = vector.shape_cast %69 : vector<16xf32> to vector<16x1xf32>
    %71 = arith.extf %58 : vector<1x128xbf16> to vector<1x128xf32>
    %72 = vector.broadcast %70 : vector<16x1xf32> to vector<16x128xf32>
    %73 = vector.broadcast %71 : vector<1x128xf32> to vector<16x128xf32>
    %74 = arith.mulf %72, %73 : vector<16x128xf32>
    %cst_49 = arith.constant dense<0.000000e+00> : vector<16x8xf32>
    %75 = tpu.matmul %62, %61, %cst_49 {dimension_numbers = #tpu.dot_dimension_numbers<[1], [0], [0], [1], [0, 0, 1, 1], [], []>} : vector<16x16xbf16>, vector<16x8xbf16>, vector<16x8xf32> -> vector<16x8xf32>
    %cst_50 = arith.constant dense<0.000000e+00> : vector<16x128xf32>
    %76 = tpu.matmul %61, %56, %cst_50 {dimension_numbers = #tpu.dot_dimension_numbers<[1], [0], [0], [1], [0, 0, 1, 1], [], []>} : vector<16x8xbf16>, vector<8x128xbf16>, vector<16x128xf32> -> vector<16x128xf32>
    %77 = arith.addf %66, %76 : vector<16x128xf32>
    %78 = arith.addf %77, %74 : vector<16x128xf32>
    %79 = arith.truncf %75 : vector<16x8xf32> to vector<16x8xbf16>
    %cst_51 = arith.constant dense<0.000000e+00> : vector<16x128xf32>
    %80 = tpu.matmul %79, %60, %cst_51 {dimension_numbers = #tpu.dot_dimension_numbers<[1], [0], [0], [1], [0, 0, 1, 1], [], []>} : vector<16x8xbf16>, vector<8x128xbf16>, vector<16x128xf32> -> vector<16x128xf32>
    %81 = arith.addf %78, %80 : vector<16x128xf32>
    %82 = arith.extf %1 : vector<16x128xbf16> to vector<16x128xf32>
    %83 = arith.mulf %81, %82 : vector<16x128xf32>
    %84 = arith.truncf %83 : vector<16x128xf32> to vector<16x128xbf16>
    %cst_52 = arith.constant dense<0.000000e+00> : vector<16x8xf32>
    %85 = tpu.matmul %84, %3, %cst_52 {dimension_numbers = #tpu.dot_dimension_numbers<[1], [0], [0], [1], [0, 0, 1, 1], [], []>} : vector<16x128xbf16>, vector<128x8xbf16>, vector<16x8xf32> -> vector<16x8xf32>
    %c0_53 = arith.constant 0 : index
    %c0_54 = arith.constant 0 : index
    %c0_55 = arith.constant 0 : index
    %86 = vector.load %arg4[%c0_53, %c0_54, %c0_55] : memref<1x4x8xf32, #tpu.memory_space<vmem>>, vector<1x1x8xf32>
    %87 = vector.shape_cast %86 : vector<1x1x8xf32> to vector<1x8xf32>
    %88 = vector.broadcast %87 : vector<1x8xf32> to vector<16x8xf32>
    %89 = arith.addf %85, %88 : vector<16x8xf32>
    %90 = arith.negf %89 : vector<16x8xf32>
    %91 = math.exp %90 : vector<16x8xf32>
    %cst_56 = arith.constant 1.000000e+00 : f32
    %92 = vector.broadcast %cst_56 : f32 to vector<16x8xf32>
    %93 = arith.addf %92, %91 : vector<16x8xf32>
    %94 = arith.divf %92, %93 : vector<16x8xf32>
    %cst_57 = arith.constant dense<0.000000e+00> : vector<16x8xf32>
    %95 = tpu.matmul %84, %4, %cst_57 {dimension_numbers = #tpu.dot_dimension_numbers<[1], [0], [0], [1], [0, 0, 1, 1], [], []>} : vector<16x128xbf16>, vector<128x8xbf16>, vector<16x8xf32> -> vector<16x8xf32>
    %c0_58 = arith.constant 0 : index
    %c0_59 = arith.constant 0 : index
    %c0_60 = arith.constant 0 : index
    %96 = vector.load %arg5[%c0_58, %c0_59, %c0_60] : memref<1x4x8xf32, #tpu.memory_space<vmem>>, vector<1x1x8xf32>
    %97 = vector.shape_cast %96 : vector<1x1x8xf32> to vector<1x8xf32>
    %98 = vector.broadcast %97 : vector<1x8xf32> to vector<16x8xf32>
    %99 = arith.addf %95, %98 : vector<16x8xf32>
    %100 = arith.negf %99 : vector<16x8xf32>
    %101 = math.exp %100 : vector<16x8xf32>
    %cst_61 = arith.constant 1.000000e+00 : f32
    %102 = vector.broadcast %cst_61 : f32 to vector<16x8xf32>
    %103 = arith.addf %102, %101 : vector<16x8xf32>
    %104 = arith.divf %102, %103 : vector<16x8xf32>
    %c0_62 = arith.constant 0 : index
    %c0_63 = arith.constant 0 : index
    %c0_64 = arith.constant 0 : index
    %105 = vector.load %arg23[%c0_62, %c0_63, %c0_64] : memref<1x1x8xf32, #tpu.memory_space<vmem>>, vector<1x1x8xf32>
    %106 = vector.shape_cast %105 : vector<1x1x8xf32> to vector<1x8xf32>
    %c0_65 = arith.constant 0 : index
    %c0_66 = arith.constant 0 : index
    %c0_67 = arith.constant 0 : index
    %107 = vector.load %arg24[%c0_65, %c0_66, %c0_67] : memref<1x1x8xf32, #tpu.memory_space<vmem>>, vector<1x1x8xf32>
    %108 = vector.shape_cast %107 : vector<1x1x8xf32> to vector<1x8xf32>
    %109 = vector.broadcast %106 : vector<1x8xf32> to vector<16x8xf32>
    %110 = arith.mulf %32, %109 : vector<16x8xf32>
    %111 = vector.broadcast %108 : vector<1x8xf32> to vector<16x8xf32>
    %112 = arith.addf %110, %111 : vector<16x8xf32>
    %113 = arith.truncf %112 : vector<16x8xf32> to vector<16x8xbf16>
    %cst_68 = arith.constant dense<0.000000e+00> : vector<16x16xf32>
    %114 = tpu.matmul %113, %113, %cst_68 {dimension_numbers = #tpu.dot_dimension_numbers<[1], [1], [0], [0], [0, 0, 1, 0], [], []>} : vector<16x8xbf16>, vector<16x8xbf16>, vector<16x16xf32> -> vector<16x16xf32>
    %cst_69 = arith.constant dense<0xFF800000> : vector<16xf32>
    %115 = vector.multi_reduction <maximumf>, %114, %cst_69 [1] : vector<16x16xf32> to vector<16xf32>
    %116 = vector.shape_cast %115 : vector<16xf32> to vector<16x1xf32>
    %117 = vector.broadcast %116 : vector<16x1xf32> to vector<16x16xf32>
    %118 = arith.subf %114, %117 : vector<16x16xf32>
    %119 = math.exp %118 : vector<16x16xf32>
    %cst_70 = arith.constant dense<0.000000e+00> : vector<16xf32>
    %120 = vector.multi_reduction <add>, %119, %cst_70 [1] : vector<16x16xf32> to vector<16xf32>
    %121 = vector.shape_cast %120 : vector<16xf32> to vector<16x1xf32>
    %122 = tpu.reciprocal %121 {approx = true} : vector<16x1xf32> -> vector<16x1xf32>
    %123 = vector.broadcast %122 : vector<16x1xf32> to vector<16x16xf32>
    %124 = arith.mulf %119, %123 : vector<16x16xf32>
    %125 = arith.mulf %94, %6 : vector<16x8xf32>
    %c0_71 = arith.constant 0 : index
    %c0_72 = arith.constant 0 : index
    %c0_73 = arith.constant 0 : index
    %126 = vector.load %arg19[%c0_71, %c0_72, %c0_73] : memref<1x1x64xbf16, #tpu.memory_space<vmem>>, vector<1x1x64xbf16>
    %127 = vector.shape_cast %126 : vector<1x1x64xbf16> to vector<1x64xbf16>
    %c0_74 = arith.constant 0 : index
    %c0_75 = arith.constant 0 : index
    %c0_76 = arith.constant 0 : index
    %128 = vector.load %arg20[%c0_74, %c0_75, %c0_76] : memref<1x8x64xbf16, #tpu.memory_space<vmem>>, vector<1x8x64xbf16>
    %129 = vector.shape_cast %128 : vector<1x8x64xbf16> to vector<8x64xbf16>
    %c0_77 = arith.constant 0 : index
    %c0_78 = arith.constant 0 : index
    %c0_79 = arith.constant 0 : index
    %130 = vector.load %arg21[%c0_77, %c0_78, %c0_79] : memref<1x1x64xbf16, #tpu.memory_space<vmem>>, vector<1x1x64xbf16>
    %131 = vector.shape_cast %130 : vector<1x1x64xbf16> to vector<1x64xbf16>
    %c0_80 = arith.constant 0 : index
    %c0_81 = arith.constant 0 : index
    %c0_82 = arith.constant 0 : index
    %132 = vector.load %arg22[%c0_80, %c0_81, %c0_82] : memref<1x8x64xbf16, #tpu.memory_space<vmem>>, vector<1x8x64xbf16>
    %133 = vector.shape_cast %132 : vector<1x8x64xbf16> to vector<8x64xbf16>
    %134 = arith.truncf %125 : vector<16x8xf32> to vector<16x8xbf16>
    %135 = arith.truncf %124 : vector<16x16xf32> to vector<16x16xbf16>
    %136 = arith.extf %127 : vector<1x64xbf16> to vector<1x64xf32>
    %137 = vector.broadcast %8 : vector<16x1xf32> to vector<16x64xf32>
    %138 = vector.broadcast %136 : vector<1x64xf32> to vector<16x64xf32>
    %139 = arith.mulf %137, %138 : vector<16x64xf32>
    %140 = vector.broadcast %10 : vector<1x16xf32> to vector<16x16xf32>
    %141 = arith.mulf %124, %140 : vector<16x16xf32>
    %cst_83 = arith.constant dense<0.000000e+00> : vector<16xf32>
    %142 = vector.multi_reduction <add>, %141, %cst_83 [1] : vector<16x16xf32> to vector<16xf32>
    %143 = vector.shape_cast %142 : vector<16xf32> to vector<16x1xf32>
    %144 = arith.extf %131 : vector<1x64xbf16> to vector<1x64xf32>
    %145 = vector.broadcast %143 : vector<16x1xf32> to vector<16x64xf32>
    %146 = vector.broadcast %144 : vector<1x64xf32> to vector<16x64xf32>
    %147 = arith.mulf %145, %146 : vector<16x64xf32>
    %cst_84 = arith.constant dense<0.000000e+00> : vector<16x8xf32>
    %148 = tpu.matmul %135, %134, %cst_84 {dimension_numbers = #tpu.dot_dimension_numbers<[1], [0], [0], [1], [0, 0, 1, 1], [], []>} : vector<16x16xbf16>, vector<16x8xbf16>, vector<16x8xf32> -> vector<16x8xf32>
    %cst_85 = arith.constant dense<0.000000e+00> : vector<16x64xf32>
    %149 = tpu.matmul %134, %129, %cst_85 {dimension_numbers = #tpu.dot_dimension_numbers<[1], [0], [0], [1], [0, 0, 1, 1], [], []>} : vector<16x8xbf16>, vector<8x64xbf16>, vector<16x64xf32> -> vector<16x64xf32>
    %150 = arith.addf %139, %149 : vector<16x64xf32>
    %151 = arith.addf %150, %147 : vector<16x64xf32>
    %152 = arith.truncf %148 : vector<16x8xf32> to vector<16x8xbf16>
    %cst_86 = arith.constant dense<0.000000e+00> : vector<16x64xf32>
    %153 = tpu.matmul %152, %133, %cst_86 {dimension_numbers = #tpu.dot_dimension_numbers<[1], [0], [0], [1], [0, 0, 1, 1], [], []>} : vector<16x8xbf16>, vector<8x64xbf16>, vector<16x64xf32> -> vector<16x64xf32>
    %154 = arith.addf %151, %153 : vector<16x64xf32>
    %155 = arith.extf %2 : vector<16x64xbf16> to vector<16x64xf32>
    %156 = arith.mulf %154, %155 : vector<16x64xf32>
    %157 = arith.truncf %156 : vector<16x64xf32> to vector<16x64xbf16>
    %cst_87 = arith.constant dense<0.000000e+00> : vector<16x8xf32>
    %158 = tpu.matmul %157, %5, %cst_87 {dimension_numbers = #tpu.dot_dimension_numbers<[1], [0], [0], [1], [0, 0, 1, 1], [], []>} : vector<16x64xbf16>, vector<64x8xbf16>, vector<16x8xf32> -> vector<16x8xf32>
    %c0_88 = arith.constant 0 : index
    %c0_89 = arith.constant 0 : index
    %c0_90 = arith.constant 0 : index
    %159 = vector.load %arg6[%c0_88, %c0_89, %c0_90] : memref<1x4x8xf32, #tpu.memory_space<vmem>>, vector<1x1x8xf32>
    %160 = vector.shape_cast %159 : vector<1x1x8xf32> to vector<1x8xf32>
    %161 = vector.broadcast %160 : vector<1x8xf32> to vector<16x8xf32>
    %162 = arith.addf %158, %161 : vector<16x8xf32>
    %163 = math.tanh %162 : vector<16x8xf32>
    %164 = arith.mulf %104, %6 : vector<16x8xf32>
    %cst_91 = arith.constant 1.000000e+00 : f32
    %165 = vector.broadcast %cst_91 : f32 to vector<16x8xf32>
    %166 = arith.subf %165, %104 : vector<16x8xf32>
    %167 = arith.mulf %166, %163 : vector<16x8xf32>
    %168 = arith.addf %164, %167 : vector<16x8xf32>
    %c0_92 = arith.constant 0 : index
    %c1 = arith.constant 1 : index
    %c0_93 = arith.constant 0 : index
    %c0_94 = arith.constant 0 : index
    %169 = vector.load %arg1[%c0_92, %c1, %c0_93, %c0_94] : memref<1x4x16x1xf32, #tpu.memory_space<vmem>>, vector<1x1x16x1xf32>
    %170 = vector.shape_cast %169 : vector<1x1x16x1xf32> to vector<16x1xf32>
    %c0_95 = arith.constant 0 : index
    %c1_96 = arith.constant 1 : index
    %c0_97 = arith.constant 0 : index
    %c0_98 = arith.constant 0 : index
    %171 = vector.load %arg2[%c0_95, %c1_96, %c0_97, %c0_98] : memref<1x4x1x16xf32, #tpu.memory_space<vmem>>, vector<1x1x1x16xf32>
    %172 = vector.shape_cast %171 : vector<1x1x1x16xf32> to vector<1x16xf32>
    %c0_99 = arith.constant 0 : index
    %c1_100 = arith.constant 1 : index
    %c0_101 = arith.constant 0 : index
    %173 = vector.load %arg3[%c0_99, %c1_100, %c0_101] : memref<1x4x8xf32, #tpu.memory_space<vmem>>, vector<1x1x8xf32>
    %174 = vector.shape_cast %173 : vector<1x1x8xf32> to vector<1x8xf32>
    %175 = vector.broadcast %174 : vector<1x8xf32> to vector<16x8xf32>
    %176 = arith.addf %0, %175 : vector<16x8xf32>
    %cst_102 = arith.constant dense<0.000000e+00> : vector<16xf32>
    %177 = vector.multi_reduction <add>, %176, %cst_102 [1] : vector<16x8xf32> to vector<16xf32>
    %178 = vector.shape_cast %177 : vector<16xf32> to vector<16x1xf32>
    %cst_103 = arith.constant 8.000000e+00 : f32
    %179 = vector.broadcast %cst_103 : f32 to vector<16x1xf32>
    %180 = arith.divf %178, %179 : vector<16x1xf32>
    %181 = vector.broadcast %180 : vector<16x1xf32> to vector<16x8xf32>
    %182 = arith.subf %176, %181 : vector<16x8xf32>
    %183 = arith.mulf %182, %182 : vector<16x8xf32>
    %cst_104 = arith.constant dense<0.000000e+00> : vector<16xf32>
    %184 = vector.multi_reduction <add>, %183, %cst_104 [1] : vector<16x8xf32> to vector<16xf32>
    %185 = vector.shape_cast %184 : vector<16xf32> to vector<16x1xf32>
    %cst_105 = arith.constant 8.000000e+00 : f32
    %186 = vector.broadcast %cst_105 : f32 to vector<16x1xf32>
    %187 = arith.divf %185, %186 : vector<16x1xf32>
    %188 = vector.broadcast %180 : vector<16x1xf32> to vector<16x8xf32>
    %189 = arith.subf %176, %188 : vector<16x8xf32>
    %cst_106 = arith.constant 9.99999996E-13 : f32
    %190 = vector.broadcast %cst_106 : f32 to vector<16x1xf32>
    %191 = arith.addf %187, %190 : vector<16x1xf32>
    %192 = math.rsqrt %191 : vector<16x1xf32>
    %193 = vector.broadcast %192 : vector<16x1xf32> to vector<16x8xf32>
    %194 = arith.mulf %189, %193 : vector<16x8xf32>
    %c0_107 = arith.constant 0 : index
    %c0_108 = arith.constant 0 : index
    %c0_109 = arith.constant 0 : index
    %195 = vector.load %arg17[%c0_107, %c0_108, %c0_109] : memref<1x1x8xf32, #tpu.memory_space<vmem>>, vector<1x1x8xf32>
    %196 = vector.shape_cast %195 : vector<1x1x8xf32> to vector<1x8xf32>
    %c0_110 = arith.constant 0 : index
    %c0_111 = arith.constant 0 : index
    %c0_112 = arith.constant 0 : index
    %197 = vector.load %arg18[%c0_110, %c0_111, %c0_112] : memref<1x1x8xf32, #tpu.memory_space<vmem>>, vector<1x1x8xf32>
    %198 = vector.shape_cast %197 : vector<1x1x8xf32> to vector<1x8xf32>
    %199 = vector.broadcast %196 : vector<1x8xf32> to vector<16x8xf32>
    %200 = arith.mulf %194, %199 : vector<16x8xf32>
    %201 = vector.broadcast %198 : vector<1x8xf32> to vector<16x8xf32>
    %202 = arith.addf %200, %201 : vector<16x8xf32>
    %203 = arith.truncf %202 : vector<16x8xf32> to vector<16x8xbf16>
    %cst_113 = arith.constant dense<0.000000e+00> : vector<16x16xf32>
    %204 = tpu.matmul %203, %203, %cst_113 {dimension_numbers = #tpu.dot_dimension_numbers<[1], [1], [0], [0], [0, 0, 1, 0], [], []>} : vector<16x8xbf16>, vector<16x8xbf16>, vector<16x16xf32> -> vector<16x16xf32>
    %cst_114 = arith.constant dense<0xFF800000> : vector<16xf32>
    %205 = vector.multi_reduction <maximumf>, %204, %cst_114 [1] : vector<16x16xf32> to vector<16xf32>
    %206 = vector.shape_cast %205 : vector<16xf32> to vector<16x1xf32>
    %207 = vector.broadcast %206 : vector<16x1xf32> to vector<16x16xf32>
    %208 = arith.subf %204, %207 : vector<16x16xf32>
    %209 = math.exp %208 : vector<16x16xf32>
    %cst_115 = arith.constant dense<0.000000e+00> : vector<16xf32>
    %210 = vector.multi_reduction <add>, %209, %cst_115 [1] : vector<16x16xf32> to vector<16xf32>
    %211 = vector.shape_cast %210 : vector<16xf32> to vector<16x1xf32>
    %212 = tpu.reciprocal %211 {approx = true} : vector<16x1xf32> -> vector<16x1xf32>
    %213 = vector.broadcast %212 : vector<16x1xf32> to vector<16x16xf32>
    %214 = arith.mulf %209, %213 : vector<16x16xf32>
    %c0_116 = arith.constant 0 : index
    %c0_117 = arith.constant 0 : index
    %c0_118 = arith.constant 0 : index
    %215 = vector.load %arg13[%c0_116, %c0_117, %c0_118] : memref<1x1x128xbf16, #tpu.memory_space<vmem>>, vector<1x1x128xbf16>
    %216 = vector.shape_cast %215 : vector<1x1x128xbf16> to vector<1x128xbf16>
    %c0_119 = arith.constant 0 : index
    %c0_120 = arith.constant 0 : index
    %c0_121 = arith.constant 0 : index
    %217 = vector.load %arg14[%c0_119, %c0_120, %c0_121] : memref<1x8x128xbf16, #tpu.memory_space<vmem>>, vector<1x8x128xbf16>
    %218 = vector.shape_cast %217 : vector<1x8x128xbf16> to vector<8x128xbf16>
    %c0_122 = arith.constant 0 : index
    %c0_123 = arith.constant 0 : index
    %c0_124 = arith.constant 0 : index
    %219 = vector.load %arg15[%c0_122, %c0_123, %c0_124] : memref<1x1x128xbf16, #tpu.memory_space<vmem>>, vector<1x1x128xbf16>
    %220 = vector.shape_cast %219 : vector<1x1x128xbf16> to vector<1x128xbf16>
    %c0_125 = arith.constant 0 : index
    %c0_126 = arith.constant 0 : index
    %c0_127 = arith.constant 0 : index
    %221 = vector.load %arg16[%c0_125, %c0_126, %c0_127] : memref<1x8x128xbf16, #tpu.memory_space<vmem>>, vector<1x8x128xbf16>
    %222 = vector.shape_cast %221 : vector<1x8x128xbf16> to vector<8x128xbf16>
    %223 = arith.truncf %168 : vector<16x8xf32> to vector<16x8xbf16>
    %224 = arith.truncf %214 : vector<16x16xf32> to vector<16x16xbf16>
    %225 = arith.extf %216 : vector<1x128xbf16> to vector<1x128xf32>
    %226 = vector.broadcast %170 : vector<16x1xf32> to vector<16x128xf32>
    %227 = vector.broadcast %225 : vector<1x128xf32> to vector<16x128xf32>
    %228 = arith.mulf %226, %227 : vector<16x128xf32>
    %229 = vector.broadcast %172 : vector<1x16xf32> to vector<16x16xf32>
    %230 = arith.mulf %214, %229 : vector<16x16xf32>
    %cst_128 = arith.constant dense<0.000000e+00> : vector<16xf32>
    %231 = vector.multi_reduction <add>, %230, %cst_128 [1] : vector<16x16xf32> to vector<16xf32>
    %232 = vector.shape_cast %231 : vector<16xf32> to vector<16x1xf32>
    %233 = arith.extf %220 : vector<1x128xbf16> to vector<1x128xf32>
    %234 = vector.broadcast %232 : vector<16x1xf32> to vector<16x128xf32>
    %235 = vector.broadcast %233 : vector<1x128xf32> to vector<16x128xf32>
    %236 = arith.mulf %234, %235 : vector<16x128xf32>
    %cst_129 = arith.constant dense<0.000000e+00> : vector<16x8xf32>
    %237 = tpu.matmul %224, %223, %cst_129 {dimension_numbers = #tpu.dot_dimension_numbers<[1], [0], [0], [1], [0, 0, 1, 1], [], []>} : vector<16x16xbf16>, vector<16x8xbf16>, vector<16x8xf32> -> vector<16x8xf32>
    %cst_130 = arith.constant dense<0.000000e+00> : vector<16x128xf32>
    %238 = tpu.matmul %223, %218, %cst_130 {dimension_numbers = #tpu.dot_dimension_numbers<[1], [0], [0], [1], [0, 0, 1, 1], [], []>} : vector<16x8xbf16>, vector<8x128xbf16>, vector<16x128xf32> -> vector<16x128xf32>
    %239 = arith.addf %228, %238 : vector<16x128xf32>
    %240 = arith.addf %239, %236 : vector<16x128xf32>
    %241 = arith.truncf %237 : vector<16x8xf32> to vector<16x8xbf16>
    %cst_131 = arith.constant dense<0.000000e+00> : vector<16x128xf32>
    %242 = tpu.matmul %241, %222, %cst_131 {dimension_numbers = #tpu.dot_dimension_numbers<[1], [0], [0], [1], [0, 0, 1, 1], [], []>} : vector<16x8xbf16>, vector<8x128xbf16>, vector<16x128xf32> -> vector<16x128xf32>
    %243 = arith.addf %240, %242 : vector<16x128xf32>
    %244 = arith.extf %1 : vector<16x128xbf16> to vector<16x128xf32>
    %245 = arith.mulf %243, %244 : vector<16x128xf32>
    %246 = arith.truncf %245 : vector<16x128xf32> to vector<16x128xbf16>
    %cst_132 = arith.constant dense<0.000000e+00> : vector<16x8xf32>
    %247 = tpu.matmul %246, %3, %cst_132 {dimension_numbers = #tpu.dot_dimension_numbers<[1], [0], [0], [1], [0, 0, 1, 1], [], []>} : vector<16x128xbf16>, vector<128x8xbf16>, vector<16x8xf32> -> vector<16x8xf32>
    %c0_133 = arith.constant 0 : index
    %c1_134 = arith.constant 1 : index
    %c0_135 = arith.constant 0 : index
    %248 = vector.load %arg4[%c0_133, %c1_134, %c0_135] : memref<1x4x8xf32, #tpu.memory_space<vmem>>, vector<1x1x8xf32>
    %249 = vector.shape_cast %248 : vector<1x1x8xf32> to vector<1x8xf32>
    %250 = vector.broadcast %249 : vector<1x8xf32> to vector<16x8xf32>
    %251 = arith.addf %247, %250 : vector<16x8xf32>
    %252 = arith.negf %251 : vector<16x8xf32>
    %253 = math.exp %252 : vector<16x8xf32>
    %cst_136 = arith.constant 1.000000e+00 : f32
    %254 = vector.broadcast %cst_136 : f32 to vector<16x8xf32>
    %255 = arith.addf %254, %253 : vector<16x8xf32>
    %256 = arith.divf %254, %255 : vector<16x8xf32>
    %cst_137 = arith.constant dense<0.000000e+00> : vector<16x8xf32>
    %257 = tpu.matmul %246, %4, %cst_137 {dimension_numbers = #tpu.dot_dimension_numbers<[1], [0], [0], [1], [0, 0, 1, 1], [], []>} : vector<16x128xbf16>, vector<128x8xbf16>, vector<16x8xf32> -> vector<16x8xf32>
    %c0_138 = arith.constant 0 : index
    %c1_139 = arith.constant 1 : index
    %c0_140 = arith.constant 0 : index
    %258 = vector.load %arg5[%c0_138, %c1_139, %c0_140] : memref<1x4x8xf32, #tpu.memory_space<vmem>>, vector<1x1x8xf32>
    %259 = vector.shape_cast %258 : vector<1x1x8xf32> to vector<1x8xf32>
    %260 = vector.broadcast %259 : vector<1x8xf32> to vector<16x8xf32>
    %261 = arith.addf %257, %260 : vector<16x8xf32>
    %262 = arith.negf %261 : vector<16x8xf32>
    %263 = math.exp %262 : vector<16x8xf32>
    %cst_141 = arith.constant 1.000000e+00 : f32
    %264 = vector.broadcast %cst_141 : f32 to vector<16x8xf32>
    %265 = arith.addf %264, %263 : vector<16x8xf32>
    %266 = arith.divf %264, %265 : vector<16x8xf32>
    %c0_142 = arith.constant 0 : index
    %c0_143 = arith.constant 0 : index
    %c0_144 = arith.constant 0 : index
    %267 = vector.load %arg23[%c0_142, %c0_143, %c0_144] : memref<1x1x8xf32, #tpu.memory_space<vmem>>, vector<1x1x8xf32>
    %268 = vector.shape_cast %267 : vector<1x1x8xf32> to vector<1x8xf32>
    %c0_145 = arith.constant 0 : index
    %c0_146 = arith.constant 0 : index
    %c0_147 = arith.constant 0 : index
    %269 = vector.load %arg24[%c0_145, %c0_146, %c0_147] : memref<1x1x8xf32, #tpu.memory_space<vmem>>, vector<1x1x8xf32>
    %270 = vector.shape_cast %269 : vector<1x1x8xf32> to vector<1x8xf32>
    %271 = vector.broadcast %268 : vector<1x8xf32> to vector<16x8xf32>
    %272 = arith.mulf %194, %271 : vector<16x8xf32>
    %273 = vector.broadcast %270 : vector<1x8xf32> to vector<16x8xf32>
    %274 = arith.addf %272, %273 : vector<16x8xf32>
    %275 = arith.truncf %274 : vector<16x8xf32> to vector<16x8xbf16>
    %cst_148 = arith.constant dense<0.000000e+00> : vector<16x16xf32>
    %276 = tpu.matmul %275, %275, %cst_148 {dimension_numbers = #tpu.dot_dimension_numbers<[1], [1], [0], [0], [0, 0, 1, 0], [], []>} : vector<16x8xbf16>, vector<16x8xbf16>, vector<16x16xf32> -> vector<16x16xf32>
    %cst_149 = arith.constant dense<0xFF800000> : vector<16xf32>
    %277 = vector.multi_reduction <maximumf>, %276, %cst_149 [1] : vector<16x16xf32> to vector<16xf32>
    %278 = vector.shape_cast %277 : vector<16xf32> to vector<16x1xf32>
    %279 = vector.broadcast %278 : vector<16x1xf32> to vector<16x16xf32>
    %280 = arith.subf %276, %279 : vector<16x16xf32>
    %281 = math.exp %280 : vector<16x16xf32>
    %cst_150 = arith.constant dense<0.000000e+00> : vector<16xf32>
    %282 = vector.multi_reduction <add>, %281, %cst_150 [1] : vector<16x16xf32> to vector<16xf32>
    %283 = vector.shape_cast %282 : vector<16xf32> to vector<16x1xf32>
    %284 = tpu.reciprocal %283 {approx = true} : vector<16x1xf32> -> vector<16x1xf32>
    %285 = vector.broadcast %284 : vector<16x1xf32> to vector<16x16xf32>
    %286 = arith.mulf %281, %285 : vector<16x16xf32>
    %287 = arith.mulf %256, %168 : vector<16x8xf32>
    %c0_151 = arith.constant 0 : index
    %c0_152 = arith.constant 0 : index
    %c0_153 = arith.constant 0 : index
    %288 = vector.load %arg19[%c0_151, %c0_152, %c0_153] : memref<1x1x64xbf16, #tpu.memory_space<vmem>>, vector<1x1x64xbf16>
    %289 = vector.shape_cast %288 : vector<1x1x64xbf16> to vector<1x64xbf16>
    %c0_154 = arith.constant 0 : index
    %c0_155 = arith.constant 0 : index
    %c0_156 = arith.constant 0 : index
    %290 = vector.load %arg20[%c0_154, %c0_155, %c0_156] : memref<1x8x64xbf16, #tpu.memory_space<vmem>>, vector<1x8x64xbf16>
    %291 = vector.shape_cast %290 : vector<1x8x64xbf16> to vector<8x64xbf16>
    %c0_157 = arith.constant 0 : index
    %c0_158 = arith.constant 0 : index
    %c0_159 = arith.constant 0 : index
    %292 = vector.load %arg21[%c0_157, %c0_158, %c0_159] : memref<1x1x64xbf16, #tpu.memory_space<vmem>>, vector<1x1x64xbf16>
    %293 = vector.shape_cast %292 : vector<1x1x64xbf16> to vector<1x64xbf16>
    %c0_160 = arith.constant 0 : index
    %c0_161 = arith.constant 0 : index
    %c0_162 = arith.constant 0 : index
    %294 = vector.load %arg22[%c0_160, %c0_161, %c0_162] : memref<1x8x64xbf16, #tpu.memory_space<vmem>>, vector<1x8x64xbf16>
    %295 = vector.shape_cast %294 : vector<1x8x64xbf16> to vector<8x64xbf16>
    %296 = arith.truncf %287 : vector<16x8xf32> to vector<16x8xbf16>
    %297 = arith.truncf %286 : vector<16x16xf32> to vector<16x16xbf16>
    %298 = arith.extf %289 : vector<1x64xbf16> to vector<1x64xf32>
    %299 = vector.broadcast %170 : vector<16x1xf32> to vector<16x64xf32>
    %300 = vector.broadcast %298 : vector<1x64xf32> to vector<16x64xf32>
    %301 = arith.mulf %299, %300 : vector<16x64xf32>
    %302 = vector.broadcast %172 : vector<1x16xf32> to vector<16x16xf32>
    %303 = arith.mulf %286, %302 : vector<16x16xf32>
    %cst_163 = arith.constant dense<0.000000e+00> : vector<16xf32>
    %304 = vector.multi_reduction <add>, %303, %cst_163 [1] : vector<16x16xf32> to vector<16xf32>
    %305 = vector.shape_cast %304 : vector<16xf32> to vector<16x1xf32>
    %306 = arith.extf %293 : vector<1x64xbf16> to vector<1x64xf32>
    %307 = vector.broadcast %305 : vector<16x1xf32> to vector<16x64xf32>
    %308 = vector.broadcast %306 : vector<1x64xf32> to vector<16x64xf32>
    %309 = arith.mulf %307, %308 : vector<16x64xf32>
    %cst_164 = arith.constant dense<0.000000e+00> : vector<16x8xf32>
    %310 = tpu.matmul %297, %296, %cst_164 {dimension_numbers = #tpu.dot_dimension_numbers<[1], [0], [0], [1], [0, 0, 1, 1], [], []>} : vector<16x16xbf16>, vector<16x8xbf16>, vector<16x8xf32> -> vector<16x8xf32>
    %cst_165 = arith.constant dense<0.000000e+00> : vector<16x64xf32>
    %311 = tpu.matmul %296, %291, %cst_165 {dimension_numbers = #tpu.dot_dimension_numbers<[1], [0], [0], [1], [0, 0, 1, 1], [], []>} : vector<16x8xbf16>, vector<8x64xbf16>, vector<16x64xf32> -> vector<16x64xf32>
    %312 = arith.addf %301, %311 : vector<16x64xf32>
    %313 = arith.addf %312, %309 : vector<16x64xf32>
    %314 = arith.truncf %310 : vector<16x8xf32> to vector<16x8xbf16>
    %cst_166 = arith.constant dense<0.000000e+00> : vector<16x64xf32>
    %315 = tpu.matmul %314, %295, %cst_166 {dimension_numbers = #tpu.dot_dimension_numbers<[1], [0], [0], [1], [0, 0, 1, 1], [], []>} : vector<16x8xbf16>, vector<8x64xbf16>, vector<16x64xf32> -> vector<16x64xf32>
    %316 = arith.addf %313, %315 : vector<16x64xf32>
    %317 = arith.extf %2 : vector<16x64xbf16> to vector<16x64xf32>
    %318 = arith.mulf %316, %317 : vector<16x64xf32>
    %319 = arith.truncf %318 : vector<16x64xf32> to vector<16x64xbf16>
    %cst_167 = arith.constant dense<0.000000e+00> : vector<16x8xf32>
    %320 = tpu.matmul %319, %5, %cst_167 {dimension_numbers = #tpu.dot_dimension_numbers<[1], [0], [0], [1], [0, 0, 1, 1], [], []>} : vector<16x64xbf16>, vector<64x8xbf16>, vector<16x8xf32> -> vector<16x8xf32>
    %c0_168 = arith.constant 0 : index
    %c1_169 = arith.constant 1 : index
    %c0_170 = arith.constant 0 : index
    %321 = vector.load %arg6[%c0_168, %c1_169, %c0_170] : memref<1x4x8xf32, #tpu.memory_space<vmem>>, vector<1x1x8xf32>
    %322 = vector.shape_cast %321 : vector<1x1x8xf32> to vector<1x8xf32>
    %323 = vector.broadcast %322 : vector<1x8xf32> to vector<16x8xf32>
    %324 = arith.addf %320, %323 : vector<16x8xf32>
    %325 = math.tanh %324 : vector<16x8xf32>
    %326 = arith.mulf %266, %168 : vector<16x8xf32>
    %cst_171 = arith.constant 1.000000e+00 : f32
    %327 = vector.broadcast %cst_171 : f32 to vector<16x8xf32>
    %328 = arith.subf %327, %266 : vector<16x8xf32>
    %329 = arith.mulf %328, %325 : vector<16x8xf32>
    %330 = arith.addf %326, %329 : vector<16x8xf32>
    %c0_172 = arith.constant 0 : index
    %c2 = arith.constant 2 : index
    %c0_173 = arith.constant 0 : index
    %c0_174 = arith.constant 0 : index
    %331 = vector.load %arg1[%c0_172, %c2, %c0_173, %c0_174] : memref<1x4x16x1xf32, #tpu.memory_space<vmem>>, vector<1x1x16x1xf32>
    %332 = vector.shape_cast %331 : vector<1x1x16x1xf32> to vector<16x1xf32>
    %c0_175 = arith.constant 0 : index
    %c2_176 = arith.constant 2 : index
    %c0_177 = arith.constant 0 : index
    %c0_178 = arith.constant 0 : index
    %333 = vector.load %arg2[%c0_175, %c2_176, %c0_177, %c0_178] : memref<1x4x1x16xf32, #tpu.memory_space<vmem>>, vector<1x1x1x16xf32>
    %334 = vector.shape_cast %333 : vector<1x1x1x16xf32> to vector<1x16xf32>
    %c0_179 = arith.constant 0 : index
    %c2_180 = arith.constant 2 : index
    %c0_181 = arith.constant 0 : index
    %335 = vector.load %arg3[%c0_179, %c2_180, %c0_181] : memref<1x4x8xf32, #tpu.memory_space<vmem>>, vector<1x1x8xf32>
    %336 = vector.shape_cast %335 : vector<1x1x8xf32> to vector<1x8xf32>
    %337 = vector.broadcast %336 : vector<1x8xf32> to vector<16x8xf32>
    %338 = arith.addf %0, %337 : vector<16x8xf32>
    %cst_182 = arith.constant dense<0.000000e+00> : vector<16xf32>
    %339 = vector.multi_reduction <add>, %338, %cst_182 [1] : vector<16x8xf32> to vector<16xf32>
    %340 = vector.shape_cast %339 : vector<16xf32> to vector<16x1xf32>
    %cst_183 = arith.constant 8.000000e+00 : f32
    %341 = vector.broadcast %cst_183 : f32 to vector<16x1xf32>
    %342 = arith.divf %340, %341 : vector<16x1xf32>
    %343 = vector.broadcast %342 : vector<16x1xf32> to vector<16x8xf32>
    %344 = arith.subf %338, %343 : vector<16x8xf32>
    %345 = arith.mulf %344, %344 : vector<16x8xf32>
    %cst_184 = arith.constant dense<0.000000e+00> : vector<16xf32>
    %346 = vector.multi_reduction <add>, %345, %cst_184 [1] : vector<16x8xf32> to vector<16xf32>
    %347 = vector.shape_cast %346 : vector<16xf32> to vector<16x1xf32>
    %cst_185 = arith.constant 8.000000e+00 : f32
    %348 = vector.broadcast %cst_185 : f32 to vector<16x1xf32>
    %349 = arith.divf %347, %348 : vector<16x1xf32>
    %350 = vector.broadcast %342 : vector<16x1xf32> to vector<16x8xf32>
    %351 = arith.subf %338, %350 : vector<16x8xf32>
    %cst_186 = arith.constant 9.99999996E-13 : f32
    %352 = vector.broadcast %cst_186 : f32 to vector<16x1xf32>
    %353 = arith.addf %349, %352 : vector<16x1xf32>
    %354 = math.rsqrt %353 : vector<16x1xf32>
    %355 = vector.broadcast %354 : vector<16x1xf32> to vector<16x8xf32>
    %356 = arith.mulf %351, %355 : vector<16x8xf32>
    %c0_187 = arith.constant 0 : index
    %c0_188 = arith.constant 0 : index
    %c0_189 = arith.constant 0 : index
    %357 = vector.load %arg17[%c0_187, %c0_188, %c0_189] : memref<1x1x8xf32, #tpu.memory_space<vmem>>, vector<1x1x8xf32>
    %358 = vector.shape_cast %357 : vector<1x1x8xf32> to vector<1x8xf32>
    %c0_190 = arith.constant 0 : index
    %c0_191 = arith.constant 0 : index
    %c0_192 = arith.constant 0 : index
    %359 = vector.load %arg18[%c0_190, %c0_191, %c0_192] : memref<1x1x8xf32, #tpu.memory_space<vmem>>, vector<1x1x8xf32>
    %360 = vector.shape_cast %359 : vector<1x1x8xf32> to vector<1x8xf32>
    %361 = vector.broadcast %358 : vector<1x8xf32> to vector<16x8xf32>
    %362 = arith.mulf %356, %361 : vector<16x8xf32>
    %363 = vector.broadcast %360 : vector<1x8xf32> to vector<16x8xf32>
    %364 = arith.addf %362, %363 : vector<16x8xf32>
    %365 = arith.truncf %364 : vector<16x8xf32> to vector<16x8xbf16>
    %cst_193 = arith.constant dense<0.000000e+00> : vector<16x16xf32>
    %366 = tpu.matmul %365, %365, %cst_193 {dimension_numbers = #tpu.dot_dimension_numbers<[1], [1], [0], [0], [0, 0, 1, 0], [], []>} : vector<16x8xbf16>, vector<16x8xbf16>, vector<16x16xf32> -> vector<16x16xf32>
    %cst_194 = arith.constant dense<0xFF800000> : vector<16xf32>
    %367 = vector.multi_reduction <maximumf>, %366, %cst_194 [1] : vector<16x16xf32> to vector<16xf32>
    %368 = vector.shape_cast %367 : vector<16xf32> to vector<16x1xf32>
    %369 = vector.broadcast %368 : vector<16x1xf32> to vector<16x16xf32>
    %370 = arith.subf %366, %369 : vector<16x16xf32>
    %371 = math.exp %370 : vector<16x16xf32>
    %cst_195 = arith.constant dense<0.000000e+00> : vector<16xf32>
    %372 = vector.multi_reduction <add>, %371, %cst_195 [1] : vector<16x16xf32> to vector<16xf32>
    %373 = vector.shape_cast %372 : vector<16xf32> to vector<16x1xf32>
    %374 = tpu.reciprocal %373 {approx = true} : vector<16x1xf32> -> vector<16x1xf32>
    %375 = vector.broadcast %374 : vector<16x1xf32> to vector<16x16xf32>
    %376 = arith.mulf %371, %375 : vector<16x16xf32>
    %c0_196 = arith.constant 0 : index
    %c0_197 = arith.constant 0 : index
    %c0_198 = arith.constant 0 : index
    %377 = vector.load %arg13[%c0_196, %c0_197, %c0_198] : memref<1x1x128xbf16, #tpu.memory_space<vmem>>, vector<1x1x128xbf16>
    %378 = vector.shape_cast %377 : vector<1x1x128xbf16> to vector<1x128xbf16>
    %c0_199 = arith.constant 0 : index
    %c0_200 = arith.constant 0 : index
    %c0_201 = arith.constant 0 : index
    %379 = vector.load %arg14[%c0_199, %c0_200, %c0_201] : memref<1x8x128xbf16, #tpu.memory_space<vmem>>, vector<1x8x128xbf16>
    %380 = vector.shape_cast %379 : vector<1x8x128xbf16> to vector<8x128xbf16>
    %c0_202 = arith.constant 0 : index
    %c0_203 = arith.constant 0 : index
    %c0_204 = arith.constant 0 : index
    %381 = vector.load %arg15[%c0_202, %c0_203, %c0_204] : memref<1x1x128xbf16, #tpu.memory_space<vmem>>, vector<1x1x128xbf16>
    %382 = vector.shape_cast %381 : vector<1x1x128xbf16> to vector<1x128xbf16>
    %c0_205 = arith.constant 0 : index
    %c0_206 = arith.constant 0 : index
    %c0_207 = arith.constant 0 : index
    %383 = vector.load %arg16[%c0_205, %c0_206, %c0_207] : memref<1x8x128xbf16, #tpu.memory_space<vmem>>, vector<1x8x128xbf16>
    %384 = vector.shape_cast %383 : vector<1x8x128xbf16> to vector<8x128xbf16>
    %385 = arith.truncf %330 : vector<16x8xf32> to vector<16x8xbf16>
    %386 = arith.truncf %376 : vector<16x16xf32> to vector<16x16xbf16>
    %387 = arith.extf %378 : vector<1x128xbf16> to vector<1x128xf32>
    %388 = vector.broadcast %332 : vector<16x1xf32> to vector<16x128xf32>
    %389 = vector.broadcast %387 : vector<1x128xf32> to vector<16x128xf32>
    %390 = arith.mulf %388, %389 : vector<16x128xf32>
    %391 = vector.broadcast %334 : vector<1x16xf32> to vector<16x16xf32>
    %392 = arith.mulf %376, %391 : vector<16x16xf32>
    %cst_208 = arith.constant dense<0.000000e+00> : vector<16xf32>
    %393 = vector.multi_reduction <add>, %392, %cst_208 [1] : vector<16x16xf32> to vector<16xf32>
    %394 = vector.shape_cast %393 : vector<16xf32> to vector<16x1xf32>
    %395 = arith.extf %382 : vector<1x128xbf16> to vector<1x128xf32>
    %396 = vector.broadcast %394 : vector<16x1xf32> to vector<16x128xf32>
    %397 = vector.broadcast %395 : vector<1x128xf32> to vector<16x128xf32>
    %398 = arith.mulf %396, %397 : vector<16x128xf32>
    %cst_209 = arith.constant dense<0.000000e+00> : vector<16x8xf32>
    %399 = tpu.matmul %386, %385, %cst_209 {dimension_numbers = #tpu.dot_dimension_numbers<[1], [0], [0], [1], [0, 0, 1, 1], [], []>} : vector<16x16xbf16>, vector<16x8xbf16>, vector<16x8xf32> -> vector<16x8xf32>
    %cst_210 = arith.constant dense<0.000000e+00> : vector<16x128xf32>
    %400 = tpu.matmul %385, %380, %cst_210 {dimension_numbers = #tpu.dot_dimension_numbers<[1], [0], [0], [1], [0, 0, 1, 1], [], []>} : vector<16x8xbf16>, vector<8x128xbf16>, vector<16x128xf32> -> vector<16x128xf32>
    %401 = arith.addf %390, %400 : vector<16x128xf32>
    %402 = arith.addf %401, %398 : vector<16x128xf32>
    %403 = arith.truncf %399 : vector<16x8xf32> to vector<16x8xbf16>
    %cst_211 = arith.constant dense<0.000000e+00> : vector<16x128xf32>
    %404 = tpu.matmul %403, %384, %cst_211 {dimension_numbers = #tpu.dot_dimension_numbers<[1], [0], [0], [1], [0, 0, 1, 1], [], []>} : vector<16x8xbf16>, vector<8x128xbf16>, vector<16x128xf32> -> vector<16x128xf32>
    %405 = arith.addf %402, %404 : vector<16x128xf32>
    %406 = arith.extf %1 : vector<16x128xbf16> to vector<16x128xf32>
    %407 = arith.mulf %405, %406 : vector<16x128xf32>
    %408 = arith.truncf %407 : vector<16x128xf32> to vector<16x128xbf16>
    %cst_212 = arith.constant dense<0.000000e+00> : vector<16x8xf32>
    %409 = tpu.matmul %408, %3, %cst_212 {dimension_numbers = #tpu.dot_dimension_numbers<[1], [0], [0], [1], [0, 0, 1, 1], [], []>} : vector<16x128xbf16>, vector<128x8xbf16>, vector<16x8xf32> -> vector<16x8xf32>
    %c0_213 = arith.constant 0 : index
    %c2_214 = arith.constant 2 : index
    %c0_215 = arith.constant 0 : index
    %410 = vector.load %arg4[%c0_213, %c2_214, %c0_215] : memref<1x4x8xf32, #tpu.memory_space<vmem>>, vector<1x1x8xf32>
    %411 = vector.shape_cast %410 : vector<1x1x8xf32> to vector<1x8xf32>
    %412 = vector.broadcast %411 : vector<1x8xf32> to vector<16x8xf32>
    %413 = arith.addf %409, %412 : vector<16x8xf32>
    %414 = arith.negf %413 : vector<16x8xf32>
    %415 = math.exp %414 : vector<16x8xf32>
    %cst_216 = arith.constant 1.000000e+00 : f32
    %416 = vector.broadcast %cst_216 : f32 to vector<16x8xf32>
    %417 = arith.addf %416, %415 : vector<16x8xf32>
    %418 = arith.divf %416, %417 : vector<16x8xf32>
    %cst_217 = arith.constant dense<0.000000e+00> : vector<16x8xf32>
    %419 = tpu.matmul %408, %4, %cst_217 {dimension_numbers = #tpu.dot_dimension_numbers<[1], [0], [0], [1], [0, 0, 1, 1], [], []>} : vector<16x128xbf16>, vector<128x8xbf16>, vector<16x8xf32> -> vector<16x8xf32>
    %c0_218 = arith.constant 0 : index
    %c2_219 = arith.constant 2 : index
    %c0_220 = arith.constant 0 : index
    %420 = vector.load %arg5[%c0_218, %c2_219, %c0_220] : memref<1x4x8xf32, #tpu.memory_space<vmem>>, vector<1x1x8xf32>
    %421 = vector.shape_cast %420 : vector<1x1x8xf32> to vector<1x8xf32>
    %422 = vector.broadcast %421 : vector<1x8xf32> to vector<16x8xf32>
    %423 = arith.addf %419, %422 : vector<16x8xf32>
    %424 = arith.negf %423 : vector<16x8xf32>
    %425 = math.exp %424 : vector<16x8xf32>
    %cst_221 = arith.constant 1.000000e+00 : f32
    %426 = vector.broadcast %cst_221 : f32 to vector<16x8xf32>
    %427 = arith.addf %426, %425 : vector<16x8xf32>
    %428 = arith.divf %426, %427 : vector<16x8xf32>
    %c0_222 = arith.constant 0 : index
    %c0_223 = arith.constant 0 : index
    %c0_224 = arith.constant 0 : index
    %429 = vector.load %arg23[%c0_222, %c0_223, %c0_224] : memref<1x1x8xf32, #tpu.memory_space<vmem>>, vector<1x1x8xf32>
    %430 = vector.shape_cast %429 : vector<1x1x8xf32> to vector<1x8xf32>
    %c0_225 = arith.constant 0 : index
    %c0_226 = arith.constant 0 : index
    %c0_227 = arith.constant 0 : index
    %431 = vector.load %arg24[%c0_225, %c0_226, %c0_227] : memref<1x1x8xf32, #tpu.memory_space<vmem>>, vector<1x1x8xf32>
    %432 = vector.shape_cast %431 : vector<1x1x8xf32> to vector<1x8xf32>
    %433 = vector.broadcast %430 : vector<1x8xf32> to vector<16x8xf32>
    %434 = arith.mulf %356, %433 : vector<16x8xf32>
    %435 = vector.broadcast %432 : vector<1x8xf32> to vector<16x8xf32>
    %436 = arith.addf %434, %435 : vector<16x8xf32>
    %437 = arith.truncf %436 : vector<16x8xf32> to vector<16x8xbf16>
    %cst_228 = arith.constant dense<0.000000e+00> : vector<16x16xf32>
    %438 = tpu.matmul %437, %437, %cst_228 {dimension_numbers = #tpu.dot_dimension_numbers<[1], [1], [0], [0], [0, 0, 1, 0], [], []>} : vector<16x8xbf16>, vector<16x8xbf16>, vector<16x16xf32> -> vector<16x16xf32>
    %cst_229 = arith.constant dense<0xFF800000> : vector<16xf32>
    %439 = vector.multi_reduction <maximumf>, %438, %cst_229 [1] : vector<16x16xf32> to vector<16xf32>
    %440 = vector.shape_cast %439 : vector<16xf32> to vector<16x1xf32>
    %441 = vector.broadcast %440 : vector<16x1xf32> to vector<16x16xf32>
    %442 = arith.subf %438, %441 : vector<16x16xf32>
    %443 = math.exp %442 : vector<16x16xf32>
    %cst_230 = arith.constant dense<0.000000e+00> : vector<16xf32>
    %444 = vector.multi_reduction <add>, %443, %cst_230 [1] : vector<16x16xf32> to vector<16xf32>
    %445 = vector.shape_cast %444 : vector<16xf32> to vector<16x1xf32>
    %446 = tpu.reciprocal %445 {approx = true} : vector<16x1xf32> -> vector<16x1xf32>
    %447 = vector.broadcast %446 : vector<16x1xf32> to vector<16x16xf32>
    %448 = arith.mulf %443, %447 : vector<16x16xf32>
    %449 = arith.mulf %418, %330 : vector<16x8xf32>
    %c0_231 = arith.constant 0 : index
    %c0_232 = arith.constant 0 : index
    %c0_233 = arith.constant 0 : index
    %450 = vector.load %arg19[%c0_231, %c0_232, %c0_233] : memref<1x1x64xbf16, #tpu.memory_space<vmem>>, vector<1x1x64xbf16>
    %451 = vector.shape_cast %450 : vector<1x1x64xbf16> to vector<1x64xbf16>
    %c0_234 = arith.constant 0 : index
    %c0_235 = arith.constant 0 : index
    %c0_236 = arith.constant 0 : index
    %452 = vector.load %arg20[%c0_234, %c0_235, %c0_236] : memref<1x8x64xbf16, #tpu.memory_space<vmem>>, vector<1x8x64xbf16>
    %453 = vector.shape_cast %452 : vector<1x8x64xbf16> to vector<8x64xbf16>
    %c0_237 = arith.constant 0 : index
    %c0_238 = arith.constant 0 : index
    %c0_239 = arith.constant 0 : index
    %454 = vector.load %arg21[%c0_237, %c0_238, %c0_239] : memref<1x1x64xbf16, #tpu.memory_space<vmem>>, vector<1x1x64xbf16>
    %455 = vector.shape_cast %454 : vector<1x1x64xbf16> to vector<1x64xbf16>
    %c0_240 = arith.constant 0 : index
    %c0_241 = arith.constant 0 : index
    %c0_242 = arith.constant 0 : index
    %456 = vector.load %arg22[%c0_240, %c0_241, %c0_242] : memref<1x8x64xbf16, #tpu.memory_space<vmem>>, vector<1x8x64xbf16>
    %457 = vector.shape_cast %456 : vector<1x8x64xbf16> to vector<8x64xbf16>
    %458 = arith.truncf %449 : vector<16x8xf32> to vector<16x8xbf16>
    %459 = arith.truncf %448 : vector<16x16xf32> to vector<16x16xbf16>
    %460 = arith.extf %451 : vector<1x64xbf16> to vector<1x64xf32>
    %461 = vector.broadcast %332 : vector<16x1xf32> to vector<16x64xf32>
    %462 = vector.broadcast %460 : vector<1x64xf32> to vector<16x64xf32>
    %463 = arith.mulf %461, %462 : vector<16x64xf32>
    %464 = vector.broadcast %334 : vector<1x16xf32> to vector<16x16xf32>
    %465 = arith.mulf %448, %464 : vector<16x16xf32>
    %cst_243 = arith.constant dense<0.000000e+00> : vector<16xf32>
    %466 = vector.multi_reduction <add>, %465, %cst_243 [1] : vector<16x16xf32> to vector<16xf32>
    %467 = vector.shape_cast %466 : vector<16xf32> to vector<16x1xf32>
    %468 = arith.extf %455 : vector<1x64xbf16> to vector<1x64xf32>
    %469 = vector.broadcast %467 : vector<16x1xf32> to vector<16x64xf32>
    %470 = vector.broadcast %468 : vector<1x64xf32> to vector<16x64xf32>
    %471 = arith.mulf %469, %470 : vector<16x64xf32>
    %cst_244 = arith.constant dense<0.000000e+00> : vector<16x8xf32>
    %472 = tpu.matmul %459, %458, %cst_244 {dimension_numbers = #tpu.dot_dimension_numbers<[1], [0], [0], [1], [0, 0, 1, 1], [], []>} : vector<16x16xbf16>, vector<16x8xbf16>, vector<16x8xf32> -> vector<16x8xf32>
    %cst_245 = arith.constant dense<0.000000e+00> : vector<16x64xf32>
    %473 = tpu.matmul %458, %453, %cst_245 {dimension_numbers = #tpu.dot_dimension_numbers<[1], [0], [0], [1], [0, 0, 1, 1], [], []>} : vector<16x8xbf16>, vector<8x64xbf16>, vector<16x64xf32> -> vector<16x64xf32>
    %474 = arith.addf %463, %473 : vector<16x64xf32>
    %475 = arith.addf %474, %471 : vector<16x64xf32>
    %476 = arith.truncf %472 : vector<16x8xf32> to vector<16x8xbf16>
    %cst_246 = arith.constant dense<0.000000e+00> : vector<16x64xf32>
    %477 = tpu.matmul %476, %457, %cst_246 {dimension_numbers = #tpu.dot_dimension_numbers<[1], [0], [0], [1], [0, 0, 1, 1], [], []>} : vector<16x8xbf16>, vector<8x64xbf16>, vector<16x64xf32> -> vector<16x64xf32>
    %478 = arith.addf %475, %477 : vector<16x64xf32>
    %479 = arith.extf %2 : vector<16x64xbf16> to vector<16x64xf32>
    %480 = arith.mulf %478, %479 : vector<16x64xf32>
    %481 = arith.truncf %480 : vector<16x64xf32> to vector<16x64xbf16>
    %cst_247 = arith.constant dense<0.000000e+00> : vector<16x8xf32>
    %482 = tpu.matmul %481, %5, %cst_247 {dimension_numbers = #tpu.dot_dimension_numbers<[1], [0], [0], [1], [0, 0, 1, 1], [], []>} : vector<16x64xbf16>, vector<64x8xbf16>, vector<16x8xf32> -> vector<16x8xf32>
    %c0_248 = arith.constant 0 : index
    %c2_249 = arith.constant 2 : index
    %c0_250 = arith.constant 0 : index
    %483 = vector.load %arg6[%c0_248, %c2_249, %c0_250] : memref<1x4x8xf32, #tpu.memory_space<vmem>>, vector<1x1x8xf32>
    %484 = vector.shape_cast %483 : vector<1x1x8xf32> to vector<1x8xf32>
    %485 = vector.broadcast %484 : vector<1x8xf32> to vector<16x8xf32>
    %486 = arith.addf %482, %485 : vector<16x8xf32>
    %487 = math.tanh %486 : vector<16x8xf32>
    %488 = arith.mulf %428, %330 : vector<16x8xf32>
    %cst_251 = arith.constant 1.000000e+00 : f32
    %489 = vector.broadcast %cst_251 : f32 to vector<16x8xf32>
    %490 = arith.subf %489, %428 : vector<16x8xf32>
    %491 = arith.mulf %490, %487 : vector<16x8xf32>
    %492 = arith.addf %488, %491 : vector<16x8xf32>
    %c0_252 = arith.constant 0 : index
    %c3 = arith.constant 3 : index
    %c0_253 = arith.constant 0 : index
    %c0_254 = arith.constant 0 : index
    %493 = vector.load %arg1[%c0_252, %c3, %c0_253, %c0_254] : memref<1x4x16x1xf32, #tpu.memory_space<vmem>>, vector<1x1x16x1xf32>
    %494 = vector.shape_cast %493 : vector<1x1x16x1xf32> to vector<16x1xf32>
    %c0_255 = arith.constant 0 : index
    %c3_256 = arith.constant 3 : index
    %c0_257 = arith.constant 0 : index
    %c0_258 = arith.constant 0 : index
    %495 = vector.load %arg2[%c0_255, %c3_256, %c0_257, %c0_258] : memref<1x4x1x16xf32, #tpu.memory_space<vmem>>, vector<1x1x1x16xf32>
    %496 = vector.shape_cast %495 : vector<1x1x1x16xf32> to vector<1x16xf32>
    %c0_259 = arith.constant 0 : index
    %c3_260 = arith.constant 3 : index
    %c0_261 = arith.constant 0 : index
    %497 = vector.load %arg3[%c0_259, %c3_260, %c0_261] : memref<1x4x8xf32, #tpu.memory_space<vmem>>, vector<1x1x8xf32>
    %498 = vector.shape_cast %497 : vector<1x1x8xf32> to vector<1x8xf32>
    %499 = vector.broadcast %498 : vector<1x8xf32> to vector<16x8xf32>
    %500 = arith.addf %0, %499 : vector<16x8xf32>
    %cst_262 = arith.constant dense<0.000000e+00> : vector<16xf32>
    %501 = vector.multi_reduction <add>, %500, %cst_262 [1] : vector<16x8xf32> to vector<16xf32>
    %502 = vector.shape_cast %501 : vector<16xf32> to vector<16x1xf32>
    %cst_263 = arith.constant 8.000000e+00 : f32
    %503 = vector.broadcast %cst_263 : f32 to vector<16x1xf32>
    %504 = arith.divf %502, %503 : vector<16x1xf32>
    %505 = vector.broadcast %504 : vector<16x1xf32> to vector<16x8xf32>
    %506 = arith.subf %500, %505 : vector<16x8xf32>
    %507 = arith.mulf %506, %506 : vector<16x8xf32>
    %cst_264 = arith.constant dense<0.000000e+00> : vector<16xf32>
    %508 = vector.multi_reduction <add>, %507, %cst_264 [1] : vector<16x8xf32> to vector<16xf32>
    %509 = vector.shape_cast %508 : vector<16xf32> to vector<16x1xf32>
    %cst_265 = arith.constant 8.000000e+00 : f32
    %510 = vector.broadcast %cst_265 : f32 to vector<16x1xf32>
    %511 = arith.divf %509, %510 : vector<16x1xf32>
    %512 = vector.broadcast %504 : vector<16x1xf32> to vector<16x8xf32>
    %513 = arith.subf %500, %512 : vector<16x8xf32>
    %cst_266 = arith.constant 9.99999996E-13 : f32
    %514 = vector.broadcast %cst_266 : f32 to vector<16x1xf32>
    %515 = arith.addf %511, %514 : vector<16x1xf32>
    %516 = math.rsqrt %515 : vector<16x1xf32>
    %517 = vector.broadcast %516 : vector<16x1xf32> to vector<16x8xf32>
    %518 = arith.mulf %513, %517 : vector<16x8xf32>
    %c0_267 = arith.constant 0 : index
    %c0_268 = arith.constant 0 : index
    %c0_269 = arith.constant 0 : index
    %519 = vector.load %arg17[%c0_267, %c0_268, %c0_269] : memref<1x1x8xf32, #tpu.memory_space<vmem>>, vector<1x1x8xf32>
    %520 = vector.shape_cast %519 : vector<1x1x8xf32> to vector<1x8xf32>
    %c0_270 = arith.constant 0 : index
    %c0_271 = arith.constant 0 : index
    %c0_272 = arith.constant 0 : index
    %521 = vector.load %arg18[%c0_270, %c0_271, %c0_272] : memref<1x1x8xf32, #tpu.memory_space<vmem>>, vector<1x1x8xf32>
    %522 = vector.shape_cast %521 : vector<1x1x8xf32> to vector<1x8xf32>
    %523 = vector.broadcast %520 : vector<1x8xf32> to vector<16x8xf32>
    %524 = arith.mulf %518, %523 : vector<16x8xf32>
    %525 = vector.broadcast %522 : vector<1x8xf32> to vector<16x8xf32>
    %526 = arith.addf %524, %525 : vector<16x8xf32>
    %527 = arith.truncf %526 : vector<16x8xf32> to vector<16x8xbf16>
    %cst_273 = arith.constant dense<0.000000e+00> : vector<16x16xf32>
    %528 = tpu.matmul %527, %527, %cst_273 {dimension_numbers = #tpu.dot_dimension_numbers<[1], [1], [0], [0], [0, 0, 1, 0], [], []>} : vector<16x8xbf16>, vector<16x8xbf16>, vector<16x16xf32> -> vector<16x16xf32>
    %cst_274 = arith.constant dense<0xFF800000> : vector<16xf32>
    %529 = vector.multi_reduction <maximumf>, %528, %cst_274 [1] : vector<16x16xf32> to vector<16xf32>
    %530 = vector.shape_cast %529 : vector<16xf32> to vector<16x1xf32>
    %531 = vector.broadcast %530 : vector<16x1xf32> to vector<16x16xf32>
    %532 = arith.subf %528, %531 : vector<16x16xf32>
    %533 = math.exp %532 : vector<16x16xf32>
    %cst_275 = arith.constant dense<0.000000e+00> : vector<16xf32>
    %534 = vector.multi_reduction <add>, %533, %cst_275 [1] : vector<16x16xf32> to vector<16xf32>
    %535 = vector.shape_cast %534 : vector<16xf32> to vector<16x1xf32>
    %536 = tpu.reciprocal %535 {approx = true} : vector<16x1xf32> -> vector<16x1xf32>
    %537 = vector.broadcast %536 : vector<16x1xf32> to vector<16x16xf32>
    %538 = arith.mulf %533, %537 : vector<16x16xf32>
    %c0_276 = arith.constant 0 : index
    %c0_277 = arith.constant 0 : index
    %c0_278 = arith.constant 0 : index
    %539 = vector.load %arg13[%c0_276, %c0_277, %c0_278] : memref<1x1x128xbf16, #tpu.memory_space<vmem>>, vector<1x1x128xbf16>
    %540 = vector.shape_cast %539 : vector<1x1x128xbf16> to vector<1x128xbf16>
    %c0_279 = arith.constant 0 : index
    %c0_280 = arith.constant 0 : index
    %c0_281 = arith.constant 0 : index
    %541 = vector.load %arg14[%c0_279, %c0_280, %c0_281] : memref<1x8x128xbf16, #tpu.memory_space<vmem>>, vector<1x8x128xbf16>
    %542 = vector.shape_cast %541 : vector<1x8x128xbf16> to vector<8x128xbf16>
    %c0_282 = arith.constant 0 : index
    %c0_283 = arith.constant 0 : index
    %c0_284 = arith.constant 0 : index
    %543 = vector.load %arg15[%c0_282, %c0_283, %c0_284] : memref<1x1x128xbf16, #tpu.memory_space<vmem>>, vector<1x1x128xbf16>
    %544 = vector.shape_cast %543 : vector<1x1x128xbf16> to vector<1x128xbf16>
    %c0_285 = arith.constant 0 : index
    %c0_286 = arith.constant 0 : index
    %c0_287 = arith.constant 0 : index
    %545 = vector.load %arg16[%c0_285, %c0_286, %c0_287] : memref<1x8x128xbf16, #tpu.memory_space<vmem>>, vector<1x8x128xbf16>
    %546 = vector.shape_cast %545 : vector<1x8x128xbf16> to vector<8x128xbf16>
    %547 = arith.truncf %492 : vector<16x8xf32> to vector<16x8xbf16>
    %548 = arith.truncf %538 : vector<16x16xf32> to vector<16x16xbf16>
    %549 = arith.extf %540 : vector<1x128xbf16> to vector<1x128xf32>
    %550 = vector.broadcast %494 : vector<16x1xf32> to vector<16x128xf32>
    %551 = vector.broadcast %549 : vector<1x128xf32> to vector<16x128xf32>
    %552 = arith.mulf %550, %551 : vector<16x128xf32>
    %553 = vector.broadcast %496 : vector<1x16xf32> to vector<16x16xf32>
    %554 = arith.mulf %538, %553 : vector<16x16xf32>
    %cst_288 = arith.constant dense<0.000000e+00> : vector<16xf32>
    %555 = vector.multi_reduction <add>, %554, %cst_288 [1] : vector<16x16xf32> to vector<16xf32>
    %556 = vector.shape_cast %555 : vector<16xf32> to vector<16x1xf32>
    %557 = arith.extf %544 : vector<1x128xbf16> to vector<1x128xf32>
    %558 = vector.broadcast %556 : vector<16x1xf32> to vector<16x128xf32>
    %559 = vector.broadcast %557 : vector<1x128xf32> to vector<16x128xf32>
    %560 = arith.mulf %558, %559 : vector<16x128xf32>
    %cst_289 = arith.constant dense<0.000000e+00> : vector<16x8xf32>
    %561 = tpu.matmul %548, %547, %cst_289 {dimension_numbers = #tpu.dot_dimension_numbers<[1], [0], [0], [1], [0, 0, 1, 1], [], []>} : vector<16x16xbf16>, vector<16x8xbf16>, vector<16x8xf32> -> vector<16x8xf32>
    %cst_290 = arith.constant dense<0.000000e+00> : vector<16x128xf32>
    %562 = tpu.matmul %547, %542, %cst_290 {dimension_numbers = #tpu.dot_dimension_numbers<[1], [0], [0], [1], [0, 0, 1, 1], [], []>} : vector<16x8xbf16>, vector<8x128xbf16>, vector<16x128xf32> -> vector<16x128xf32>
    %563 = arith.addf %552, %562 : vector<16x128xf32>
    %564 = arith.addf %563, %560 : vector<16x128xf32>
    %565 = arith.truncf %561 : vector<16x8xf32> to vector<16x8xbf16>
    %cst_291 = arith.constant dense<0.000000e+00> : vector<16x128xf32>
    %566 = tpu.matmul %565, %546, %cst_291 {dimension_numbers = #tpu.dot_dimension_numbers<[1], [0], [0], [1], [0, 0, 1, 1], [], []>} : vector<16x8xbf16>, vector<8x128xbf16>, vector<16x128xf32> -> vector<16x128xf32>
    %567 = arith.addf %564, %566 : vector<16x128xf32>
    %568 = arith.extf %1 : vector<16x128xbf16> to vector<16x128xf32>
    %569 = arith.mulf %567, %568 : vector<16x128xf32>
    %570 = arith.truncf %569 : vector<16x128xf32> to vector<16x128xbf16>
    %cst_292 = arith.constant dense<0.000000e+00> : vector<16x8xf32>
    %571 = tpu.matmul %570, %3, %cst_292 {dimension_numbers = #tpu.dot_dimension_numbers<[1], [0], [0], [1], [0, 0, 1, 1], [], []>} : vector<16x128xbf16>, vector<128x8xbf16>, vector<16x8xf32> -> vector<16x8xf32>
    %c0_293 = arith.constant 0 : index
    %c3_294 = arith.constant 3 : index
    %c0_295 = arith.constant 0 : index
    %572 = vector.load %arg4[%c0_293, %c3_294, %c0_295] : memref<1x4x8xf32, #tpu.memory_space<vmem>>, vector<1x1x8xf32>
    %573 = vector.shape_cast %572 : vector<1x1x8xf32> to vector<1x8xf32>
    %574 = vector.broadcast %573 : vector<1x8xf32> to vector<16x8xf32>
    %575 = arith.addf %571, %574 : vector<16x8xf32>
    %576 = arith.negf %575 : vector<16x8xf32>
    %577 = math.exp %576 : vector<16x8xf32>
    %cst_296 = arith.constant 1.000000e+00 : f32
    %578 = vector.broadcast %cst_296 : f32 to vector<16x8xf32>
    %579 = arith.addf %578, %577 : vector<16x8xf32>
    %580 = arith.divf %578, %579 : vector<16x8xf32>
    %cst_297 = arith.constant dense<0.000000e+00> : vector<16x8xf32>
    %581 = tpu.matmul %570, %4, %cst_297 {dimension_numbers = #tpu.dot_dimension_numbers<[1], [0], [0], [1], [0, 0, 1, 1], [], []>} : vector<16x128xbf16>, vector<128x8xbf16>, vector<16x8xf32> -> vector<16x8xf32>
    %c0_298 = arith.constant 0 : index
    %c3_299 = arith.constant 3 : index
    %c0_300 = arith.constant 0 : index
    %582 = vector.load %arg5[%c0_298, %c3_299, %c0_300] : memref<1x4x8xf32, #tpu.memory_space<vmem>>, vector<1x1x8xf32>
    %583 = vector.shape_cast %582 : vector<1x1x8xf32> to vector<1x8xf32>
    %584 = vector.broadcast %583 : vector<1x8xf32> to vector<16x8xf32>
    %585 = arith.addf %581, %584 : vector<16x8xf32>
    %586 = arith.negf %585 : vector<16x8xf32>
    %587 = math.exp %586 : vector<16x8xf32>
    %cst_301 = arith.constant 1.000000e+00 : f32
    %588 = vector.broadcast %cst_301 : f32 to vector<16x8xf32>
    %589 = arith.addf %588, %587 : vector<16x8xf32>
    %590 = arith.divf %588, %589 : vector<16x8xf32>
    %c0_302 = arith.constant 0 : index
    %c0_303 = arith.constant 0 : index
    %c0_304 = arith.constant 0 : index
    %591 = vector.load %arg23[%c0_302, %c0_303, %c0_304] : memref<1x1x8xf32, #tpu.memory_space<vmem>>, vector<1x1x8xf32>
    %592 = vector.shape_cast %591 : vector<1x1x8xf32> to vector<1x8xf32>
    %c0_305 = arith.constant 0 : index
    %c0_306 = arith.constant 0 : index
    %c0_307 = arith.constant 0 : index
    %593 = vector.load %arg24[%c0_305, %c0_306, %c0_307] : memref<1x1x8xf32, #tpu.memory_space<vmem>>, vector<1x1x8xf32>
    %594 = vector.shape_cast %593 : vector<1x1x8xf32> to vector<1x8xf32>
    %595 = vector.broadcast %592 : vector<1x8xf32> to vector<16x8xf32>
    %596 = arith.mulf %518, %595 : vector<16x8xf32>
    %597 = vector.broadcast %594 : vector<1x8xf32> to vector<16x8xf32>
    %598 = arith.addf %596, %597 : vector<16x8xf32>
    %599 = arith.truncf %598 : vector<16x8xf32> to vector<16x8xbf16>
    %cst_308 = arith.constant dense<0.000000e+00> : vector<16x16xf32>
    %600 = tpu.matmul %599, %599, %cst_308 {dimension_numbers = #tpu.dot_dimension_numbers<[1], [1], [0], [0], [0, 0, 1, 0], [], []>} : vector<16x8xbf16>, vector<16x8xbf16>, vector<16x16xf32> -> vector<16x16xf32>
    %cst_309 = arith.constant dense<0xFF800000> : vector<16xf32>
    %601 = vector.multi_reduction <maximumf>, %600, %cst_309 [1] : vector<16x16xf32> to vector<16xf32>
    %602 = vector.shape_cast %601 : vector<16xf32> to vector<16x1xf32>
    %603 = vector.broadcast %602 : vector<16x1xf32> to vector<16x16xf32>
    %604 = arith.subf %600, %603 : vector<16x16xf32>
    %605 = math.exp %604 : vector<16x16xf32>
    %cst_310 = arith.constant dense<0.000000e+00> : vector<16xf32>
    %606 = vector.multi_reduction <add>, %605, %cst_310 [1] : vector<16x16xf32> to vector<16xf32>
    %607 = vector.shape_cast %606 : vector<16xf32> to vector<16x1xf32>
    %608 = tpu.reciprocal %607 {approx = true} : vector<16x1xf32> -> vector<16x1xf32>
    %609 = vector.broadcast %608 : vector<16x1xf32> to vector<16x16xf32>
    %610 = arith.mulf %605, %609 : vector<16x16xf32>
    %611 = arith.mulf %580, %492 : vector<16x8xf32>
    %c0_311 = arith.constant 0 : index
    %c0_312 = arith.constant 0 : index
    %c0_313 = arith.constant 0 : index
    %612 = vector.load %arg19[%c0_311, %c0_312, %c0_313] : memref<1x1x64xbf16, #tpu.memory_space<vmem>>, vector<1x1x64xbf16>
    %613 = vector.shape_cast %612 : vector<1x1x64xbf16> to vector<1x64xbf16>
    %c0_314 = arith.constant 0 : index
    %c0_315 = arith.constant 0 : index
    %c0_316 = arith.constant 0 : index
    %614 = vector.load %arg20[%c0_314, %c0_315, %c0_316] : memref<1x8x64xbf16, #tpu.memory_space<vmem>>, vector<1x8x64xbf16>
    %615 = vector.shape_cast %614 : vector<1x8x64xbf16> to vector<8x64xbf16>
    %c0_317 = arith.constant 0 : index
    %c0_318 = arith.constant 0 : index
    %c0_319 = arith.constant 0 : index
    %616 = vector.load %arg21[%c0_317, %c0_318, %c0_319] : memref<1x1x64xbf16, #tpu.memory_space<vmem>>, vector<1x1x64xbf16>
    %617 = vector.shape_cast %616 : vector<1x1x64xbf16> to vector<1x64xbf16>
    %c0_320 = arith.constant 0 : index
    %c0_321 = arith.constant 0 : index
    %c0_322 = arith.constant 0 : index
    %618 = vector.load %arg22[%c0_320, %c0_321, %c0_322] : memref<1x8x64xbf16, #tpu.memory_space<vmem>>, vector<1x8x64xbf16>
    %619 = vector.shape_cast %618 : vector<1x8x64xbf16> to vector<8x64xbf16>
    %620 = arith.truncf %611 : vector<16x8xf32> to vector<16x8xbf16>
    %621 = arith.truncf %610 : vector<16x16xf32> to vector<16x16xbf16>
    %622 = arith.extf %613 : vector<1x64xbf16> to vector<1x64xf32>
    %623 = vector.broadcast %494 : vector<16x1xf32> to vector<16x64xf32>
    %624 = vector.broadcast %622 : vector<1x64xf32> to vector<16x64xf32>
    %625 = arith.mulf %623, %624 : vector<16x64xf32>
    %626 = vector.broadcast %496 : vector<1x16xf32> to vector<16x16xf32>
    %627 = arith.mulf %610, %626 : vector<16x16xf32>
    %cst_323 = arith.constant dense<0.000000e+00> : vector<16xf32>
    %628 = vector.multi_reduction <add>, %627, %cst_323 [1] : vector<16x16xf32> to vector<16xf32>
    %629 = vector.shape_cast %628 : vector<16xf32> to vector<16x1xf32>
    %630 = arith.extf %617 : vector<1x64xbf16> to vector<1x64xf32>
    %631 = vector.broadcast %629 : vector<16x1xf32> to vector<16x64xf32>
    %632 = vector.broadcast %630 : vector<1x64xf32> to vector<16x64xf32>
    %633 = arith.mulf %631, %632 : vector<16x64xf32>
    %cst_324 = arith.constant dense<0.000000e+00> : vector<16x8xf32>
    %634 = tpu.matmul %621, %620, %cst_324 {dimension_numbers = #tpu.dot_dimension_numbers<[1], [0], [0], [1], [0, 0, 1, 1], [], []>} : vector<16x16xbf16>, vector<16x8xbf16>, vector<16x8xf32> -> vector<16x8xf32>
    %cst_325 = arith.constant dense<0.000000e+00> : vector<16x64xf32>
    %635 = tpu.matmul %620, %615, %cst_325 {dimension_numbers = #tpu.dot_dimension_numbers<[1], [0], [0], [1], [0, 0, 1, 1], [], []>} : vector<16x8xbf16>, vector<8x64xbf16>, vector<16x64xf32> -> vector<16x64xf32>
    %636 = arith.addf %625, %635 : vector<16x64xf32>
    %637 = arith.addf %636, %633 : vector<16x64xf32>
    %638 = arith.truncf %634 : vector<16x8xf32> to vector<16x8xbf16>
    %cst_326 = arith.constant dense<0.000000e+00> : vector<16x64xf32>
    %639 = tpu.matmul %638, %619, %cst_326 {dimension_numbers = #tpu.dot_dimension_numbers<[1], [0], [0], [1], [0, 0, 1, 1], [], []>} : vector<16x8xbf16>, vector<8x64xbf16>, vector<16x64xf32> -> vector<16x64xf32>
    %640 = arith.addf %637, %639 : vector<16x64xf32>
    %641 = arith.extf %2 : vector<16x64xbf16> to vector<16x64xf32>
    %642 = arith.mulf %640, %641 : vector<16x64xf32>
    %643 = arith.truncf %642 : vector<16x64xf32> to vector<16x64xbf16>
    %cst_327 = arith.constant dense<0.000000e+00> : vector<16x8xf32>
    %644 = tpu.matmul %643, %5, %cst_327 {dimension_numbers = #tpu.dot_dimension_numbers<[1], [0], [0], [1], [0, 0, 1, 1], [], []>} : vector<16x64xbf16>, vector<64x8xbf16>, vector<16x8xf32> -> vector<16x8xf32>
    %c0_328 = arith.constant 0 : index
    %c3_329 = arith.constant 3 : index
    %c0_330 = arith.constant 0 : index
    %645 = vector.load %arg6[%c0_328, %c3_329, %c0_330] : memref<1x4x8xf32, #tpu.memory_space<vmem>>, vector<1x1x8xf32>
    %646 = vector.shape_cast %645 : vector<1x1x8xf32> to vector<1x8xf32>
    %647 = vector.broadcast %646 : vector<1x8xf32> to vector<16x8xf32>
    %648 = arith.addf %644, %647 : vector<16x8xf32>
    %649 = math.tanh %648 : vector<16x8xf32>
    %650 = arith.mulf %590, %492 : vector<16x8xf32>
    %cst_331 = arith.constant 1.000000e+00 : f32
    %651 = vector.broadcast %cst_331 : f32 to vector<16x8xf32>
    %652 = arith.subf %651, %590 : vector<16x8xf32>
    %653 = arith.mulf %652, %649 : vector<16x8xf32>
    %654 = arith.addf %650, %653 : vector<16x8xf32>
    %c0_332 = arith.constant 0 : index
    %c0_333 = arith.constant 0 : index
    %655 = vector.load %arg26[%c0_332, %c0_333] : memref<1x8xf32, #tpu.memory_space<vmem>>, vector<1x8xf32>
    %656 = arith.truncf %492 : vector<16x8xf32> to vector<16x8xbf16>
    %c0_334 = arith.constant 0 : index
    %c0_335 = arith.constant 0 : index
    %c0_336 = arith.constant 0 : index
    %657 = vector.load %arg25[%c0_334, %c0_335, %c0_336] : memref<2x8x8xbf16, #tpu.memory_space<vmem>>, vector<1x8x8xbf16>
    %658 = vector.shape_cast %657 : vector<1x8x8xbf16> to vector<8x8xbf16>
    %cst_337 = arith.constant dense<0.000000e+00> : vector<16x8xf32>
    %659 = tpu.matmul %656, %658, %cst_337 {dimension_numbers = #tpu.dot_dimension_numbers<[1], [0], [0], [1], [0, 0, 1, 1], [], []>} : vector<16x8xbf16>, vector<8x8xbf16>, vector<16x8xf32> -> vector<16x8xf32>
    %660 = vector.broadcast %655 : vector<1x8xf32> to vector<16x8xf32>
    %661 = arith.addf %660, %659 : vector<16x8xf32>
    %662 = arith.truncf %654 : vector<16x8xf32> to vector<16x8xbf16>
    %c1_338 = arith.constant 1 : index
    %c0_339 = arith.constant 0 : index
    %c0_340 = arith.constant 0 : index
    %663 = vector.load %arg25[%c1_338, %c0_339, %c0_340] : memref<2x8x8xbf16, #tpu.memory_space<vmem>>, vector<1x8x8xbf16>
    %664 = vector.shape_cast %663 : vector<1x8x8xbf16> to vector<8x8xbf16>
    %cst_341 = arith.constant dense<0.000000e+00> : vector<16x8xf32>
    %665 = tpu.matmul %662, %664, %cst_341 {dimension_numbers = #tpu.dot_dimension_numbers<[1], [0], [0], [1], [0, 0, 1, 1], [], []>} : vector<16x8xbf16>, vector<8x8xbf16>, vector<16x8xf32> -> vector<16x8xf32>
    %666 = arith.addf %661, %665 : vector<16x8xf32>
    %c0_342 = arith.constant 0 : index
    %c0_343 = arith.constant 0 : index
    %c0_344 = arith.constant 0 : index
    %667 = vector.load %arg27[%c0_342, %c0_343, %c0_344] : memref<1x16x8xf32, #tpu.memory_space<vmem>>, vector<1x16x8xf32>
    %668 = vector.shape_cast %667 : vector<1x16x8xf32> to vector<16x8xf32>
    %669 = vector.shape_cast %666 : vector<16x8xf32> to vector<1x16x8xf32>
    tpu.vector_store %arg27[%c0_342, %c0_343, %c0_344], %669 {strides = array<i32>} : memref<1x16x8xf32, #tpu.memory_space<vmem>>, vector<1x16x8xf32>,
    return
  }
  func.func @transform_0(%arg0: i32) -> (i32, i32, i32, i32) {
    %c0_i32 = arith.constant 0 : i32
    %c0_i32_0 = arith.constant 0 : i32
    %c0_i32_1 = arith.constant 0 : i32
    %c0_i32_2 = arith.constant 0 : i32
    return %arg0, %c0_i32, %c0_i32_0, %c0_i32_1 : i32, i32, i32, i32
  }
  func.func @transform_1(%arg0: i32) -> (i32, i32, i32, i32) {
    %c0_i32 = arith.constant 0 : i32
    %c0_i32_0 = arith.constant 0 : i32
    %c0_i32_1 = arith.constant 0 : i32
    %c0_i32_2 = arith.constant 0 : i32
    return %arg0, %c0_i32, %c0_i32_0, %c0_i32_1 : i32, i32, i32, i32
  }
  func.func @transform_2(%arg0: i32) -> (i32, i32, i32) {
    %c0_i32 = arith.constant 0 : i32
    %c0_i32_0 = arith.constant 0 : i32
    %c0_i32_1 = arith.constant 0 : i32
    return %arg0, %c0_i32, %c0_i32_0 : i32, i32, i32
  }
  func.func @transform_3(%arg0: i32) -> (i32, i32, i32) {
    %c0_i32 = arith.constant 0 : i32
    %c0_i32_0 = arith.constant 0 : i32
    %c0_i32_1 = arith.constant 0 : i32
    return %arg0, %c0_i32, %c0_i32_0 : i32, i32, i32
  }
  func.func @transform_4(%arg0: i32) -> (i32, i32, i32) {
    %c0_i32 = arith.constant 0 : i32
    %c0_i32_0 = arith.constant 0 : i32
    %c0_i32_1 = arith.constant 0 : i32
    return %arg0, %c0_i32, %c0_i32_0 : i32, i32, i32
  }
  func.func @transform_5(%arg0: i32) -> (i32, i32, i32) {
    %c0_i32 = arith.constant 0 : i32
    %c0_i32_0 = arith.constant 0 : i32
    %c0_i32_1 = arith.constant 0 : i32
    return %arg0, %c0_i32, %c0_i32_0 : i32, i32, i32
  }
  func.func @transform_6(%arg0: i32) -> (i32, i32) {
    %c0_i32 = arith.constant 0 : i32
    %c0_i32_0 = arith.constant 0 : i32
    %c0_i32_1 = arith.constant 0 : i32
    return %c0_i32, %c0_i32_0 : i32, i32
  }
  func.func @transform_7(%arg0: i32) -> (i32, i32) {
    %c0_i32 = arith.constant 0 : i32
    %c0_i32_0 = arith.constant 0 : i32
    %c0_i32_1 = arith.constant 0 : i32
    return %c0_i32, %c0_i32_0 : i32, i32
  }
  func.func @transform_8(%arg0: i32) -> (i32, i32) {
    %c0_i32 = arith.constant 0 : i32
    %c0_i32_0 = arith.constant 0 : i32
    %c0_i32_1 = arith.constant 0 : i32
    return %c0_i32, %c0_i32_0 : i32, i32
  }
  func.func @transform_9(%arg0: i32) -> (i32, i32) {
    %c0_i32 = arith.constant 0 : i32
    %c0_i32_0 = arith.constant 0 : i32
    %c0_i32_1 = arith.constant 0 : i32
    return %c0_i32, %c0_i32_0 : i32, i32
  }
  func.func @transform_10(%arg0: i32) -> (i32, i32) {
    %c0_i32 = arith.constant 0 : i32
    %c0_i32_0 = arith.constant 0 : i32
    %c0_i32_1 = arith.constant 0 : i32
    return %c0_i32, %c0_i32_0 : i32, i32
  }
  func.func @transform_11(%arg0: i32) -> (i32, i32) {
    %c0_i32 = arith.constant 0 : i32
    %c0_i32_0 = arith.constant 0 : i32
    %c0_i32_1 = arith.constant 0 : i32
    return %c0_i32, %c0_i32_0 : i32, i32
  }
  func.func @transform_12(%arg0: i32) -> (i32, i32, i32) {
    %c0_i32 = arith.constant 0 : i32
    %c0_i32_0 = arith.constant 0 : i32
    %c0_i32_1 = arith.constant 0 : i32
    %c0_i32_2 = arith.constant 0 : i32
    return %c0_i32, %c0_i32_0, %c0_i32_1 : i32, i32, i32
  }
  func.func @transform_13(%arg0: i32) -> (i32, i32, i32) {
    %c0_i32 = arith.constant 0 : i32
    %c0_i32_0 = arith.constant 0 : i32
    %c0_i32_1 = arith.constant 0 : i32
    %c0_i32_2 = arith.constant 0 : i32
    return %c0_i32, %c0_i32_0, %c0_i32_1 : i32, i32, i32
  }
  func.func @transform_14(%arg0: i32) -> (i32, i32, i32) {
    %c0_i32 = arith.constant 0 : i32
    %c0_i32_0 = arith.constant 0 : i32
    %c0_i32_1 = arith.constant 0 : i32
    %c0_i32_2 = arith.constant 0 : i32
    return %c0_i32, %c0_i32_0, %c0_i32_1 : i32, i32, i32
  }
  func.func @transform_15(%arg0: i32) -> (i32, i32, i32) {
    %c0_i32 = arith.constant 0 : i32
    %c0_i32_0 = arith.constant 0 : i32
    %c0_i32_1 = arith.constant 0 : i32
    %c0_i32_2 = arith.constant 0 : i32
    return %c0_i32, %c0_i32_0, %c0_i32_1 : i32, i32, i32
  }
  func.func @transform_16(%arg0: i32) -> (i32, i32, i32) {
    %c0_i32 = arith.constant 0 : i32
    %c0_i32_0 = arith.constant 0 : i32
    %c0_i32_1 = arith.constant 0 : i32
    %c0_i32_2 = arith.constant 0 : i32
    return %c0_i32, %c0_i32_0, %c0_i32_1 : i32, i32, i32
  }
  func.func @transform_17(%arg0: i32) -> (i32, i32, i32) {
    %c0_i32 = arith.constant 0 : i32
    %c0_i32_0 = arith.constant 0 : i32
    %c0_i32_1 = arith.constant 0 : i32
    %c0_i32_2 = arith.constant 0 : i32
    return %c0_i32, %c0_i32_0, %c0_i32_1 : i32, i32, i32
  }
  func.func @transform_18(%arg0: i32) -> (i32, i32, i32) {
    %c0_i32 = arith.constant 0 : i32
    %c0_i32_0 = arith.constant 0 : i32
    %c0_i32_1 = arith.constant 0 : i32
    %c0_i32_2 = arith.constant 0 : i32
    return %c0_i32, %c0_i32_0, %c0_i32_1 : i32, i32, i32
  }
  func.func @transform_19(%arg0: i32) -> (i32, i32, i32) {
    %c0_i32 = arith.constant 0 : i32
    %c0_i32_0 = arith.constant 0 : i32
    %c0_i32_1 = arith.constant 0 : i32
    %c0_i32_2 = arith.constant 0 : i32
    return %c0_i32, %c0_i32_0, %c0_i32_1 : i32, i32, i32
  }
  func.func @transform_20(%arg0: i32) -> (i32, i32, i32) {
    %c0_i32 = arith.constant 0 : i32
    %c0_i32_0 = arith.constant 0 : i32
    %c0_i32_1 = arith.constant 0 : i32
    %c0_i32_2 = arith.constant 0 : i32
    return %c0_i32, %c0_i32_0, %c0_i32_1 : i32, i32, i32
  }
  func.func @transform_21(%arg0: i32) -> (i32, i32, i32) {
    %c0_i32 = arith.constant 0 : i32
    %c0_i32_0 = arith.constant 0 : i32
    %c0_i32_1 = arith.constant 0 : i32
    %c0_i32_2 = arith.constant 0 : i32
    return %c0_i32, %c0_i32_0, %c0_i32_1 : i32, i32, i32
  }
  func.func @transform_22(%arg0: i32) -> (i32, i32, i32) {
    %c0_i32 = arith.constant 0 : i32
    %c0_i32_0 = arith.constant 0 : i32
    %c0_i32_1 = arith.constant 0 : i32
    %c0_i32_2 = arith.constant 0 : i32
    return %c0_i32, %c0_i32_0, %c0_i32_1 : i32, i32, i32
  }
  func.func @transform_23(%arg0: i32) -> (i32, i32, i32) {
    %c0_i32 = arith.constant 0 : i32
    %c0_i32_0 = arith.constant 0 : i32
    %c0_i32_1 = arith.constant 0 : i32
    %c0_i32_2 = arith.constant 0 : i32
    return %c0_i32, %c0_i32_0, %c0_i32_1 : i32, i32, i32
  }
  func.func @transform_24(%arg0: i32) -> (i32, i32, i32) {
    %c0_i32 = arith.constant 0 : i32
    %c0_i32_0 = arith.constant 0 : i32
    %c0_i32_1 = arith.constant 0 : i32
    %c0_i32_2 = arith.constant 0 : i32
    return %c0_i32, %c0_i32_0, %c0_i32_1 : i32, i32, i32
  }
  func.func @transform_25(%arg0: i32) -> (i32, i32) {
    %c0_i32 = arith.constant 0 : i32
    %c0_i32_0 = arith.constant 0 : i32
    %c0_i32_1 = arith.constant 0 : i32
    return %c0_i32, %c0_i32_0 : i32, i32
  }
  func.func @transform_26(%arg0: i32) -> (i32, i32, i32) {
    %c0_i32 = arith.constant 0 : i32
    %c0_i32_0 = arith.constant 0 : i32
    %c0_i32_1 = arith.constant 0 : i32
    return %arg0, %c0_i32, %c0_i32_0 : i32, i32, i32
  }
}

module attributes {stable_mosaic.version = 11 : i64} {
  func.func @_chain_kernel(%arg0: i32, %arg1: memref<1x4x16x1xf32, #tpu.memory_space<vmem>>, %arg2: memref<1x4x1x16xf32, #tpu.memory_space<vmem>>, %arg3: memref<1x4x8xf32, #tpu.memory_space<vmem>>, %arg4: memref<1x4x8xf32, #tpu.memory_space<vmem>>, %arg5: memref<1x4x8xf32, #tpu.memory_space<vmem>>, %arg6: memref<1x4x8xf32, #tpu.memory_space<vmem>>, %arg7: memref<16x8xf32, #tpu.memory_space<vmem>>, %arg8: memref<16x128xbf16, #tpu.memory_space<vmem>>, %arg9: memref<128x8xbf16, #tpu.memory_space<vmem>>, %arg10: memref<128x8xbf16, #tpu.memory_space<vmem>>, %arg11: memref<16x64xbf16, #tpu.memory_space<vmem>>, %arg12: memref<64x8xbf16, #tpu.memory_space<vmem>>, %arg13: memref<1x1x128xbf16, #tpu.memory_space<vmem>>, %arg14: memref<1x8x128xbf16, #tpu.memory_space<vmem>>, %arg15: memref<1x1x128xbf16, #tpu.memory_space<vmem>>, %arg16: memref<1x8x128xbf16, #tpu.memory_space<vmem>>, %arg17: memref<1x1x8xf32, #tpu.memory_space<vmem>>, %arg18: memref<1x1x8xf32, #tpu.memory_space<vmem>>, %arg19: memref<1x1x64xbf16, #tpu.memory_space<vmem>>, %arg20: memref<1x8x64xbf16, #tpu.memory_space<vmem>>, %arg21: memref<1x1x64xbf16, #tpu.memory_space<vmem>>, %arg22: memref<1x8x64xbf16, #tpu.memory_space<vmem>>, %arg23: memref<1x1x8xf32, #tpu.memory_space<vmem>>, %arg24: memref<1x1x8xf32, #tpu.memory_space<vmem>>, %arg25: memref<2x8x4xbf16, #tpu.memory_space<vmem>>, %arg26: memref<1x4xf32, #tpu.memory_space<vmem>>, %arg27: memref<1x16x4xf32, #tpu.memory_space<vmem>>) attributes {dimension_semantics = [#tpu.dimension_semantics<parallel>], iteration_bounds = array<i64: 2>, scalar_prefetch = 0 : i64, scratch_operands = 0 : i64, tpu.core_type = #tpu.core_type<tc>, window_params = [{transform_indices = @transform_0, window_bounds = array<i64: 1, 4, 16, 1>}, {transform_indices = @transform_1, window_bounds = array<i64: 1, 4, 1, 16>}, {transform_indices = @transform_2, window_bounds = array<i64: 1, 4, 8>}, {transform_indices = @transform_3, window_bounds = array<i64: 1, 4, 8>}, {transform_indices = @transform_4, window_bounds = array<i64: 1, 4, 8>}, {transform_indices = @transform_5, window_bounds = array<i64: 1, 4, 8>}, {pipeline_mode = #tpu.pipeline_mode<synchronous>, transform_indices = @transform_6, window_bounds = array<i64: 16, 8>}, {pipeline_mode = #tpu.pipeline_mode<synchronous>, transform_indices = @transform_7, window_bounds = array<i64: 16, 128>}, {pipeline_mode = #tpu.pipeline_mode<synchronous>, transform_indices = @transform_8, window_bounds = array<i64: 128, 8>}, {pipeline_mode = #tpu.pipeline_mode<synchronous>, transform_indices = @transform_9, window_bounds = array<i64: 128, 8>}, {pipeline_mode = #tpu.pipeline_mode<synchronous>, transform_indices = @transform_10, window_bounds = array<i64: 16, 64>}, {pipeline_mode = #tpu.pipeline_mode<synchronous>, transform_indices = @transform_11, window_bounds = array<i64: 64, 8>}, {pipeline_mode = #tpu.pipeline_mode<synchronous>, transform_indices = @transform_12, window_bounds = array<i64: 1, 1, 128>}, {pipeline_mode = #tpu.pipeline_mode<synchronous>, transform_indices = @transform_13, window_bounds = array<i64: 1, 8, 128>}, {pipeline_mode = #tpu.pipeline_mode<synchronous>, transform_indices = @transform_14, window_bounds = array<i64: 1, 1, 128>}, {pipeline_mode = #tpu.pipeline_mode<synchronous>, transform_indices = @transform_15, window_bounds = array<i64: 1, 8, 128>}, {pipeline_mode = #tpu.pipeline_mode<synchronous>, transform_indices = @transform_16, window_bounds = array<i64: 1, 1, 8>}, {pipeline_mode = #tpu.pipeline_mode<synchronous>, transform_indices = @transform_17, window_bounds = array<i64: 1, 1, 8>}, {pipeline_mode = #tpu.pipeline_mode<synchronous>, transform_indices = @transform_18, window_bounds = array<i64: 1, 1, 64>}, {pipeline_mode = #tpu.pipeline_mode<synchronous>, transform_indices = @transform_19, window_bounds = array<i64: 1, 8, 64>}, {pipeline_mode = #tpu.pipeline_mode<synchronous>, transform_indices = @transform_20, window_bounds = array<i64: 1, 1, 64>}, {pipeline_mode = #tpu.pipeline_mode<synchronous>, transform_indices = @transform_21, window_bounds = array<i64: 1, 8, 64>}, {pipeline_mode = #tpu.pipeline_mode<synchronous>, transform_indices = @transform_22, window_bounds = array<i64: 1, 1, 8>}, {pipeline_mode = #tpu.pipeline_mode<synchronous>, transform_indices = @transform_23, window_bounds = array<i64: 1, 1, 8>}, {pipeline_mode = #tpu.pipeline_mode<synchronous>, transform_indices = @transform_24, window_bounds = array<i64: 2, 8, 4>}, {pipeline_mode = #tpu.pipeline_mode<synchronous>, transform_indices = @transform_25, window_bounds = array<i64: 1, 4>}, {transform_indices = @transform_26, window_bounds = array<i64: 1, 16, 4>}]} {
    %c0 = arith.constant 0 : index
    %c0_0 = arith.constant 0 : index
    %0 = vector.load %arg7[%c0, %c0_0] : memref<16x8xf32, #tpu.memory_space<vmem>>, vector<16x8xf32>
    %c0_1 = arith.constant 0 : index
    %c0_2 = arith.constant 0 : index
    %1 = vector.load %arg8[%c0_1, %c0_2] : memref<16x128xbf16, #tpu.memory_space<vmem>>, vector<16x128xbf16>
    %c0_3 = arith.constant 0 : index
    %c0_4 = arith.constant 0 : index
    %2 = vector.load %arg11[%c0_3, %c0_4] : memref<16x64xbf16, #tpu.memory_space<vmem>>, vector<16x64xbf16>
    %c0_5 = arith.constant 0 : index
    %c0_6 = arith.constant 0 : index
    %3 = vector.load %arg9[%c0_5, %c0_6] : memref<128x8xbf16, #tpu.memory_space<vmem>>, vector<128x8xbf16>
    %c0_7 = arith.constant 0 : index
    %c0_8 = arith.constant 0 : index
    %4 = vector.load %arg10[%c0_7, %c0_8] : memref<128x8xbf16, #tpu.memory_space<vmem>>, vector<128x8xbf16>
    %c0_9 = arith.constant 0 : index
    %c0_10 = arith.constant 0 : index
    %5 = vector.load %arg12[%c0_9, %c0_10] : memref<64x8xbf16, #tpu.memory_space<vmem>>, vector<64x8xbf16>
    %cst = arith.constant 0.000000e+00 : f32
    %6 = vector.broadcast %cst : f32 to vector<16x8xf32>
    %c0_11 = arith.constant 0 : index
    %c0_12 = arith.constant 0 : index
    %c0_13 = arith.constant 0 : index
    %c0_14 = arith.constant 0 : index
    %7 = vector.load %arg1[%c0_11, %c0_12, %c0_13, %c0_14] : memref<1x4x16x1xf32, #tpu.memory_space<vmem>>, vector<1x1x16x1xf32>
    %8 = vector.shape_cast %7 : vector<1x1x16x1xf32> to vector<16x1xf32>
    %c0_15 = arith.constant 0 : index
    %c0_16 = arith.constant 0 : index
    %c0_17 = arith.constant 0 : index
    %c0_18 = arith.constant 0 : index
    %9 = vector.load %arg2[%c0_15, %c0_16, %c0_17, %c0_18] : memref<1x4x1x16xf32, #tpu.memory_space<vmem>>, vector<1x1x1x16xf32>
    %10 = vector.shape_cast %9 : vector<1x1x1x16xf32> to vector<1x16xf32>
    %c0_19 = arith.constant 0 : index
    %c0_20 = arith.constant 0 : index
    %c0_21 = arith.constant 0 : index
    %11 = vector.load %arg3[%c0_19, %c0_20, %c0_21] : memref<1x4x8xf32, #tpu.memory_space<vmem>>, vector<1x1x8xf32>
    %12 = vector.shape_cast %11 : vector<1x1x8xf32> to vector<1x8xf32>
    %13 = vector.broadcast %12 : vector<1x8xf32> to vector<16x8xf32>
    %14 = arith.addf %0, %13 : vector<16x8xf32>
    %cst_22 = arith.constant dense<0.000000e+00> : vector<16xf32>
    %15 = vector.multi_reduction <add>, %14, %cst_22 [1] : vector<16x8xf32> to vector<16xf32>
    %16 = vector.shape_cast %15 : vector<16xf32> to vector<16x1xf32>
    %cst_23 = arith.constant 8.000000e+00 : f32
    %17 = vector.broadcast %cst_23 : f32 to vector<16x1xf32>
    %18 = arith.divf %16, %17 : vector<16x1xf32>
    %19 = vector.broadcast %18 : vector<16x1xf32> to vector<16x8xf32>
    %20 = arith.subf %14, %19 : vector<16x8xf32>
    %21 = arith.mulf %20, %20 : vector<16x8xf32>
    %cst_24 = arith.constant dense<0.000000e+00> : vector<16xf32>
    %22 = vector.multi_reduction <add>, %21, %cst_24 [1] : vector<16x8xf32> to vector<16xf32>
    %23 = vector.shape_cast %22 : vector<16xf32> to vector<16x1xf32>
    %cst_25 = arith.constant 8.000000e+00 : f32
    %24 = vector.broadcast %cst_25 : f32 to vector<16x1xf32>
    %25 = arith.divf %23, %24 : vector<16x1xf32>
    %26 = vector.broadcast %18 : vector<16x1xf32> to vector<16x8xf32>
    %27 = arith.subf %14, %26 : vector<16x8xf32>
    %cst_26 = arith.constant 9.99999996E-13 : f32
    %28 = vector.broadcast %cst_26 : f32 to vector<16x1xf32>
    %29 = arith.addf %25, %28 : vector<16x1xf32>
    %30 = math.rsqrt %29 : vector<16x1xf32>
    %31 = vector.broadcast %30 : vector<16x1xf32> to vector<16x8xf32>
    %32 = arith.mulf %27, %31 : vector<16x8xf32>
    %c0_27 = arith.constant 0 : index
    %c0_28 = arith.constant 0 : index
    %c0_29 = arith.constant 0 : index
    %33 = vector.load %arg17[%c0_27, %c0_28, %c0_29] : memref<1x1x8xf32, #tpu.memory_space<vmem>>, vector<1x1x8xf32>
    %34 = vector.shape_cast %33 : vector<1x1x8xf32> to vector<1x8xf32>
    %c0_30 = arith.constant 0 : index
    %c0_31 = arith.constant 0 : index
    %c0_32 = arith.constant 0 : index
    %35 = vector.load %arg18[%c0_30, %c0_31, %c0_32] : memref<1x1x8xf32, #tpu.memory_space<vmem>>, vector<1x1x8xf32>
    %36 = vector.shape_cast %35 : vector<1x1x8xf32> to vector<1x8xf32>
    %37 = vector.broadcast %34 : vector<1x8xf32> to vector<16x8xf32>
    %38 = arith.mulf %32, %37 : vector<16x8xf32>
    %39 = vector.broadcast %36 : vector<1x8xf32> to vector<16x8xf32>
    %40 = arith.addf %38, %39 : vector<16x8xf32>
    %41 = arith.truncf %40 : vector<16x8xf32> to vector<16x8xbf16>
    %cst_33 = arith.constant dense<0.000000e+00> : vector<16x16xf32>
    %42 = tpu.matmul %41, %41, %cst_33 {dimension_numbers = #tpu.dot_dimension_numbers<[1], [1], [0], [0], [0, 0, 1, 0], [], []>} : vector<16x8xbf16>, vector<16x8xbf16>, vector<16x16xf32> -> vector<16x16xf32>
    %cst_34 = arith.constant dense<0xFF800000> : vector<16xf32>
    %43 = vector.multi_reduction <maximumf>, %42, %cst_34 [1] : vector<16x16xf32> to vector<16xf32>
    %44 = vector.shape_cast %43 : vector<16xf32> to vector<16x1xf32>
    %45 = vector.broadcast %44 : vector<16x1xf32> to vector<16x16xf32>
    %46 = arith.subf %42, %45 : vector<16x16xf32>
    %47 = math.exp %46 : vector<16x16xf32>
    %cst_35 = arith.constant dense<0.000000e+00> : vector<16xf32>
    %48 = vector.multi_reduction <add>, %47, %cst_35 [1] : vector<16x16xf32> to vector<16xf32>
    %49 = vector.shape_cast %48 : vector<16xf32> to vector<16x1xf32>
    %50 = tpu.reciprocal %49 {approx = true} : vector<16x1xf32> -> vector<16x1xf32>
    %51 = vector.broadcast %50 : vector<16x1xf32> to vector<16x16xf32>
    %52 = arith.mulf %47, %51 : vector<16x16xf32>
    %c0_36 = arith.constant 0 : index
    %c0_37 = arith.constant 0 : index
    %c0_38 = arith.constant 0 : index
    %53 = vector.load %arg13[%c0_36, %c0_37, %c0_38] : memref<1x1x128xbf16, #tpu.memory_space<vmem>>, vector<1x1x128xbf16>
    %54 = vector.shape_cast %53 : vector<1x1x128xbf16> to vector<1x128xbf16>
    %c0_39 = arith.constant 0 : index
    %c0_40 = arith.constant 0 : index
    %c0_41 = arith.constant 0 : index
    %55 = vector.load %arg14[%c0_39, %c0_40, %c0_41] : memref<1x8x128xbf16, #tpu.memory_space<vmem>>, vector<1x8x128xbf16>
    %56 = vector.shape_cast %55 : vector<1x8x128xbf16> to vector<8x128xbf16>
    %c0_42 = arith.constant 0 : index
    %c0_43 = arith.constant 0 : index
    %c0_44 = arith.constant 0 : index
    %57 = vector.load %arg15[%c0_42, %c0_43, %c0_44] : memref<1x1x128xbf16, #tpu.memory_space<vmem>>, vector<1x1x128xbf16>
    %58 = vector.shape_cast %57 : vector<1x1x128xbf16> to vector<1x128xbf16>
    %c0_45 = arith.constant 0 : index
    %c0_46 = arith.constant 0 : index
    %c0_47 = arith.constant 0 : index
    %59 = vector.load %arg16[%c0_45, %c0_46, %c0_47] : memref<1x8x128xbf16, #tpu.memory_space<vmem>>, vector<1x8x128xbf16>
    %60 = vector.shape_cast %59 : vector<1x8x128xbf16> to vector<8x128xbf16>
    %61 = arith.truncf %6 : vector<16x8xf32> to vector<16x8xbf16>
    %62 = arith.truncf %52 : vector<16x16xf32> to vector<16x16xbf16>
    %63 = arith.extf %54 : vector<1x128xbf16> to vector<1x128xf32>
    %64 = vector.broadcast %8 : vector<16x1xf32> to vector<16x128xf32>
    %65 = vector.broadcast %63 : vector<1x128xf32> to vector<16x128xf32>
    %66 = arith.mulf %64, %65 : vector<16x128xf32>
    %67 = vector.broadcast %10 : vector<1x16xf32> to vector<16x16xf32>
    %68 = arith.mulf %52, %67 : vector<16x16xf32>
    %cst_48 = arith.constant dense<0.000000e+00> : vector<16xf32>
    %69 = vector.multi_reduction <add>, %68, %cst_48 [1] : vector<16x16xf32> to vector<16xf32>
    %70 = vector.shape_cast %69 : vector<16xf32> to vector<16x1xf32>
    %71 = arith.extf %58 : vector<1x128xbf16> to vector<1x128xf32>
    %72 = vector.broadcast %70 : vector<16x1xf32> to vector<16x128xf32>
    %73 = vector.broadcast %71 : vector<1x128xf32> to vector<16x128xf32>
    %74 = arith.mulf %72, %73 : vector<16x128xf32>
    %cst_49 = arith.constant dense<0.000000e+00> : vector<16x8xf32>
    %75 = tpu.matmul %62, %61, %cst_49 {dimension_numbers = #tpu.dot_dimension_numbers<[1], [0], [0], [1], [0, 0, 1, 1], [], []>} : vector<16x16xbf16>, vector<16x8xbf16>, vector<16x8xf32> -> vector<16x8xf32>
    %cst_50 = arith.constant dense<0.000000e+00> : vector<16x128xf32>
    %76 = tpu.matmul %61, %56, %cst_50 {dimension_numbers = #tpu.dot_dimension_numbers<[1], [0], [0], [1], [0, 0, 1, 1], [], []>} : vector<16x8xbf16>, vector<8x128xbf16>, vector<16x128xf32> -> vector<16x128xf32>
    %77 = arith.addf %66, %76 : vector<16x128xf32>
    %78 = arith.addf %77, %74 : vector<16x128xf32>
    %79 = arith.truncf %75 : vector<16x8xf32> to vector<16x8xbf16>
    %cst_51 = arith.constant dense<0.000000e+00> : vector<16x128xf32>
    %80 = tpu.matmul %79, %60, %cst_51 {dimension_numbers = #tpu.dot_dimension_numbers<[1], [0], [0], [1], [0, 0, 1, 1], [], []>} : vector<16x8xbf16>, vector<8x128xbf16>, vector<16x128xf32> -> vector<16x128xf32>
    %81 = arith.addf %78, %80 : vector<16x128xf32>
    %82 = arith.extf %1 : vector<16x128xbf16> to vector<16x128xf32>
    %83 = arith.mulf %81, %82 : vector<16x128xf32>
    %84 = arith.truncf %83 : vector<16x128xf32> to vector<16x128xbf16>
    %cst_52 = arith.constant dense<0.000000e+00> : vector<16x8xf32>
    %85 = tpu.matmul %84, %3, %cst_52 {dimension_numbers = #tpu.dot_dimension_numbers<[1], [0], [0], [1], [0, 0, 1, 1], [], []>} : vector<16x128xbf16>, vector<128x8xbf16>, vector<16x8xf32> -> vector<16x8xf32>
    %c0_53 = arith.constant 0 : index
    %c0_54 = arith.constant 0 : index
    %c0_55 = arith.constant 0 : index
    %86 = vector.load %arg4[%c0_53, %c0_54, %c0_55] : memref<1x4x8xf32, #tpu.memory_space<vmem>>, vector<1x1x8xf32>
    %87 = vector.shape_cast %86 : vector<1x1x8xf32> to vector<1x8xf32>
    %88 = vector.broadcast %87 : vector<1x8xf32> to vector<16x8xf32>
    %89 = arith.addf %85, %88 : vector<16x8xf32>
    %90 = arith.negf %89 : vector<16x8xf32>
    %91 = math.exp %90 : vector<16x8xf32>
    %cst_56 = arith.constant 1.000000e+00 : f32
    %92 = vector.broadcast %cst_56 : f32 to vector<16x8xf32>
    %93 = arith.addf %92, %91 : vector<16x8xf32>
    %94 = arith.divf %92, %93 : vector<16x8xf32>
    %cst_57 = arith.constant dense<0.000000e+00> : vector<16x8xf32>
    %95 = tpu.matmul %84, %4, %cst_57 {dimension_numbers = #tpu.dot_dimension_numbers<[1], [0], [0], [1], [0, 0, 1, 1], [], []>} : vector<16x128xbf16>, vector<128x8xbf16>, vector<16x8xf32> -> vector<16x8xf32>
    %c0_58 = arith.constant 0 : index
    %c0_59 = arith.constant 0 : index
    %c0_60 = arith.constant 0 : index
    %96 = vector.load %arg5[%c0_58, %c0_59, %c0_60] : memref<1x4x8xf32, #tpu.memory_space<vmem>>, vector<1x1x8xf32>
    %97 = vector.shape_cast %96 : vector<1x1x8xf32> to vector<1x8xf32>
    %98 = vector.broadcast %97 : vector<1x8xf32> to vector<16x8xf32>
    %99 = arith.addf %95, %98 : vector<16x8xf32>
    %100 = arith.negf %99 : vector<16x8xf32>
    %101 = math.exp %100 : vector<16x8xf32>
    %cst_61 = arith.constant 1.000000e+00 : f32
    %102 = vector.broadcast %cst_61 : f32 to vector<16x8xf32>
    %103 = arith.addf %102, %101 : vector<16x8xf32>
    %104 = arith.divf %102, %103 : vector<16x8xf32>
    %c0_62 = arith.constant 0 : index
    %c0_63 = arith.constant 0 : index
    %c0_64 = arith.constant 0 : index
    %105 = vector.load %arg23[%c0_62, %c0_63, %c0_64] : memref<1x1x8xf32, #tpu.memory_space<vmem>>, vector<1x1x8xf32>
    %106 = vector.shape_cast %105 : vector<1x1x8xf32> to vector<1x8xf32>
    %c0_65 = arith.constant 0 : index
    %c0_66 = arith.constant 0 : index
    %c0_67 = arith.constant 0 : index
    %107 = vector.load %arg24[%c0_65, %c0_66, %c0_67] : memref<1x1x8xf32, #tpu.memory_space<vmem>>, vector<1x1x8xf32>
    %108 = vector.shape_cast %107 : vector<1x1x8xf32> to vector<1x8xf32>
    %109 = vector.broadcast %106 : vector<1x8xf32> to vector<16x8xf32>
    %110 = arith.mulf %32, %109 : vector<16x8xf32>
    %111 = vector.broadcast %108 : vector<1x8xf32> to vector<16x8xf32>
    %112 = arith.addf %110, %111 : vector<16x8xf32>
    %113 = arith.truncf %112 : vector<16x8xf32> to vector<16x8xbf16>
    %cst_68 = arith.constant dense<0.000000e+00> : vector<16x16xf32>
    %114 = tpu.matmul %113, %113, %cst_68 {dimension_numbers = #tpu.dot_dimension_numbers<[1], [1], [0], [0], [0, 0, 1, 0], [], []>} : vector<16x8xbf16>, vector<16x8xbf16>, vector<16x16xf32> -> vector<16x16xf32>
    %cst_69 = arith.constant dense<0xFF800000> : vector<16xf32>
    %115 = vector.multi_reduction <maximumf>, %114, %cst_69 [1] : vector<16x16xf32> to vector<16xf32>
    %116 = vector.shape_cast %115 : vector<16xf32> to vector<16x1xf32>
    %117 = vector.broadcast %116 : vector<16x1xf32> to vector<16x16xf32>
    %118 = arith.subf %114, %117 : vector<16x16xf32>
    %119 = math.exp %118 : vector<16x16xf32>
    %cst_70 = arith.constant dense<0.000000e+00> : vector<16xf32>
    %120 = vector.multi_reduction <add>, %119, %cst_70 [1] : vector<16x16xf32> to vector<16xf32>
    %121 = vector.shape_cast %120 : vector<16xf32> to vector<16x1xf32>
    %122 = tpu.reciprocal %121 {approx = true} : vector<16x1xf32> -> vector<16x1xf32>
    %123 = vector.broadcast %122 : vector<16x1xf32> to vector<16x16xf32>
    %124 = arith.mulf %119, %123 : vector<16x16xf32>
    %125 = arith.mulf %94, %6 : vector<16x8xf32>
    %c0_71 = arith.constant 0 : index
    %c0_72 = arith.constant 0 : index
    %c0_73 = arith.constant 0 : index
    %126 = vector.load %arg19[%c0_71, %c0_72, %c0_73] : memref<1x1x64xbf16, #tpu.memory_space<vmem>>, vector<1x1x64xbf16>
    %127 = vector.shape_cast %126 : vector<1x1x64xbf16> to vector<1x64xbf16>
    %c0_74 = arith.constant 0 : index
    %c0_75 = arith.constant 0 : index
    %c0_76 = arith.constant 0 : index
    %128 = vector.load %arg20[%c0_74, %c0_75, %c0_76] : memref<1x8x64xbf16, #tpu.memory_space<vmem>>, vector<1x8x64xbf16>
    %129 = vector.shape_cast %128 : vector<1x8x64xbf16> to vector<8x64xbf16>
    %c0_77 = arith.constant 0 : index
    %c0_78 = arith.constant 0 : index
    %c0_79 = arith.constant 0 : index
    %130 = vector.load %arg21[%c0_77, %c0_78, %c0_79] : memref<1x1x64xbf16, #tpu.memory_space<vmem>>, vector<1x1x64xbf16>
    %131 = vector.shape_cast %130 : vector<1x1x64xbf16> to vector<1x64xbf16>
    %c0_80 = arith.constant 0 : index
    %c0_81 = arith.constant 0 : index
    %c0_82 = arith.constant 0 : index
    %132 = vector.load %arg22[%c0_80, %c0_81, %c0_82] : memref<1x8x64xbf16, #tpu.memory_space<vmem>>, vector<1x8x64xbf16>
    %133 = vector.shape_cast %132 : vector<1x8x64xbf16> to vector<8x64xbf16>
    %134 = arith.truncf %125 : vector<16x8xf32> to vector<16x8xbf16>
    %135 = arith.truncf %124 : vector<16x16xf32> to vector<16x16xbf16>
    %136 = arith.extf %127 : vector<1x64xbf16> to vector<1x64xf32>
    %137 = vector.broadcast %8 : vector<16x1xf32> to vector<16x64xf32>
    %138 = vector.broadcast %136 : vector<1x64xf32> to vector<16x64xf32>
    %139 = arith.mulf %137, %138 : vector<16x64xf32>
    %140 = vector.broadcast %10 : vector<1x16xf32> to vector<16x16xf32>
    %141 = arith.mulf %124, %140 : vector<16x16xf32>
    %cst_83 = arith.constant dense<0.000000e+00> : vector<16xf32>
    %142 = vector.multi_reduction <add>, %141, %cst_83 [1] : vector<16x16xf32> to vector<16xf32>
    %143 = vector.shape_cast %142 : vector<16xf32> to vector<16x1xf32>
    %144 = arith.extf %131 : vector<1x64xbf16> to vector<1x64xf32>
    %145 = vector.broadcast %143 : vector<16x1xf32> to vector<16x64xf32>
    %146 = vector.broadcast %144 : vector<1x64xf32> to vector<16x64xf32>
    %147 = arith.mulf %145, %146 : vector<16x64xf32>
    %cst_84 = arith.constant dense<0.000000e+00> : vector<16x8xf32>
    %148 = tpu.matmul %135, %134, %cst_84 {dimension_numbers = #tpu.dot_dimension_numbers<[1], [0], [0], [1], [0, 0, 1, 1], [], []>} : vector<16x16xbf16>, vector<16x8xbf16>, vector<16x8xf32> -> vector<16x8xf32>
    %cst_85 = arith.constant dense<0.000000e+00> : vector<16x64xf32>
    %149 = tpu.matmul %134, %129, %cst_85 {dimension_numbers = #tpu.dot_dimension_numbers<[1], [0], [0], [1], [0, 0, 1, 1], [], []>} : vector<16x8xbf16>, vector<8x64xbf16>, vector<16x64xf32> -> vector<16x64xf32>
    %150 = arith.addf %139, %149 : vector<16x64xf32>
    %151 = arith.addf %150, %147 : vector<16x64xf32>
    %152 = arith.truncf %148 : vector<16x8xf32> to vector<16x8xbf16>
    %cst_86 = arith.constant dense<0.000000e+00> : vector<16x64xf32>
    %153 = tpu.matmul %152, %133, %cst_86 {dimension_numbers = #tpu.dot_dimension_numbers<[1], [0], [0], [1], [0, 0, 1, 1], [], []>} : vector<16x8xbf16>, vector<8x64xbf16>, vector<16x64xf32> -> vector<16x64xf32>
    %154 = arith.addf %151, %153 : vector<16x64xf32>
    %155 = arith.extf %2 : vector<16x64xbf16> to vector<16x64xf32>
    %156 = arith.mulf %154, %155 : vector<16x64xf32>
    %157 = arith.truncf %156 : vector<16x64xf32> to vector<16x64xbf16>
    %cst_87 = arith.constant dense<0.000000e+00> : vector<16x8xf32>
    %158 = tpu.matmul %157, %5, %cst_87 {dimension_numbers = #tpu.dot_dimension_numbers<[1], [0], [0], [1], [0, 0, 1, 1], [], []>} : vector<16x64xbf16>, vector<64x8xbf16>, vector<16x8xf32> -> vector<16x8xf32>
    %c0_88 = arith.constant 0 : index
    %c0_89 = arith.constant 0 : index
    %c0_90 = arith.constant 0 : index
    %159 = vector.load %arg6[%c0_88, %c0_89, %c0_90] : memref<1x4x8xf32, #tpu.memory_space<vmem>>, vector<1x1x8xf32>
    %160 = vector.shape_cast %159 : vector<1x1x8xf32> to vector<1x8xf32>
    %161 = vector.broadcast %160 : vector<1x8xf32> to vector<16x8xf32>
    %162 = arith.addf %158, %161 : vector<16x8xf32>
    %163 = math.tanh %162 : vector<16x8xf32>
    %164 = arith.mulf %104, %6 : vector<16x8xf32>
    %cst_91 = arith.constant 1.000000e+00 : f32
    %165 = vector.broadcast %cst_91 : f32 to vector<16x8xf32>
    %166 = arith.subf %165, %104 : vector<16x8xf32>
    %167 = arith.mulf %166, %163 : vector<16x8xf32>
    %168 = arith.addf %164, %167 : vector<16x8xf32>
    %c0_92 = arith.constant 0 : index
    %c1 = arith.constant 1 : index
    %c0_93 = arith.constant 0 : index
    %c0_94 = arith.constant 0 : index
    %169 = vector.load %arg1[%c0_92, %c1, %c0_93, %c0_94] : memref<1x4x16x1xf32, #tpu.memory_space<vmem>>, vector<1x1x16x1xf32>
    %170 = vector.shape_cast %169 : vector<1x1x16x1xf32> to vector<16x1xf32>
    %c0_95 = arith.constant 0 : index
    %c1_96 = arith.constant 1 : index
    %c0_97 = arith.constant 0 : index
    %c0_98 = arith.constant 0 : index
    %171 = vector.load %arg2[%c0_95, %c1_96, %c0_97, %c0_98] : memref<1x4x1x16xf32, #tpu.memory_space<vmem>>, vector<1x1x1x16xf32>
    %172 = vector.shape_cast %171 : vector<1x1x1x16xf32> to vector<1x16xf32>
    %c0_99 = arith.constant 0 : index
    %c1_100 = arith.constant 1 : index
    %c0_101 = arith.constant 0 : index
    %173 = vector.load %arg3[%c0_99, %c1_100, %c0_101] : memref<1x4x8xf32, #tpu.memory_space<vmem>>, vector<1x1x8xf32>
    %174 = vector.shape_cast %173 : vector<1x1x8xf32> to vector<1x8xf32>
    %175 = vector.broadcast %174 : vector<1x8xf32> to vector<16x8xf32>
    %176 = arith.addf %0, %175 : vector<16x8xf32>
    %cst_102 = arith.constant dense<0.000000e+00> : vector<16xf32>
    %177 = vector.multi_reduction <add>, %176, %cst_102 [1] : vector<16x8xf32> to vector<16xf32>
    %178 = vector.shape_cast %177 : vector<16xf32> to vector<16x1xf32>
    %cst_103 = arith.constant 8.000000e+00 : f32
    %179 = vector.broadcast %cst_103 : f32 to vector<16x1xf32>
    %180 = arith.divf %178, %179 : vector<16x1xf32>
    %181 = vector.broadcast %180 : vector<16x1xf32> to vector<16x8xf32>
    %182 = arith.subf %176, %181 : vector<16x8xf32>
    %183 = arith.mulf %182, %182 : vector<16x8xf32>
    %cst_104 = arith.constant dense<0.000000e+00> : vector<16xf32>
    %184 = vector.multi_reduction <add>, %183, %cst_104 [1] : vector<16x8xf32> to vector<16xf32>
    %185 = vector.shape_cast %184 : vector<16xf32> to vector<16x1xf32>
    %cst_105 = arith.constant 8.000000e+00 : f32
    %186 = vector.broadcast %cst_105 : f32 to vector<16x1xf32>
    %187 = arith.divf %185, %186 : vector<16x1xf32>
    %188 = vector.broadcast %180 : vector<16x1xf32> to vector<16x8xf32>
    %189 = arith.subf %176, %188 : vector<16x8xf32>
    %cst_106 = arith.constant 9.99999996E-13 : f32
    %190 = vector.broadcast %cst_106 : f32 to vector<16x1xf32>
    %191 = arith.addf %187, %190 : vector<16x1xf32>
    %192 = math.rsqrt %191 : vector<16x1xf32>
    %193 = vector.broadcast %192 : vector<16x1xf32> to vector<16x8xf32>
    %194 = arith.mulf %189, %193 : vector<16x8xf32>
    %c0_107 = arith.constant 0 : index
    %c0_108 = arith.constant 0 : index
    %c0_109 = arith.constant 0 : index
    %195 = vector.load %arg17[%c0_107, %c0_108, %c0_109] : memref<1x1x8xf32, #tpu.memory_space<vmem>>, vector<1x1x8xf32>
    %196 = vector.shape_cast %195 : vector<1x1x8xf32> to vector<1x8xf32>
    %c0_110 = arith.constant 0 : index
    %c0_111 = arith.constant 0 : index
    %c0_112 = arith.constant 0 : index
    %197 = vector.load %arg18[%c0_110, %c0_111, %c0_112] : memref<1x1x8xf32, #tpu.memory_space<vmem>>, vector<1x1x8xf32>
    %198 = vector.shape_cast %197 : vector<1x1x8xf32> to vector<1x8xf32>
    %199 = vector.broadcast %196 : vector<1x8xf32> to vector<16x8xf32>
    %200 = arith.mulf %194, %199 : vector<16x8xf32>
    %201 = vector.broadcast %198 : vector<1x8xf32> to vector<16x8xf32>
    %202 = arith.addf %200, %201 : vector<16x8xf32>
    %203 = arith.truncf %202 : vector<16x8xf32> to vector<16x8xbf16>
    %cst_113 = arith.constant dense<0.000000e+00> : vector<16x16xf32>
    %204 = tpu.matmul %203, %203, %cst_113 {dimension_numbers = #tpu.dot_dimension_numbers<[1], [1], [0], [0], [0, 0, 1, 0], [], []>} : vector<16x8xbf16>, vector<16x8xbf16>, vector<16x16xf32> -> vector<16x16xf32>
    %cst_114 = arith.constant dense<0xFF800000> : vector<16xf32>
    %205 = vector.multi_reduction <maximumf>, %204, %cst_114 [1] : vector<16x16xf32> to vector<16xf32>
    %206 = vector.shape_cast %205 : vector<16xf32> to vector<16x1xf32>
    %207 = vector.broadcast %206 : vector<16x1xf32> to vector<16x16xf32>
    %208 = arith.subf %204, %207 : vector<16x16xf32>
    %209 = math.exp %208 : vector<16x16xf32>
    %cst_115 = arith.constant dense<0.000000e+00> : vector<16xf32>
    %210 = vector.multi_reduction <add>, %209, %cst_115 [1] : vector<16x16xf32> to vector<16xf32>
    %211 = vector.shape_cast %210 : vector<16xf32> to vector<16x1xf32>
    %212 = tpu.reciprocal %211 {approx = true} : vector<16x1xf32> -> vector<16x1xf32>
    %213 = vector.broadcast %212 : vector<16x1xf32> to vector<16x16xf32>
    %214 = arith.mulf %209, %213 : vector<16x16xf32>
    %c0_116 = arith.constant 0 : index
    %c0_117 = arith.constant 0 : index
    %c0_118 = arith.constant 0 : index
    %215 = vector.load %arg13[%c0_116, %c0_117, %c0_118] : memref<1x1x128xbf16, #tpu.memory_space<vmem>>, vector<1x1x128xbf16>
    %216 = vector.shape_cast %215 : vector<1x1x128xbf16> to vector<1x128xbf16>
    %c0_119 = arith.constant 0 : index
    %c0_120 = arith.constant 0 : index
    %c0_121 = arith.constant 0 : index
    %217 = vector.load %arg14[%c0_119, %c0_120, %c0_121] : memref<1x8x128xbf16, #tpu.memory_space<vmem>>, vector<1x8x128xbf16>
    %218 = vector.shape_cast %217 : vector<1x8x128xbf16> to vector<8x128xbf16>
    %c0_122 = arith.constant 0 : index
    %c0_123 = arith.constant 0 : index
    %c0_124 = arith.constant 0 : index
    %219 = vector.load %arg15[%c0_122, %c0_123, %c0_124] : memref<1x1x128xbf16, #tpu.memory_space<vmem>>, vector<1x1x128xbf16>
    %220 = vector.shape_cast %219 : vector<1x1x128xbf16> to vector<1x128xbf16>
    %c0_125 = arith.constant 0 : index
    %c0_126 = arith.constant 0 : index
    %c0_127 = arith.constant 0 : index
    %221 = vector.load %arg16[%c0_125, %c0_126, %c0_127] : memref<1x8x128xbf16, #tpu.memory_space<vmem>>, vector<1x8x128xbf16>
    %222 = vector.shape_cast %221 : vector<1x8x128xbf16> to vector<8x128xbf16>
    %223 = arith.truncf %168 : vector<16x8xf32> to vector<16x8xbf16>
    %224 = arith.truncf %214 : vector<16x16xf32> to vector<16x16xbf16>
    %225 = arith.extf %216 : vector<1x128xbf16> to vector<1x128xf32>
    %226 = vector.broadcast %170 : vector<16x1xf32> to vector<16x128xf32>
    %227 = vector.broadcast %225 : vector<1x128xf32> to vector<16x128xf32>
    %228 = arith.mulf %226, %227 : vector<16x128xf32>
    %229 = vector.broadcast %172 : vector<1x16xf32> to vector<16x16xf32>
    %230 = arith.mulf %214, %229 : vector<16x16xf32>
    %cst_128 = arith.constant dense<0.000000e+00> : vector<16xf32>
    %231 = vector.multi_reduction <add>, %230, %cst_128 [1] : vector<16x16xf32> to vector<16xf32>
    %232 = vector.shape_cast %231 : vector<16xf32> to vector<16x1xf32>
    %233 = arith.extf %220 : vector<1x128xbf16> to vector<1x128xf32>
    %234 = vector.broadcast %232 : vector<16x1xf32> to vector<16x128xf32>
    %235 = vector.broadcast %233 : vector<1x128xf32> to vector<16x128xf32>
    %236 = arith.mulf %234, %235 : vector<16x128xf32>
    %cst_129 = arith.constant dense<0.000000e+00> : vector<16x8xf32>
    %237 = tpu.matmul %224, %223, %cst_129 {dimension_numbers = #tpu.dot_dimension_numbers<[1], [0], [0], [1], [0, 0, 1, 1], [], []>} : vector<16x16xbf16>, vector<16x8xbf16>, vector<16x8xf32> -> vector<16x8xf32>
    %cst_130 = arith.constant dense<0.000000e+00> : vector<16x128xf32>
    %238 = tpu.matmul %223, %218, %cst_130 {dimension_numbers = #tpu.dot_dimension_numbers<[1], [0], [0], [1], [0, 0, 1, 1], [], []>} : vector<16x8xbf16>, vector<8x128xbf16>, vector<16x128xf32> -> vector<16x128xf32>
    %239 = arith.addf %228, %238 : vector<16x128xf32>
    %240 = arith.addf %239, %236 : vector<16x128xf32>
    %241 = arith.truncf %237 : vector<16x8xf32> to vector<16x8xbf16>
    %cst_131 = arith.constant dense<0.000000e+00> : vector<16x128xf32>
    %242 = tpu.matmul %241, %222, %cst_131 {dimension_numbers = #tpu.dot_dimension_numbers<[1], [0], [0], [1], [0, 0, 1, 1], [], []>} : vector<16x8xbf16>, vector<8x128xbf16>, vector<16x128xf32> -> vector<16x128xf32>
    %243 = arith.addf %240, %242 : vector<16x128xf32>
    %244 = arith.extf %1 : vector<16x128xbf16> to vector<16x128xf32>
    %245 = arith.mulf %243, %244 : vector<16x128xf32>
    %246 = arith.truncf %245 : vector<16x128xf32> to vector<16x128xbf16>
    %cst_132 = arith.constant dense<0.000000e+00> : vector<16x8xf32>
    %247 = tpu.matmul %246, %3, %cst_132 {dimension_numbers = #tpu.dot_dimension_numbers<[1], [0], [0], [1], [0, 0, 1, 1], [], []>} : vector<16x128xbf16>, vector<128x8xbf16>, vector<16x8xf32> -> vector<16x8xf32>
    %c0_133 = arith.constant 0 : index
    %c1_134 = arith.constant 1 : index
    %c0_135 = arith.constant 0 : index
    %248 = vector.load %arg4[%c0_133, %c1_134, %c0_135] : memref<1x4x8xf32, #tpu.memory_space<vmem>>, vector<1x1x8xf32>
    %249 = vector.shape_cast %248 : vector<1x1x8xf32> to vector<1x8xf32>
    %250 = vector.broadcast %249 : vector<1x8xf32> to vector<16x8xf32>
    %251 = arith.addf %247, %250 : vector<16x8xf32>
    %252 = arith.negf %251 : vector<16x8xf32>
    %253 = math.exp %252 : vector<16x8xf32>
    %cst_136 = arith.constant 1.000000e+00 : f32
    %254 = vector.broadcast %cst_136 : f32 to vector<16x8xf32>
    %255 = arith.addf %254, %253 : vector<16x8xf32>
    %256 = arith.divf %254, %255 : vector<16x8xf32>
    %cst_137 = arith.constant dense<0.000000e+00> : vector<16x8xf32>
    %257 = tpu.matmul %246, %4, %cst_137 {dimension_numbers = #tpu.dot_dimension_numbers<[1], [0], [0], [1], [0, 0, 1, 1], [], []>} : vector<16x128xbf16>, vector<128x8xbf16>, vector<16x8xf32> -> vector<16x8xf32>
    %c0_138 = arith.constant 0 : index
    %c1_139 = arith.constant 1 : index
    %c0_140 = arith.constant 0 : index
    %258 = vector.load %arg5[%c0_138, %c1_139, %c0_140] : memref<1x4x8xf32, #tpu.memory_space<vmem>>, vector<1x1x8xf32>
    %259 = vector.shape_cast %258 : vector<1x1x8xf32> to vector<1x8xf32>
    %260 = vector.broadcast %259 : vector<1x8xf32> to vector<16x8xf32>
    %261 = arith.addf %257, %260 : vector<16x8xf32>
    %262 = arith.negf %261 : vector<16x8xf32>
    %263 = math.exp %262 : vector<16x8xf32>
    %cst_141 = arith.constant 1.000000e+00 : f32
    %264 = vector.broadcast %cst_141 : f32 to vector<16x8xf32>
    %265 = arith.addf %264, %263 : vector<16x8xf32>
    %266 = arith.divf %264, %265 : vector<16x8xf32>
    %c0_142 = arith.constant 0 : index
    %c0_143 = arith.constant 0 : index
    %c0_144 = arith.constant 0 : index
    %267 = vector.load %arg23[%c0_142, %c0_143, %c0_144] : memref<1x1x8xf32, #tpu.memory_space<vmem>>, vector<1x1x8xf32>
    %268 = vector.shape_cast %267 : vector<1x1x8xf32> to vector<1x8xf32>
    %c0_145 = arith.constant 0 : index
    %c0_146 = arith.constant 0 : index
    %c0_147 = arith.constant 0 : index
    %269 = vector.load %arg24[%c0_145, %c0_146, %c0_147] : memref<1x1x8xf32, #tpu.memory_space<vmem>>, vector<1x1x8xf32>
    %270 = vector.shape_cast %269 : vector<1x1x8xf32> to vector<1x8xf32>
    %271 = vector.broadcast %268 : vector<1x8xf32> to vector<16x8xf32>
    %272 = arith.mulf %194, %271 : vector<16x8xf32>
    %273 = vector.broadcast %270 : vector<1x8xf32> to vector<16x8xf32>
    %274 = arith.addf %272, %273 : vector<16x8xf32>
    %275 = arith.truncf %274 : vector<16x8xf32> to vector<16x8xbf16>
    %cst_148 = arith.constant dense<0.000000e+00> : vector<16x16xf32>
    %276 = tpu.matmul %275, %275, %cst_148 {dimension_numbers = #tpu.dot_dimension_numbers<[1], [1], [0], [0], [0, 0, 1, 0], [], []>} : vector<16x8xbf16>, vector<16x8xbf16>, vector<16x16xf32> -> vector<16x16xf32>
    %cst_149 = arith.constant dense<0xFF800000> : vector<16xf32>
    %277 = vector.multi_reduction <maximumf>, %276, %cst_149 [1] : vector<16x16xf32> to vector<16xf32>
    %278 = vector.shape_cast %277 : vector<16xf32> to vector<16x1xf32>
    %279 = vector.broadcast %278 : vector<16x1xf32> to vector<16x16xf32>
    %280 = arith.subf %276, %279 : vector<16x16xf32>
    %281 = math.exp %280 : vector<16x16xf32>
    %cst_150 = arith.constant dense<0.000000e+00> : vector<16xf32>
    %282 = vector.multi_reduction <add>, %281, %cst_150 [1] : vector<16x16xf32> to vector<16xf32>
    %283 = vector.shape_cast %282 : vector<16xf32> to vector<16x1xf32>
    %284 = tpu.reciprocal %283 {approx = true} : vector<16x1xf32> -> vector<16x1xf32>
    %285 = vector.broadcast %284 : vector<16x1xf32> to vector<16x16xf32>
    %286 = arith.mulf %281, %285 : vector<16x16xf32>
    %287 = arith.mulf %256, %168 : vector<16x8xf32>
    %c0_151 = arith.constant 0 : index
    %c0_152 = arith.constant 0 : index
    %c0_153 = arith.constant 0 : index
    %288 = vector.load %arg19[%c0_151, %c0_152, %c0_153] : memref<1x1x64xbf16, #tpu.memory_space<vmem>>, vector<1x1x64xbf16>
    %289 = vector.shape_cast %288 : vector<1x1x64xbf16> to vector<1x64xbf16>
    %c0_154 = arith.constant 0 : index
    %c0_155 = arith.constant 0 : index
    %c0_156 = arith.constant 0 : index
    %290 = vector.load %arg20[%c0_154, %c0_155, %c0_156] : memref<1x8x64xbf16, #tpu.memory_space<vmem>>, vector<1x8x64xbf16>
    %291 = vector.shape_cast %290 : vector<1x8x64xbf16> to vector<8x64xbf16>
    %c0_157 = arith.constant 0 : index
    %c0_158 = arith.constant 0 : index
    %c0_159 = arith.constant 0 : index
    %292 = vector.load %arg21[%c0_157, %c0_158, %c0_159] : memref<1x1x64xbf16, #tpu.memory_space<vmem>>, vector<1x1x64xbf16>
    %293 = vector.shape_cast %292 : vector<1x1x64xbf16> to vector<1x64xbf16>
    %c0_160 = arith.constant 0 : index
    %c0_161 = arith.constant 0 : index
    %c0_162 = arith.constant 0 : index
    %294 = vector.load %arg22[%c0_160, %c0_161, %c0_162] : memref<1x8x64xbf16, #tpu.memory_space<vmem>>, vector<1x8x64xbf16>
    %295 = vector.shape_cast %294 : vector<1x8x64xbf16> to vector<8x64xbf16>
    %296 = arith.truncf %287 : vector<16x8xf32> to vector<16x8xbf16>
    %297 = arith.truncf %286 : vector<16x16xf32> to vector<16x16xbf16>
    %298 = arith.extf %289 : vector<1x64xbf16> to vector<1x64xf32>
    %299 = vector.broadcast %170 : vector<16x1xf32> to vector<16x64xf32>
    %300 = vector.broadcast %298 : vector<1x64xf32> to vector<16x64xf32>
    %301 = arith.mulf %299, %300 : vector<16x64xf32>
    %302 = vector.broadcast %172 : vector<1x16xf32> to vector<16x16xf32>
    %303 = arith.mulf %286, %302 : vector<16x16xf32>
    %cst_163 = arith.constant dense<0.000000e+00> : vector<16xf32>
    %304 = vector.multi_reduction <add>, %303, %cst_163 [1] : vector<16x16xf32> to vector<16xf32>
    %305 = vector.shape_cast %304 : vector<16xf32> to vector<16x1xf32>
    %306 = arith.extf %293 : vector<1x64xbf16> to vector<1x64xf32>
    %307 = vector.broadcast %305 : vector<16x1xf32> to vector<16x64xf32>
    %308 = vector.broadcast %306 : vector<1x64xf32> to vector<16x64xf32>
    %309 = arith.mulf %307, %308 : vector<16x64xf32>
    %cst_164 = arith.constant dense<0.000000e+00> : vector<16x8xf32>
    %310 = tpu.matmul %297, %296, %cst_164 {dimension_numbers = #tpu.dot_dimension_numbers<[1], [0], [0], [1], [0, 0, 1, 1], [], []>} : vector<16x16xbf16>, vector<16x8xbf16>, vector<16x8xf32> -> vector<16x8xf32>
    %cst_165 = arith.constant dense<0.000000e+00> : vector<16x64xf32>
    %311 = tpu.matmul %296, %291, %cst_165 {dimension_numbers = #tpu.dot_dimension_numbers<[1], [0], [0], [1], [0, 0, 1, 1], [], []>} : vector<16x8xbf16>, vector<8x64xbf16>, vector<16x64xf32> -> vector<16x64xf32>
    %312 = arith.addf %301, %311 : vector<16x64xf32>
    %313 = arith.addf %312, %309 : vector<16x64xf32>
    %314 = arith.truncf %310 : vector<16x8xf32> to vector<16x8xbf16>
    %cst_166 = arith.constant dense<0.000000e+00> : vector<16x64xf32>
    %315 = tpu.matmul %314, %295, %cst_166 {dimension_numbers = #tpu.dot_dimension_numbers<[1], [0], [0], [1], [0, 0, 1, 1], [], []>} : vector<16x8xbf16>, vector<8x64xbf16>, vector<16x64xf32> -> vector<16x64xf32>
    %316 = arith.addf %313, %315 : vector<16x64xf32>
    %317 = arith.extf %2 : vector<16x64xbf16> to vector<16x64xf32>
    %318 = arith.mulf %316, %317 : vector<16x64xf32>
    %319 = arith.truncf %318 : vector<16x64xf32> to vector<16x64xbf16>
    %cst_167 = arith.constant dense<0.000000e+00> : vector<16x8xf32>
    %320 = tpu.matmul %319, %5, %cst_167 {dimension_numbers = #tpu.dot_dimension_numbers<[1], [0], [0], [1], [0, 0, 1, 1], [], []>} : vector<16x64xbf16>, vector<64x8xbf16>, vector<16x8xf32> -> vector<16x8xf32>
    %c0_168 = arith.constant 0 : index
    %c1_169 = arith.constant 1 : index
    %c0_170 = arith.constant 0 : index
    %321 = vector.load %arg6[%c0_168, %c1_169, %c0_170] : memref<1x4x8xf32, #tpu.memory_space<vmem>>, vector<1x1x8xf32>
    %322 = vector.shape_cast %321 : vector<1x1x8xf32> to vector<1x8xf32>
    %323 = vector.broadcast %322 : vector<1x8xf32> to vector<16x8xf32>
    %324 = arith.addf %320, %323 : vector<16x8xf32>
    %325 = math.tanh %324 : vector<16x8xf32>
    %326 = arith.mulf %266, %168 : vector<16x8xf32>
    %cst_171 = arith.constant 1.000000e+00 : f32
    %327 = vector.broadcast %cst_171 : f32 to vector<16x8xf32>
    %328 = arith.subf %327, %266 : vector<16x8xf32>
    %329 = arith.mulf %328, %325 : vector<16x8xf32>
    %330 = arith.addf %326, %329 : vector<16x8xf32>
    %c0_172 = arith.constant 0 : index
    %c2 = arith.constant 2 : index
    %c0_173 = arith.constant 0 : index
    %c0_174 = arith.constant 0 : index
    %331 = vector.load %arg1[%c0_172, %c2, %c0_173, %c0_174] : memref<1x4x16x1xf32, #tpu.memory_space<vmem>>, vector<1x1x16x1xf32>
    %332 = vector.shape_cast %331 : vector<1x1x16x1xf32> to vector<16x1xf32>
    %c0_175 = arith.constant 0 : index
    %c2_176 = arith.constant 2 : index
    %c0_177 = arith.constant 0 : index
    %c0_178 = arith.constant 0 : index
    %333 = vector.load %arg2[%c0_175, %c2_176, %c0_177, %c0_178] : memref<1x4x1x16xf32, #tpu.memory_space<vmem>>, vector<1x1x1x16xf32>
    %334 = vector.shape_cast %333 : vector<1x1x1x16xf32> to vector<1x16xf32>
    %c0_179 = arith.constant 0 : index
    %c2_180 = arith.constant 2 : index
    %c0_181 = arith.constant 0 : index
    %335 = vector.load %arg3[%c0_179, %c2_180, %c0_181] : memref<1x4x8xf32, #tpu.memory_space<vmem>>, vector<1x1x8xf32>
    %336 = vector.shape_cast %335 : vector<1x1x8xf32> to vector<1x8xf32>
    %337 = vector.broadcast %336 : vector<1x8xf32> to vector<16x8xf32>
    %338 = arith.addf %0, %337 : vector<16x8xf32>
    %cst_182 = arith.constant dense<0.000000e+00> : vector<16xf32>
    %339 = vector.multi_reduction <add>, %338, %cst_182 [1] : vector<16x8xf32> to vector<16xf32>
    %340 = vector.shape_cast %339 : vector<16xf32> to vector<16x1xf32>
    %cst_183 = arith.constant 8.000000e+00 : f32
    %341 = vector.broadcast %cst_183 : f32 to vector<16x1xf32>
    %342 = arith.divf %340, %341 : vector<16x1xf32>
    %343 = vector.broadcast %342 : vector<16x1xf32> to vector<16x8xf32>
    %344 = arith.subf %338, %343 : vector<16x8xf32>
    %345 = arith.mulf %344, %344 : vector<16x8xf32>
    %cst_184 = arith.constant dense<0.000000e+00> : vector<16xf32>
    %346 = vector.multi_reduction <add>, %345, %cst_184 [1] : vector<16x8xf32> to vector<16xf32>
    %347 = vector.shape_cast %346 : vector<16xf32> to vector<16x1xf32>
    %cst_185 = arith.constant 8.000000e+00 : f32
    %348 = vector.broadcast %cst_185 : f32 to vector<16x1xf32>
    %349 = arith.divf %347, %348 : vector<16x1xf32>
    %350 = vector.broadcast %342 : vector<16x1xf32> to vector<16x8xf32>
    %351 = arith.subf %338, %350 : vector<16x8xf32>
    %cst_186 = arith.constant 9.99999996E-13 : f32
    %352 = vector.broadcast %cst_186 : f32 to vector<16x1xf32>
    %353 = arith.addf %349, %352 : vector<16x1xf32>
    %354 = math.rsqrt %353 : vector<16x1xf32>
    %355 = vector.broadcast %354 : vector<16x1xf32> to vector<16x8xf32>
    %356 = arith.mulf %351, %355 : vector<16x8xf32>
    %c0_187 = arith.constant 0 : index
    %c0_188 = arith.constant 0 : index
    %c0_189 = arith.constant 0 : index
    %357 = vector.load %arg17[%c0_187, %c0_188, %c0_189] : memref<1x1x8xf32, #tpu.memory_space<vmem>>, vector<1x1x8xf32>
    %358 = vector.shape_cast %357 : vector<1x1x8xf32> to vector<1x8xf32>
    %c0_190 = arith.constant 0 : index
    %c0_191 = arith.constant 0 : index
    %c0_192 = arith.constant 0 : index
    %359 = vector.load %arg18[%c0_190, %c0_191, %c0_192] : memref<1x1x8xf32, #tpu.memory_space<vmem>>, vector<1x1x8xf32>
    %360 = vector.shape_cast %359 : vector<1x1x8xf32> to vector<1x8xf32>
    %361 = vector.broadcast %358 : vector<1x8xf32> to vector<16x8xf32>
    %362 = arith.mulf %356, %361 : vector<16x8xf32>
    %363 = vector.broadcast %360 : vector<1x8xf32> to vector<16x8xf32>
    %364 = arith.addf %362, %363 : vector<16x8xf32>
    %365 = arith.truncf %364 : vector<16x8xf32> to vector<16x8xbf16>
    %cst_193 = arith.constant dense<0.000000e+00> : vector<16x16xf32>
    %366 = tpu.matmul %365, %365, %cst_193 {dimension_numbers = #tpu.dot_dimension_numbers<[1], [1], [0], [0], [0, 0, 1, 0], [], []>} : vector<16x8xbf16>, vector<16x8xbf16>, vector<16x16xf32> -> vector<16x16xf32>
    %cst_194 = arith.constant dense<0xFF800000> : vector<16xf32>
    %367 = vector.multi_reduction <maximumf>, %366, %cst_194 [1] : vector<16x16xf32> to vector<16xf32>
    %368 = vector.shape_cast %367 : vector<16xf32> to vector<16x1xf32>
    %369 = vector.broadcast %368 : vector<16x1xf32> to vector<16x16xf32>
    %370 = arith.subf %366, %369 : vector<16x16xf32>
    %371 = math.exp %370 : vector<16x16xf32>
    %cst_195 = arith.constant dense<0.000000e+00> : vector<16xf32>
    %372 = vector.multi_reduction <add>, %371, %cst_195 [1] : vector<16x16xf32> to vector<16xf32>
    %373 = vector.shape_cast %372 : vector<16xf32> to vector<16x1xf32>
    %374 = tpu.reciprocal %373 {approx = true} : vector<16x1xf32> -> vector<16x1xf32>
    %375 = vector.broadcast %374 : vector<16x1xf32> to vector<16x16xf32>
    %376 = arith.mulf %371, %375 : vector<16x16xf32>
    %c0_196 = arith.constant 0 : index
    %c0_197 = arith.constant 0 : index
    %c0_198 = arith.constant 0 : index
    %377 = vector.load %arg13[%c0_196, %c0_197, %c0_198] : memref<1x1x128xbf16, #tpu.memory_space<vmem>>, vector<1x1x128xbf16>
    %378 = vector.shape_cast %377 : vector<1x1x128xbf16> to vector<1x128xbf16>
    %c0_199 = arith.constant 0 : index
    %c0_200 = arith.constant 0 : index
    %c0_201 = arith.constant 0 : index
    %379 = vector.load %arg14[%c0_199, %c0_200, %c0_201] : memref<1x8x128xbf16, #tpu.memory_space<vmem>>, vector<1x8x128xbf16>
    %380 = vector.shape_cast %379 : vector<1x8x128xbf16> to vector<8x128xbf16>
    %c0_202 = arith.constant 0 : index
    %c0_203 = arith.constant 0 : index
    %c0_204 = arith.constant 0 : index
    %381 = vector.load %arg15[%c0_202, %c0_203, %c0_204] : memref<1x1x128xbf16, #tpu.memory_space<vmem>>, vector<1x1x128xbf16>
    %382 = vector.shape_cast %381 : vector<1x1x128xbf16> to vector<1x128xbf16>
    %c0_205 = arith.constant 0 : index
    %c0_206 = arith.constant 0 : index
    %c0_207 = arith.constant 0 : index
    %383 = vector.load %arg16[%c0_205, %c0_206, %c0_207] : memref<1x8x128xbf16, #tpu.memory_space<vmem>>, vector<1x8x128xbf16>
    %384 = vector.shape_cast %383 : vector<1x8x128xbf16> to vector<8x128xbf16>
    %385 = arith.truncf %330 : vector<16x8xf32> to vector<16x8xbf16>
    %386 = arith.truncf %376 : vector<16x16xf32> to vector<16x16xbf16>
    %387 = arith.extf %378 : vector<1x128xbf16> to vector<1x128xf32>
    %388 = vector.broadcast %332 : vector<16x1xf32> to vector<16x128xf32>
    %389 = vector.broadcast %387 : vector<1x128xf32> to vector<16x128xf32>
    %390 = arith.mulf %388, %389 : vector<16x128xf32>
    %391 = vector.broadcast %334 : vector<1x16xf32> to vector<16x16xf32>
    %392 = arith.mulf %376, %391 : vector<16x16xf32>
    %cst_208 = arith.constant dense<0.000000e+00> : vector<16xf32>
    %393 = vector.multi_reduction <add>, %392, %cst_208 [1] : vector<16x16xf32> to vector<16xf32>
    %394 = vector.shape_cast %393 : vector<16xf32> to vector<16x1xf32>
    %395 = arith.extf %382 : vector<1x128xbf16> to vector<1x128xf32>
    %396 = vector.broadcast %394 : vector<16x1xf32> to vector<16x128xf32>
    %397 = vector.broadcast %395 : vector<1x128xf32> to vector<16x128xf32>
    %398 = arith.mulf %396, %397 : vector<16x128xf32>
    %cst_209 = arith.constant dense<0.000000e+00> : vector<16x8xf32>
    %399 = tpu.matmul %386, %385, %cst_209 {dimension_numbers = #tpu.dot_dimension_numbers<[1], [0], [0], [1], [0, 0, 1, 1], [], []>} : vector<16x16xbf16>, vector<16x8xbf16>, vector<16x8xf32> -> vector<16x8xf32>
    %cst_210 = arith.constant dense<0.000000e+00> : vector<16x128xf32>
    %400 = tpu.matmul %385, %380, %cst_210 {dimension_numbers = #tpu.dot_dimension_numbers<[1], [0], [0], [1], [0, 0, 1, 1], [], []>} : vector<16x8xbf16>, vector<8x128xbf16>, vector<16x128xf32> -> vector<16x128xf32>
    %401 = arith.addf %390, %400 : vector<16x128xf32>
    %402 = arith.addf %401, %398 : vector<16x128xf32>
    %403 = arith.truncf %399 : vector<16x8xf32> to vector<16x8xbf16>
    %cst_211 = arith.constant dense<0.000000e+00> : vector<16x128xf32>
    %404 = tpu.matmul %403, %384, %cst_211 {dimension_numbers = #tpu.dot_dimension_numbers<[1], [0], [0], [1], [0, 0, 1, 1], [], []>} : vector<16x8xbf16>, vector<8x128xbf16>, vector<16x128xf32> -> vector<16x128xf32>
    %405 = arith.addf %402, %404 : vector<16x128xf32>
    %406 = arith.extf %1 : vector<16x128xbf16> to vector<16x128xf32>
    %407 = arith.mulf %405, %406 : vector<16x128xf32>
    %408 = arith.truncf %407 : vector<16x128xf32> to vector<16x128xbf16>
    %cst_212 = arith.constant dense<0.000000e+00> : vector<16x8xf32>
    %409 = tpu.matmul %408, %3, %cst_212 {dimension_numbers = #tpu.dot_dimension_numbers<[1], [0], [0], [1], [0, 0, 1, 1], [], []>} : vector<16x128xbf16>, vector<128x8xbf16>, vector<16x8xf32> -> vector<16x8xf32>
    %c0_213 = arith.constant 0 : index
    %c2_214 = arith.constant 2 : index
    %c0_215 = arith.constant 0 : index
    %410 = vector.load %arg4[%c0_213, %c2_214, %c0_215] : memref<1x4x8xf32, #tpu.memory_space<vmem>>, vector<1x1x8xf32>
    %411 = vector.shape_cast %410 : vector<1x1x8xf32> to vector<1x8xf32>
    %412 = vector.broadcast %411 : vector<1x8xf32> to vector<16x8xf32>
    %413 = arith.addf %409, %412 : vector<16x8xf32>
    %414 = arith.negf %413 : vector<16x8xf32>
    %415 = math.exp %414 : vector<16x8xf32>
    %cst_216 = arith.constant 1.000000e+00 : f32
    %416 = vector.broadcast %cst_216 : f32 to vector<16x8xf32>
    %417 = arith.addf %416, %415 : vector<16x8xf32>
    %418 = arith.divf %416, %417 : vector<16x8xf32>
    %cst_217 = arith.constant dense<0.000000e+00> : vector<16x8xf32>
    %419 = tpu.matmul %408, %4, %cst_217 {dimension_numbers = #tpu.dot_dimension_numbers<[1], [0], [0], [1], [0, 0, 1, 1], [], []>} : vector<16x128xbf16>, vector<128x8xbf16>, vector<16x8xf32> -> vector<16x8xf32>
    %c0_218 = arith.constant 0 : index
    %c2_219 = arith.constant 2 : index
    %c0_220 = arith.constant 0 : index
    %420 = vector.load %arg5[%c0_218, %c2_219, %c0_220] : memref<1x4x8xf32, #tpu.memory_space<vmem>>, vector<1x1x8xf32>
    %421 = vector.shape_cast %420 : vector<1x1x8xf32> to vector<1x8xf32>
    %422 = vector.broadcast %421 : vector<1x8xf32> to vector<16x8xf32>
    %423 = arith.addf %419, %422 : vector<16x8xf32>
    %424 = arith.negf %423 : vector<16x8xf32>
    %425 = math.exp %424 : vector<16x8xf32>
    %cst_221 = arith.constant 1.000000e+00 : f32
    %426 = vector.broadcast %cst_221 : f32 to vector<16x8xf32>
    %427 = arith.addf %426, %425 : vector<16x8xf32>
    %428 = arith.divf %426, %427 : vector<16x8xf32>
    %c0_222 = arith.constant 0 : index
    %c0_223 = arith.constant 0 : index
    %c0_224 = arith.constant 0 : index
    %429 = vector.load %arg23[%c0_222, %c0_223, %c0_224] : memref<1x1x8xf32, #tpu.memory_space<vmem>>, vector<1x1x8xf32>
    %430 = vector.shape_cast %429 : vector<1x1x8xf32> to vector<1x8xf32>
    %c0_225 = arith.constant 0 : index
    %c0_226 = arith.constant 0 : index
    %c0_227 = arith.constant 0 : index
    %431 = vector.load %arg24[%c0_225, %c0_226, %c0_227] : memref<1x1x8xf32, #tpu.memory_space<vmem>>, vector<1x1x8xf32>
    %432 = vector.shape_cast %431 : vector<1x1x8xf32> to vector<1x8xf32>
    %433 = vector.broadcast %430 : vector<1x8xf32> to vector<16x8xf32>
    %434 = arith.mulf %356, %433 : vector<16x8xf32>
    %435 = vector.broadcast %432 : vector<1x8xf32> to vector<16x8xf32>
    %436 = arith.addf %434, %435 : vector<16x8xf32>
    %437 = arith.truncf %436 : vector<16x8xf32> to vector<16x8xbf16>
    %cst_228 = arith.constant dense<0.000000e+00> : vector<16x16xf32>
    %438 = tpu.matmul %437, %437, %cst_228 {dimension_numbers = #tpu.dot_dimension_numbers<[1], [1], [0], [0], [0, 0, 1, 0], [], []>} : vector<16x8xbf16>, vector<16x8xbf16>, vector<16x16xf32> -> vector<16x16xf32>
    %cst_229 = arith.constant dense<0xFF800000> : vector<16xf32>
    %439 = vector.multi_reduction <maximumf>, %438, %cst_229 [1] : vector<16x16xf32> to vector<16xf32>
    %440 = vector.shape_cast %439 : vector<16xf32> to vector<16x1xf32>
    %441 = vector.broadcast %440 : vector<16x1xf32> to vector<16x16xf32>
    %442 = arith.subf %438, %441 : vector<16x16xf32>
    %443 = math.exp %442 : vector<16x16xf32>
    %cst_230 = arith.constant dense<0.000000e+00> : vector<16xf32>
    %444 = vector.multi_reduction <add>, %443, %cst_230 [1] : vector<16x16xf32> to vector<16xf32>
    %445 = vector.shape_cast %444 : vector<16xf32> to vector<16x1xf32>
    %446 = tpu.reciprocal %445 {approx = true} : vector<16x1xf32> -> vector<16x1xf32>
    %447 = vector.broadcast %446 : vector<16x1xf32> to vector<16x16xf32>
    %448 = arith.mulf %443, %447 : vector<16x16xf32>
    %449 = arith.mulf %418, %330 : vector<16x8xf32>
    %c0_231 = arith.constant 0 : index
    %c0_232 = arith.constant 0 : index
    %c0_233 = arith.constant 0 : index
    %450 = vector.load %arg19[%c0_231, %c0_232, %c0_233] : memref<1x1x64xbf16, #tpu.memory_space<vmem>>, vector<1x1x64xbf16>
    %451 = vector.shape_cast %450 : vector<1x1x64xbf16> to vector<1x64xbf16>
    %c0_234 = arith.constant 0 : index
    %c0_235 = arith.constant 0 : index
    %c0_236 = arith.constant 0 : index
    %452 = vector.load %arg20[%c0_234, %c0_235, %c0_236] : memref<1x8x64xbf16, #tpu.memory_space<vmem>>, vector<1x8x64xbf16>
    %453 = vector.shape_cast %452 : vector<1x8x64xbf16> to vector<8x64xbf16>
    %c0_237 = arith.constant 0 : index
    %c0_238 = arith.constant 0 : index
    %c0_239 = arith.constant 0 : index
    %454 = vector.load %arg21[%c0_237, %c0_238, %c0_239] : memref<1x1x64xbf16, #tpu.memory_space<vmem>>, vector<1x1x64xbf16>
    %455 = vector.shape_cast %454 : vector<1x1x64xbf16> to vector<1x64xbf16>
    %c0_240 = arith.constant 0 : index
    %c0_241 = arith.constant 0 : index
    %c0_242 = arith.constant 0 : index
    %456 = vector.load %arg22[%c0_240, %c0_241, %c0_242] : memref<1x8x64xbf16, #tpu.memory_space<vmem>>, vector<1x8x64xbf16>
    %457 = vector.shape_cast %456 : vector<1x8x64xbf16> to vector<8x64xbf16>
    %458 = arith.truncf %449 : vector<16x8xf32> to vector<16x8xbf16>
    %459 = arith.truncf %448 : vector<16x16xf32> to vector<16x16xbf16>
    %460 = arith.extf %451 : vector<1x64xbf16> to vector<1x64xf32>
    %461 = vector.broadcast %332 : vector<16x1xf32> to vector<16x64xf32>
    %462 = vector.broadcast %460 : vector<1x64xf32> to vector<16x64xf32>
    %463 = arith.mulf %461, %462 : vector<16x64xf32>
    %464 = vector.broadcast %334 : vector<1x16xf32> to vector<16x16xf32>
    %465 = arith.mulf %448, %464 : vector<16x16xf32>
    %cst_243 = arith.constant dense<0.000000e+00> : vector<16xf32>
    %466 = vector.multi_reduction <add>, %465, %cst_243 [1] : vector<16x16xf32> to vector<16xf32>
    %467 = vector.shape_cast %466 : vector<16xf32> to vector<16x1xf32>
    %468 = arith.extf %455 : vector<1x64xbf16> to vector<1x64xf32>
    %469 = vector.broadcast %467 : vector<16x1xf32> to vector<16x64xf32>
    %470 = vector.broadcast %468 : vector<1x64xf32> to vector<16x64xf32>
    %471 = arith.mulf %469, %470 : vector<16x64xf32>
    %cst_244 = arith.constant dense<0.000000e+00> : vector<16x8xf32>
    %472 = tpu.matmul %459, %458, %cst_244 {dimension_numbers = #tpu.dot_dimension_numbers<[1], [0], [0], [1], [0, 0, 1, 1], [], []>} : vector<16x16xbf16>, vector<16x8xbf16>, vector<16x8xf32> -> vector<16x8xf32>
    %cst_245 = arith.constant dense<0.000000e+00> : vector<16x64xf32>
    %473 = tpu.matmul %458, %453, %cst_245 {dimension_numbers = #tpu.dot_dimension_numbers<[1], [0], [0], [1], [0, 0, 1, 1], [], []>} : vector<16x8xbf16>, vector<8x64xbf16>, vector<16x64xf32> -> vector<16x64xf32>
    %474 = arith.addf %463, %473 : vector<16x64xf32>
    %475 = arith.addf %474, %471 : vector<16x64xf32>
    %476 = arith.truncf %472 : vector<16x8xf32> to vector<16x8xbf16>
    %cst_246 = arith.constant dense<0.000000e+00> : vector<16x64xf32>
    %477 = tpu.matmul %476, %457, %cst_246 {dimension_numbers = #tpu.dot_dimension_numbers<[1], [0], [0], [1], [0, 0, 1, 1], [], []>} : vector<16x8xbf16>, vector<8x64xbf16>, vector<16x64xf32> -> vector<16x64xf32>
    %478 = arith.addf %475, %477 : vector<16x64xf32>
    %479 = arith.extf %2 : vector<16x64xbf16> to vector<16x64xf32>
    %480 = arith.mulf %478, %479 : vector<16x64xf32>
    %481 = arith.truncf %480 : vector<16x64xf32> to vector<16x64xbf16>
    %cst_247 = arith.constant dense<0.000000e+00> : vector<16x8xf32>
    %482 = tpu.matmul %481, %5, %cst_247 {dimension_numbers = #tpu.dot_dimension_numbers<[1], [0], [0], [1], [0, 0, 1, 1], [], []>} : vector<16x64xbf16>, vector<64x8xbf16>, vector<16x8xf32> -> vector<16x8xf32>
    %c0_248 = arith.constant 0 : index
    %c2_249 = arith.constant 2 : index
    %c0_250 = arith.constant 0 : index
    %483 = vector.load %arg6[%c0_248, %c2_249, %c0_250] : memref<1x4x8xf32, #tpu.memory_space<vmem>>, vector<1x1x8xf32>
    %484 = vector.shape_cast %483 : vector<1x1x8xf32> to vector<1x8xf32>
    %485 = vector.broadcast %484 : vector<1x8xf32> to vector<16x8xf32>
    %486 = arith.addf %482, %485 : vector<16x8xf32>
    %487 = math.tanh %486 : vector<16x8xf32>
    %488 = arith.mulf %428, %330 : vector<16x8xf32>
    %cst_251 = arith.constant 1.000000e+00 : f32
    %489 = vector.broadcast %cst_251 : f32 to vector<16x8xf32>
    %490 = arith.subf %489, %428 : vector<16x8xf32>
    %491 = arith.mulf %490, %487 : vector<16x8xf32>
    %492 = arith.addf %488, %491 : vector<16x8xf32>
    %c0_252 = arith.constant 0 : index
    %c3 = arith.constant 3 : index
    %c0_253 = arith.constant 0 : index
    %c0_254 = arith.constant 0 : index
    %493 = vector.load %arg1[%c0_252, %c3, %c0_253, %c0_254] : memref<1x4x16x1xf32, #tpu.memory_space<vmem>>, vector<1x1x16x1xf32>
    %494 = vector.shape_cast %493 : vector<1x1x16x1xf32> to vector<16x1xf32>
    %c0_255 = arith.constant 0 : index
    %c3_256 = arith.constant 3 : index
    %c0_257 = arith.constant 0 : index
    %c0_258 = arith.constant 0 : index
    %495 = vector.load %arg2[%c0_255, %c3_256, %c0_257, %c0_258] : memref<1x4x1x16xf32, #tpu.memory_space<vmem>>, vector<1x1x1x16xf32>
    %496 = vector.shape_cast %495 : vector<1x1x1x16xf32> to vector<1x16xf32>
    %c0_259 = arith.constant 0 : index
    %c3_260 = arith.constant 3 : index
    %c0_261 = arith.constant 0 : index
    %497 = vector.load %arg3[%c0_259, %c3_260, %c0_261] : memref<1x4x8xf32, #tpu.memory_space<vmem>>, vector<1x1x8xf32>
    %498 = vector.shape_cast %497 : vector<1x1x8xf32> to vector<1x8xf32>
    %499 = vector.broadcast %498 : vector<1x8xf32> to vector<16x8xf32>
    %500 = arith.addf %0, %499 : vector<16x8xf32>
    %cst_262 = arith.constant dense<0.000000e+00> : vector<16xf32>
    %501 = vector.multi_reduction <add>, %500, %cst_262 [1] : vector<16x8xf32> to vector<16xf32>
    %502 = vector.shape_cast %501 : vector<16xf32> to vector<16x1xf32>
    %cst_263 = arith.constant 8.000000e+00 : f32
    %503 = vector.broadcast %cst_263 : f32 to vector<16x1xf32>
    %504 = arith.divf %502, %503 : vector<16x1xf32>
    %505 = vector.broadcast %504 : vector<16x1xf32> to vector<16x8xf32>
    %506 = arith.subf %500, %505 : vector<16x8xf32>
    %507 = arith.mulf %506, %506 : vector<16x8xf32>
    %cst_264 = arith.constant dense<0.000000e+00> : vector<16xf32>
    %508 = vector.multi_reduction <add>, %507, %cst_264 [1] : vector<16x8xf32> to vector<16xf32>
    %509 = vector.shape_cast %508 : vector<16xf32> to vector<16x1xf32>
    %cst_265 = arith.constant 8.000000e+00 : f32
    %510 = vector.broadcast %cst_265 : f32 to vector<16x1xf32>
    %511 = arith.divf %509, %510 : vector<16x1xf32>
    %512 = vector.broadcast %504 : vector<16x1xf32> to vector<16x8xf32>
    %513 = arith.subf %500, %512 : vector<16x8xf32>
    %cst_266 = arith.constant 9.99999996E-13 : f32
    %514 = vector.broadcast %cst_266 : f32 to vector<16x1xf32>
    %515 = arith.addf %511, %514 : vector<16x1xf32>
    %516 = math.rsqrt %515 : vector<16x1xf32>
    %517 = vector.broadcast %516 : vector<16x1xf32> to vector<16x8xf32>
    %518 = arith.mulf %513, %517 : vector<16x8xf32>
    %c0_267 = arith.constant 0 : index
    %c0_268 = arith.constant 0 : index
    %c0_269 = arith.constant 0 : index
    %519 = vector.load %arg17[%c0_267, %c0_268, %c0_269] : memref<1x1x8xf32, #tpu.memory_space<vmem>>, vector<1x1x8xf32>
    %520 = vector.shape_cast %519 : vector<1x1x8xf32> to vector<1x8xf32>
    %c0_270 = arith.constant 0 : index
    %c0_271 = arith.constant 0 : index
    %c0_272 = arith.constant 0 : index
    %521 = vector.load %arg18[%c0_270, %c0_271, %c0_272] : memref<1x1x8xf32, #tpu.memory_space<vmem>>, vector<1x1x8xf32>
    %522 = vector.shape_cast %521 : vector<1x1x8xf32> to vector<1x8xf32>
    %523 = vector.broadcast %520 : vector<1x8xf32> to vector<16x8xf32>
    %524 = arith.mulf %518, %523 : vector<16x8xf32>
    %525 = vector.broadcast %522 : vector<1x8xf32> to vector<16x8xf32>
    %526 = arith.addf %524, %525 : vector<16x8xf32>
    %527 = arith.truncf %526 : vector<16x8xf32> to vector<16x8xbf16>
    %cst_273 = arith.constant dense<0.000000e+00> : vector<16x16xf32>
    %528 = tpu.matmul %527, %527, %cst_273 {dimension_numbers = #tpu.dot_dimension_numbers<[1], [1], [0], [0], [0, 0, 1, 0], [], []>} : vector<16x8xbf16>, vector<16x8xbf16>, vector<16x16xf32> -> vector<16x16xf32>
    %cst_274 = arith.constant dense<0xFF800000> : vector<16xf32>
    %529 = vector.multi_reduction <maximumf>, %528, %cst_274 [1] : vector<16x16xf32> to vector<16xf32>
    %530 = vector.shape_cast %529 : vector<16xf32> to vector<16x1xf32>
    %531 = vector.broadcast %530 : vector<16x1xf32> to vector<16x16xf32>
    %532 = arith.subf %528, %531 : vector<16x16xf32>
    %533 = math.exp %532 : vector<16x16xf32>
    %cst_275 = arith.constant dense<0.000000e+00> : vector<16xf32>
    %534 = vector.multi_reduction <add>, %533, %cst_275 [1] : vector<16x16xf32> to vector<16xf32>
    %535 = vector.shape_cast %534 : vector<16xf32> to vector<16x1xf32>
    %536 = tpu.reciprocal %535 {approx = true} : vector<16x1xf32> -> vector<16x1xf32>
    %537 = vector.broadcast %536 : vector<16x1xf32> to vector<16x16xf32>
    %538 = arith.mulf %533, %537 : vector<16x16xf32>
    %c0_276 = arith.constant 0 : index
    %c0_277 = arith.constant 0 : index
    %c0_278 = arith.constant 0 : index
    %539 = vector.load %arg13[%c0_276, %c0_277, %c0_278] : memref<1x1x128xbf16, #tpu.memory_space<vmem>>, vector<1x1x128xbf16>
    %540 = vector.shape_cast %539 : vector<1x1x128xbf16> to vector<1x128xbf16>
    %c0_279 = arith.constant 0 : index
    %c0_280 = arith.constant 0 : index
    %c0_281 = arith.constant 0 : index
    %541 = vector.load %arg14[%c0_279, %c0_280, %c0_281] : memref<1x8x128xbf16, #tpu.memory_space<vmem>>, vector<1x8x128xbf16>
    %542 = vector.shape_cast %541 : vector<1x8x128xbf16> to vector<8x128xbf16>
    %c0_282 = arith.constant 0 : index
    %c0_283 = arith.constant 0 : index
    %c0_284 = arith.constant 0 : index
    %543 = vector.load %arg15[%c0_282, %c0_283, %c0_284] : memref<1x1x128xbf16, #tpu.memory_space<vmem>>, vector<1x1x128xbf16>
    %544 = vector.shape_cast %543 : vector<1x1x128xbf16> to vector<1x128xbf16>
    %c0_285 = arith.constant 0 : index
    %c0_286 = arith.constant 0 : index
    %c0_287 = arith.constant 0 : index
    %545 = vector.load %arg16[%c0_285, %c0_286, %c0_287] : memref<1x8x128xbf16, #tpu.memory_space<vmem>>, vector<1x8x128xbf16>
    %546 = vector.shape_cast %545 : vector<1x8x128xbf16> to vector<8x128xbf16>
    %547 = arith.truncf %492 : vector<16x8xf32> to vector<16x8xbf16>
    %548 = arith.truncf %538 : vector<16x16xf32> to vector<16x16xbf16>
    %549 = arith.extf %540 : vector<1x128xbf16> to vector<1x128xf32>
    %550 = vector.broadcast %494 : vector<16x1xf32> to vector<16x128xf32>
    %551 = vector.broadcast %549 : vector<1x128xf32> to vector<16x128xf32>
    %552 = arith.mulf %550, %551 : vector<16x128xf32>
    %553 = vector.broadcast %496 : vector<1x16xf32> to vector<16x16xf32>
    %554 = arith.mulf %538, %553 : vector<16x16xf32>
    %cst_288 = arith.constant dense<0.000000e+00> : vector<16xf32>
    %555 = vector.multi_reduction <add>, %554, %cst_288 [1] : vector<16x16xf32> to vector<16xf32>
    %556 = vector.shape_cast %555 : vector<16xf32> to vector<16x1xf32>
    %557 = arith.extf %544 : vector<1x128xbf16> to vector<1x128xf32>
    %558 = vector.broadcast %556 : vector<16x1xf32> to vector<16x128xf32>
    %559 = vector.broadcast %557 : vector<1x128xf32> to vector<16x128xf32>
    %560 = arith.mulf %558, %559 : vector<16x128xf32>
    %cst_289 = arith.constant dense<0.000000e+00> : vector<16x8xf32>
    %561 = tpu.matmul %548, %547, %cst_289 {dimension_numbers = #tpu.dot_dimension_numbers<[1], [0], [0], [1], [0, 0, 1, 1], [], []>} : vector<16x16xbf16>, vector<16x8xbf16>, vector<16x8xf32> -> vector<16x8xf32>
    %cst_290 = arith.constant dense<0.000000e+00> : vector<16x128xf32>
    %562 = tpu.matmul %547, %542, %cst_290 {dimension_numbers = #tpu.dot_dimension_numbers<[1], [0], [0], [1], [0, 0, 1, 1], [], []>} : vector<16x8xbf16>, vector<8x128xbf16>, vector<16x128xf32> -> vector<16x128xf32>
    %563 = arith.addf %552, %562 : vector<16x128xf32>
    %564 = arith.addf %563, %560 : vector<16x128xf32>
    %565 = arith.truncf %561 : vector<16x8xf32> to vector<16x8xbf16>
    %cst_291 = arith.constant dense<0.000000e+00> : vector<16x128xf32>
    %566 = tpu.matmul %565, %546, %cst_291 {dimension_numbers = #tpu.dot_dimension_numbers<[1], [0], [0], [1], [0, 0, 1, 1], [], []>} : vector<16x8xbf16>, vector<8x128xbf16>, vector<16x128xf32> -> vector<16x128xf32>
    %567 = arith.addf %564, %566 : vector<16x128xf32>
    %568 = arith.extf %1 : vector<16x128xbf16> to vector<16x128xf32>
    %569 = arith.mulf %567, %568 : vector<16x128xf32>
    %570 = arith.truncf %569 : vector<16x128xf32> to vector<16x128xbf16>
    %cst_292 = arith.constant dense<0.000000e+00> : vector<16x8xf32>
    %571 = tpu.matmul %570, %3, %cst_292 {dimension_numbers = #tpu.dot_dimension_numbers<[1], [0], [0], [1], [0, 0, 1, 1], [], []>} : vector<16x128xbf16>, vector<128x8xbf16>, vector<16x8xf32> -> vector<16x8xf32>
    %c0_293 = arith.constant 0 : index
    %c3_294 = arith.constant 3 : index
    %c0_295 = arith.constant 0 : index
    %572 = vector.load %arg4[%c0_293, %c3_294, %c0_295] : memref<1x4x8xf32, #tpu.memory_space<vmem>>, vector<1x1x8xf32>
    %573 = vector.shape_cast %572 : vector<1x1x8xf32> to vector<1x8xf32>
    %574 = vector.broadcast %573 : vector<1x8xf32> to vector<16x8xf32>
    %575 = arith.addf %571, %574 : vector<16x8xf32>
    %576 = arith.negf %575 : vector<16x8xf32>
    %577 = math.exp %576 : vector<16x8xf32>
    %cst_296 = arith.constant 1.000000e+00 : f32
    %578 = vector.broadcast %cst_296 : f32 to vector<16x8xf32>
    %579 = arith.addf %578, %577 : vector<16x8xf32>
    %580 = arith.divf %578, %579 : vector<16x8xf32>
    %cst_297 = arith.constant dense<0.000000e+00> : vector<16x8xf32>
    %581 = tpu.matmul %570, %4, %cst_297 {dimension_numbers = #tpu.dot_dimension_numbers<[1], [0], [0], [1], [0, 0, 1, 1], [], []>} : vector<16x128xbf16>, vector<128x8xbf16>, vector<16x8xf32> -> vector<16x8xf32>
    %c0_298 = arith.constant 0 : index
    %c3_299 = arith.constant 3 : index
    %c0_300 = arith.constant 0 : index
    %582 = vector.load %arg5[%c0_298, %c3_299, %c0_300] : memref<1x4x8xf32, #tpu.memory_space<vmem>>, vector<1x1x8xf32>
    %583 = vector.shape_cast %582 : vector<1x1x8xf32> to vector<1x8xf32>
    %584 = vector.broadcast %583 : vector<1x8xf32> to vector<16x8xf32>
    %585 = arith.addf %581, %584 : vector<16x8xf32>
    %586 = arith.negf %585 : vector<16x8xf32>
    %587 = math.exp %586 : vector<16x8xf32>
    %cst_301 = arith.constant 1.000000e+00 : f32
    %588 = vector.broadcast %cst_301 : f32 to vector<16x8xf32>
    %589 = arith.addf %588, %587 : vector<16x8xf32>
    %590 = arith.divf %588, %589 : vector<16x8xf32>
    %c0_302 = arith.constant 0 : index
    %c0_303 = arith.constant 0 : index
    %c0_304 = arith.constant 0 : index
    %591 = vector.load %arg23[%c0_302, %c0_303, %c0_304] : memref<1x1x8xf32, #tpu.memory_space<vmem>>, vector<1x1x8xf32>
    %592 = vector.shape_cast %591 : vector<1x1x8xf32> to vector<1x8xf32>
    %c0_305 = arith.constant 0 : index
    %c0_306 = arith.constant 0 : index
    %c0_307 = arith.constant 0 : index
    %593 = vector.load %arg24[%c0_305, %c0_306, %c0_307] : memref<1x1x8xf32, #tpu.memory_space<vmem>>, vector<1x1x8xf32>
    %594 = vector.shape_cast %593 : vector<1x1x8xf32> to vector<1x8xf32>
    %595 = vector.broadcast %592 : vector<1x8xf32> to vector<16x8xf32>
    %596 = arith.mulf %518, %595 : vector<16x8xf32>
    %597 = vector.broadcast %594 : vector<1x8xf32> to vector<16x8xf32>
    %598 = arith.addf %596, %597 : vector<16x8xf32>
    %599 = arith.truncf %598 : vector<16x8xf32> to vector<16x8xbf16>
    %cst_308 = arith.constant dense<0.000000e+00> : vector<16x16xf32>
    %600 = tpu.matmul %599, %599, %cst_308 {dimension_numbers = #tpu.dot_dimension_numbers<[1], [1], [0], [0], [0, 0, 1, 0], [], []>} : vector<16x8xbf16>, vector<16x8xbf16>, vector<16x16xf32> -> vector<16x16xf32>
    %cst_309 = arith.constant dense<0xFF800000> : vector<16xf32>
    %601 = vector.multi_reduction <maximumf>, %600, %cst_309 [1] : vector<16x16xf32> to vector<16xf32>
    %602 = vector.shape_cast %601 : vector<16xf32> to vector<16x1xf32>
    %603 = vector.broadcast %602 : vector<16x1xf32> to vector<16x16xf32>
    %604 = arith.subf %600, %603 : vector<16x16xf32>
    %605 = math.exp %604 : vector<16x16xf32>
    %cst_310 = arith.constant dense<0.000000e+00> : vector<16xf32>
    %606 = vector.multi_reduction <add>, %605, %cst_310 [1] : vector<16x16xf32> to vector<16xf32>
    %607 = vector.shape_cast %606 : vector<16xf32> to vector<16x1xf32>
    %608 = tpu.reciprocal %607 {approx = true} : vector<16x1xf32> -> vector<16x1xf32>
    %609 = vector.broadcast %608 : vector<16x1xf32> to vector<16x16xf32>
    %610 = arith.mulf %605, %609 : vector<16x16xf32>
    %611 = arith.mulf %580, %492 : vector<16x8xf32>
    %c0_311 = arith.constant 0 : index
    %c0_312 = arith.constant 0 : index
    %c0_313 = arith.constant 0 : index
    %612 = vector.load %arg19[%c0_311, %c0_312, %c0_313] : memref<1x1x64xbf16, #tpu.memory_space<vmem>>, vector<1x1x64xbf16>
    %613 = vector.shape_cast %612 : vector<1x1x64xbf16> to vector<1x64xbf16>
    %c0_314 = arith.constant 0 : index
    %c0_315 = arith.constant 0 : index
    %c0_316 = arith.constant 0 : index
    %614 = vector.load %arg20[%c0_314, %c0_315, %c0_316] : memref<1x8x64xbf16, #tpu.memory_space<vmem>>, vector<1x8x64xbf16>
    %615 = vector.shape_cast %614 : vector<1x8x64xbf16> to vector<8x64xbf16>
    %c0_317 = arith.constant 0 : index
    %c0_318 = arith.constant 0 : index
    %c0_319 = arith.constant 0 : index
    %616 = vector.load %arg21[%c0_317, %c0_318, %c0_319] : memref<1x1x64xbf16, #tpu.memory_space<vmem>>, vector<1x1x64xbf16>
    %617 = vector.shape_cast %616 : vector<1x1x64xbf16> to vector<1x64xbf16>
    %c0_320 = arith.constant 0 : index
    %c0_321 = arith.constant 0 : index
    %c0_322 = arith.constant 0 : index
    %618 = vector.load %arg22[%c0_320, %c0_321, %c0_322] : memref<1x8x64xbf16, #tpu.memory_space<vmem>>, vector<1x8x64xbf16>
    %619 = vector.shape_cast %618 : vector<1x8x64xbf16> to vector<8x64xbf16>
    %620 = arith.truncf %611 : vector<16x8xf32> to vector<16x8xbf16>
    %621 = arith.truncf %610 : vector<16x16xf32> to vector<16x16xbf16>
    %622 = arith.extf %613 : vector<1x64xbf16> to vector<1x64xf32>
    %623 = vector.broadcast %494 : vector<16x1xf32> to vector<16x64xf32>
    %624 = vector.broadcast %622 : vector<1x64xf32> to vector<16x64xf32>
    %625 = arith.mulf %623, %624 : vector<16x64xf32>
    %626 = vector.broadcast %496 : vector<1x16xf32> to vector<16x16xf32>
    %627 = arith.mulf %610, %626 : vector<16x16xf32>
    %cst_323 = arith.constant dense<0.000000e+00> : vector<16xf32>
    %628 = vector.multi_reduction <add>, %627, %cst_323 [1] : vector<16x16xf32> to vector<16xf32>
    %629 = vector.shape_cast %628 : vector<16xf32> to vector<16x1xf32>
    %630 = arith.extf %617 : vector<1x64xbf16> to vector<1x64xf32>
    %631 = vector.broadcast %629 : vector<16x1xf32> to vector<16x64xf32>
    %632 = vector.broadcast %630 : vector<1x64xf32> to vector<16x64xf32>
    %633 = arith.mulf %631, %632 : vector<16x64xf32>
    %cst_324 = arith.constant dense<0.000000e+00> : vector<16x8xf32>
    %634 = tpu.matmul %621, %620, %cst_324 {dimension_numbers = #tpu.dot_dimension_numbers<[1], [0], [0], [1], [0, 0, 1, 1], [], []>} : vector<16x16xbf16>, vector<16x8xbf16>, vector<16x8xf32> -> vector<16x8xf32>
    %cst_325 = arith.constant dense<0.000000e+00> : vector<16x64xf32>
    %635 = tpu.matmul %620, %615, %cst_325 {dimension_numbers = #tpu.dot_dimension_numbers<[1], [0], [0], [1], [0, 0, 1, 1], [], []>} : vector<16x8xbf16>, vector<8x64xbf16>, vector<16x64xf32> -> vector<16x64xf32>
    %636 = arith.addf %625, %635 : vector<16x64xf32>
    %637 = arith.addf %636, %633 : vector<16x64xf32>
    %638 = arith.truncf %634 : vector<16x8xf32> to vector<16x8xbf16>
    %cst_326 = arith.constant dense<0.000000e+00> : vector<16x64xf32>
    %639 = tpu.matmul %638, %619, %cst_326 {dimension_numbers = #tpu.dot_dimension_numbers<[1], [0], [0], [1], [0, 0, 1, 1], [], []>} : vector<16x8xbf16>, vector<8x64xbf16>, vector<16x64xf32> -> vector<16x64xf32>
    %640 = arith.addf %637, %639 : vector<16x64xf32>
    %641 = arith.extf %2 : vector<16x64xbf16> to vector<16x64xf32>
    %642 = arith.mulf %640, %641 : vector<16x64xf32>
    %643 = arith.truncf %642 : vector<16x64xf32> to vector<16x64xbf16>
    %cst_327 = arith.constant dense<0.000000e+00> : vector<16x8xf32>
    %644 = tpu.matmul %643, %5, %cst_327 {dimension_numbers = #tpu.dot_dimension_numbers<[1], [0], [0], [1], [0, 0, 1, 1], [], []>} : vector<16x64xbf16>, vector<64x8xbf16>, vector<16x8xf32> -> vector<16x8xf32>
    %c0_328 = arith.constant 0 : index
    %c3_329 = arith.constant 3 : index
    %c0_330 = arith.constant 0 : index
    %645 = vector.load %arg6[%c0_328, %c3_329, %c0_330] : memref<1x4x8xf32, #tpu.memory_space<vmem>>, vector<1x1x8xf32>
    %646 = vector.shape_cast %645 : vector<1x1x8xf32> to vector<1x8xf32>
    %647 = vector.broadcast %646 : vector<1x8xf32> to vector<16x8xf32>
    %648 = arith.addf %644, %647 : vector<16x8xf32>
    %649 = math.tanh %648 : vector<16x8xf32>
    %650 = arith.mulf %590, %492 : vector<16x8xf32>
    %cst_331 = arith.constant 1.000000e+00 : f32
    %651 = vector.broadcast %cst_331 : f32 to vector<16x8xf32>
    %652 = arith.subf %651, %590 : vector<16x8xf32>
    %653 = arith.mulf %652, %649 : vector<16x8xf32>
    %654 = arith.addf %650, %653 : vector<16x8xf32>
    %c0_332 = arith.constant 0 : index
    %c0_333 = arith.constant 0 : index
    %655 = vector.load %arg26[%c0_332, %c0_333] : memref<1x4xf32, #tpu.memory_space<vmem>>, vector<1x4xf32>
    %656 = arith.truncf %492 : vector<16x8xf32> to vector<16x8xbf16>
    %c0_334 = arith.constant 0 : index
    %c0_335 = arith.constant 0 : index
    %c0_336 = arith.constant 0 : index
    %657 = vector.load %arg25[%c0_334, %c0_335, %c0_336] : memref<2x8x4xbf16, #tpu.memory_space<vmem>>, vector<1x8x4xbf16>
    %658 = vector.shape_cast %657 : vector<1x8x4xbf16> to vector<8x4xbf16>
    %cst_337 = arith.constant dense<0.000000e+00> : vector<16x4xf32>
    %659 = tpu.matmul %656, %658, %cst_337 {dimension_numbers = #tpu.dot_dimension_numbers<[1], [0], [0], [1], [0, 0, 1, 1], [], []>} : vector<16x8xbf16>, vector<8x4xbf16>, vector<16x4xf32> -> vector<16x4xf32>
    %660 = vector.broadcast %655 : vector<1x4xf32> to vector<16x4xf32>
    %661 = arith.addf %660, %659 : vector<16x4xf32>
    %662 = arith.truncf %654 : vector<16x8xf32> to vector<16x8xbf16>
    %c1_338 = arith.constant 1 : index
    %c0_339 = arith.constant 0 : index
    %c0_340 = arith.constant 0 : index
    %663 = vector.load %arg25[%c1_338, %c0_339, %c0_340] : memref<2x8x4xbf16, #tpu.memory_space<vmem>>, vector<1x8x4xbf16>
    %664 = vector.shape_cast %663 : vector<1x8x4xbf16> to vector<8x4xbf16>
    %cst_341 = arith.constant dense<0.000000e+00> : vector<16x4xf32>
    %665 = tpu.matmul %662, %664, %cst_341 {dimension_numbers = #tpu.dot_dimension_numbers<[1], [0], [0], [1], [0, 0, 1, 1], [], []>} : vector<16x8xbf16>, vector<8x4xbf16>, vector<16x4xf32> -> vector<16x4xf32>
    %666 = arith.addf %661, %665 : vector<16x4xf32>
    %c0_342 = arith.constant 0 : index
    %c0_343 = arith.constant 0 : index
    %c0_344 = arith.constant 0 : index
    %667 = vector.load %arg27[%c0_342, %c0_343, %c0_344] : memref<1x16x4xf32, #tpu.memory_space<vmem>>, vector<1x16x4xf32>
    %668 = vector.shape_cast %667 : vector<1x16x4xf32> to vector<16x4xf32>
    %669 = vector.shape_cast %666 : vector<16x4xf32> to vector<1x16x4xf32>
    tpu.vector_store %arg27[%c0_342, %c0_343, %c0_344], %669 {strides = array<i32>} : memref<1x16x4xf32, #tpu.memory_space<vmem>>, vector<1x16x4xf32>,
    return
  }
  func.func @transform_0(%arg0: i32) -> (i32, i32, i32, i32) {
    %c0_i32 = arith.constant 0 : i32
    %c0_i32_0 = arith.constant 0 : i32
    %c0_i32_1 = arith.constant 0 : i32
    %c0_i32_2 = arith.constant 0 : i32
    return %arg0, %c0_i32, %c0_i32_0, %c0_i32_1 : i32, i32, i32, i32
  }
  func.func @transform_1(%arg0: i32) -> (i32, i32, i32, i32) {
    %c0_i32 = arith.constant 0 : i32
    %c0_i32_0 = arith.constant 0 : i32
    %c0_i32_1 = arith.constant 0 : i32
    %c0_i32_2 = arith.constant 0 : i32
    return %arg0, %c0_i32, %c0_i32_0, %c0_i32_1 : i32, i32, i32, i32
  }
  func.func @transform_2(%arg0: i32) -> (i32, i32, i32) {
    %c0_i32 = arith.constant 0 : i32
    %c0_i32_0 = arith.constant 0 : i32
    %c0_i32_1 = arith.constant 0 : i32
    return %arg0, %c0_i32, %c0_i32_0 : i32, i32, i32
  }
  func.func @transform_3(%arg0: i32) -> (i32, i32, i32) {
    %c0_i32 = arith.constant 0 : i32
    %c0_i32_0 = arith.constant 0 : i32
    %c0_i32_1 = arith.constant 0 : i32
    return %arg0, %c0_i32, %c0_i32_0 : i32, i32, i32
  }
  func.func @transform_4(%arg0: i32) -> (i32, i32, i32) {
    %c0_i32 = arith.constant 0 : i32
    %c0_i32_0 = arith.constant 0 : i32
    %c0_i32_1 = arith.constant 0 : i32
    return %arg0, %c0_i32, %c0_i32_0 : i32, i32, i32
  }
  func.func @transform_5(%arg0: i32) -> (i32, i32, i32) {
    %c0_i32 = arith.constant 0 : i32
    %c0_i32_0 = arith.constant 0 : i32
    %c0_i32_1 = arith.constant 0 : i32
    return %arg0, %c0_i32, %c0_i32_0 : i32, i32, i32
  }
  func.func @transform_6(%arg0: i32) -> (i32, i32) {
    %c0_i32 = arith.constant 0 : i32
    %c0_i32_0 = arith.constant 0 : i32
    %c0_i32_1 = arith.constant 0 : i32
    return %c0_i32, %c0_i32_0 : i32, i32
  }
  func.func @transform_7(%arg0: i32) -> (i32, i32) {
    %c0_i32 = arith.constant 0 : i32
    %c0_i32_0 = arith.constant 0 : i32
    %c0_i32_1 = arith.constant 0 : i32
    return %c0_i32, %c0_i32_0 : i32, i32
  }
  func.func @transform_8(%arg0: i32) -> (i32, i32) {
    %c0_i32 = arith.constant 0 : i32
    %c0_i32_0 = arith.constant 0 : i32
    %c0_i32_1 = arith.constant 0 : i32
    return %c0_i32, %c0_i32_0 : i32, i32
  }
  func.func @transform_9(%arg0: i32) -> (i32, i32) {
    %c0_i32 = arith.constant 0 : i32
    %c0_i32_0 = arith.constant 0 : i32
    %c0_i32_1 = arith.constant 0 : i32
    return %c0_i32, %c0_i32_0 : i32, i32
  }
  func.func @transform_10(%arg0: i32) -> (i32, i32) {
    %c0_i32 = arith.constant 0 : i32
    %c0_i32_0 = arith.constant 0 : i32
    %c0_i32_1 = arith.constant 0 : i32
    return %c0_i32, %c0_i32_0 : i32, i32
  }
  func.func @transform_11(%arg0: i32) -> (i32, i32) {
    %c0_i32 = arith.constant 0 : i32
    %c0_i32_0 = arith.constant 0 : i32
    %c0_i32_1 = arith.constant 0 : i32
    return %c0_i32, %c0_i32_0 : i32, i32
  }
  func.func @transform_12(%arg0: i32) -> (i32, i32, i32) {
    %c0_i32 = arith.constant 0 : i32
    %c0_i32_0 = arith.constant 0 : i32
    %c0_i32_1 = arith.constant 0 : i32
    %c0_i32_2 = arith.constant 0 : i32
    return %c0_i32, %c0_i32_0, %c0_i32_1 : i32, i32, i32
  }
  func.func @transform_13(%arg0: i32) -> (i32, i32, i32) {
    %c0_i32 = arith.constant 0 : i32
    %c0_i32_0 = arith.constant 0 : i32
    %c0_i32_1 = arith.constant 0 : i32
    %c0_i32_2 = arith.constant 0 : i32
    return %c0_i32, %c0_i32_0, %c0_i32_1 : i32, i32, i32
  }
  func.func @transform_14(%arg0: i32) -> (i32, i32, i32) {
    %c0_i32 = arith.constant 0 : i32
    %c0_i32_0 = arith.constant 0 : i32
    %c0_i32_1 = arith.constant 0 : i32
    %c0_i32_2 = arith.constant 0 : i32
    return %c0_i32, %c0_i32_0, %c0_i32_1 : i32, i32, i32
  }
  func.func @transform_15(%arg0: i32) -> (i32, i32, i32) {
    %c0_i32 = arith.constant 0 : i32
    %c0_i32_0 = arith.constant 0 : i32
    %c0_i32_1 = arith.constant 0 : i32
    %c0_i32_2 = arith.constant 0 : i32
    return %c0_i32, %c0_i32_0, %c0_i32_1 : i32, i32, i32
  }
  func.func @transform_16(%arg0: i32) -> (i32, i32, i32) {
    %c0_i32 = arith.constant 0 : i32
    %c0_i32_0 = arith.constant 0 : i32
    %c0_i32_1 = arith.constant 0 : i32
    %c0_i32_2 = arith.constant 0 : i32
    return %c0_i32, %c0_i32_0, %c0_i32_1 : i32, i32, i32
  }
  func.func @transform_17(%arg0: i32) -> (i32, i32, i32) {
    %c0_i32 = arith.constant 0 : i32
    %c0_i32_0 = arith.constant 0 : i32
    %c0_i32_1 = arith.constant 0 : i32
    %c0_i32_2 = arith.constant 0 : i32
    return %c0_i32, %c0_i32_0, %c0_i32_1 : i32, i32, i32
  }
  func.func @transform_18(%arg0: i32) -> (i32, i32, i32) {
    %c0_i32 = arith.constant 0 : i32
    %c0_i32_0 = arith.constant 0 : i32
    %c0_i32_1 = arith.constant 0 : i32
    %c0_i32_2 = arith.constant 0 : i32
    return %c0_i32, %c0_i32_0, %c0_i32_1 : i32, i32, i32
  }
  func.func @transform_19(%arg0: i32) -> (i32, i32, i32) {
    %c0_i32 = arith.constant 0 : i32
    %c0_i32_0 = arith.constant 0 : i32
    %c0_i32_1 = arith.constant 0 : i32
    %c0_i32_2 = arith.constant 0 : i32
    return %c0_i32, %c0_i32_0, %c0_i32_1 : i32, i32, i32
  }
  func.func @transform_20(%arg0: i32) -> (i32, i32, i32) {
    %c0_i32 = arith.constant 0 : i32
    %c0_i32_0 = arith.constant 0 : i32
    %c0_i32_1 = arith.constant 0 : i32
    %c0_i32_2 = arith.constant 0 : i32
    return %c0_i32, %c0_i32_0, %c0_i32_1 : i32, i32, i32
  }
  func.func @transform_21(%arg0: i32) -> (i32, i32, i32) {
    %c0_i32 = arith.constant 0 : i32
    %c0_i32_0 = arith.constant 0 : i32
    %c0_i32_1 = arith.constant 0 : i32
    %c0_i32_2 = arith.constant 0 : i32
    return %c0_i32, %c0_i32_0, %c0_i32_1 : i32, i32, i32
  }
  func.func @transform_22(%arg0: i32) -> (i32, i32, i32) {
    %c0_i32 = arith.constant 0 : i32
    %c0_i32_0 = arith.constant 0 : i32
    %c0_i32_1 = arith.constant 0 : i32
    %c0_i32_2 = arith.constant 0 : i32
    return %c0_i32, %c0_i32_0, %c0_i32_1 : i32, i32, i32
  }
  func.func @transform_23(%arg0: i32) -> (i32, i32, i32) {
    %c0_i32 = arith.constant 0 : i32
    %c0_i32_0 = arith.constant 0 : i32
    %c0_i32_1 = arith.constant 0 : i32
    %c0_i32_2 = arith.constant 0 : i32
    return %c0_i32, %c0_i32_0, %c0_i32_1 : i32, i32, i32
  }
  func.func @transform_24(%arg0: i32) -> (i32, i32, i32) {
    %c0_i32 = arith.constant 0 : i32
    %c0_i32_0 = arith.constant 0 : i32
    %c0_i32_1 = arith.constant 0 : i32
    %c0_i32_2 = arith.constant 0 : i32
    return %c0_i32, %c0_i32_0, %c0_i32_1 : i32, i32, i32
  }
  func.func @transform_25(%arg0: i32) -> (i32, i32) {
    %c0_i32 = arith.constant 0 : i32
    %c0_i32_0 = arith.constant 0 : i32
    %c0_i32_1 = arith.constant 0 : i32
    return %c0_i32, %c0_i32_0 : i32, i32
  }
  func.func @transform_26(%arg0: i32) -> (i32, i32, i32) {
    %c0_i32 = arith.constant 0 : i32
    %c0_i32_0 = arith.constant 0 : i32
    %c0_i32_1 = arith.constant 0 : i32
    return %arg0, %c0_i32, %c0_i32_0 : i32, i32, i32
  }
}

</mosaic_0001>

<bundles_post_ra>
// kernel: _lambda_.2
= control target key start
LH: loop header
LB: loop body
LE: loop exit
PB: predicated region body
PF: predicated region fallthrough
CT: control target
= control target key end

     0   :  { %s3598_s27 = smov 0   ;;  %s4481_s0 = inlined_call_operand.vmem [shape: f32[2,4,16,1], index: 0, kind: input, shape index: {}]   ;;  %s4482_s1 = inlined_call_operand.vmem [shape: f32[2,4,1,16], index: 1, kind: input, shape index: {}]   ;;  %s4483_s2 = inlined_call_operand.vmem [shape: f32[2,4,8], index: 2, kind: input, shape index: {}]   ;;  %s4484_s3 = inlined_call_operand.vmem [shape: f32[2,4,8], index: 3, kind: input, shape index: {}]   ;;  %s4485_s4 = inlined_call_operand.vmem [shape: f32[2,4,8], index: 4, kind: input, shape index: {}]   ;;  %s4486_s5 = inlined_call_operand.vmem [shape: f32[2,4,8], index: 5, kind: input, shape index: {}]   ;;  %s4487_s6 = inlined_call_operand.vmem [shape: f32[16,8], index: 6, kind: input, shape index: {}]   ;;  %s4488_s7 = inlined_call_operand.vmem [shape: bf16[16,128], index: 7, kind: input, shape index: {}]   ;;  %s4489_s8 = inlined_call_operand.vmem [shape: bf16[128,8], index: 8, kind: input, shape index: {}]   ;;  %s4490_s9 = inlined_call_operand.vmem [shape: bf16[128,8], index: 9, kind: input, shape index: {}]   ;;  %s4491_s10 = inlined_call_operand.vmem [shape: bf16[16,64], index: 10, kind: input, shape index: {}]   ;;  %s4492_s11 = inlined_call_operand.vmem [shape: bf16[64,8], index: 11, kind: input, shape index: {}]   ;;  %s4493_s12 = inlined_call_operand.vmem [shape: bf16[1,1,128], index: 12, kind: input, shape index: {}]   ;;  %s4494_s13 = inlined_call_operand.vmem [shape: bf16[1,8,128], index: 13, kind: input, shape index: {}]   ;;  %s4495_s14 = inlined_call_operand.vmem [shape: bf16[1,1,128], index: 14, kind: input, shape index: {}]   ;;  %s4496_s15 = inlined_call_operand.vmem [shape: bf16[1,8,128], index: 15, kind: input, shape index: {}]   ;;  %s4497_s16 = inlined_call_operand.vmem [shape: f32[1,1,8], index: 16, kind: input, shape index: {}]   ;;  %s4498_s17 = inlined_call_operand.vmem [shape: f32[1,1,8], index: 17, kind: input, shape index: {}]   ;;  %s4499_s18 = inlined_call_operand.vmem [shape: bf16[1,1,64], index: 18, kind: input, shape index: {}]   ;;  %s4500_s19 = inlined_call_operand.vmem [shape: bf16[1,8,64], index: 19, kind: input, shape index: {}]   ;;  %s4501_s20 = inlined_call_operand.vmem [shape: bf16[1,1,64], index: 20, kind: input, shape index: {}]   ;;  %s4502_s21 = inlined_call_operand.vmem [shape: bf16[1,8,64], index: 21, kind: input, shape index: {}]   ;;  %s4503_s22 = inlined_call_operand.vmem [shape: f32[1,1,8], index: 22, kind: input, shape index: {}]   ;;  %s4504_s23 = inlined_call_operand.vmem [shape: f32[1,1,8], index: 23, kind: input, shape index: {}]   ;;  %s4505_s24 = inlined_call_operand.vmem [shape: bf16[2,8,8], index: 24, kind: input, shape index: {}]   ;;  %s4506_s25 = inlined_call_operand.vmem [shape: f32[1,8], index: 25, kind: input, shape index: {}]   ;;  %s4507_s26 = inlined_call_operand.vmem [shape: f32[2,16,8], index: 26, kind: output, shape index: {}]  }
   0x1   :  { %4511 = sst [smem:[#allocation2_spill]] %s4481_s0 }
   0x2   :  { %4512 = sst [smem:[#allocation3_spill]] %s4482_s1 }
   0x3   :  { %4513 = sst [smem:[#allocation4_spill]] %s4483_s2 }
   0x4   :  { %4514 = sst [smem:[#allocation5_spill]] %s4484_s3 }
   0x5   :  { %4515 = sst [smem:[#allocation6_spill]] %s4485_s4 }
   0x6   :  { %4516 = sst [smem:[#allocation7_spill]] %s4486_s5 }
   0x7   :  { %4517 = sst [smem:[#allocation8_spill]] %s4487_s6 }
   0x8   :  { %4518 = sst [smem:[#allocation9_spill]] %s4488_s7 }
   0x9   :  { %4519 = sst [smem:[#allocation10_spill]] %s4489_s8 }
   0xa   :  { %4520 = sst [smem:[#allocation11_spill]] %s4490_s9 }
   0xb   :  { %4521 = sst [smem:[#allocation12_spill]] %s4491_s10 }
   0xc   :  { %4522 = sst [smem:[#allocation13_spill]] %s4493_s12 }
   0xd   :  { %4523 = sst [smem:[#allocation14_spill]] %s4494_s13 }
   0xe   :  { %4524 = sst [smem:[#allocation15_spill]] %s4495_s14 }
   0xf   :  { %4525 = sst [smem:[#allocation16_spill]] %s4496_s15 }
  0x10 LB: > { %s3038_s3 = sadd.s32 4294967295, %s3459_s27   ;;  %p3042_p0 = scmp.ge.s32.totalorder %s3459_s27, 1  ;;  %s3459_s27 = sphi %s3598_s27, %s36_s27  }
  0x11   : > { %p757_p1 = scmp.lt.s32.totalorder %s3459_s27, 3 }
  0x13   : > { %p758_p2 = pnand %p3042_p0, %p757_p1 }
  0x14   : > { %p847_p3 = scmp.lt.s32.totalorder (!%p758_p2), %s3038_s3, 1  ;;  %s4526_s4 = sld [smem:[#allocation4_spill]] (!%p758_p2) }
  0x15   : > { %761 = sbr.rel (%p758_p2) target bundleno = 4695 (0x1257), region = 124  ;;  %s4527_s30 = sld [smem:[#allocation8_spill]] (!%p758_p2) }
  0x16   : > { %s4528_s15 = sld [smem:[#allocation16_spill]] (!%p758_p2) }
  0x17   : > { %s4529_s13 = sld [smem:[#allocation14_spill]] (!%p758_p2) }
  0x18   : > { %s4530_s8 = sld [smem:[#allocation3_spill]] (!%p758_p2) }
  0x19   : > { %s4531_s5 = sld [smem:[#allocation2_spill]] (!%p758_p2) }
  0x1a   : > { %s4542_s3 = smov (!%p847_p3, %s3038_s3), 1  ;;  %vm931_vm0 = vcmask 64512   ;;  %v3461_v7 = vmov 8.0   ;;  %vm1090_vm2 = vcmask 1043456   ;;  %v3650_v45 = vld [vmem:[%s4497_s16] ss:$0 sm:$0xff] }
  0x1b   : > { %s3609_s7 = sshll.u32 %s4542_s3, 2  ;;  %v3620_v0 = vld [vmem:[%s4527_s30] sm:$0xff]  ;;  %v3627_v3 = vld [vmem:[%s4527_s30 + $0x8] sm:$0xff]  ;;  %3265 = vrcp.f32 %v3461_v7  ;;  %vm1013_vm9 = vcmask 130048   ;;  %s3197_s0 = sshll.u32 %s4542_s3, 6 }
  0x1c   : > { %s3615_s29 = scalar_lea.vmem %s4526_s4, %s3609_s7  ;;  %v1039_v24 = vld [vmem:[%s4528_s15] sm:$0xf]  ;;  %s4532_s28 = sld [smem:[#allocation10_spill]] }
  0x1d   : > { %v3240_v1 = vld [vmem:[%s3615_s29] ss:$0 sm:$0xff]  ;;  %v3642_v25 = vsel %vm1090_vm2, %v1039_v24, 0  ;;  %s4533_s9 = sld [smem:[#allocation11_spill]] }
  0x1e   : > { %v929_v2 = vadd.f32 %v3240_v1, %v3620_v0  ;;  %v930_v5 = vadd.f32 %v3240_v1, %v3627_v3  ;;  %1126 = vmatpush.bf16.msra.mxu3 %v3642_v25  ;;  %v3655_v46 = vld [vmem:[%s4503_s22] ss:$0 sm:$0xff]  ;;  %s3694_s4 = scalar_lea.vmem %s4530_s8, %s3609_s7  ;;  %s4534_s12 = sld [smem:[#allocation13_spill]] }
  0x1f   : > { %v3661_v51 = vld [vmem:[%s4498_s17] ss:$0 sm:$0xff]  ;;  %s3702_s10 = scalar_lea.vmem %s4531_s5, %s3197_s0  ;;  %s4535_s14 = sld [smem:[#allocation15_spill]] }
  0x20   : > { %v932_v4 = vsel %vm931_vm0, %v929_v2, 0.0  ;;  %v935_v6 = vsel %vm931_vm0, %v930_v5, 0.0  ;;  %v3667_v53 = vld [vmem:[%s4504_s23] ss:$0 sm:$0xff]  ;;  %s4536_s2 = sld [smem:[#allocation9_spill]] }
  0x21   : > { %933 = vadd.xlane.f32.xlu0 %v932_v4  ;;  %v3266_v8 = vpop.eup %3265  ;;  %s4537_s1 = sld [smem:[#allocation5_spill]] }
  0x22   : > { %v939_v9 = vmul.f32 8.0, %v3266_v8  ;;  %vm943_vm1 = vweird.f32 %v3266_v8  ;;  %s4538_s15 = sld [smem:[#allocation6_spill]] }
  0x23   : > { %s4539_s5 = sld [smem:[#allocation7_spill]] }
  0x24   : > { %v940_v10 = vsub.f32 1.0, %v939_v9 }
  0x26   : > { %v941_v11 = vmul.f32 %v3266_v8, %v940_v10 }
  0x27   : > { %s3853_s8 = scalar_lea.vmem %s4537_s1, %s3609_s7 }
  0x28   : > { %v942_v12 = vadd.f32 %v3266_v8, %v941_v11 }
  0x29   : > { %936 = vadd.xlane.f32.xlu0 %v935_v6  ;;  %v1037_v6 = vld [vmem:[%s4529_s13] sm:$0xf]  ;;  %s3933_s6 = scalar_lea.vmem %s4539_s5, %s3609_s7 }
  0x2a   : > { %v3632_v13 = vsel %vm943_vm1, %v3266_v8, %v942_v12  ;;  %v3687_v7 = vsel %vm1090_vm2, %v1037_v6, 0  ;;  %v3462_v8 = vmov 0  }
  0x2b   : > { %1080 = vmatpush.bf16.msra.mxu1 %v3462_v8  ;;  %3238 = vset.pattern.permute.xlu0 %v3462_v8 }
  0x2c   : > { %1101 = vmatpush.bf16.msra.mxu2 %v3687_v7  ;;  %3237 = vset.pattern.permute.xlu2 %v3462_v8 }
  0x2d   : > { %3239 = vset.pattern.permute.xlu1 %v3462_v8 }
  0x2f   : > { %1102 = vmatmul.bf16.vlgmr.msra.gmra.mxu2 %v3462_v8 }
  0x94   : > { %v934_v14 = vpop.xlane.xlu0 %933 }
  0x95   : > { %v945_v15 = vmul.f32 %v3632_v13, %v934_v14 }
  0x97   : > { %v947_v16 = vsub.f32 %v929_v2, %v945_v15 }
  0x99   : > { %v949_v17 = vmul.f32 %v947_v16, %v947_v16 }
  0x9b   : > { %v951_v18 = vsel %vm931_vm0, %v949_v17, 0.0 }
  0x9c   : > { %952 = vadd.xlane.f32.xlu1 %v951_v18  ;;  %v937_v19 = vpop.xlane.xlu0 %936 }
  0x9d   : > { %v946_v20 = vmul.f32 %v3632_v13, %v937_v19 }
  0x9f   : > { %v948_v21 = vsub.f32 %v930_v5, %v946_v20  ;;  %v925_v20 = vld [vmem:[%s3702_s10 + $0x8] sm:$0xff] }
  0xa1   : > { %v950_v22 = vmul.f32 %v948_v21, %v948_v21 }
  0xa3   : > { %v954_v23 = vsel %vm931_vm0, %v950_v22, 0.0 }
  0xa4   : > { %955 = vadd.xlane.f32.xlu1 %v954_v23  ;;  %v3707_v23 = vld [vmem:[%s3694_s4] ss:$0 sm:$0xff] }
 0x10f   : > { %v953_v26 = vpop.xlane.xlu1 %952 }
 0x110   : > { %v957_v27 = vmul.f32 %v953_v26, %v3632_v13 }
 0x112   : > { %v959_v28 = vadd.f32 1e-12, %v957_v27 }
 0x114   : > { %3267 = vrsqrt.f32 %v959_v28  ;;  %vm967_vm4 = vweird.f32 %v959_v28 }
 0x117   : > { %v956_v29 = vpop.xlane.xlu1 %955 }
 0x118   : > { %v958_v30 = vmul.f32 %v956_v29, %v3632_v13 }
 0x11a   : > { %v3268_v31 = vpop.eup %3267  ;;  %v960_v32 = vadd.f32 1e-12, %v958_v30 }
 0x11b   : > { %v962_v33 = vmul.f32 %v3268_v31, %v959_v28  ;;  %vm968_vm3 = vweird.f32 %v3268_v31 }
 0x11c   : > { %3269 = vrsqrt.f32 %v960_v32  ;;  %vm969_vm5 = vmor %vm967_vm4, %vm968_vm3  ;;  %vm977_vm7 = vweird.f32 %v960_v32 }
 0x11d   : > { %v963_v34 = vmul.f32 %v3268_v31, %v962_v33 }
 0x11f   : > { %v964_v35 = vmul.f32 0.5, %v963_v34 }
 0x121   : > { %v965_v36 = vsub.f32 1.5, %v964_v35  ;;  %v3717_v35 = vld [vmem:[%s4532_s28 + $0x38] sm:$0xff] }
 0x122   : > { %v3270_v37 = vpop.eup %3269  ;;  %1190 = vmatpush.bf16.msrb.mxu1 %v3717_v35 }
 0x123   : > { %v966_v38 = vmul.f32 %v3268_v31, %v965_v36  ;;  %v972_v39 = vmul.f32 %v3270_v37, %v960_v32  ;;  %vm978_vm6 = vweird.f32 %v3270_v37  ;;  %v3722_v36 = vld [vmem:[%s4533_s9 + $0x38] sm:$0xff] }
 0x124   : > { %vm979_vm8 = vmor %vm977_vm7, %vm978_vm6  ;;  %1292 = vmatpush.bf16.msrb.mxu2 %v3722_v36 }
 0x125   : > { %v973_v40 = vmul.f32 %v3270_v37, %v972_v39  ;;  %v970_v42 = vsel %vm969_vm5, %v3268_v31, %v966_v38  ;;  %v3734_v38 = vld [vmem:[%s4533_s9 + $0x30] sm:$0xff] }
 0x126   : > { %v981_v44 = vmul.f32 %v970_v42, %v947_v16  ;;  %v3753_v42 = vld [vmem:[%s4532_s28 + $0x20] sm:$0xff] }
 0x127   : > { %v974_v41 = vmul.f32 0.5, %v973_v40  ;;  %v3741_v40 = vld [vmem:[%s4532_s28 + $0x28] sm:$0xff] }
 0x128   : > { %v988_v50 = vmul.f32 %v3650_v45, %v981_v44  ;;  %v1349_v52 = vmul.f32 %v3655_v46, %v981_v44  ;;  %1293 = vmatpush.bf16.msrb.mxu2 %v3734_v38 }
 0x129   : > { %v975_v43 = vsub.f32 1.5, %v974_v41  ;;  %v3746_v41 = vld [vmem:[%s4533_s9 + $0x28] sm:$0xff] }
 0x12a   : > { %v993_v56 = vadd.f32 %v3661_v51, %v988_v50  ;;  %v1354_v58 = vadd.f32 %v3667_v53, %v1349_v52  ;;  %v3780_v50 = vld [vmem:[%s4532_s28 + $0x10] sm:$0xff] }
 0x12b   : > { %v976_v47 = vmul.f32 %v3270_v37, %v975_v43  ;;  %v3758_v43 = vld [vmem:[%s4533_s9 + $0x20] sm:$0xff]  ;;  %v3785_v52 = vld [vmem:[%s4533_s9 + $0x10] sm:$0xff] }
 0x12c   : > { %1294 = vmatpush.bf16.msrb.mxu2 %v3746_v41 }
 0x12d   : > { %v980_v48 = vsel %vm979_vm8, %v3270_v37, %v976_v47  ;;  %v3729_v37 = vld [vmem:[%s4532_s28 + $0x30] sm:$0xff] }
 0x12e   : > { %v982_v49 = vmul.f32 %v980_v48, %v948_v21  ;;  %v924_v21 = vld [vmem:[%s3702_s10] sm:$0xff]  ;;  %1191 = vmatpush.bf16.msrb.mxu1 %v3729_v37  ;;  %v3768_v48 = vld [vmem:[%s4532_s28 + $0x18] sm:$0xff] }
 0x130   : > { %v989_v54 = vmul.f32 %v3650_v45, %v982_v49  ;;  %v1350_v55 = vmul.f32 %v3655_v46, %v982_v49  ;;  %1295 = vmatpush.bf16.msrb.mxu2 %v3758_v43  ;;  %v3773_v49 = vld [vmem:[%s4533_s9 + $0x18] sm:$0xff] }
 0x132   : > { %v994_v57 = vadd.f32 %v3661_v51, %v989_v54  ;;  %v1355_v59 = vadd.f32 %v3667_v53, %v1350_v55  ;;  %1192 = vmatpush.bf16.msrb.mxu1 %v3741_v40  ;;  %v3792_v54 = vld [vmem:[%s4532_s28 + $0x8] sm:$0xff] }
 0x133   : > { %v3797_v55 = vld [vmem:[%s4533_s9 + $0x8] sm:$0xff] }
 0x134   : > { %v995_v60 = vpack.c.bf16 %v994_v57, %v993_v56  ;;  %v3675_v61 = vpack.c.bf16 %v1355_v59, %v1354_v58  ;;  %1296 = vmatpush.bf16.msrb.mxu2 %v3773_v49  ;;  %v3804_v56 = vld [vmem:[%s4532_s28] sm:$0xff] }
 0x135   : > { %v3809_v57 = vld [vmem:[%s4533_s9] sm:$0xff] }
 0x136   : > { %v997_v62 = vsel %vm931_vm0, %v995_v60, 0  ;;  %v1358_v63 = vsel %vm931_vm0, %v3675_v61, 0  ;;  %1193 = vmatpush.bf16.msrb.mxu1 %v3753_v42  ;;  %v1036_v58 = vld [vmem:[%s4534_s12] sm:$0x1] }
 0x137   : > { %1006 = vmatpush.bf16.xpose.msra.mxu0 %v997_v62  ;;  %1367 = vmatpush.bf16.xpose.msrb.mxu3 %v1358_v63  ;;  %v1041_v59 = vunpack.c.l.bf16 %v1036_v58 }
 0x138   : > { %1297 = vmatpush.bf16.msrb.mxu2 %v3785_v52 }
 0x139   : > { %v3819_v63 = vperm.slane %v1041_v59, 0 }
 0x13a   : > { %1194 = vmatpush.bf16.msrb.mxu1 %v3768_v48 }
 0x13c   : > { %1298 = vmatpush.bf16.msrb.mxu2 %v3797_v55 }
 0x13e   : > { %3052 = vmatmul.msk.bf16.vlgmr.msra.gmra.mxu0 %vm931_vm0, %v995_v60  ;;  %1195 = vmatpush.bf16.msrb.mxu1 %v3780_v50  ;;  %v1103_v60 = vpop.f32.mrf.mxu2 }
 0x140   : > { %1299 = vmatpush.bf16.msrb.mxu2 %v3809_v57 }
 0x142   : > { %1196 = vmatpush.bf16.msrb.mxu1 %v3792_v54 }
 0x146   : > { %1197 = vmatpush.bf16.msrb.mxu1 %v3804_v56 }
 0x1bb   : > { %v1008_v1 = vpop.f32.mrf.mxu0 }
 0x1bc   : > { %v1014_v2 = vsel %vm1013_vm9, %v1008_v1, -inf }
 0x1bd   : > { %1015 = vmax.xlane.f32.xlu2 %v1014_v2 }
 0x1c3   : > { %v1010_v4 = vpop.f32.mrf.mxu0 }
 0x1c4   : > { %v1017_v5 = vsel %vm1013_vm9, %v1010_v4, -inf }
 0x1c5   : > { %1018 = vmax.xlane.f32.xlu2 %v1017_v5 }
 0x1dd   : > { %1044 = vperm.xlu2 %3237, %v924_v21  }
 0x230   : > { %v1016_v9 = vpop.xlane.xlu2 %1015 }
 0x231   : > { %v1020_v10 = vsub.f32 %v1008_v1, %v1016_v9 }
 0x233   : > { %v1022_v11 = vmul.f32 1.442695, %v1020_v10 }
 0x235   : > { %3271 = vpow2.f32 %v1022_v11 }
 0x238   : > { %v1019_v12 = vpop.xlane.xlu2 %1018 }
 0x239   : > { %v1021_v14 = vsub.f32 %v1010_v4, %v1019_v12  ;;  %v3824_v4 = vld [vmem:[%s3615_s29 + $0x1] ss:$0 sm:$0xff]  ;;  %v1105_v12 = vpop.f32.mrf.mxu2 }
 0x23a   : > { %v3830_v6 = vadd.f32 %v3824_v4, %v3620_v0 }
 0x23b   : > { %v3272_v15 = vpop.eup %3271  ;;  %v1024_v16 = vmul.f32 1.442695, %v1021_v14 }
 0x23c   : > { %v1026_v17 = vsel %vm1013_vm9, %v3272_v15, 0.0  ;;  %v1552_v10 = vsel %vm931_vm0, %v3830_v6, 0.0 }
 0x23d   : > { %3273 = vpow2.f32 %v1024_v16  ;;  %1027 = vadd.xlane.f32.xlu0 %v1026_v17 }
 0x240   : > { %v3821_v2 = vpop.permute.xlu2 %1044 }
 0x241   : > { %v1053_v8 = vmul.f32 %v3819_v63, %v3821_v2 }
 0x243   : > { %v3274_v18 = vpop.eup %3273  ;;  %v1108_v16 = vadd.f32 %v1103_v60, %v1053_v8  ;;  %v3247_v60 = vld [vmem:[%s3853_s8] ss:$0 sm:$0xff] }
 0x244   : > { %v1029_v19 = vsel %vm1013_vm9, %v3274_v18, 0.0 }
 0x245   : > { %1030 = vadd.xlane.f32.xlu1 %v1029_v19  ;;  %v3220_v19 = vld [vmem:[%s4536_s2] sm:$0xff]   ;;  %s3862_s2 = scalar_lea.vmem %s4538_s15, %s3609_s7  ;;  %s4540_s15 = sld [smem:[#allocation12_spill]] }
 0x246   : > { %v3845_v21 = vunpack.c.l.bf16 %v3220_v19 }
 0x251   : > { %1049 = vperm.xlu0 %3238, %v925_v20  }
 0x27b   : > { %1553 = vadd.xlane.f32.xlu0 %v1552_v10 }
 0x2b0   : > { %v1028_v22 = vpop.xlane.xlu0 %1027 }
 0x2b1   : > { %3275 = vrcp.f32 %v1028_v22 }
 0x2b7   : > { %v3276_v24 = vpop.eup %3275 }
 0x2b8   : > { %v1031_v26 = vpop.xlane.xlu1 %1030  ;;  %v1034_v27 = vmul.f32 %v3276_v24, %v3272_v15  ;;  %v3847_v24 = vunpack.c.h.bf16 %v3220_v19 }
 0x2b9   : > { %3277 = vrcp.f32 %v1031_v26 }
 0x2ba   : > { %v1058_v28 = vmul.f32 %v3707_v23, %v1034_v27 }
 0x2bc   : > { %v1060_v29 = vsel %vm1013_vm9, %v1058_v28, 0.0 }
 0x2bd   : > { %1061 = vadd.xlane.f32.xlu1 %v1060_v29 }
 0x2bf   : > { %v3278_v30 = vpop.eup %3277 }
 0x2c0   : > { %v1035_v31 = vmul.f32 %v3278_v30, %v3274_v18 }
 0x2c2   : > { %v1040_v32 = vpack.c.bf16 %v1035_v31, %v1034_v27  ;;  %v1059_v33 = vmul.f32 %v3707_v23, %v1035_v31 }
 0x2c3   : > { %v3826_v5 = vpop.permute.xlu0 %1049 }
 0x2c4   : > { %3053 = vmatmul.msk.bf16.vlgmr.msra.gmra.mxu1 %vm1013_vm9, %v1040_v32  ;;  %v1063_v34 = vsel %vm1013_vm9, %v1059_v33, 0.0  ;;  %v1054_v11 = vmul.f32 %v3819_v63, %v3826_v5  ;;  %v3145_v33 = vld [vmem:[%s3702_s10 + $0x18] sm:$0xff] }
 0x2c5   : > { %1064 = vadd.xlane.f32.xlu1 %v1063_v34  ;;  %1649 = vperm.xlu0 %3238, %v3145_v33  }
 0x2c6   : > { %v1109_v17 = vadd.f32 %v1105_v12, %v1054_v11 }
 0x330   : > { %v1062_v62 = vpop.xlane.xlu1 %1061 }
 0x338   : > { %v1065_v14 = vpop.xlane.xlu1 %1064 }
 0x341   : > { %v1082_v39 = vpop.f32.mrf.mxu1 }
 0x349   : > { %v1084_v44 = vpop.f32.mrf.mxu1 }
 0x34a   : > { %v1112_v47 = vpack.c.bf16 %v1084_v44, %v1082_v39 }
 0x34c   : > { %3054 = vmatmul.msk.bf16.vlgmr.msra.gmra.mxu3 %vm931_vm0, %v1112_v47 }
 0x35c   : > { %3123 = vmatmul.msk.bf16.vlgmr.msrb.gmra.mxu3 %vm931_vm0, %v3675_v61  ;;  %v1038_v61 = vld [vmem:[%s4535_s14] sm:$0x1] }
 0x35d   : > { %v1066_v1 = vunpack.c.l.bf16 %v1038_v61 }
 0x35f   : > { %v3834_v9 = vperm.slane %v1066_v1, 0 }
 0x361   : > { %v1068_v0 = vmul.f32 %v3834_v9, %v1062_v62  ;;  %v1069_v18 = vmul.f32 %v3834_v9, %v1065_v14 }
 0x363   : > { %v1110_v20 = vadd.f32 %v1108_v16, %v1068_v0  ;;  %v1111_v26 = vadd.f32 %v1109_v17, %v1069_v18 }
 0x3cf   : > { %v1128_v15 = vpop.f32.mrf.mxu3 }
 0x3d0   : > { %v1133_v22 = vadd.f32 %v1128_v15, %v1110_v20  ;;  %v1399_v15 = vld [vmem:[%s4500_s19] sm:$0xf] }
 0x3d1   : > { %v3875_v16 = vsel %vm1090_vm2, %v1399_v15, 0 }
 0x3d2   : > { %v1137_v29 = vmul.f32 %v3845_v21, %v1133_v22  ;;  %1450 = vmatpush.bf16.msra.mxu3 %v3875_v16 }
 0x3d7   : > { %v1130_v27 = vpop.f32.mrf.mxu3 }
 0x3d8   : > { %v1134_v28 = vadd.f32 %v1130_v27, %v1111_v26  ;;  %v1554_v26 = vpop.xlane.xlu0 %1553 }
 0x3da   : > { %v1138_v30 = vmul.f32 %v3847_v24, %v1134_v28  ;;  %v1558_v28 = vmul.f32 %v1554_v26, %v3632_v13 }
 0x3dc   : > { %v1139_v31 = vpack.c.bf16 %v1138_v30, %v1137_v29  ;;  %v1551_v29 = vadd.f32 %v3824_v4, %v3627_v3 }
 0x3de   : > { %1198 = vmatmul.bf16.vlgmr.msrb.gmra.mxu1 %v1139_v31  ;;  %1300 = vmatmul.bf16.vlgmr.msrb.gmra.mxu2 %v1139_v31  ;;  %v3883_v31 = vsub.f32 %v3830_v6, %v1558_v28 }
 0x3df   : > { %v1369_v32 = vpop.f32.mrf.mxu3 }
 0x3e0   : > { %v1374_v34 = vsel %vm1013_vm9, %v1369_v32, -inf }
 0x3e1   : > { %1375 = vmax.xlane.f32.xlu1 %v1374_v34 }
 0x3e7   : > { %v1371_v39 = vpop.f32.mrf.mxu3 }
 0x3e8   : > { %v1377_v44 = vsel %vm1013_vm9, %v1371_v39, -inf }
 0x3e9   : > { %1378 = vmax.xlane.f32.xlu2 %v1377_v44  ;;  %v1562_v44 = vmul.f32 %v3883_v31, %v3883_v31 }
 0x454   : > { %v1376_v47 = vpop.xlane.xlu1 %1375 }
 0x455   : > { %v1380_v58 = vsub.f32 %v1369_v32, %v1376_v47  ;;  %v1555_v32 = vsel %vm931_vm0, %v1551_v29, 0.0 }
 0x457   : > { %v1382_v59 = vmul.f32 1.442695, %v1380_v58 }
 0x459   : > { %3279 = vpow2.f32 %v1382_v59  ;;  %v1564_v59 = vsel %vm931_vm0, %v1562_v44, 0.0 }
 0x45b   : > { %v1199_v61 = vpop.f32.mrf.mxu1 }
 0x45c   : > { %v1200_v62 = vadd.f32 %v3247_v60, %v1199_v61  ;;  %v1379_v1 = vpop.xlane.xlu2 %1378 }
 0x45d   : > { %v1381_v8 = vsub.f32 %v1371_v39, %v1379_v1 }
 0x45e   : > { %v3087_v10 = vmul.f32 -1.442695, %v1200_v62 }
 0x45f   : > { %v3867_v11 = vpop.eup %3279  ;;  %v1384_v12 = vmul.f32 1.442695, %v1381_v8 }
 0x460   : > { %3281 = vpow2.f32 %v3087_v10  ;;  %v1386_v14 = vsel %vm1013_vm9, %v3867_v11, 0.0 }
 0x461   : > { %3283 = vpow2.f32 %v1384_v12  ;;  %1387 = vadd.xlane.f32.xlu1 %v1386_v14 }
 0x463   : > { %v1201_v0 = vpop.f32.mrf.mxu1 }
 0x464   : > { %v1202_v17 = vadd.f32 %v3247_v60, %v1201_v0 }
 0x466   : > { %v3282_v18 = vpop.eup %3281  ;;  %v3088_v19 = vmul.f32 -1.442695, %v1202_v17 }
 0x467   : > { %v3284_v20 = vpop.eup %3283  ;;  %v1210_v22 = vadd.f32 1.0, %v3282_v18 }
 0x468   : > { %3285 = vpow2.f32 %v3088_v19  ;;  %v1389_v27 = vsel %vm1013_vm9, %v3284_v20, 0.0 }
 0x469   : > { %3287 = vrcp.f32 %v1210_v22  ;;  %1390 = vadd.xlane.f32.xlu1 %v1389_v27  ;;  %v1223_v6 = vand.u32 2147483648, %v1210_v22  ;;  %vm1217_vm11 = vweird.f32 %v1210_v22  ;;  %v1221_v61 = vand.u32 2147483647, %v1210_v22 }
 0x46b   : > { %v1224_v14 = vor.u32 1.1754944e-38, %v1223_v6  ;;  %vm1222_vm14 = vcmp.eq.f32.partialorder %v1221_v61, 8.507059e+37 }
 0x46e   : > { %v3286_v30 = vpop.eup %3285 }
 0x46f   : > { %v3288_v33 = vpop.eup %3287  ;;  %v1211_v34 = vadd.f32 1.0, %v3286_v30 }
 0x470   : > { %v1213_v39 = vmul.f32 %v3288_v33, %v1210_v22  ;;  %vm1218_vm10 = vweird.f32 %v3288_v33 }
 0x471   : > { %3289 = vrcp.f32 %v1211_v34  ;;  %1556 = vadd.xlane.f32.xlu1 %v1555_v32  ;;  %vm1219_vm12 = vmor %vm1217_vm11, %vm1218_vm10  ;;  %v1238_v1 = vand.u32 2147483648, %v1211_v34  ;;  %v1236_v12 = vand.u32 2147483647, %v1211_v34  ;;  %vm1232_vm15 = vweird.f32 %v1211_v34 }
 0x472   : > { %v1214_v47 = vsub.f32 1.0, %v1213_v39  ;;  %vm1515_vm11 = vcmask 523264  }
 0x473   : > { %v1239_v17 = vor.u32 1.1754944e-38, %v1238_v1  ;;  %vm1237_vm3 = vcmp.eq.f32.partialorder %v1236_v12, 8.507059e+37 }
 0x474   : > { %v1215_v58 = vmul.f32 %v3288_v33, %v1214_v47 }
 0x476   : > { %v1216_v3 = vadd.f32 %v3288_v33, %v1215_v58 }
 0x477   : > { %v3290_v60 = vpop.eup %3289 }
 0x478   : > { %v1228_v4 = vmul.f32 %v3290_v60, %v1211_v34  ;;  %v1220_v8 = vsel %vm1219_vm12, %v3288_v33, %v1216_v3  ;;  %vm1233_vm13 = vweird.f32 %v3290_v60 }
 0x479   : > { %1565 = vadd.xlane.f32.xlu1 %v1564_v59  ;;  %v1225_v0 = vsel %vm1222_vm14, %v1224_v14, %v1220_v8  ;;  %vm1234_vm1 = vmor %vm1232_vm15, %vm1233_vm13 }
 0x47a   : > { %v1229_v62 = vsub.f32 1.0, %v1228_v4  ;;  %v1396_v26 = vmul.f32 0.0, %v1225_v0 }
 0x47c   : > { %v1230_v10 = vmul.f32 %v3290_v60, %v1229_v62 }
 0x47e   : > { %v1231_v15 = vadd.f32 %v3290_v60, %v1230_v10 }
 0x480   : > { %v1235_v18 = vsel %vm1234_vm1, %v3290_v60, %v1231_v15 }
 0x481   : > { %v1240_v19 = vsel %vm1237_vm3, %v1239_v17, %v1235_v18 }
 0x482   : > { %v1397_v27 = vmul.f32 0.0, %v1240_v19 }
 0x484   : > { %v1402_v22 = vpack.c.bf16 %v1397_v27, %v1396_v26 }
 0x486   : > { %1430 = vmatpush.bf16.msrb.mxu0 %v1402_v22  ;;  %3125 = vmatmul.msk.bf16.vlgmr.msra.gmra.mxu3 %vm931_vm0, %v1402_v22 }
 0x4d4   : > { %v1388_v28 = vpop.xlane.xlu1 %1387 }
 0x4d5   : > { %3291 = vrcp.f32 %v1388_v28 }
 0x4db   : > { %v3292_v30 = vpop.eup %3291 }
 0x4dc   : > { %v1391_v32 = vpop.xlane.xlu1 %1390  ;;  %v1394_v33 = vmul.f32 %v3292_v30, %v3867_v11 }
 0x4dd   : > { %3293 = vrcp.f32 %v1391_v32 }
 0x4de   : > { %v1408_v34 = vmul.f32 %v3707_v23, %v1394_v33 }
 0x4e0   : > { %v1410_v39 = vsel %vm1013_vm9, %v1408_v34, 0.0 }
 0x4e1   : > { %1411 = vadd.xlane.f32.xlu2 %v1410_v39 }
 0x4e3   : > { %v3294_v44 = vpop.eup %3293 }
 0x4e4   : > { %v1395_v47 = vmul.f32 %v3294_v44, %v3284_v20  ;;  %v1557_v58 = vpop.xlane.xlu1 %1556  ;;  %v1401_v20 = vld [vmem:[%s4502_s21] sm:$0xf] }
 0x4e5   : > { %v1559_v59 = vmul.f32 %v1557_v58, %v3632_v13 }
 0x4e6   : > { %v1403_v60 = vpack.c.bf16 %v1395_v47, %v1394_v33  ;;  %v1409_v11 = vmul.f32 %v3707_v23, %v1395_v47 }
 0x4e7   : > { %v1561_v3 = vsub.f32 %v1551_v29, %v1559_v59  ;;  %v3903_v29 = vsel %vm1090_vm2, %v1401_v20, 0 }
 0x4e8   : > { %3124 = vmatmul.msk.bf16.vlgmr.msrb.gmra.mxu0 %vm1013_vm9, %v1403_v60  ;;  %v1413_v61 = vsel %vm1013_vm9, %v1409_v11, 0.0 }
 0x4e9   : > { %v1563_v4 = vmul.f32 %v1561_v3, %v1561_v3  ;;  %1475 = vmatpush.bf16.msra.mxu0 %v3903_v29 }
 0x4eb   : > { %v1567_v6 = vsel %vm931_vm0, %v1563_v4, 0.0 }
 0x4ec   : > { %1568 = vadd.xlane.f32.xlu1 %v1567_v6  ;;  %v1566_v62 = vpop.xlane.xlu1 %1565 }
 0x4ed   : > { %v1570_v1 = vmul.f32 %v1566_v62, %v3632_v13  ;;  %1694 = vmatpush.bf16.msrb.mxu0 %v3687_v7 }
 0x4ef   : > { %v1572_v8 = vadd.f32 1e-12, %v1570_v1 }
 0x4f1   : > { %3295 = vrsqrt.f32 %v1572_v8  ;;  %vm1580_vm4 = vweird.f32 %v1572_v8 }
 0x4f4   : > { %1414 = vadd.xlane.f32.xlu1 %v1413_v61 }
 0x4f7   : > { %v3296_v23 = vpop.eup %3295 }
 0x4f8   : > { %v1575_v10 = vmul.f32 %v3296_v23, %v1572_v8  ;;  %vm1581_vm5 = vweird.f32 %v3296_v23 }
 0x4f9   : > { %vm1582_vm6 = vmor %vm1580_vm4, %vm1581_vm5 }
 0x4fa   : > { %v1576_v12 = vmul.f32 %v3296_v23, %v1575_v10 }
 0x4fc   : > { %v1577_v17 = vmul.f32 0.5, %v1576_v12 }
 0x4fe   : > { %v1578_v19 = vsub.f32 1.5, %v1577_v17 }
 0x500   : > { %v1579_v27 = vmul.f32 %v3296_v23, %v1578_v19 }
 0x502   : > { %v1583_v33 = vsel %vm1582_vm6, %v3296_v23, %v1579_v27 }
 0x503   : > { %v1594_v44 = vmul.f32 %v1583_v33, %v3883_v31 }
 0x505   : > { %v1596_v60 = vmul.f32 %v3650_v45, %v1594_v44  ;;  %v1836_v4 = vmul.f32 %v3655_v46, %v1594_v44 }
 0x507   : > { %v1598_v61 = vadd.f32 %v3661_v51, %v1596_v60  ;;  %v1838_v31 = vadd.f32 %v3667_v53, %v1836_v4 }
 0x55f   : > { %v1569_v14 = vpop.xlane.xlu1 %1568 }
 0x560   : > { %v1571_v15 = vmul.f32 %v1569_v14, %v3632_v13 }
 0x562   : > { %v1573_v0 = vadd.f32 1e-12, %v1571_v15 }
 0x564   : > { %3297 = vrsqrt.f32 %v1573_v0  ;;  %vm1590_vm8 = vweird.f32 %v1573_v0 }
 0x565   : > { %v1432_v18 = vpop.f32.mrf.mxu0 }
 0x567   : > { %v1415_v10 = vpop.xlane.xlu1 %1414 }
 0x56a   : > { %v3298_v26 = vpop.eup %3297 }
 0x56b   : > { %v1585_v22 = vmul.f32 %v3298_v26, %v1573_v0  ;;  %vm1591_vm7 = vweird.f32 %v3298_v26 }
 0x56c   : > { %vm1592_vm10 = vmor %vm1590_vm8, %vm1591_vm7 }
 0x56d   : > { %v1586_v28 = vmul.f32 %v3298_v26, %v1585_v22  ;;  %v1434_v30 = vpop.f32.mrf.mxu0 }
 0x56e   : > { %v1461_v32 = vpack.c.bf16 %v1434_v30, %v1432_v18 }
 0x56f   : > { %v1587_v34 = vmul.f32 0.5, %v1586_v28 }
 0x570   : > { %3126 = vmatmul.msk.bf16.vlgmr.msra.gmra.mxu0 %vm931_vm0, %v1461_v32 }
 0x571   : > { %v1588_v39 = vsub.f32 1.5, %v1587_v34 }
 0x573   : > { %v1589_v47 = vmul.f32 %v3298_v26, %v1588_v39  ;;  %v1301_v39 = vpop.f32.mrf.mxu2 }
 0x575   : > { %v1593_v58 = vsel %vm1592_vm10, %v3298_v26, %v1589_v47  ;;  %v3224_v26 = vld [vmem:[%s4540_s15] sm:$0xff]  }
 0x576   : > { %v1595_v59 = vmul.f32 %v1593_v58, %v1561_v3  ;;  %v3986_v28 = vunpack.c.l.bf16 %v3224_v26  ;;  %v3988_v32 = vunpack.c.h.bf16 %v3224_v26 }
 0x578   : > { %v1597_v6 = vmul.f32 %v3650_v45, %v1595_v59  ;;  %v1837_v11 = vmul.f32 %v3655_v46, %v1595_v59  ;;  %v3941_v45 = vld [vmem:[%s4492_s11 + $0x18] sm:$0xff]  ;;  %v3948_v46 = vld [vmem:[%s4492_s11 + $0x10] sm:$0xff] }
 0x579   : > { %1523 = vmatpush.bf16.msra.mxu1 %v3941_v45 }
 0x57a   : > { %v1599_v62 = vadd.f32 %v3661_v51, %v1597_v6  ;;  %v1839_v1 = vadd.f32 %v3667_v53, %v1837_v11  ;;  %v3955_v51 = vld [vmem:[%s4492_s11 + $0x8] sm:$0xff]  ;;  %v3962_v53 = vld [vmem:[%s4492_s11] sm:$0xff] }
 0x57b   : > { %v1303_v58 = vpop.f32.mrf.mxu2  ;;  %v3248_v11 = vld [vmem:[%s3862_s2] ss:$0 sm:$0xff] }
 0x57c   : > { %v1600_v20 = vpack.c.bf16 %v1599_v62, %v1598_v61  ;;  %v3918_v8 = vpack.c.bf16 %v1839_v1, %v1838_v31  ;;  %v1302_v61 = vadd.f32 %v3248_v11, %v1301_v39  ;;  %v1304_v62 = vadd.f32 %v3248_v11, %v1303_v58 }
 0x57d   : > { %1524 = vmatpush.bf16.msra.mxu1 %v3948_v46 }
 0x57e   : > { %v1602_v3 = vsel %vm931_vm0, %v1600_v20, 0  ;;  %v1842_v23 = vsel %vm931_vm0, %v3918_v8, 0  ;;  %v3121_v31 = vmul.f32 -1.442695, %v1302_v61  ;;  %v3122_v1 = vmul.f32 -1.442695, %v1304_v62 }
 0x57f   : > { %1611 = vmatpush.bf16.xpose.msra.mxu2 %v1602_v3  ;;  %1851 = vmatpush.bf16.xpose.msra.mxu0 %v1842_v23 }
 0x580   : > { %3299 = vpow2.f32 %v3121_v31 }
 0x581   : > { %1525 = vmatpush.bf16.msra.mxu1 %v3955_v51  ;;  %3301 = vpow2.f32 %v3122_v1 }
 0x585   : > { %1526 = vmatpush.bf16.msra.mxu1 %v3962_v53 }
 0x586   : > { %3147 = vmatmul.msk.bf16.vlgmr.msra.gmra.mxu2 %vm931_vm0, %v1600_v20  ;;  %v3300_v20 = vpop.eup %3299 }
 0x587   : > { %1730 = vmatpush.bf16.msrb.mxu2 %v3717_v35  ;;  %v1398_v35 = vld [vmem:[%s4499_s18] sm:$0x1]  ;;  %v3302_v3 = vpop.eup %3301  ;;  %v1312_v23 = vadd.f32 1.0, %v3300_v20 }
 0x589   : > { %1716 = vmatpush.bf16.msrb.mxu1 %v3642_v25  ;;  %3303 = vrcp.f32 %v1312_v23  ;;  %vm1319_vm13 = vweird.f32 %v1312_v23 }
 0x58b   : > { %1731 = vmatpush.bf16.msrb.mxu2 %v3729_v37  ;;  %v1400_v37 = vld [vmem:[%s4501_s20] sm:$0x1] }
 0x58f   : > { %1732 = vmatpush.bf16.msrb.mxu2 %v3741_v40  ;;  %v1452_v40 = vpop.f32.mrf.mxu3 }
 0x593   : > { %1733 = vmatpush.bf16.msrb.mxu2 %v3753_v42  ;;  %v1404_v42 = vunpack.c.l.bf16 %v1398_v35  ;;  %v1313_v35 = vadd.f32 1.0, %v3302_v3 }
 0x595   : > { %3305 = vrcp.f32 %v1313_v35  ;;  %vm1334_vm1 = vweird.f32 %v1313_v35  ;;  %v1338_v39 = vand.u32 2147483647, %v1313_v35 }
 0x597   : > { %1734 = vmatpush.bf16.msrb.mxu2 %v3768_v48  ;;  %v1416_v48 = vunpack.c.l.bf16 %v1400_v37  ;;  %v1454_v0 = vpop.f32.mrf.mxu3  ;;  %v3304_v37 = vpop.eup %3303  ;;  %vm1339_vm5 = vcmp.eq.f32.partialorder %v1338_v39, 8.507059e+37 }
 0x598   : > { %vm1320_vm12 = vweird.f32 %v3304_v37 }
 0x599   : > { %vm1321_vm15 = vmor %vm1319_vm13, %vm1320_vm12 }
 0x59b   : > { %1735 = vmatpush.bf16.msrb.mxu2 %v3780_v50  ;;  %v3973_v50 = vperm.slane %v1404_v42, 0  ;;  %v1315_v42 = vmul.f32 %v3304_v37, %v1312_v23 }
 0x59d   : > { %v1406_v14 = vmul.f32 %v3973_v50, %v3821_v2  ;;  %v1407_v17 = vmul.f32 %v3973_v50, %v3826_v5 }
 0x59f   : > { %1736 = vmatpush.bf16.msrb.mxu2 %v3792_v54  ;;  %v3975_v54 = vperm.slane %v1416_v48, 0  ;;  %v1457_v18 = vadd.f32 %v1452_v40, %v1406_v14  ;;  %v1458_v27 = vadd.f32 %v1454_v0, %v1407_v17  ;;  %v3306_v40 = vpop.eup %3305 }
 0x5a0   : > { %v1330_v48 = vmul.f32 %v3306_v40, %v1313_v35  ;;  %vm1335_vm14 = vweird.f32 %v3306_v40 }
 0x5a1   : > { %v1419_v19 = vmul.f32 %v3975_v54, %v1415_v10  ;;  %vm1336_vm3 = vmor %vm1334_vm1, %vm1335_vm14 }
 0x5a2   : > { %v1331_v10 = vsub.f32 1.0, %v1330_v48 }
 0x5a3   : > { %1737 = vmatpush.bf16.msrb.mxu2 %v3804_v56  ;;  %v1412_v56 = vpop.xlane.xlu2 %1411  ;;  %v1460_v2 = vadd.f32 %v1458_v27, %v1419_v19  ;;  %v1325_v19 = vand.u32 2147483648, %v1312_v23  ;;  %v1323_v27 = vand.u32 2147483647, %v1312_v23 }
 0x5a4   : > { %v1418_v15 = vmul.f32 %v3975_v54, %v1412_v56  ;;  %v1316_v56 = vsub.f32 1.0, %v1315_v42  ;;  %v1332_v0 = vmul.f32 %v3306_v40, %v1331_v10 }
 0x5a5   : > { %vm1324_vm4 = vcmp.eq.f32.partialorder %v1323_v27, 8.507059e+37 }
 0x5a6   : > { %v1459_v22 = vadd.f32 %v1457_v18, %v1418_v15  ;;  %v1317_v14 = vmul.f32 %v3304_v37, %v1316_v56 }
 0x5a7   : > { %1966 = vmatpush.bf16.msra.mxu2 %v3941_v45 }
 0x5a8   : > { %v1318_v18 = vadd.f32 %v3304_v37, %v1317_v14 }
 0x5ab   : > { %1967 = vmatpush.bf16.msra.mxu2 %v3948_v46 }
 0x5af   : > { %1968 = vmatpush.bf16.msra.mxu2 %v3955_v51 }
 0x5b3   : > { %1969 = vmatpush.bf16.msra.mxu2 %v3962_v53 }
 0x5ed   : > { %v1477_v12 = vpop.f32.mrf.mxu0 }
 0x5ee   : > { %v1482_v30 = vadd.f32 %v1477_v12, %v1459_v22  ;;  %v3249_v12 = vld [vmem:[%s3933_s6] ss:$0 sm:$0xff] }
 0x5f0   : > { %v1486_v5 = vmul.f32 %v3986_v28, %v1482_v30  ;;  %v1333_v30 = vadd.f32 %v3306_v40, %v1332_v0 }
 0x5f2   : > { %v1337_v58 = vsel %vm1336_vm3, %v3306_v40, %v1333_v30 }
 0x5f5   : > { %v1479_v33 = vpop.f32.mrf.mxu0 }
 0x5f6   : > { %v1483_v34 = vadd.f32 %v1479_v33, %v1460_v2  ;;  %v1340_v2 = vand.u32 2147483648, %v1313_v35  ;;  %v1322_v33 = vsel %vm1321_vm15, %v3304_v37, %v1318_v18 }
 0x5f8   : > { %v1487_v44 = vmul.f32 %v3988_v32, %v1483_v34 }
 0x5fa   : > { %v1488_v47 = vpack.c.bf16 %v1487_v44, %v1486_v5  ;;  %v1326_v44 = vor.u32 1.1754944e-38, %v1325_v19 }
 0x5fc   : > { %3143 = vmatmul.msk.bf16.vlgmr.msra.gmra.mxu1 %vm1515_vm11, %v1488_v47 }
 0x609   : > { %v1613_v59 = vpop.f32.mrf.mxu2 }
 0x60a   : > { %v1618_v60 = vsel %vm1013_vm9, %v1613_v59, -inf }
 0x60b   : > { %1619 = vmax.xlane.f32.xlu2 %v1618_v60  ;;  %v1327_v60 = vsel %vm1324_vm4, %v1326_v44, %v1322_v33 }
 0x60c   : > { %v1537_v62 = vsub.f32 1.0, %v1327_v60  ;;  %v1535_v42 = vmul.f32 0.0, %v1327_v60 }
 0x611   : > { %v1615_v4 = vpop.f32.mrf.mxu2 }
 0x612   : > { %v1621_v6 = vsel %vm1013_vm9, %v1615_v4, -inf }
 0x613   : > { %1622 = vmax.xlane.f32.xlu1 %v1621_v6  ;;  %v1341_v6 = vor.u32 1.1754944e-38, %v1340_v2 }
 0x615   : > { %v1342_v11 = vsel %vm1339_vm5, %v1341_v6, %v1337_v58  ;;  %v4033_v58 = vpop.permute.xlu0 %1649 }
 0x616   : > { %v1538_v3 = vsub.f32 1.0, %v1342_v11  ;;  %v1536_v48 = vmul.f32 0.0, %v1342_v11  ;;  %v1653_v60 = vmul.f32 %v4033_v58, %v3819_v63 }
 0x679   : > { %v1528_v15 = vpop.f32.mrf.mxu1 }
 0x67a   : > { %v1529_v17 = vadd.f32 %v3249_v12, %v1528_v15  ;;  %v3144_v15 = vld [vmem:[%s3702_s10 + $0x10] sm:$0xff] }
 0x67c   : > { %3307 = vtanh.f32 %v1529_v17 }
 0x67e   : > { %v1620_v26 = vpop.xlane.xlu2 %1619 }
 0x67f   : > { %v1624_v22 = vsub.f32 %v1613_v59, %v1620_v26 }
 0x681   : > { %v1626_v34 = vmul.f32 1.442695, %v1624_v22  ;;  %v1530_v5 = vpop.f32.mrf.mxu1 }
 0x682   : > { %v1531_v47 = vadd.f32 %v3249_v12, %v1530_v5  ;;  %v3308_v59 = vpop.eup %3307 }
 0x683   : > { %3309 = vpow2.f32 %v1626_v34  ;;  %v1539_v20 = vmul.f32 %v3308_v59, %v1537_v62 }
 0x684   : > { %3311 = vtanh.f32 %v1531_v47 }
 0x685   : > { %v3998_v40 = vadd.f32 %v1539_v20, %v1535_v42 }
 0x686   : > { %v1623_v61 = vpop.xlane.xlu1 %1622 }
 0x687   : > { %v1625_v31 = vsub.f32 %v1615_v4, %v1623_v61 }
 0x689   : > { %v3310_v1 = vpop.eup %3309  ;;  %v1628_v23 = vmul.f32 1.442695, %v1625_v31 }
 0x68a   : > { %v3312_v35 = vpop.eup %3311  ;;  %v1630_v37 = vsel %vm1013_vm9, %v3310_v1, 0.0 }
 0x68b   : > { %v1540_v56 = vmul.f32 %v3312_v35, %v1538_v3  ;;  %3313 = vpow2.f32 %v1628_v23  ;;  %1631 = vadd.xlane.f32.xlu2 %v1630_v37 }
 0x68d   : > { %v4000_v10 = vadd.f32 %v1540_v56, %v1536_v48 }
 0x68f   : > { %v1640_v4 = vpack.c.bf16 %v4000_v10, %v3998_v40 }
 0x691   : > { %v3314_v12 = vpop.eup %3313  ;;  %1677 = vmatpush.bf16.msrb.mxu3 %v1640_v4  ;;  %3149 = vmatmul.msk.bf16.vlgmr.msrb.gmra.mxu0 %vm931_vm0, %v1640_v4  ;;  %v3251_v4 = vld [vmem:[%s3615_s29 + $0x2] ss:$0 sm:$0xff] }
 0x692   : > { %v1633_v14 = vsel %vm1013_vm9, %v3314_v12, 0.0  ;;  %1923 = vmatpush.bf16.msrb.mxu0 %v3875_v16 }
 0x693   : > { %1634 = vadd.xlane.f32.xlu1 %v1633_v14 }
 0x695   : > { %1784 = vmatpush.bf16.msra.mxu3 %v3722_v36 }
 0x699   : > { %1785 = vmatpush.bf16.msra.mxu3 %v3734_v38  ;;  %v4019_v38 = vld [vmem:[%s3694_s4 + $0x1] ss:$0 sm:$0xff] }
 0x69d   : > { %1786 = vmatpush.bf16.msra.mxu3 %v3746_v41 }
 0x6a1   : > { %1787 = vmatpush.bf16.msra.mxu3 %v3758_v43  ;;  %3155 = vmatmul.msk.bf16.vlgmr.msra.gmra.mxu0 %vm931_vm0, %v3918_v8 }
 0x6a3   : > { %1644 = vperm.xlu2 %3237, %v3144_v15   ;;  %v4045_v15 = vld [vmem:[%s4527_s30] sm:$0xff] }
 0x6a5   : > { %1788 = vmatpush.bf16.msra.mxu3 %v3773_v49 }
 0x6a9   : > { %1789 = vmatpush.bf16.msra.mxu3 %v3785_v52 }
 0x6ad   : > { %1790 = vmatpush.bf16.msra.mxu3 %v3797_v55 }
 0x6b1   : > { %1791 = vmatpush.bf16.msra.mxu3 %v3809_v57 }
 0x6fe   : > { %v1632_v36 = vpop.xlane.xlu2 %1631 }
 0x6ff   : > { %3315 = vrcp.f32 %v1632_v36  ;;  %v1993_v36 = vadd.f32 %v4045_v15, %v3251_v4 }
 0x705   : > { %v3316_v41 = vpop.eup %3315 }
 0x706   : > { %v1635_v0 = vpop.xlane.xlu1 %1634  ;;  %v1638_v43 = vmul.f32 %v3316_v41, %v3310_v1  ;;  %v4028_v33 = vpop.permute.xlu2 %1644  ;;  %v1995_v41 = vsel %vm931_vm0, %v1993_v36, 0.0 }
 0x707   : > { %3317 = vrcp.f32 %v1635_v0  ;;  %v1652_v34 = vmul.f32 %v4028_v33, %v3819_v63  ;;  %v4052_v0 = vld [vmem:[%s4527_s30 + $0x8] sm:$0xff] }
 0x708   : > { %v1657_v17 = vmul.f32 %v4019_v38, %v1638_v43 }
 0x70a   : > { %v1659_v8 = vsel %vm1013_vm9, %v1657_v17, 0.0 }
 0x70b   : > { %1660 = vadd.xlane.f32.xlu1 %v1659_v8 }
 0x70d   : > { %v3318_v49 = vpop.eup %3317 }
 0x70e   : > { %v1639_v18 = vmul.f32 %v3318_v49, %v3314_v12  ;;  %v1696_v52 = vpop.f32.mrf.mxu0 }
 0x70f   : > { %v1701_v5 = vadd.f32 %v1696_v52, %v1652_v34 }
 0x710   : > { %v1641_v19 = vpack.c.bf16 %v1639_v18, %v1638_v43  ;;  %v1658_v55 = vmul.f32 %v4019_v38, %v1639_v18  ;;  %v1994_v43 = vadd.f32 %v4052_v0, %v3251_v4 }
 0x712   : > { %3148 = vmatmul.msk.bf16.vlgmr.msrb.gmra.mxu3 %vm1013_vm9, %v1641_v19  ;;  %v1662_v57 = vsel %vm1013_vm9, %v1658_v55, 0.0  ;;  %v1998_v17 = vsel %vm931_vm0, %v1994_v43, 0.0 }
 0x713   : > { %1663 = vadd.xlane.f32.xlu1 %v1662_v57 }
 0x716   : > { %v1698_v26 = vpop.f32.mrf.mxu0 }
 0x717   : > { %v1702_v59 = vadd.f32 %v1698_v26, %v1653_v60 }
 0x71e   : > { %v1853_v27 = vpop.f32.mrf.mxu0 }
 0x71f   : > { %v1858_v22 = vsel %vm1013_vm9, %v1853_v27, -inf }
 0x720   : > { %1859 = vmax.xlane.f32.xlu0 %v1858_v22 }
 0x726   : > { %v1855_v30 = vpop.f32.mrf.mxu0 }
 0x727   : > { %v1861_v2 = vsel %vm1013_vm9, %v1855_v30, -inf }
 0x728   : > { %1862 = vmax.xlane.f32.xlu1 %v1861_v2 }
 0x77e   : > { %v1661_v39 = vpop.xlane.xlu1 %1660 }
 0x77f   : > { %v1665_v44 = vmul.f32 %v1661_v39, %v3834_v9 }
 0x781   : > { %v1703_v47 = vadd.f32 %v1701_v5, %v1665_v44 }
 0x786   : > { %v1664_v6 = vpop.xlane.xlu1 %1663 }
 0x787   : > { %v1666_v11 = vmul.f32 %v1664_v6, %v3834_v9 }
 0x789   : > { %v1704_v61 = vadd.f32 %v1702_v59, %v1666_v11 }
 0x793   : > { %v1860_v62 = vpop.xlane.xlu0 %1859 }
 0x794   : > { %v1864_v31 = vsub.f32 %v1853_v27, %v1860_v62 }
 0x795   : > { %v1679_v1 = vpop.f32.mrf.mxu3 }
 0x796   : > { %v1866_v20 = vmul.f32 1.442695, %v1864_v31 }
 0x798   : > { %3319 = vpow2.f32 %v1866_v20 }
 0x79b   : > { %v1863_v3 = vpop.xlane.xlu1 %1862 }
 0x79c   : > { %v1865_v23 = vsub.f32 %v1855_v30, %v1863_v3 }
 0x79d   : > { %v1681_v35 = vpop.f32.mrf.mxu3 }
 0x79e   : > { %v3320_v37 = vpop.eup %3319  ;;  %v1868_v42 = vmul.f32 1.442695, %v1865_v23  ;;  %v1705_v48 = vpack.c.bf16 %v1681_v35, %v1679_v1 }
 0x79f   : > { %v1870_v56 = vsel %vm1013_vm9, %v3320_v37, 0.0 }
 0x7a0   : > { %3321 = vpow2.f32 %v1868_v42  ;;  %1871 = vadd.xlane.f32.xlu2 %v1870_v56  ;;  %3150 = vmatmul.msk.bf16.vlgmr.msrb.gmra.mxu1 %vm931_vm0, %v1705_v48 }
 0x7a6   : > { %v3322_v12 = vpop.eup %3321 }
 0x7a7   : > { %v1873_v14 = vsel %vm1013_vm9, %v3322_v12, 0.0 }
 0x7a8   : > { %1874 = vadd.xlane.f32.xlu1 %v1873_v14 }
 0x7b0   : > { %1996 = vadd.xlane.f32.xlu1 %v1995_v41 }
 0x7b8   : > { %1999 = vadd.xlane.f32.xlu1 %v1998_v17 }
 0x813   : > { %v1872_v8 = vpop.xlane.xlu2 %1871 }
 0x814   : > { %3323 = vrcp.f32 %v1872_v8 }
 0x81a   : > { %v3324_v52 = vpop.eup %3323 }
 0x81b   : > { %v1875_v49 = vpop.xlane.xlu1 %1874  ;;  %v4058_v26 = vmul.f32 %v3324_v52, %v3320_v37 }
 0x81c   : > { %3325 = vrcp.f32 %v1875_v49 }
 0x81d   : > { %v1718_v18 = vpop.f32.mrf.mxu1  ;;  %v1886_v1 = vmul.f32 %v4019_v38, %v4058_v26 }
 0x81e   : > { %v1723_v27 = vadd.f32 %v1718_v18, %v1703_v47 }
 0x81f   : > { %v1888_v23 = vsel %vm1013_vm9, %v1886_v1, 0.0 }
 0x820   : > { %v1725_v60 = vmul.f32 %v3845_v21, %v1723_v27 }
 0x822   : > { %v3326_v19 = vpop.eup %3325 }
 0x823   : > { %v1997_v55 = vpop.xlane.xlu1 %1996  ;;  %v4056_v57 = vmul.f32 %v3326_v19, %v3322_v12 }
 0x824   : > { %v2001_v22 = vmul.f32 %v1997_v55, %v3632_v13 }
 0x825   : > { %v1720_v30 = vpop.f32.mrf.mxu1  ;;  %v1887_v2 = vmul.f32 %v4019_v38, %v4056_v57  ;;  %v1883_v34 = vpack.c.bf16 %v4056_v57, %v4058_v26 }
 0x826   : > { %v2003_v39 = vsub.f32 %v1993_v36, %v2001_v22  ;;  %v1724_v5 = vadd.f32 %v1720_v30, %v1704_v61  ;;  %v3252_v36 = vld [vmem:[%s3853_s8 + $0x1] ss:$0 sm:$0xff] }
 0x827   : > { %v1891_v44 = vsel %vm1013_vm9, %v1887_v2, 0.0 }
 0x828   : > { %v1726_v6 = vmul.f32 %v3847_v24, %v1724_v5  ;;  %1892 = vadd.xlane.f32.xlu2 %v1891_v44  ;;  %v2005_v59 = vmul.f32 %v2003_v39, %v2003_v39 }
 0x82a   : > { %v1727_v47 = vpack.c.bf16 %v1726_v6, %v1725_v60  ;;  %v2007_v11 = vsel %vm931_vm0, %v2005_v59, 0.0 }
 0x82b   : > { %2008 = vadd.xlane.f32.xlu1 %v2007_v11  ;;  %v2000_v62 = vpop.xlane.xlu1 %1999 }
 0x82c   : > { %v2002_v31 = vmul.f32 %v2000_v62, %v3632_v13  ;;  %1738 = vmatmul.bf16.vlgmr.msrb.gmra.mxu2 %v1727_v47  ;;  %1792 = vmatmul.bf16.vlgmr.msra.gmra.mxu3 %v1727_v47 }
 0x82d   : > { %2159 = vmatpush.bf16.msrb.mxu2 %v3642_v25 }
 0x82e   : > { %v2004_v61 = vsub.f32 %v1994_v43, %v2002_v31  ;;  %v4081_v31 = vld [vmem:[%s4497_s16] ss:$0 sm:$0xff] }
 0x830   : > { %v2006_v20 = vmul.f32 %v2004_v61, %v2004_v61 }
 0x832   : > { %v2010_v3 = vsel %vm931_vm0, %v2006_v20, 0.0 }
 0x833   : > { %2011 = vadd.xlane.f32.xlu0 %v2010_v3  ;;  %1889 = vadd.xlane.f32.xlu1 %v1888_v23 }
 0x89e   : > { %v2009_v35 = vpop.xlane.xlu1 %2008 }
 0x89f   : > { %v2013_v37 = vmul.f32 %v2009_v35, %v3632_v13 }
 0x8a1   : > { %v2015_v42 = vadd.f32 1e-12, %v2013_v37 }
 0x8a3   : > { %3327 = vrsqrt.f32 %v2015_v42  ;;  %vm2023_vm6 = vweird.f32 %v2015_v42 }
 0x8a6   : > { %v2012_v48 = vpop.xlane.xlu0 %2011 }
 0x8a7   : > { %v2014_v56 = vmul.f32 %v2012_v48, %v3632_v13 }
 0x8a9   : > { %v3328_v4 = vpop.eup %3327  ;;  %v2016_v12 = vadd.f32 1e-12, %v2014_v56 }
 0x8aa   : > { %v2018_v14 = vmul.f32 %v3328_v4, %v2015_v42  ;;  %vm2024_vm7 = vweird.f32 %v3328_v4  ;;  %v4102_v42 = vld [vmem:[%s4504_s23] ss:$0 sm:$0xff] }
 0x8ab   : > { %3329 = vrsqrt.f32 %v2016_v12  ;;  %vm2025_vm8 = vmor %vm2023_vm6, %vm2024_vm7  ;;  %vm2033_vm10 = vweird.f32 %v2016_v12 }
 0x8ac   : > { %v2019_v38 = vmul.f32 %v3328_v4, %v2018_v14 }
 0x8ae   : > { %v2020_v41 = vmul.f32 0.5, %v2019_v38 }
 0x8af   : > { %v1739_v43 = vpop.f32.mrf.mxu2  ;;  %v1793_v57 = vpop.f32.mrf.mxu3 }
 0x8b0   : > { %v2021_v17 = vsub.f32 1.5, %v2020_v41  ;;  %v1740_v8 = vadd.f32 %v3252_v36, %v1739_v43 }
 0x8b1   : > { %v3330_v49 = vpop.eup %3329 }
 0x8b2   : > { %v2022_v18 = vmul.f32 %v3328_v4, %v2021_v17  ;;  %v2028_v52 = vmul.f32 %v3330_v49, %v2016_v12  ;;  %v3151_v19 = vmul.f32 -1.442695, %v1740_v8  ;;  %vm2034_vm12 = vweird.f32 %v3330_v49  ;;  %v4112_v8 = vld [vmem:[%s4532_s28 + $0x38] sm:$0xff] }
 0x8b3   : > { %vm2035_vm13 = vmor %vm2033_vm10, %vm2034_vm12 }
 0x8b4   : > { %v2029_v55 = vmul.f32 %v3330_v49, %v2028_v52  ;;  %3331 = vpow2.f32 %v3151_v19  ;;  %v2026_v27 = vsel %vm2025_vm8, %v3328_v4, %v2022_v18  ;;  %v4118_v52 = vld [vmem:[%s4532_s28 + $0x30] sm:$0xff] }
 0x8b5   : > { %v2037_v44 = vmul.f32 %v2026_v27, %v2003_v39  ;;  %v4087_v39 = vld [vmem:[%s4503_s22] ss:$0 sm:$0xff] }
 0x8b6   : > { %v2030_v22 = vmul.f32 0.5, %v2029_v55 }
 0x8b7   : > { %v1741_v30 = vpop.f32.mrf.mxu2  ;;  %v2039_v1 = vmul.f32 %v4081_v31, %v2037_v44  ;;  %v2279_v20 = vmul.f32 %v4087_v39, %v2037_v44  ;;  %v1795_v26 = vpop.f32.mrf.mxu3 }
 0x8b8   : > { %v2031_v2 = vsub.f32 1.5, %v2030_v22  ;;  %v1742_v5 = vadd.f32 %v3252_v36, %v1741_v30 }
 0x8b9   : > { %v2281_v48 = vadd.f32 %v4102_v42, %v2279_v20 }
 0x8ba   : > { %v3332_v60 = vpop.eup %3331  ;;  %v2032_v6 = vmul.f32 %v3330_v49, %v2031_v2  ;;  %v3152_v59 = vmul.f32 -1.442695, %v1742_v5  ;;  %v4125_v5 = vld [vmem:[%s4532_s28 + $0x28] sm:$0xff] }
 0x8bb   : > { %v1750_v47 = vadd.f32 1.0, %v3332_v60 }
 0x8bc   : > { %v2036_v11 = vsel %vm2035_vm13, %v3330_v49, %v2032_v6  ;;  %3333 = vpow2.f32 %v3152_v59 }
 0x8bd   : > { %v2038_v62 = vmul.f32 %v2036_v11, %v2004_v61  ;;  %3335 = vrcp.f32 %v1750_v47  ;;  %v4095_v61 = vld [vmem:[%s4498_s17] ss:$0 sm:$0xff]  ;;  %v1763_v27 = vand.u32 2147483648, %v1750_v47  ;;  %vm1757_vm15 = vweird.f32 %v1750_v47 }
 0x8be   : > { %v2041_v35 = vadd.f32 %v4095_v61, %v2039_v1  ;;  %v1761_v30 = vand.u32 2147483647, %v1750_v47  ;;  %v4131_v1 = vld [vmem:[%s4532_s28 + $0x20] sm:$0xff] }
 0x8bf   : > { %v2040_v3 = vmul.f32 %v4081_v31, %v2038_v62  ;;  %v2280_v23 = vmul.f32 %v4087_v39, %v2038_v62  ;;  %v1764_v59 = vor.u32 1.1754944e-38, %v1763_v27 }
 0x8c0   : > { %vm1762_vm5 = vcmp.eq.f32.partialorder %v1761_v30, 8.507059e+37 }
 0x8c1   : > { %v2042_v37 = vadd.f32 %v4095_v61, %v2040_v3  ;;  %v2282_v56 = vadd.f32 %v4102_v42, %v2280_v23 }
 0x8c2   : > { %v3334_v4 = vpop.eup %3333 }
 0x8c3   : > { %v3336_v12 = vpop.eup %3335  ;;  %v1751_v14 = vadd.f32 1.0, %v3334_v4  ;;  %v2043_v38 = vpack.c.bf16 %v2042_v37, %v2041_v35  ;;  %v4106_v36 = vpack.c.bf16 %v2282_v56, %v2281_v48  ;;  %v4139_v37 = vld [vmem:[%s4532_s28 + $0x18] sm:$0xff]  ;;  %v4147_v56 = vld [vmem:[%s4532_s28 + $0x10] sm:$0xff]  ;;  %v4158_v4 = vld [vmem:[%s4532_s28 + $0x8] sm:$0xff] }
 0x8c4   : > { %v1753_v41 = vmul.f32 %v3336_v12, %v1750_v47  ;;  %vm1758_vm14 = vweird.f32 %v3336_v12 }
 0x8c5   : > { %3337 = vrcp.f32 %v1751_v14  ;;  %v2045_v43 = vsel %vm931_vm0, %v2043_v38, 0  ;;  %vm1759_vm1 = vmor %vm1757_vm15, %vm1758_vm14  ;;  %v1778_v2 = vand.u32 2147483648, %v1751_v14  ;;  %v1776_v6 = vand.u32 2147483647, %v1751_v14 }
 0x8c6   : > { %v1754_v17 = vsub.f32 1.0, %v1753_v41  ;;  %2054 = vmatpush.bf16.xpose.msrb.mxu3 %v2045_v43  ;;  %vm1772_vm4 = vweird.f32 %v1751_v14 }
 0x8c7   : > { %v1779_v47 = vor.u32 1.1754944e-38, %v1778_v2  ;;  %vm1777_vm7 = vcmp.eq.f32.partialorder %v1776_v6, 8.507059e+37  ;;  %v1884_v6 = vmul.f32 %v4028_v33, %v3973_v50 }
 0x8c8   : > { %v1755_v49 = vmul.f32 %v3336_v12, %v1754_v17 }
 0x8ca   : > { %v1756_v55 = vadd.f32 %v3336_v12, %v1755_v49 }
 0x8cb   : > { %v3338_v18 = vpop.eup %3337 }
 0x8cc   : > { %v1768_v19 = vmul.f32 %v3338_v18, %v1751_v14  ;;  %v1760_v60 = vsel %vm1759_vm1, %v3336_v12, %v1756_v55  ;;  %vm1773_vm3 = vweird.f32 %v3338_v18  ;;  %v4164_v12 = vld [vmem:[%s4532_s28] sm:$0xff] }
 0x8cd   : > { %3163 = vmatmul.msk.bf16.vlgmr.msrb.gmra.mxu3 %vm931_vm0, %v2043_v38  ;;  %v1765_v62 = vsel %vm1762_vm5, %v1764_v59, %v1760_v60  ;;  %vm1774_vm6 = vmor %vm1772_vm4, %vm1773_vm3 }
 0x8ce   : > { %2173 = vmatpush.bf16.msra.mxu3 %v4112_v8  ;;  %v1769_v22 = vsub.f32 1.0, %v1768_v19  ;;  %v1880_v23 = vmul.f32 %v1765_v62, %v3998_v40  ;;  %v1885_v62 = vmul.f32 %v4033_v58, %v3973_v50 }
 0x8d0   : > { %v1770_v44 = vmul.f32 %v3338_v18, %v1769_v22 }
 0x8d2   : > { %2174 = vmatpush.bf16.msra.mxu3 %v4118_v52  ;;  %v1771_v11 = vadd.f32 %v3338_v18, %v1770_v44 }
 0x8d4   : > { %v1775_v20 = vsel %vm1774_vm6, %v3338_v18, %v1771_v11 }
 0x8d5   : > { %v1780_v3 = vsel %vm1777_vm7, %v1779_v47, %v1775_v20  ;;  %v1893_v20 = vpop.xlane.xlu2 %1892 }
 0x8d6   : > { %2175 = vmatpush.bf16.msra.mxu3 %v4125_v5  ;;  %v1881_v35 = vmul.f32 %v1780_v3, %v4000_v10 }
 0x8d8   : > { %v1882_v48 = vpack.c.bf16 %v1881_v35, %v1880_v23  ;;  %v1895_v35 = vmul.f32 %v1893_v20, %v3975_v54 }
 0x8da   : > { %2176 = vmatpush.bf16.msra.mxu3 %v4131_v1  ;;  %1906 = vmatpush.bf16.msra.mxu1 %v1882_v48 }
 0x8db   : > { %3157 = vmatmul.msk.bf16.vlgmr.msrb.gmra.mxu0 %vm931_vm0, %v1882_v48 }
 0x8dd   : > { %3156 = vmatmul.msk.bf16.vlgmr.msra.gmra.mxu1 %vm1013_vm9, %v1883_v34 }
 0x8de   : > { %2177 = vmatpush.bf16.msra.mxu3 %v4139_v37  ;;  %1945 = vmatpush.bf16.msrb.mxu1 %v3903_v29 }
 0x8e2   : > { %2178 = vmatpush.bf16.msra.mxu3 %v4147_v56  ;;  %2137 = vmatpush.bf16.msra.mxu1 %v3687_v7 }
 0x8e6   : > { %2179 = vmatpush.bf16.msra.mxu3 %v4158_v4 }
 0x8ea   : > { %2180 = vmatpush.bf16.msra.mxu3 %v4164_v12 }
 0x8ee   : > { %2409 = vmatpush.bf16.msrb.mxu3 %v3941_v45  ;;  %v2285_v45 = vsel %vm931_vm0, %v4106_v36, 0 }
 0x8f2   : > { %2410 = vmatpush.bf16.msrb.mxu3 %v3948_v46  ;;  %v1890_v46 = vpop.xlane.xlu1 %1889 }
 0x8f3   : > { %v1894_v3 = vmul.f32 %v1890_v46, %v3975_v54  ;;  %v4190_v46 = vld [vmem:[%s3694_s4 + $0x2] ss:$0 sm:$0xff] }
 0x8f6   : > { %2411 = vmatpush.bf16.msrb.mxu3 %v3955_v51 }
 0x8fa   : > { %2412 = vmatpush.bf16.msrb.mxu3 %v3962_v53 }
 0x950   : > { %v2056_v34 = vpop.f32.mrf.mxu3 }
 0x951   : > { %v2061_v14 = vsel %vm1013_vm9, %v2056_v34, -inf }
 0x952   : > { %2062 = vmax.xlane.f32.xlu0 %v2061_v14 }
 0x958   : > { %v2058_v38 = vpop.f32.mrf.mxu3  ;;  %v1925_v44 = vpop.f32.mrf.mxu0 }
 0x959   : > { %v2064_v41 = vsel %vm1013_vm9, %v2058_v38, -inf  ;;  %v1930_v47 = vadd.f32 %v1925_v44, %v1884_v6 }
 0x95a   : > { %2065 = vmax.xlane.f32.xlu1 %v2064_v41  ;;  %v1908_v43 = vpop.f32.mrf.mxu1 }
 0x95b   : > { %v1932_v48 = vadd.f32 %v1930_v47, %v1894_v3 }
 0x960   : > { %v1927_v59 = vpop.f32.mrf.mxu0 }
 0x961   : > { %v1931_v23 = vadd.f32 %v1927_v59, %v1885_v62 }
 0x962   : > { %v1910_v17 = vpop.f32.mrf.mxu1 }
 0x963   : > { %v1934_v49 = vpack.c.bf16 %v1910_v17, %v1908_v43 }
 0x965   : > { %3158 = vmatmul.msk.bf16.vlgmr.msrb.gmra.mxu1 %vm931_vm0, %v1934_v49 }
 0x966   : > { %2294 = vmatpush.bf16.xpose.msrb.mxu1 %v2285_v45  ;;  %v3253_v45 = vld [vmem:[%s3862_s2 + $0x1] ss:$0 sm:$0xff] }
 0x9c5   : > { %v2063_v51 = vpop.xlane.xlu0 %2062 }
 0x9c6   : > { %v2067_v53 = vsub.f32 %v2056_v34, %v2063_v51  ;;  %v3161_v34 = vld [vmem:[%s3702_s10 + $0x28] sm:$0xff] }
 0x9c8   : > { %v2069_v18 = vmul.f32 1.442695, %v2067_v53 }
 0x9ca   : > { %3339 = vpow2.f32 %v2069_v18 }
 0x9cd   : > { %v2066_v19 = vpop.xlane.xlu1 %2065 }
 0x9ce   : > { %v2068_v55 = vsub.f32 %v2058_v38, %v2066_v19  ;;  %v1933_v38 = vadd.f32 %v1931_v23, %v1895_v35  ;;  %v1794_v19 = vadd.f32 %v3253_v45, %v1793_v57  ;;  %v3160_v35 = vld [vmem:[%s3702_s10 + $0x20] sm:$0xff] }
 0x9cf   : > { %2087 = vperm.xlu1 %3239, %v3160_v35  }
 0x9d0   : > { %v3340_v27 = vpop.eup %3339  ;;  %v2071_v22 = vmul.f32 1.442695, %v2068_v55  ;;  %v3153_v44 = vmul.f32 -1.442695, %v1794_v19 }
 0x9d1   : > { %v2073_v30 = vsel %vm1013_vm9, %v3340_v27, 0.0 }
 0x9d2   : > { %3341 = vpow2.f32 %v2071_v22  ;;  %2074 = vadd.xlane.f32.xlu2 %v2073_v30  ;;  %v1796_v22 = vadd.f32 %v3253_v45, %v1795_v26 }
 0x9d4   : > { %v3154_v6 = vmul.f32 -1.442695, %v1796_v22 }
 0x9d8   : > { %v3342_v2 = vpop.eup %3341 }
 0x9d9   : > { %v2076_v60 = vsel %vm1013_vm9, %v3342_v2, 0.0 }
 0x9da   : > { %2077 = vadd.xlane.f32.xlu0 %v2076_v60 }
 0x9e2   : > { %v1947_v11 = vpop.f32.mrf.mxu1 }
 0x9e3   : > { %v1952_v14 = vadd.f32 %v1947_v11, %v1932_v48 }
 0x9e5   : > { %v1954_v43 = vmul.f32 %v3986_v28, %v1952_v14  ;;  %v3255_v14 = vld [vmem:[%s3933_s6 + $0x1] ss:$0 sm:$0xff] }
 0x9ea   : > { %2092 = vperm.xlu2 %3237, %v3161_v34   ;;  %v1949_v33 = vpop.f32.mrf.mxu1 }
 0x9eb   : > { %v1953_v41 = vadd.f32 %v1949_v33, %v1933_v38 }
 0x9ed   : > { %v1955_v58 = vmul.f32 %v3988_v32, %v1953_v41 }
 0x9ef   : > { %v1956_v17 = vpack.c.bf16 %v1955_v58, %v1954_v43 }
 0x9f1   : > { %3159 = vmatmul.msk.bf16.vlgmr.msra.gmra.mxu2 %vm1515_vm11, %v1956_v17 }
 0xa45   : > { %v2075_v49 = vpop.xlane.xlu2 %2074 }
 0xa46   : > { %3343 = vrcp.f32 %v2075_v49 }
 0xa4c   : > { %v3344_v51 = vpop.eup %3343 }
 0xa4d   : > { %v2078_v53 = vpop.xlane.xlu0 %2077  ;;  %v4192_v18 = vmul.f32 %v3344_v51, %v3340_v27 }
 0xa4e   : > { %3345 = vrcp.f32 %v2078_v53 }
 0xa4f   : > { %v2100_v55 = vmul.f32 %v4190_v46, %v4192_v18  ;;  %3347 = vpow2.f32 %v3153_v44 }
 0xa50   : > { %3349 = vpow2.f32 %v3154_v6 }
 0xa51   : > { %v2102_v30 = vsel %vm1013_vm9, %v2100_v55, 0.0 }
 0xa52   : > { %2103 = vadd.xlane.f32.xlu0 %v2102_v30 }
 0xa54   : > { %v3346_v60 = vpop.eup %3345 }
 0xa55   : > { %v4197_v59 = vmul.f32 %v3346_v60, %v3342_v2  ;;  %v3348_v11 = vpop.eup %3347 }
 0xa56   : > { %v3350_v26 = vpop.eup %3349  ;;  %v1804_v62 = vadd.f32 1.0, %v3348_v11 }
 0xa57   : > { %v2101_v27 = vmul.f32 %v4190_v46, %v4197_v59  ;;  %v1805_v47 = vadd.f32 1.0, %v3350_v26 }
 0xa58   : > { %3351 = vrcp.f32 %v1804_v62  ;;  %v1817_v17 = vand.u32 2147483648, %v1804_v62  ;;  %vm1811_vm10 = vweird.f32 %v1804_v62  ;;  %v1815_v49 = vand.u32 2147483647, %v1804_v62 }
 0xa59   : > { %v2105_v57 = vsel %vm1013_vm9, %v2101_v27, 0.0  ;;  %3353 = vrcp.f32 %v1805_v47  ;;  %v1832_v51 = vand.u32 2147483648, %v1805_v47  ;;  %vm1826_vm14 = vweird.f32 %v1805_v47 }
 0xa5a   : > { %2106 = vadd.xlane.f32.xlu0 %v2105_v57  ;;  %v1830_v19 = vand.u32 2147483647, %v1805_v47  ;;  %v1818_v22 = vor.u32 1.1754944e-38, %v1817_v17  ;;  %vm1816_vm1 = vcmp.eq.f32.partialorder %v1815_v49, 8.507059e+37 }
 0xa5b   : > { %v1833_v6 = vor.u32 1.1754944e-38, %v1832_v51 }
 0xa5c   : > { %vm1831_vm3 = vcmp.eq.f32.partialorder %v1830_v19, 8.507059e+37 }
 0xa5e   : > { %v3352_v20 = vpop.eup %3351 }
 0xa5f   : > { %v3354_v3 = vpop.eup %3353  ;;  %v1807_v2 = vmul.f32 %v3352_v20, %v1804_v62  ;;  %vm1812_vm8 = vweird.f32 %v3352_v20 }
 0xa60   : > { %v1822_v23 = vmul.f32 %v3354_v3, %v1805_v47  ;;  %vm1827_vm12 = vweird.f32 %v3354_v3  ;;  %vm1813_vm13 = vmor %vm1811_vm10, %vm1812_vm8 }
 0xa61   : > { %v1808_v48 = vsub.f32 1.0, %v1807_v2  ;;  %vm1828_vm15 = vmor %vm1826_vm14, %vm1827_vm12 }
 0xa62   : > { %v1823_v34 = vsub.f32 1.0, %v1822_v23 }
 0xa63   : > { %v1809_v38 = vmul.f32 %v3352_v20, %v1808_v48 }
 0xa64   : > { %v1824_v41 = vmul.f32 %v3354_v3, %v1823_v34  ;;  %v2084_v34 = vpack.c.bf16 %v4197_v59, %v4192_v18  ;;  %v4232_v18 = vld [vmem:[%s4533_s9 + $0x28] sm:$0xff]  ;;  %v4238_v59 = vld [vmem:[%s4533_s9 + $0x20] sm:$0xff] }
 0xa65   : > { %v1810_v58 = vadd.f32 %v3352_v20, %v1809_v38  ;;  %v4252_v38 = vld [vmem:[%s4533_s9 + $0x10] sm:$0xff] }
 0xa66   : > { %v1825_v45 = vadd.f32 %v3354_v3, %v1824_v41 }
 0xa67   : > { %v1814_v53 = vsel %vm1813_vm13, %v3352_v20, %v1810_v58 }
 0xa68   : > { %v1829_v44 = vsel %vm1828_vm15, %v3354_v3, %v1825_v45  ;;  %v1819_v60 = vsel %vm1816_vm1, %v1818_v22, %v1814_v53 }
 0xa69   : > { %v1834_v57 = vsel %vm1831_vm3, %v1833_v6, %v1829_v44  ;;  %v1980_v11 = vsub.f32 1.0, %v1819_v60  ;;  %v1978_v23 = vmul.f32 %v1819_v60, %v3998_v40  ;;  %v4218_v40 = vld [vmem:[%s4533_s9 + $0x38] sm:$0xff] }
 0xa6a   : > { %v1981_v62 = vsub.f32 1.0, %v1834_v57  ;;  %v1979_v47 = vmul.f32 %v1834_v57, %v4000_v10  ;;  %v4226_v10 = vld [vmem:[%s4533_s9 + $0x30] sm:$0xff] }
 0xa74   : > { %v1971_v33 = vpop.f32.mrf.mxu2 }
 0xa75   : > { %v1972_v43 = vadd.f32 %v3255_v14, %v1971_v33  ;;  %v4258_v33 = vld [vmem:[%s4533_s9 + $0x8] sm:$0xff] }
 0xa77   : > { %3355 = vtanh.f32 %v1972_v43 }
 0xa7c   : > { %v1973_v55 = vpop.f32.mrf.mxu2 }
 0xa7d   : > { %v1974_v30 = vadd.f32 %v3255_v14, %v1973_v55  ;;  %v3356_v27 = vpop.eup %3355  ;;  %v4246_v14 = vld [vmem:[%s4533_s9 + $0x18] sm:$0xff] }
 0xa7e   : > { %v1982_v26 = vmul.f32 %v3356_v27, %v1980_v11 }
 0xa7f   : > { %3357 = vtanh.f32 %v1974_v30  ;;  %v4270_v30 = vpop.permute.xlu1 %2087 }
 0xa80   : > { %v4206_v35 = vadd.f32 %v1982_v26, %v1978_v23  ;;  %v2095_v57 = vmul.f32 %v4270_v30, %v3819_v63  ;;  %v4274_v26 = vpop.permute.xlu2 %2092 }
 0xa85   : > { %v3358_v2 = vpop.eup %3357 }
 0xa86   : > { %v1983_v20 = vmul.f32 %v3358_v2, %v1981_v62 }
 0xa88   : > { %v4208_v48 = vadd.f32 %v1983_v20, %v1979_v47  ;;  %v2096_v20 = vmul.f32 %v4274_v26, %v3819_v63 }
 0xa8a   : > { %v2083_v3 = vpack.c.bf16 %v4208_v48, %v4206_v35 }
 0xa8c   : > { %2120 = vmatpush.bf16.msra.mxu0 %v2083_v3  ;;  %3165 = vmatmul.msk.bf16.vlgmr.msra.gmra.mxu1 %vm931_vm0, %v2083_v3 }
 0xa8d   : > { %2366 = vmatpush.bf16.msra.mxu1 %v3875_v16 }
 0xa8f   : > { %3164 = vmatmul.msk.bf16.vlgmr.msra.gmra.mxu0 %vm1013_vm9, %v2084_v34 }
 0xa90   : > { %2227 = vmatpush.bf16.msrb.mxu0 %v4218_v40 }
 0xa94   : > { %2228 = vmatpush.bf16.msrb.mxu0 %v4226_v10 }
 0xa98   : > { %2229 = vmatpush.bf16.msrb.mxu0 %v4232_v18 }
 0xa9c   : > { %2230 = vmatpush.bf16.msrb.mxu0 %v4238_v59  ;;  %3171 = vmatmul.msk.bf16.vlgmr.msrb.gmra.mxu1 %vm931_vm0, %v4106_v36  ;;  %v4264_v36 = vld [vmem:[%s4533_s9] sm:$0xff] }
 0xaa0   : > { %2231 = vmatpush.bf16.msrb.mxu0 %v4246_v14 }
 0xaa4   : > { %2232 = vmatpush.bf16.msrb.mxu0 %v4252_v38 }
 0xaa8   : > { %2233 = vmatpush.bf16.msrb.mxu0 %v4258_v33 }
 0xaac   : > { %2234 = vmatpush.bf16.msrb.mxu0 %v4264_v36 }
 0xac5   : > { %v2104_v55 = vpop.xlane.xlu0 %2103 }
 0xac6   : > { %v2108_v34 = vmul.f32 %v2104_v55, %v3834_v9 }
 0xacd   : > { %v2107_v22 = vpop.xlane.xlu0 %2106 }
 0xb09   : > { %v2139_v41 = vpop.f32.mrf.mxu1 }
 0xb0a   : > { %v2144_v3 = vadd.f32 %v2139_v41, %v2095_v57 }
 0xb0c   : > { %v2122_v43 = vpop.f32.mrf.mxu0 }
 0xb11   : > { %v2141_v58 = vpop.f32.mrf.mxu1 }
 0xb14   : > { %v2124_v17 = vpop.f32.mrf.mxu0 }
 0xb15   : > { %v2148_v49 = vpack.c.bf16 %v2124_v17, %v2122_v43  ;;  %v2145_v43 = vadd.f32 %v2141_v58, %v2096_v20  ;;  %v2109_v17 = vmul.f32 %v2107_v22, %v3834_v9 }
 0xb17   : > { %3166 = vmatmul.msk.bf16.vlgmr.msrb.gmra.mxu2 %vm931_vm0, %v2148_v49  ;;  %v2146_v49 = vadd.f32 %v2144_v3, %v2108_v34 }
 0xb19   : > { %v2296_v45 = vpop.f32.mrf.mxu1 }
 0xb1a   : > { %v2301_v51 = vsel %vm1013_vm9, %v2296_v45, -inf }
 0xb1b   : > { %2302 = vmax.xlane.f32.xlu0 %v2301_v51 }
 0xb21   : > { %v2298_v53 = vpop.f32.mrf.mxu1 }
 0xb22   : > { %v2304_v19 = vsel %vm1013_vm9, %v2298_v53, -inf }
 0xb23   : > { %2305 = vmax.xlane.f32.xlu1 %v2304_v19  ;;  %v2147_v19 = vadd.f32 %v2145_v43, %v2109_v17 }
 0xb8e   : > { %v2303_v44 = vpop.xlane.xlu0 %2302 }
 0xb8f   : > { %v2307_v60 = vsub.f32 %v2296_v45, %v2303_v44  ;;  %v3256_v45 = vld [vmem:[%s3615_s29 + $0x3] ss:$0 sm:$0xff]  ;;  %s3198_s29 = sshll.u32 %s4542_s3, 4 }
 0xb90   : > { %v2437_v22 = vadd.f32 %v4052_v0, %v3256_v45  ;;  %s876_s13 = scalar_lea.vmem %s4507_s26, %s3198_s29 }
 0xb91   : > { %v2309_v6 = vmul.f32 1.442695, %v2307_v60 }
 0xb93   : > { %3359 = vpow2.f32 %v2309_v6 }
 0xb96   : > { %v2306_v27 = vpop.xlane.xlu1 %2305 }
 0xb97   : > { %v2308_v11 = vsub.f32 %v2298_v53, %v2306_v27  ;;  %v2436_v27 = vadd.f32 %v4045_v15, %v3256_v45 }
 0xb99   : > { %v3360_v62 = vpop.eup %3359  ;;  %v2311_v2 = vmul.f32 1.442695, %v2308_v11  ;;  %v2438_v58 = vsel %vm931_vm0, %v2436_v27, 0.0  ;;  %v2441_v11 = vsel %vm931_vm0, %v2437_v22, 0.0 }
 0xb9a   : > { %v2161_v23 = vpop.f32.mrf.mxu2  ;;  %v2313_v47 = vsel %vm1013_vm9, %v3360_v62, 0.0 }
 0xb9b   : > { %3361 = vpow2.f32 %v2311_v2  ;;  %2314 = vadd.xlane.f32.xlu2 %v2313_v47  ;;  %v2166_v53 = vadd.f32 %v2161_v23, %v2146_v49 }
 0xb9d   : > { %v2168_v41 = vmul.f32 %v3845_v21, %v2166_v53 }
 0xba1   : > { %v3362_v51 = vpop.eup %3361 }
 0xba2   : > { %v2163_v44 = vpop.f32.mrf.mxu2  ;;  %v2316_v60 = vsel %vm1013_vm9, %v3362_v51, 0.0 }
 0xba3   : > { %v2167_v6 = vadd.f32 %v2163_v44, %v2147_v19  ;;  %2317 = vadd.xlane.f32.xlu0 %v2316_v60  ;;  %v3258_v60 = vld [vmem:[%s3853_s8 + $0x2] ss:$0 sm:$0xff] }
 0xba5   : > { %v2169_v57 = vmul.f32 %v3847_v24, %v2167_v6 }
 0xba7   : > { %v2170_v55 = vpack.c.bf16 %v2169_v57, %v2168_v41 }
 0xba9   : > { %2181 = vmatmul.bf16.vlgmr.msra.gmra.mxu3 %v2170_v55  ;;  %2235 = vmatmul.bf16.vlgmr.msrb.gmra.mxu0 %v2170_v55 }
 0xbaa   : > { %2602 = vmatpush.bf16.msra.mxu3 %v3642_v25 }
 0xbab   : > { %2439 = vadd.xlane.f32.xlu0 %v2438_v58 }
 0xbb3   : > { %2442 = vadd.xlane.f32.xlu0 %v2441_v11 }
 0xc0e   : > { %v2315_v2 = vpop.xlane.xlu2 %2314 }
 0xc0f   : > { %3363 = vrcp.f32 %v2315_v2 }
 0xc15   : > { %v3364_v15 = vpop.eup %3363 }
 0xc16   : > { %v2318_v23 = vpop.xlane.xlu0 %2317  ;;  %v4290_v47 = vmul.f32 %v3364_v15, %v3360_v62 }
 0xc17   : > { %3365 = vrcp.f32 %v2318_v23 }
 0xc18   : > { %v2329_v20 = vmul.f32 %v4190_v46, %v4290_v47 }
 0xc1a   : > { %v2331_v3 = vsel %vm1013_vm9, %v2329_v20, 0.0 }
 0xc1b   : > { %2332 = vadd.xlane.f32.xlu1 %v2331_v3 }
 0xc1d   : > { %v3366_v25 = vpop.eup %3365 }
 0xc1e   : > { %v2440_v34 = vpop.xlane.xlu0 %2439  ;;  %v4295_v0 = vmul.f32 %v3366_v25, %v3362_v51 }
 0xc1f   : > { %v2444_v43 = vmul.f32 %v2440_v34, %v3632_v13 }
 0xc20   : > { %v2330_v17 = vmul.f32 %v4190_v46, %v4295_v0 }
 0xc21   : > { %v4300_v49 = vsub.f32 %v2436_v27, %v2444_v43 }
 0xc22   : > { %v2334_v62 = vsel %vm1013_vm9, %v2330_v17, 0.0 }
 0xc23   : > { %2335 = vadd.xlane.f32.xlu2 %v2334_v62  ;;  %v2448_v45 = vmul.f32 %v4300_v49, %v4300_v49 }
 0xc25   : > { %v2450_v53 = vsel %vm931_vm0, %v2448_v45, 0.0 }
 0xc26   : > { %2451 = vadd.xlane.f32.xlu0 %v2450_v53  ;;  %v2443_v19 = vpop.xlane.xlu0 %2442 }
 0xc27   : > { %v2445_v51 = vmul.f32 %v2443_v19, %v3632_v13 }
 0xc29   : > { %v4307_v44 = vsub.f32 %v2437_v22, %v2445_v51 }
 0xc2b   : > { %v2449_v46 = vmul.f32 %v4307_v44, %v4307_v44 }
 0xc2c   : > { %v2182_v6 = vpop.f32.mrf.mxu3 }
 0xc2d   : > { %v2183_v27 = vadd.f32 %v3258_v60, %v2182_v6  ;;  %v2453_v41 = vsel %vm931_vm0, %v2449_v46, 0.0 }
 0xc2e   : > { %2454 = vadd.xlane.f32.xlu0 %v2453_v41 }
 0xc2f   : > { %v3167_v57 = vmul.f32 -1.442695, %v2183_v27 }
 0xc31   : > { %3367 = vpow2.f32 %v3167_v57 }
 0xc34   : > { %v2184_v55 = vpop.f32.mrf.mxu3 }
 0xc35   : > { %v2185_v58 = vadd.f32 %v3258_v60, %v2184_v55 }
 0xc37   : > { %v3368_v11 = vpop.eup %3367  ;;  %v3168_v2 = vmul.f32 -1.442695, %v2185_v58 }
 0xc38   : > { %v2193_v15 = vadd.f32 1.0, %v3368_v11 }
 0xc39   : > { %3369 = vpow2.f32 %v3168_v2 }
 0xc3a   : > { %3371 = vrcp.f32 %v2193_v15  ;;  %v2206_v45 = vand.u32 2147483648, %v2193_v15  ;;  %vm2200_vm5 = vweird.f32 %v2193_v15  ;;  %v2204_v19 = vand.u32 2147483647, %v2193_v15 }
 0xc3c   : > { %v2207_v27 = vor.u32 1.1754944e-38, %v2206_v45  ;;  %vm2205_vm10 = vcmp.eq.f32.partialorder %v2204_v19, 8.507059e+37 }
 0xc3f   : > { %v3370_v22 = vpop.eup %3369 }
 0xc40   : > { %v3372_v23 = vpop.eup %3371  ;;  %v2194_v20 = vadd.f32 1.0, %v3370_v22 }
 0xc41   : > { %v2196_v3 = vmul.f32 %v3372_v23, %v2193_v15  ;;  %vm2201_vm4 = vweird.f32 %v3372_v23 }
 0xc42   : > { %3373 = vrcp.f32 %v2194_v20  ;;  %vm2202_vm6 = vmor %vm2200_vm5, %vm2201_vm4  ;;  %v2221_v51 = vand.u32 2147483648, %v2194_v20  ;;  %v2219_v6 = vand.u32 2147483647, %v2194_v20  ;;  %vm2215_vm8 = vweird.f32 %v2194_v20 }
 0xc43   : > { %v2197_v25 = vsub.f32 1.0, %v2196_v3 }
 0xc44   : > { %v2222_v55 = vor.u32 1.1754944e-38, %v2221_v51  ;;  %vm2220_vm13 = vcmp.eq.f32.partialorder %v2219_v6, 8.507059e+37 }
 0xc45   : > { %v2198_v34 = vmul.f32 %v3372_v23, %v2197_v25 }
 0xc47   : > { %v2199_v62 = vadd.f32 %v3372_v23, %v2198_v34 }
 0xc48   : > { %v3374_v43 = vpop.eup %3373 }
 0xc49   : > { %v2211_v17 = vmul.f32 %v3374_v43, %v2194_v20  ;;  %v2203_v46 = vsel %vm2202_vm6, %v3372_v23, %v2199_v62  ;;  %vm2216_vm7 = vweird.f32 %v3374_v43  ;;  %v2326_v23 = vpack.c.bf16 %v4295_v0, %v4290_v47 }
 0xc4a   : > { %v2208_v57 = vsel %vm2205_vm10, %v2207_v27, %v2203_v46  ;;  %vm2217_vm12 = vmor %vm2215_vm8, %vm2216_vm7 }
 0xc4b   : > { %v2212_v53 = vsub.f32 1.0, %v2211_v17  ;;  %v2323_v2 = vmul.f32 %v2208_v57, %v4206_v35 }
 0xc4d   : > { %v2213_v60 = vmul.f32 %v3374_v43, %v2212_v53 }
 0xc4f   : > { %v2214_v41 = vadd.f32 %v3374_v43, %v2213_v60 }
 0xc51   : > { %v2218_v58 = vsel %vm2217_vm12, %v3374_v43, %v2214_v41 }
 0xc52   : > { %v2223_v11 = vsel %vm2220_vm13, %v2222_v55, %v2218_v58 }
 0xc53   : > { %v2324_v15 = vmul.f32 %v2223_v11, %v4208_v48 }
 0xc55   : > { %v2325_v22 = vpack.c.bf16 %v2324_v15, %v2323_v2 }
 0xc57   : > { %2349 = vmatpush.bf16.msra.mxu2 %v2325_v22  ;;  %3173 = vmatmul.msk.bf16.vlgmr.msra.gmra.mxu1 %vm931_vm0, %v2325_v22 }
 0xc5a   : > { %3172 = vmatmul.msk.bf16.vlgmr.msra.gmra.mxu2 %vm1013_vm9, %v2326_v23 }
 0xc5b   : > { %2388 = vmatpush.bf16.msrb.mxu2 %v3903_v29 }
 0xc5f   : > { %2580 = vmatpush.bf16.msra.mxu2 %v3687_v7 }
 0xc99   : > { %v2452_v20 = vpop.xlane.xlu0 %2451 }
 0xc9a   : > { %v2456_v3 = vmul.f32 %v2452_v20, %v3632_v13 }
 0xc9c   : > { %v2458_v25 = vadd.f32 1e-12, %v2456_v3 }
 0xc9e   : > { %3375 = vrsqrt.f32 %v2458_v25  ;;  %vm2466_vm15 = vweird.f32 %v2458_v25 }
 0xca1   : > { %v2455_v34 = vpop.xlane.xlu0 %2454 }
 0xca2   : > { %v2457_v43 = vmul.f32 %v2455_v34, %v3632_v13 }
 0xca4   : > { %v3376_v17 = vpop.eup %3375  ;;  %v2459_v62 = vadd.f32 1e-12, %v2457_v43 }
 0xca5   : > { %v2461_v45 = vmul.f32 %v3376_v17, %v2458_v25  ;;  %vm2467_vm14 = vweird.f32 %v3376_v17 }
 0xca6   : > { %3377 = vrsqrt.f32 %v2459_v62  ;;  %vm2468_vm1 = vmor %vm2466_vm15, %vm2467_vm14  ;;  %vm2476_vm4 = vweird.f32 %v2459_v62 }
 0xca7   : > { %v2462_v53 = vmul.f32 %v3376_v17, %v2461_v45  ;;  %v2327_v45 = vmul.f32 %v4270_v30, %v3973_v50 }
 0xca9   : > { %v2463_v47 = vmul.f32 0.5, %v2462_v53  ;;  %v2333_v53 = vpop.xlane.xlu1 %2332 }
 0xcab   : > { %v2464_v0 = vsub.f32 1.5, %v2463_v47 }
 0xcac   : > { %v3378_v19 = vpop.eup %3377 }
 0xcad   : > { %v2465_v51 = vmul.f32 %v3376_v17, %v2464_v0  ;;  %v2471_v60 = vmul.f32 %v3378_v19, %v2459_v62  ;;  %vm2477_vm3 = vweird.f32 %v3378_v19  ;;  %v3176_v62 = vld [vmem:[%s3702_s10 + $0x30] sm:$0xff] }
 0xcae   : > { %vm2478_vm5 = vmor %vm2476_vm4, %vm2477_vm3 }
 0xcaf   : > { %v2472_v7 = vmul.f32 %v3378_v19, %v2471_v60  ;;  %v2469_v46 = vsel %vm2468_vm1, %v3376_v17, %v2465_v51  ;;  %v2336_v60 = vpop.xlane.xlu2 %2335 }
 0xcb0   : > { %v2480_v13 = vmul.f32 %v2469_v46, %v4300_v49 }
 0xcb1   : > { %v2473_v6 = vmul.f32 0.5, %v2472_v7  ;;  %v2337_v7 = vmul.f32 %v2333_v53, %v3975_v54 }
 0xcb2   : > { %v2482_v58 = vmul.f32 %v4081_v31, %v2480_v13  ;;  %v2722_v49 = vmul.f32 %v4087_v39, %v2480_v13 }
 0xcb3   : > { %v2474_v27 = vsub.f32 1.5, %v2473_v6  ;;  %v2338_v6 = vmul.f32 %v2336_v60, %v3975_v54 }
 0xcb4   : > { %v2484_v2 = vadd.f32 %v4095_v61, %v2482_v58 }
 0xcb5   : > { %v2475_v41 = vmul.f32 %v3378_v19, %v2474_v27 }
 0xcb7   : > { %v2479_v57 = vsel %vm2478_vm5, %v3378_v19, %v2475_v41  ;;  %v2328_v19 = vmul.f32 %v4274_v26, %v3973_v50 }
 0xcb8   : > { %v2481_v55 = vmul.f32 %v2479_v57, %v4307_v44  ;;  %v2236_v44 = vpop.f32.mrf.mxu0 }
 0xcba   : > { %v2483_v11 = vmul.f32 %v4081_v31, %v2481_v55  ;;  %v2723_v31 = vmul.f32 %v4087_v39, %v2481_v55 }
 0xcbc   : > { %v2485_v15 = vadd.f32 %v4095_v61, %v2483_v11 }
 0xcbe   : > { %v2486_v22 = vpack.c.bf16 %v2485_v15, %v2484_v2 }
 0xcc0   : > { %v2488_v23 = vsel %vm931_vm0, %v2486_v22, 0  ;;  %v2238_v20 = vpop.f32.mrf.mxu0 }
 0xcc1   : > { %2497 = vmatpush.bf16.xpose.msra.mxu0 %v2488_v23 }
 0xcc8   : > { %3179 = vmatmul.msk.bf16.vlgmr.msra.gmra.mxu0 %vm931_vm0, %v2486_v22 }
 0xcc9   : > { %2616 = vmatpush.bf16.msrb.mxu0 %v4112_v8  ;;  %v3449_v8 = vld [vmem:[%s4492_s11 + $0x18] sm:$0xff] }
 0xccd   : > { %2617 = vmatpush.bf16.msrb.mxu0 %v4118_v52  ;;  %v2725_v52 = vadd.f32 %v4102_v42, %v2723_v31 }
 0xcd1   : > { %2618 = vmatpush.bf16.msrb.mxu0 %v4125_v5  ;;  %v2724_v5 = vadd.f32 %v4102_v42, %v2722_v49 }
 0xcd4   : > { %v2368_v17 = vpop.f32.mrf.mxu1 }
 0xcd5   : > { %2619 = vmatpush.bf16.msrb.mxu0 %v4131_v1  ;;  %v3450_v1 = vld [vmem:[%s4492_s11 + $0x10] sm:$0xff]  ;;  %v2373_v51 = vadd.f32 %v2368_v17, %v2327_v45 }
 0xcd7   : > { %v2375_v27 = vadd.f32 %v2373_v51, %v2337_v7 }
 0xcd9   : > { %2620 = vmatpush.bf16.msrb.mxu0 %v4139_v37  ;;  %v4349_v37 = vpack.c.bf16 %v2725_v52, %v2724_v5  ;;  %v3257_v5 = vld [vmem:[%s3862_s2 + $0x2] ss:$0 sm:$0xff] }
 0xcdb   : > { %v2728_v42 = vsel %vm931_vm0, %v4349_v37, 0 }
 0xcdc   : > { %v2370_v47 = vpop.f32.mrf.mxu1 }
 0xcdd   : > { %2621 = vmatpush.bf16.msrb.mxu0 %v4147_v56  ;;  %v2351_v61 = vpop.f32.mrf.mxu2  ;;  %v2374_v46 = vadd.f32 %v2370_v47, %v2328_v19 }
 0xcdf   : > { %v2376_v41 = vadd.f32 %v2374_v46, %v2338_v6 }
 0xce1   : > { %2622 = vmatpush.bf16.msrb.mxu0 %v4158_v4  ;;  %v3451_v4 = vld [vmem:[%s4492_s11 + $0x8] sm:$0xff] }
 0xce5   : > { %2623 = vmatpush.bf16.msrb.mxu0 %v4164_v12  ;;  %v2353_v56 = vpop.f32.mrf.mxu2  ;;  %v3452_v12 = vld [vmem:[%s4492_s11] sm:$0xff] }
 0xce6   : > { %v2377_v39 = vpack.c.bf16 %v2353_v56, %v2351_v61  ;;  %v2239_v56 = vadd.f32 %v3257_v5, %v2238_v20  ;;  %v3259_v20 = vld [vmem:[%s3933_s6 + $0x2] ss:$0 sm:$0xff] }
 0xce8   : > { %3174 = vmatmul.msk.bf16.vlgmr.msrb.gmra.mxu2 %vm931_vm0, %v2377_v39 }
 0xce9   : > { %2852 = vmatpush.bf16.msra.mxu0 %v3449_v8  ;;  %2737 = vmatpush.bf16.xpose.msrb.mxu2 %v2728_v42  ;;  %v3170_v42 = vmul.f32 -1.442695, %v2239_v56 }
 0xced   : > { %2853 = vmatpush.bf16.msra.mxu0 %v3450_v1  ;;  %v2237_v1 = vadd.f32 %v3257_v5, %v2236_v44 }
 0xcef   : > { %v3169_v39 = vmul.f32 -1.442695, %v2237_v1 }
 0xcf1   : > { %2854 = vmatpush.bf16.msra.mxu0 %v3451_v4  ;;  %v3177_v4 = vld [vmem:[%s3702_s10 + $0x38] sm:$0xff] }
 0xcf5   : > { %2855 = vmatpush.bf16.msra.mxu0 %v3452_v12 }
 0xd45   : > { %v2499_v3 = vpop.f32.mrf.mxu0 }
 0xd46   : > { %v2504_v25 = vsel %vm1013_vm9, %v2499_v3, -inf }
 0xd47   : > { %2505 = vmax.xlane.f32.xlu0 %v2504_v25 }
 0xd4d   : > { %v2501_v34 = vpop.f32.mrf.mxu0 }
 0xd4e   : > { %v2507_v43 = vsel %vm1013_vm9, %v2501_v34, -inf }
 0xd4f   : > { %2508 = vmax.xlane.f32.xlu1 %v2507_v43 }
 0xd68   : > { %2530 = vperm.xlu1 %3239, %v3176_v62  }
 0xd6b   : > { %v2390_v0 = vpop.f32.mrf.mxu2 }
 0xd6c   : > { %v2395_v13 = vadd.f32 %v2390_v0, %v2375_v27 }
 0xd6e   : > { %v2397_v30 = vmul.f32 %v3986_v28, %v2395_v13 }
 0xd73   : > { %v2392_v57 = vpop.f32.mrf.mxu2 }
 0xd74   : > { %v2396_v55 = vadd.f32 %v2392_v57, %v2376_v41 }
 0xd76   : > { %v2398_v58 = vmul.f32 %v3988_v32, %v2396_v55 }
 0xd78   : > { %v2399_v11 = vpack.c.bf16 %v2398_v58, %v2397_v30 }
 0xd7a   : > { %3175 = vmatmul.msk.bf16.vlgmr.msrb.gmra.mxu3 %vm1515_vm11, %v2399_v11 }
 0xdba   : > { %v2506_v26 = vpop.xlane.xlu0 %2505 }
 0xdbb   : > { %v2510_v2 = vsub.f32 %v2499_v3, %v2506_v26 }
 0xdbd   : > { %v2512_v15 = vmul.f32 1.442695, %v2510_v2 }
 0xdbf   : > { %3379 = vpow2.f32 %v2512_v15 }
 0xdc2   : > { %v2509_v22 = vpop.xlane.xlu1 %2508 }
 0xdc3   : > { %v2511_v23 = vsub.f32 %v2501_v34, %v2509_v22 }
 0xdc5   : > { %v4372_v31 = vpop.eup %3379  ;;  %v2514_v61 = vmul.f32 1.442695, %v2511_v23 }
 0xdc6   : > { %v2516_v49 = vsel %vm1013_vm9, %v4372_v31, 0.0 }
 0xdc7   : > { %3381 = vpow2.f32 %v2514_v61  ;;  %2517 = vadd.xlane.f32.xlu2 %v2516_v49 }
 0xdc8   : > { %3383 = vpow2.f32 %v3169_v39 }
 0xdc9   : > { %3385 = vpow2.f32 %v3170_v42 }
 0xdcd   : > { %v4376_v8 = vpop.eup %3381 }
 0xdce   : > { %v2519_v52 = vsel %vm1013_vm9, %v4376_v8, 0.0  ;;  %v3384_v12 = vpop.eup %3383 }
 0xdcf   : > { %2520 = vadd.xlane.f32.xlu0 %v2519_v52  ;;  %v3386_v3 = vpop.eup %3385  ;;  %v2247_v25 = vadd.f32 1.0, %v3384_v12 }
 0xdd0   : > { %v2248_v34 = vadd.f32 1.0, %v3386_v3 }
 0xdd1   : > { %3387 = vrcp.f32 %v2247_v25  ;;  %v2260_v7 = vand.u32 2147483648, %v2247_v25  ;;  %vm2254_vm7 = vweird.f32 %v2247_v25  ;;  %v2258_v46 = vand.u32 2147483647, %v2247_v25 }
 0xdd2   : > { %3389 = vrcp.f32 %v2248_v34  ;;  %v2275_v27 = vand.u32 2147483648, %v2248_v34  ;;  %vm2269_vm12 = vweird.f32 %v2248_v34  ;;  %v2273_v41 = vand.u32 2147483647, %v2248_v34 }
 0xdd3   : > { %v2261_v55 = vor.u32 1.1754944e-38, %v2260_v7  ;;  %vm2259_vm14 = vcmp.eq.f32.partialorder %v2258_v46, 8.507059e+37 }
 0xdd4   : > { %v2276_v26 = vor.u32 1.1754944e-38, %v2275_v27  ;;  %vm2274_vm15 = vcmp.eq.f32.partialorder %v2273_v41, 8.507059e+37 }
 0xdd7   : > { %v3388_v43 = vpop.eup %3387 }
 0xdd8   : > { %v3390_v17 = vpop.eup %3389  ;;  %v2250_v62 = vmul.f32 %v3388_v43, %v2247_v25  ;;  %vm2255_vm6 = vweird.f32 %v3388_v43 }
 0xdd9   : > { %v2265_v45 = vmul.f32 %v3390_v17, %v2248_v34  ;;  %vm2270_vm8 = vweird.f32 %v3390_v17  ;;  %vm2256_vm10 = vmor %vm2254_vm7, %vm2255_vm6 }
 0xdda   : > { %v2251_v53 = vsub.f32 1.0, %v2250_v62  ;;  %vm2271_vm13 = vmor %vm2269_vm12, %vm2270_vm8 }
 0xddb   : > { %v2266_v44 = vsub.f32 1.0, %v2265_v45 }
 0xddc   : > { %v2252_v47 = vmul.f32 %v3388_v43, %v2251_v53 }
 0xddd   : > { %v2267_v19 = vmul.f32 %v3390_v17, %v2266_v44 }
 0xdde   : > { %v2253_v60 = vadd.f32 %v3388_v43, %v2252_v47 }
 0xddf   : > { %2535 = vperm.xlu2 %3237, %v3177_v4   ;;  %v2268_v6 = vadd.f32 %v3390_v17, %v2267_v19 }
 0xde0   : > { %v2257_v13 = vsel %vm2256_vm10, %v3388_v43, %v2253_v60  ;;  %v4419_v43 = vpop.permute.xlu1 %2530 }
 0xde1   : > { %v2272_v58 = vsel %vm2271_vm13, %v3390_v17, %v2268_v6  ;;  %v2262_v11 = vsel %vm2259_vm14, %v2261_v55, %v2257_v13 }
 0xde2   : > { %v2277_v15 = vsel %vm2274_vm15, %v2276_v26, %v2272_v58  ;;  %v2423_v22 = vsub.f32 1.0, %v2262_v11  ;;  %v2421_v52 = vmul.f32 %v2262_v11, %v4206_v35 }
 0xde3   : > { %v2424_v61 = vsub.f32 1.0, %v2277_v15  ;;  %v2422_v5 = vmul.f32 %v2277_v15, %v4208_v48 }
 0xdfd   : > { %v2414_v0 = vpop.f32.mrf.mxu3 }
 0xdfe   : > { %v2415_v51 = vadd.f32 %v3259_v20, %v2414_v0 }
 0xe00   : > { %3391 = vtanh.f32 %v2415_v51 }
 0xe05   : > { %v2416_v57 = vpop.f32.mrf.mxu3 }
 0xe06   : > { %v2417_v30 = vadd.f32 %v3259_v20, %v2416_v57  ;;  %v3392_v2 = vpop.eup %3391 }
 0xe07   : > { %v2425_v23 = vmul.f32 %v3392_v2, %v2423_v22 }
 0xe08   : > { %3393 = vtanh.f32 %v2417_v30  ;;  %v2873_v30 = vld [vmem:[%s4505_s24] sm:$0xf] }
 0xe09   : > { %v4385_v56 = vadd.f32 %v2425_v23, %v2421_v52  ;;  %v2875_v58 = vsel %vm1090_vm2, %v2873_v30, 0 }
 0xe0e   : > { %v3394_v49 = vpop.eup %3393 }
 0xe0f   : > { %v2426_v1 = vmul.f32 %v3394_v49, %v2424_v61 }
 0xe11   : > { %v4387_v39 = vadd.f32 %v2426_v1, %v2422_v5 }
 0xe13   : > { %v4391_v4 = vpack.c.bf16 %v4387_v39, %v4385_v56 }
 0xe15   : > { %2563 = vmatpush.bf16.msrb.mxu1 %v4391_v4  ;;  %3181 = vmatmul.msk.bf16.vlgmr.msra.gmra.mxu2 %vm931_vm0, %v4391_v4 }
 0xe16   : > { %2809 = vmatpush.bf16.msra.mxu2 %v3875_v16  ;;  %v4408_v16 = vld [vmem:[%s3694_s4 + $0x3] ss:$0 sm:$0xff] }
 0xe19   : > { %2670 = vmatpush.bf16.msra.mxu1 %v4218_v40 }
 0xe1d   : > { %2671 = vmatpush.bf16.msra.mxu1 %v4226_v10 }
 0xe21   : > { %2672 = vmatpush.bf16.msra.mxu1 %v4232_v18 }
 0xe25   : > { %2673 = vmatpush.bf16.msra.mxu1 %v4238_v59  ;;  %3187 = vmatmul.msk.bf16.vlgmr.msrb.gmra.mxu2 %vm931_vm0, %v4349_v37 }
 0xe29   : > { %2674 = vmatpush.bf16.msra.mxu1 %v4246_v14 }
 0xe2d   : > { %2675 = vmatpush.bf16.msra.mxu1 %v4252_v38 }
 0xe31   : > { %2676 = vmatpush.bf16.msra.mxu1 %v4258_v33 }
 0xe35   : > { %2677 = vmatpush.bf16.msra.mxu1 %v4264_v36 }
 0xe3a   : > { %v2518_v35 = vpop.xlane.xlu2 %2517 }
 0xe3b   : > { %3395 = vrcp.f32 %v2518_v35 }
 0xe41   : > { %v3396_v48 = vpop.eup %3395 }
 0xe42   : > { %v2521_v40 = vpop.xlane.xlu0 %2520  ;;  %v2524_v10 = vmul.f32 %v3396_v48, %v4372_v31  ;;  %v4425_v19 = vpop.permute.xlu2 %2535 }
 0xe43   : > { %3397 = vrcp.f32 %v2521_v40  ;;  %v2539_v26 = vmul.f32 %v4425_v19, %v3819_v63 }
 0xe44   : > { %v2543_v18 = vmul.f32 %v4408_v16, %v2524_v10 }
 0xe46   : > { %v2545_v59 = vsel %vm1013_vm9, %v2543_v18, 0.0 }
 0xe47   : > { %2546 = vadd.xlane.f32.xlu0 %v2545_v59 }
 0xe49   : > { %v3398_v14 = vpop.eup %3397 }
 0xe4a   : > { %v2525_v38 = vmul.f32 %v3398_v14, %v4376_v8  ;;  %v2538_v8 = vmul.f32 %v4419_v43, %v3819_v63 }
 0xe4c   : > { %v2527_v33 = vpack.c.bf16 %v2525_v38, %v2524_v10  ;;  %v2544_v36 = vmul.f32 %v4408_v16, %v2525_v38 }
 0xe4e   : > { %3180 = vmatmul.msk.bf16.vlgmr.msrb.gmra.mxu1 %vm1013_vm9, %v2527_v33  ;;  %v2548_v37 = vsel %vm1013_vm9, %v2544_v36, 0.0 }
 0xe4f   : > { %2549 = vadd.xlane.f32.xlu0 %v2548_v37  ;;  %2884 = vmatpush.bf16.msrb.mxu1 %v2875_v58 }
 0xe98   : > { %v2582_v42 = vpop.f32.mrf.mxu2 }
 0xe99   : > { %v2587_v62 = vadd.f32 %v2582_v42, %v2538_v8 }
 0xea0   : > { %v2584_v12 = vpop.f32.mrf.mxu2 }
 0xea1   : > { %v2588_v15 = vadd.f32 %v2584_v12, %v2539_v26 }
 0xea8   : > { %v2739_v31 = vpop.f32.mrf.mxu2 }
 0xea9   : > { %v2744_v3 = vsel %vm1013_vm9, %v2739_v31, -inf }
 0xeaa   : > { %2745 = vmax.xlane.f32.xlu0 %v2744_v3 }
 0xeb0   : > { %v2741_v25 = vpop.f32.mrf.mxu2 }
 0xeb1   : > { %v2747_v34 = vsel %vm1013_vm9, %v2741_v25, -inf }
 0xeb2   : > { %2748 = vmax.xlane.f32.xlu2 %v2747_v34 }
 0xeba   : > { %v2547_v17 = vpop.xlane.xlu0 %2546 }
 0xebb   : > { %v2551_v45 = vmul.f32 %v2547_v17, %v3834_v9 }
 0xebd   : > { %v2589_v53 = vadd.f32 %v2587_v62, %v2551_v45 }
 0xec2   : > { %v2550_v0 = vpop.xlane.xlu0 %2549 }
 0xec3   : > { %v2552_v2 = vmul.f32 %v2550_v0, %v3834_v9 }
 0xec5   : > { %v2590_v23 = vadd.f32 %v2588_v15, %v2552_v2 }
 0xecb   : > { %v2565_v44 = vpop.f32.mrf.mxu1 }
 0xed3   : > { %v2567_v20 = vpop.f32.mrf.mxu1 }
 0xed4   : > { %v2591_v47 = vpack.c.bf16 %v2567_v20, %v2565_v44 }
 0xed6   : > { %3182 = vmatmul.msk.bf16.vlgmr.msra.gmra.mxu3 %vm931_vm0, %v2591_v47 }
 0xf1d   : > { %v2746_v51 = vpop.xlane.xlu0 %2745 }
 0xf1e   : > { %v2750_v60 = vsub.f32 %v2739_v31, %v2746_v51 }
 0xf20   : > { %v2752_v7 = vmul.f32 1.442695, %v2750_v60 }
 0xf22   : > { %3399 = vpow2.f32 %v2752_v7 }
 0xf25   : > { %v2749_v46 = vpop.xlane.xlu2 %2748 }
 0xf26   : > { %v2751_v6 = vsub.f32 %v2741_v25, %v2749_v46 }
 0xf28   : > { %v3400_v27 = vpop.eup %3399  ;;  %v2754_v13 = vmul.f32 1.442695, %v2751_v6 }
 0xf29   : > { %v2756_v41 = vsel %vm1013_vm9, %v3400_v27, 0.0 }
 0xf2a   : > { %3401 = vpow2.f32 %v2754_v13  ;;  %2757 = vadd.xlane.f32.xlu1 %v2756_v41 }
 0xf30   : > { %v3402_v57 = vpop.eup %3401 }
 0xf31   : > { %v2759_v55 = vsel %vm1013_vm9, %v3402_v57, 0.0 }
 0xf32   : > { %2760 = vadd.xlane.f32.xlu0 %v2759_v55 }
 0xf59   : > { %v2604_v11 = vpop.f32.mrf.mxu3 }
 0xf5a   : > { %v2609_v22 = vadd.f32 %v2604_v11, %v2589_v53 }
 0xf5c   : > { %v2611_v52 = vmul.f32 %v3845_v21, %v2609_v22 }
 0xf61   : > { %v2606_v61 = vpop.f32.mrf.mxu3 }
 0xf62   : > { %v2610_v49 = vadd.f32 %v2606_v61, %v2590_v23  ;;  %v2770_v61 = vmul.f32 %v4419_v43, %v3973_v50 }
 0xf64   : > { %v2612_v5 = vmul.f32 %v3847_v24, %v2610_v49 }
 0xf66   : > { %v2613_v1 = vpack.c.bf16 %v2612_v5, %v2611_v52  ;;  %v2771_v5 = vmul.f32 %v4425_v19, %v3973_v50  ;;  %v3262_v19 = vld [vmem:[%s3862_s2 + $0x3] ss:$0 sm:$0xff] }
 0xf68   : > { %2624 = vmatmul.bf16.vlgmr.msrb.gmra.mxu0 %v2613_v1  ;;  %2678 = vmatmul.bf16.vlgmr.msra.gmra.mxu1 %v2613_v1 }
 0xf78   : > { %3192 = vmatmul.msk.bf16.vlgmr.msrb.gmra.mxu1 %vm931_vm0, %v4391_v4  ;;  %v3261_v4 = vld [vmem:[%s3853_s8 + $0x3] ss:$0 sm:$0xff] }
 0xf9d   : > { %v2758_v35 = vpop.xlane.xlu1 %2757 }
 0xf9e   : > { %3403 = vrcp.f32 %v2758_v35 }
 0xfa4   : > { %v3404_v63 = vpop.eup %3403 }
 0xfa5   : > { %v2761_v9 = vpop.xlane.xlu0 %2760  ;;  %v2764_v48 = vmul.f32 %v3404_v63, %v3400_v27 }
 0xfa6   : > { %3405 = vrcp.f32 %v2761_v9 }
 0xfa7   : > { %v2772_v40 = vmul.f32 %v4408_v16, %v2764_v48 }
 0xfa9   : > { %v2774_v10 = vsel %vm1013_vm9, %v2772_v40, 0.0 }
 0xfaa   : > { %2775 = vadd.xlane.f32.xlu0 %v2774_v10 }
 0xfac   : > { %v3406_v21 = vpop.eup %3405 }
 0xfad   : > { %v2765_v24 = vmul.f32 %v3406_v21, %v3402_v57 }
 0xfaf   : > { %v2773_v18 = vmul.f32 %v4408_v16, %v2765_v24  ;;  %v2769_v59 = vpack.c.bf16 %v2765_v24, %v2764_v48 }
 0xfb1   : > { %v2777_v14 = vsel %vm1013_vm9, %v2773_v18, 0.0 }
 0xfb2   : > { %2778 = vadd.xlane.f32.xlu0 %v2777_v14 }
 0xfe5   : > { %v2625_v38 = vpop.f32.mrf.mxu0  ;;  %v2679_v50 = vpop.f32.mrf.mxu1 }
 0xfe6   : > { %v2626_v33 = vadd.f32 %v3261_v4, %v2625_v38 }
 0xfe8   : > { %v3183_v36 = vmul.f32 -1.442695, %v2626_v33 }
 0xfea   : > { %3407 = vpow2.f32 %v3183_v36 }
 0xfed   : > { %v2627_v37 = vpop.f32.mrf.mxu0  ;;  %v2681_v14 = vpop.f32.mrf.mxu1 }
 0xfee   : > { %v2628_v42 = vadd.f32 %v3261_v4, %v2627_v37  ;;  %v2680_v4 = vadd.f32 %v3262_v19, %v2679_v50  ;;  %v2682_v38 = vadd.f32 %v3262_v19, %v2681_v14 }
 0xff0   : > { %v3408_v12 = vpop.eup %3407  ;;  %v3184_v31 = vmul.f32 -1.442695, %v2628_v42  ;;  %v3185_v33 = vmul.f32 -1.442695, %v2680_v4  ;;  %v3186_v36 = vmul.f32 -1.442695, %v2682_v38 }
 0xff1   : > { %v2636_v3 = vadd.f32 1.0, %v3408_v12 }
 0xff2   : > { %3409 = vpow2.f32 %v3184_v31 }
 0xff3   : > { %3411 = vrcp.f32 %v2636_v3  ;;  %v2649_v20 = vand.u32 2147483648, %v2636_v3  ;;  %vm2643_vm3 = vweird.f32 %v2636_v3  ;;  %v2647_v0 = vand.u32 2147483647, %v2636_v3 }
 0xff5   : > { %v2650_v6 = vor.u32 1.1754944e-38, %v2649_v20  ;;  %vm2648_vm7 = vcmp.eq.f32.partialorder %v2647_v0, 8.507059e+37 }
 0xff8   : > { %v3410_v25 = vpop.eup %3409 }
 0xff9   : > { %v3412_v34 = vpop.eup %3411  ;;  %v2637_v8 = vadd.f32 1.0, %v3410_v25 }
 0xffa   : > { %v2639_v16 = vmul.f32 %v3412_v34, %v2636_v3  ;;  %vm2644_vm1 = vweird.f32 %v3412_v34 }
 0xffb   : > { %3413 = vrcp.f32 %v2637_v8  ;;  %vm2645_vm4 = vmor %vm2643_vm3, %vm2644_vm1  ;;  %v2664_v51 = vand.u32 2147483648, %v2637_v8  ;;  %v2662_v46 = vand.u32 2147483647, %v2637_v8  ;;  %vm2658_vm6 = vweird.f32 %v2637_v8 }
 0xffc   : > { %v2640_v17 = vsub.f32 1.0, %v2639_v16  ;;  %3415 = vpow2.f32 %v3185_v33 }
 0xffd   : > { %v2665_v41 = vor.u32 1.1754944e-38, %v2664_v51  ;;  %vm2663_vm10 = vcmp.eq.f32.partialorder %v2662_v46, 8.507059e+37  ;;  %3417 = vpow2.f32 %v3186_v36 }
 0xffe   : > { %v2641_v62 = vmul.f32 %v3412_v34, %v2640_v17  ;;  %v3264_v17 = vld [vmem:[%s3933_s6 + $0x3] ss:$0 sm:$0xff] }
0x1000   : > { %v2642_v44 = vadd.f32 %v3412_v34, %v2641_v62 }
0x1001   : > { %v3414_v45 = vpop.eup %3413 }
0x1002   : > { %v2654_v53 = vmul.f32 %v3414_v45, %v2637_v8  ;;  %v2646_v7 = vsel %vm2645_vm4, %v3412_v34, %v2642_v44  ;;  %vm2659_vm5 = vweird.f32 %v3414_v45 }
0x1003   : > { %v2651_v13 = vsel %vm2648_vm7, %v2650_v6, %v2646_v7  ;;  %vm2660_vm8 = vmor %vm2658_vm6, %vm2659_vm5 }
0x1004   : > { %v2655_v47 = vsub.f32 1.0, %v2654_v53  ;;  %v2766_v30 = vmul.f32 %v2651_v13, %v4385_v56 }
0x1006   : > { %v2656_v60 = vmul.f32 %v3414_v45, %v2655_v47 }
0x1008   : > { %v2657_v27 = vadd.f32 %v3414_v45, %v2656_v60 }
0x100a   : > { %v2661_v57 = vsel %vm2660_vm8, %v3414_v45, %v2657_v27 }
0x100b   : > { %v2666_v55 = vsel %vm2663_vm10, %v2665_v41, %v2661_v57 }
0x100c   : > { %v2767_v58 = vmul.f32 %v2666_v55, %v4387_v39 }
0x100e   : > { %v2768_v11 = vpack.c.bf16 %v2767_v58, %v2766_v30 }
0x1010   : > { %2792 = vmatpush.bf16.msrb.mxu3 %v2768_v11  ;;  %3189 = vmatmul.msk.bf16.vlgmr.msra.gmra.mxu2 %vm931_vm0, %v2768_v11 }
0x1013   : > { %3188 = vmatmul.msk.bf16.vlgmr.msrb.gmra.mxu3 %vm1013_vm9, %v2769_v59 }
0x1014   : > { %2831 = vmatpush.bf16.msra.mxu3 %v3903_v29 }
0x101d   : > { %v2776_v23 = vpop.xlane.xlu0 %2775 }
0x101e   : > { %v2780_v35 = vmul.f32 %v2776_v23, %v3975_v54 }
0x1025   : > { %v2779_v29 = vpop.xlane.xlu0 %2778 }
0x1026   : > { %v2781_v9 = vmul.f32 %v2779_v29, %v3975_v54  ;;  %v3416_v54 = vpop.eup %3415  ;;  %v3263_v29 = vld [vmem:[%s4506_s25] ss:$0 sm:$0xff] }
0x1027   : > { %v3418_v37 = vpop.eup %3417  ;;  %v2690_v42 = vadd.f32 1.0, %v3416_v54 }
0x1028   : > { %v2691_v12 = vadd.f32 1.0, %v3418_v37 }
0x1029   : > { %3419 = vrcp.f32 %v2690_v42  ;;  %v2703_v47 = vand.u32 2147483648, %v2690_v42  ;;  %v2701_v0 = vand.u32 2147483647, %v2690_v42 }
0x102a   : > { %3421 = vrcp.f32 %v2691_v12  ;;  %v2718_v60 = vand.u32 2147483648, %v2691_v12  ;;  %vm2712_vm13 = vweird.f32 %v2691_v12  ;;  %v2716_v46 = vand.u32 2147483647, %v2691_v12 }
0x102b   : > { %v2704_v27 = vor.u32 1.1754944e-38, %v2703_v47  ;;  %vm2702_vm15 = vcmp.eq.f32.partialorder %v2701_v0, 8.507059e+37 }
0x102c   : > { %v2719_v55 = vor.u32 1.1754944e-38, %v2718_v60  ;;  %vm2717_vm1 = vcmp.eq.f32.partialorder %v2716_v46, 8.507059e+37 }
0x1093   : > { %v2811_v22 = vpop.f32.mrf.mxu2 }
0x1094   : > { %v2816_v1 = vadd.f32 %v2811_v22, %v2770_v61 }
0x1096   : > { %v2794_v26 = vpop.f32.mrf.mxu3  ;;  %v2818_v48 = vadd.f32 %v2816_v1, %v2780_v35  ;;  %v2886_v1 = vpop.f32.mrf.mxu1 }
0x1097   : > { %v2894_v35 = vadd.f32 %v3263_v29, %v2886_v1 }
0x109b   : > { %v2813_v49 = vpop.f32.mrf.mxu2 }
0x109c   : > { %v2817_v63 = vadd.f32 %v2813_v49, %v2771_v5 }
0x109e   : > { %v2796_v2 = vpop.f32.mrf.mxu3  ;;  %v2819_v10 = vadd.f32 %v2817_v63, %v2781_v9 }
0x109f   : > { %v2820_v15 = vpack.c.bf16 %v2796_v2, %v2794_v26 }
0x10a1   : > { %3190 = vmatmul.msk.bf16.vlgmr.msra.gmra.mxu3 %vm931_vm0, %v2820_v15 }
0x1124   : > { %v2833_v52 = vpop.f32.mrf.mxu3 }
0x1125   : > { %v2838_v40 = vadd.f32 %v2833_v52, %v2818_v48 }
0x1127   : > { %v2840_v43 = vmul.f32 %v3986_v28, %v2838_v40  ;;  %v3193_v28 = vld [vmem:[%s4505_s24 + $0x4] sm:$0xf] }
0x1128   : > { %v2903_v31 = vsel %vm1090_vm2, %v3193_v28, 0 }
0x1129   : > { %2912 = vmatpush.bf16.msrb.mxu2 %v2903_v31 }
0x112c   : > { %v2835_v21 = vpop.f32.mrf.mxu3 }
0x112d   : > { %v2839_v24 = vadd.f32 %v2835_v21, %v2819_v10 }
0x112f   : > { %v2841_v18 = vmul.f32 %v3988_v32, %v2839_v24  ;;  %v3420_v32 = vpop.eup %3419 }
0x1130   : > { %v3422_v3 = vpop.eup %3421  ;;  %v2693_v25 = vmul.f32 %v3420_v32, %v2690_v42  ;;  %vm2698_vm9 = vweird.f32 %v3420_v32 }
0x1131   : > { %v2842_v59 = vpack.c.bf16 %v2841_v18, %v2840_v43  ;;  %v2708_v34 = vmul.f32 %v3422_v3, %v2691_v12  ;;  %vm2713_vm12 = vweird.f32 %v3422_v3 }
0x1132   : > { %v2694_v8 = vsub.f32 1.0, %v2693_v25  ;;  %vm2714_vm14 = vmor %vm2712_vm13, %vm2713_vm12 }
0x1133   : > { %3191 = vmatmul.msk.bf16.vlgmr.msra.gmra.mxu0 %vm1515_vm11, %v2842_v59  ;;  %v2709_v16 = vsub.f32 1.0, %v2708_v34  ;;  %vm2697_vm11 = vweird.f32 %v2690_v42 }
0x1134   : > { %v2695_v62 = vmul.f32 %v3420_v32, %v2694_v8  ;;  %vm2699_vm2 = vmor %vm2697_vm11, %vm2698_vm9 }
0x1135   : > { %v2710_v53 = vmul.f32 %v3422_v3, %v2709_v16 }
0x1136   : > { %v2696_v20 = vadd.f32 %v3420_v32, %v2695_v62 }
0x1137   : > { %v2711_v51 = vadd.f32 %v3422_v3, %v2710_v53 }
0x1138   : > { %v2700_v7 = vsel %vm2699_vm2, %v3420_v32, %v2696_v20 }
0x1139   : > { %v2715_v41 = vsel %vm2714_vm14, %v3422_v3, %v2711_v51  ;;  %v2705_v57 = vsel %vm2702_vm15, %v2704_v27, %v2700_v7 }
0x113a   : > { %v2720_v58 = vsel %vm2717_vm1, %v2719_v55, %v2715_v41  ;;  %v2866_v11 = vsub.f32 1.0, %v2705_v57  ;;  %v2864_v22 = vmul.f32 %v2705_v57, %v4385_v56 }
0x113b   : > { %v2867_v2 = vsub.f32 1.0, %v2720_v58  ;;  %v2865_v23 = vmul.f32 %v2720_v58, %v4387_v39  ;;  %v2888_v39 = vpop.f32.mrf.mxu1 }
0x113c   : > { %v2895_v9 = vadd.f32 %v3263_v29, %v2888_v39 }
0x11b0   : > { %v2857_v45 = vpop.f32.mrf.mxu0 }
0x11b1   : > { %v2858_v44 = vadd.f32 %v3264_v17, %v2857_v45 }
0x11b3   : > { %3423 = vtanh.f32 %v2858_v44 }
0x11b8   : > { %v2859_v6 = vpop.f32.mrf.mxu0 }
0x11b9   : > { %v2860_v13 = vadd.f32 %v3264_v17, %v2859_v6  ;;  %v3424_v30 = vpop.eup %3423 }
0x11ba   : > { %v2868_v26 = vmul.f32 %v3424_v30, %v2866_v11 }
0x11bb   : > { %3425 = vtanh.f32 %v2860_v13 }
0x11bc   : > { %v2870_v49 = vadd.f32 %v2868_v26, %v2864_v22 }
0x11c1   : > { %v3426_v15 = vpop.eup %3425 }
0x11c2   : > { %v2869_v61 = vmul.f32 %v3426_v15, %v2867_v2 }
0x11c4   : > { %v2871_v52 = vadd.f32 %v2869_v61, %v2865_v23 }
0x11c6   : > { %v2896_v5 = vpack.c.bf16 %v2871_v52, %v2870_v49 }
0x11c8   : > { %3194 = vmatmul.msk.bf16.vlgmr.msrb.gmra.mxu2 %vm931_vm0, %v2896_v5 }
0x124b   : > { %v2914_v56 = vpop.f32.mrf.mxu2 }
0x124c   : > { %v2919_v63 = vadd.f32 %v2914_v56, %v2894_v35 }
0x124e   : > { %2921 = vst.msk [vmem:[%s876_s13] sm:$0xff] %vm931_vm0, %v2919_v63 }
0x1253   : > { %v2916_v48 = vpop.f32.mrf.mxu2 }
0x1254   : > { %v2920_v40 = vadd.f32 %v2916_v48, %v2895_v9 }
0x1256   : > { %2922 = vst.msk [vmem:[%s876_s13 + $0x8] sm:$0xff] %vm931_vm0, %v2920_v40 }
0x1257 PF: > { %s36_s27 = sadd.s32 1, %s3459_s27  }
0x1258   : > { %p33_p4 = scmp.ge.s32.totalorder %s36_s27, 4  }
0x125a   :  { %35 = sbr.rel (!%p33_p4) target bundleno = 16 (0x10), region = 176 }

// kernel: _lambda_.3
= control target key start
LH: loop header
LB: loop body
LE: loop exit
PB: predicated region body
PF: predicated region fallthrough
CT: control target
= control target key end

     0   :  { %s3599_s27 = smov 0   ;;  %s4480_s0 = inlined_call_operand.vmem [shape: f32[2,4,16,1], index: 0, kind: input, shape index: {}]   ;;  %s4481_s1 = inlined_call_operand.vmem [shape: f32[2,4,1,16], index: 1, kind: input, shape index: {}]   ;;  %s4482_s2 = inlined_call_operand.vmem [shape: f32[2,4,8], index: 2, kind: input, shape index: {}]   ;;  %s4483_s3 = inlined_call_operand.vmem [shape: f32[2,4,8], index: 3, kind: input, shape index: {}]   ;;  %s4484_s4 = inlined_call_operand.vmem [shape: f32[2,4,8], index: 4, kind: input, shape index: {}]   ;;  %s4485_s5 = inlined_call_operand.vmem [shape: f32[2,4,8], index: 5, kind: input, shape index: {}]   ;;  %s4486_s6 = inlined_call_operand.vmem [shape: f32[16,8], index: 6, kind: input, shape index: {}]   ;;  %s4487_s7 = inlined_call_operand.vmem [shape: bf16[16,128], index: 7, kind: input, shape index: {}]   ;;  %s4488_s8 = inlined_call_operand.vmem [shape: bf16[128,8], index: 8, kind: input, shape index: {}]   ;;  %s4489_s9 = inlined_call_operand.vmem [shape: bf16[128,8], index: 9, kind: input, shape index: {}]   ;;  %s4490_s10 = inlined_call_operand.vmem [shape: bf16[16,64], index: 10, kind: input, shape index: {}]   ;;  %s4491_s11 = inlined_call_operand.vmem [shape: bf16[64,8], index: 11, kind: input, shape index: {}]   ;;  %s4492_s12 = inlined_call_operand.vmem [shape: bf16[1,1,128], index: 12, kind: input, shape index: {}]   ;;  %s4493_s13 = inlined_call_operand.vmem [shape: bf16[1,8,128], index: 13, kind: input, shape index: {}]   ;;  %s4494_s14 = inlined_call_operand.vmem [shape: bf16[1,1,128], index: 14, kind: input, shape index: {}]   ;;  %s4495_s15 = inlined_call_operand.vmem [shape: bf16[1,8,128], index: 15, kind: input, shape index: {}]   ;;  %s4496_s16 = inlined_call_operand.vmem [shape: f32[1,1,8], index: 16, kind: input, shape index: {}]   ;;  %s4497_s17 = inlined_call_operand.vmem [shape: f32[1,1,8], index: 17, kind: input, shape index: {}]   ;;  %s4498_s18 = inlined_call_operand.vmem [shape: bf16[1,1,64], index: 18, kind: input, shape index: {}]   ;;  %s4499_s19 = inlined_call_operand.vmem [shape: bf16[1,8,64], index: 19, kind: input, shape index: {}]   ;;  %s4500_s20 = inlined_call_operand.vmem [shape: bf16[1,1,64], index: 20, kind: input, shape index: {}]   ;;  %s4501_s21 = inlined_call_operand.vmem [shape: bf16[1,8,64], index: 21, kind: input, shape index: {}]   ;;  %s4502_s22 = inlined_call_operand.vmem [shape: f32[1,1,8], index: 22, kind: input, shape index: {}]   ;;  %s4503_s23 = inlined_call_operand.vmem [shape: f32[1,1,8], index: 23, kind: input, shape index: {}]   ;;  %s4504_s24 = inlined_call_operand.vmem [shape: bf16[2,8,4], index: 24, kind: input, shape index: {}]   ;;  %s4505_s25 = inlined_call_operand.vmem [shape: f32[1,4], index: 25, kind: input, shape index: {}]   ;;  %s4506_s26 = inlined_call_operand.vmem [shape: f32[2,16,4], index: 26, kind: output, shape index: {}]  }
   0x1   :  { %4510 = sst [smem:[#allocation2_spill]] %s4480_s0 }
   0x2   :  { %4511 = sst [smem:[#allocation3_spill]] %s4481_s1 }
   0x3   :  { %4512 = sst [smem:[#allocation4_spill]] %s4482_s2 }
   0x4   :  { %4513 = sst [smem:[#allocation5_spill]] %s4483_s3 }
   0x5   :  { %4514 = sst [smem:[#allocation6_spill]] %s4484_s4 }
   0x6   :  { %4515 = sst [smem:[#allocation7_spill]] %s4485_s5 }
   0x7   :  { %4516 = sst [smem:[#allocation8_spill]] %s4486_s6 }
   0x8   :  { %4517 = sst [smem:[#allocation9_spill]] %s4487_s7 }
   0x9   :  { %4518 = sst [smem:[#allocation10_spill]] %s4488_s8 }
   0xa   :  { %4519 = sst [smem:[#allocation11_spill]] %s4489_s9 }
   0xb   :  { %4520 = sst [smem:[#allocation12_spill]] %s4490_s10 }
   0xc   :  { %4521 = sst [smem:[#allocation13_spill]] %s4492_s12 }
   0xd   :  { %4522 = sst [smem:[#allocation14_spill]] %s4493_s13 }
   0xe   :  { %4523 = sst [smem:[#allocation15_spill]] %s4494_s14 }
   0xf   :  { %4524 = sst [smem:[#allocation16_spill]] %s4495_s15 }
  0x10 LB: > { %s3039_s3 = sadd.s32 4294967295, %s3460_s27   ;;  %p3043_p0 = scmp.ge.s32.totalorder %s3460_s27, 1  ;;  %s3460_s27 = sphi %s3599_s27, %s36_s27  }
  0x11   : > { %p757_p1 = scmp.lt.s32.totalorder %s3460_s27, 3 }
  0x13   : > { %p758_p2 = pnand %p3043_p0, %p757_p1 }
  0x14   : > { %p847_p3 = scmp.lt.s32.totalorder (!%p758_p2), %s3039_s3, 1  ;;  %s4525_s4 = sld [smem:[#allocation4_spill]] (!%p758_p2) }
  0x15   : > { %761 = sbr.rel (%p758_p2) target bundleno = 4695 (0x1257), region = 124  ;;  %s4526_s30 = sld [smem:[#allocation8_spill]] (!%p758_p2) }
  0x16   : > { %s4527_s15 = sld [smem:[#allocation16_spill]] (!%p758_p2) }
  0x17   : > { %s4528_s13 = sld [smem:[#allocation14_spill]] (!%p758_p2) }
  0x18   : > { %s4529_s8 = sld [smem:[#allocation3_spill]] (!%p758_p2) }
  0x19   : > { %s4530_s5 = sld [smem:[#allocation2_spill]] (!%p758_p2) }
  0x1a   : > { %s4541_s3 = smov (!%p847_p3, %s3039_s3), 1  ;;  %vm931_vm0 = vcmask 64512   ;;  %v3462_v7 = vmov 8.0   ;;  %vm1090_vm2 = vcmask 1043456   ;;  %v3651_v45 = vld [vmem:[%s4496_s16] ss:$0 sm:$0xff] }
  0x1b   : > { %s3610_s7 = sshll.u32 %s4541_s3, 2  ;;  %v3621_v0 = vld [vmem:[%s4526_s30] sm:$0xff]  ;;  %v3628_v3 = vld [vmem:[%s4526_s30 + $0x8] sm:$0xff]  ;;  %3266 = vrcp.f32 %v3462_v7  ;;  %vm1013_vm9 = vcmask 130048   ;;  %s3198_s0 = sshll.u32 %s4541_s3, 6 }
  0x1c   : > { %s3616_s29 = scalar_lea.vmem %s4525_s4, %s3610_s7  ;;  %v1039_v24 = vld [vmem:[%s4527_s15] sm:$0xf]  ;;  %s4531_s28 = sld [smem:[#allocation10_spill]] }
  0x1d   : > { %v3241_v1 = vld [vmem:[%s3616_s29] ss:$0 sm:$0xff]  ;;  %v3643_v25 = vsel %vm1090_vm2, %v1039_v24, 0  ;;  %s4532_s9 = sld [smem:[#allocation11_spill]] }
  0x1e   : > { %v929_v2 = vadd.f32 %v3241_v1, %v3621_v0  ;;  %v930_v5 = vadd.f32 %v3241_v1, %v3628_v3  ;;  %1126 = vmatpush.bf16.msra.mxu3 %v3643_v25  ;;  %v3656_v46 = vld [vmem:[%s4502_s22] ss:$0 sm:$0xff]  ;;  %s3695_s4 = scalar_lea.vmem %s4529_s8, %s3610_s7  ;;  %s4533_s12 = sld [smem:[#allocation13_spill]] }
  0x1f   : > { %v3662_v51 = vld [vmem:[%s4497_s17] ss:$0 sm:$0xff]  ;;  %s3703_s10 = scalar_lea.vmem %s4530_s5, %s3198_s0  ;;  %s4534_s14 = sld [smem:[#allocation15_spill]] }
  0x20   : > { %v932_v4 = vsel %vm931_vm0, %v929_v2, 0.0  ;;  %v935_v6 = vsel %vm931_vm0, %v930_v5, 0.0  ;;  %v3668_v53 = vld [vmem:[%s4503_s23] ss:$0 sm:$0xff]  ;;  %s4535_s2 = sld [smem:[#allocation9_spill]] }
  0x21   : > { %933 = vadd.xlane.f32.xlu0 %v932_v4  ;;  %v3267_v8 = vpop.eup %3266  ;;  %s4536_s1 = sld [smem:[#allocation5_spill]] }
  0x22   : > { %v939_v9 = vmul.f32 8.0, %v3267_v8  ;;  %vm943_vm1 = vweird.f32 %v3267_v8  ;;  %s4537_s15 = sld [smem:[#allocation6_spill]] }
  0x23   : > { %s4538_s5 = sld [smem:[#allocation7_spill]] }
  0x24   : > { %v940_v10 = vsub.f32 1.0, %v939_v9 }
  0x26   : > { %v941_v11 = vmul.f32 %v3267_v8, %v940_v10 }
  0x27   : > { %s3854_s8 = scalar_lea.vmem %s4536_s1, %s3610_s7 }
  0x28   : > { %v942_v12 = vadd.f32 %v3267_v8, %v941_v11 }
  0x29   : > { %936 = vadd.xlane.f32.xlu0 %v935_v6  ;;  %v1037_v6 = vld [vmem:[%s4528_s13] sm:$0xf]  ;;  %s3934_s6 = scalar_lea.vmem %s4538_s5, %s3610_s7 }
  0x2a   : > { %v3633_v13 = vsel %vm943_vm1, %v3267_v8, %v942_v12  ;;  %v3688_v7 = vsel %vm1090_vm2, %v1037_v6, 0  ;;  %v3463_v8 = vmov 0  }
  0x2b   : > { %1080 = vmatpush.bf16.msra.mxu1 %v3463_v8  ;;  %3239 = vset.pattern.permute.xlu0 %v3463_v8 }
  0x2c   : > { %1101 = vmatpush.bf16.msra.mxu2 %v3688_v7  ;;  %3238 = vset.pattern.permute.xlu2 %v3463_v8 }
  0x2d   : > { %3240 = vset.pattern.permute.xlu1 %v3463_v8 }
  0x2f   : > { %1102 = vmatmul.bf16.vlgmr.msra.gmra.mxu2 %v3463_v8 }
  0x94   : > { %v934_v14 = vpop.xlane.xlu0 %933 }
  0x95   : > { %v945_v15 = vmul.f32 %v3633_v13, %v934_v14 }
  0x97   : > { %v947_v16 = vsub.f32 %v929_v2, %v945_v15 }
  0x99   : > { %v949_v17 = vmul.f32 %v947_v16, %v947_v16 }
  0x9b   : > { %v951_v18 = vsel %vm931_vm0, %v949_v17, 0.0 }
  0x9c   : > { %952 = vadd.xlane.f32.xlu1 %v951_v18  ;;  %v937_v19 = vpop.xlane.xlu0 %936 }
  0x9d   : > { %v946_v20 = vmul.f32 %v3633_v13, %v937_v19 }
  0x9f   : > { %v948_v21 = vsub.f32 %v930_v5, %v946_v20  ;;  %v925_v20 = vld [vmem:[%s3703_s10 + $0x8] sm:$0xff] }
  0xa1   : > { %v950_v22 = vmul.f32 %v948_v21, %v948_v21 }
  0xa3   : > { %v954_v23 = vsel %vm931_vm0, %v950_v22, 0.0 }
  0xa4   : > { %955 = vadd.xlane.f32.xlu1 %v954_v23  ;;  %v3708_v23 = vld [vmem:[%s3695_s4] ss:$0 sm:$0xff] }
 0x10f   : > { %v953_v26 = vpop.xlane.xlu1 %952 }
 0x110   : > { %v957_v27 = vmul.f32 %v953_v26, %v3633_v13 }
 0x112   : > { %v959_v28 = vadd.f32 1e-12, %v957_v27 }
 0x114   : > { %3268 = vrsqrt.f32 %v959_v28  ;;  %vm967_vm4 = vweird.f32 %v959_v28 }
 0x117   : > { %v956_v29 = vpop.xlane.xlu1 %955 }
 0x118   : > { %v958_v30 = vmul.f32 %v956_v29, %v3633_v13 }
 0x11a   : > { %v3269_v31 = vpop.eup %3268  ;;  %v960_v32 = vadd.f32 1e-12, %v958_v30 }
 0x11b   : > { %v962_v33 = vmul.f32 %v3269_v31, %v959_v28  ;;  %vm968_vm3 = vweird.f32 %v3269_v31 }
 0x11c   : > { %3270 = vrsqrt.f32 %v960_v32  ;;  %vm969_vm5 = vmor %vm967_vm4, %vm968_vm3  ;;  %vm977_vm7 = vweird.f32 %v960_v32 }
 0x11d   : > { %v963_v34 = vmul.f32 %v3269_v31, %v962_v33 }
 0x11f   : > { %v964_v35 = vmul.f32 0.5, %v963_v34 }
 0x121   : > { %v965_v36 = vsub.f32 1.5, %v964_v35  ;;  %v3718_v35 = vld [vmem:[%s4531_s28 + $0x38] sm:$0xff] }
 0x122   : > { %v3271_v37 = vpop.eup %3270  ;;  %1190 = vmatpush.bf16.msrb.mxu1 %v3718_v35 }
 0x123   : > { %v966_v38 = vmul.f32 %v3269_v31, %v965_v36  ;;  %v972_v39 = vmul.f32 %v3271_v37, %v960_v32  ;;  %vm978_vm6 = vweird.f32 %v3271_v37  ;;  %v3723_v36 = vld [vmem:[%s4532_s9 + $0x38] sm:$0xff] }
 0x124   : > { %vm979_vm8 = vmor %vm977_vm7, %vm978_vm6  ;;  %1292 = vmatpush.bf16.msrb.mxu2 %v3723_v36 }
 0x125   : > { %v973_v40 = vmul.f32 %v3271_v37, %v972_v39  ;;  %v970_v42 = vsel %vm969_vm5, %v3269_v31, %v966_v38  ;;  %v3735_v38 = vld [vmem:[%s4532_s9 + $0x30] sm:$0xff] }
 0x126   : > { %v981_v44 = vmul.f32 %v970_v42, %v947_v16  ;;  %v3754_v42 = vld [vmem:[%s4531_s28 + $0x20] sm:$0xff] }
 0x127   : > { %v974_v41 = vmul.f32 0.5, %v973_v40  ;;  %v3742_v40 = vld [vmem:[%s4531_s28 + $0x28] sm:$0xff] }
 0x128   : > { %v988_v50 = vmul.f32 %v3651_v45, %v981_v44  ;;  %v1349_v52 = vmul.f32 %v3656_v46, %v981_v44  ;;  %1293 = vmatpush.bf16.msrb.mxu2 %v3735_v38 }
 0x129   : > { %v975_v43 = vsub.f32 1.5, %v974_v41  ;;  %v3747_v41 = vld [vmem:[%s4532_s9 + $0x28] sm:$0xff] }
 0x12a   : > { %v993_v56 = vadd.f32 %v3662_v51, %v988_v50  ;;  %v1354_v58 = vadd.f32 %v3668_v53, %v1349_v52  ;;  %v3781_v50 = vld [vmem:[%s4531_s28 + $0x10] sm:$0xff] }
 0x12b   : > { %v976_v47 = vmul.f32 %v3271_v37, %v975_v43  ;;  %v3759_v43 = vld [vmem:[%s4532_s9 + $0x20] sm:$0xff]  ;;  %v3786_v52 = vld [vmem:[%s4532_s9 + $0x10] sm:$0xff] }
 0x12c   : > { %1294 = vmatpush.bf16.msrb.mxu2 %v3747_v41 }
 0x12d   : > { %v980_v48 = vsel %vm979_vm8, %v3271_v37, %v976_v47  ;;  %v3730_v37 = vld [vmem:[%s4531_s28 + $0x30] sm:$0xff] }
 0x12e   : > { %v982_v49 = vmul.f32 %v980_v48, %v948_v21  ;;  %v924_v21 = vld [vmem:[%s3703_s10] sm:$0xff]  ;;  %1191 = vmatpush.bf16.msrb.mxu1 %v3730_v37  ;;  %v3769_v48 = vld [vmem:[%s4531_s28 + $0x18] sm:$0xff] }
 0x130   : > { %v989_v54 = vmul.f32 %v3651_v45, %v982_v49  ;;  %v1350_v55 = vmul.f32 %v3656_v46, %v982_v49  ;;  %1295 = vmatpush.bf16.msrb.mxu2 %v3759_v43  ;;  %v3774_v49 = vld [vmem:[%s4532_s9 + $0x18] sm:$0xff] }
 0x132   : > { %v994_v57 = vadd.f32 %v3662_v51, %v989_v54  ;;  %v1355_v59 = vadd.f32 %v3668_v53, %v1350_v55  ;;  %1192 = vmatpush.bf16.msrb.mxu1 %v3742_v40  ;;  %v3793_v54 = vld [vmem:[%s4531_s28 + $0x8] sm:$0xff] }
 0x133   : > { %v3798_v55 = vld [vmem:[%s4532_s9 + $0x8] sm:$0xff] }
 0x134   : > { %v995_v60 = vpack.c.bf16 %v994_v57, %v993_v56  ;;  %v3676_v61 = vpack.c.bf16 %v1355_v59, %v1354_v58  ;;  %1296 = vmatpush.bf16.msrb.mxu2 %v3774_v49  ;;  %v3805_v56 = vld [vmem:[%s4531_s28] sm:$0xff] }
 0x135   : > { %v3810_v57 = vld [vmem:[%s4532_s9] sm:$0xff] }
 0x136   : > { %v997_v62 = vsel %vm931_vm0, %v995_v60, 0  ;;  %v1358_v63 = vsel %vm931_vm0, %v3676_v61, 0  ;;  %1193 = vmatpush.bf16.msrb.mxu1 %v3754_v42  ;;  %v1036_v58 = vld [vmem:[%s4533_s12] sm:$0x1] }
 0x137   : > { %1006 = vmatpush.bf16.xpose.msra.mxu0 %v997_v62  ;;  %1367 = vmatpush.bf16.xpose.msrb.mxu3 %v1358_v63  ;;  %v1041_v59 = vunpack.c.l.bf16 %v1036_v58 }
 0x138   : > { %1297 = vmatpush.bf16.msrb.mxu2 %v3786_v52 }
 0x139   : > { %v3820_v63 = vperm.slane %v1041_v59, 0 }
 0x13a   : > { %1194 = vmatpush.bf16.msrb.mxu1 %v3769_v48 }
 0x13c   : > { %1298 = vmatpush.bf16.msrb.mxu2 %v3798_v55 }
 0x13e   : > { %3053 = vmatmul.msk.bf16.vlgmr.msra.gmra.mxu0 %vm931_vm0, %v995_v60  ;;  %1195 = vmatpush.bf16.msrb.mxu1 %v3781_v50  ;;  %v1103_v60 = vpop.f32.mrf.mxu2 }
 0x140   : > { %1299 = vmatpush.bf16.msrb.mxu2 %v3810_v57 }
 0x142   : > { %1196 = vmatpush.bf16.msrb.mxu1 %v3793_v54 }
 0x146   : > { %1197 = vmatpush.bf16.msrb.mxu1 %v3805_v56 }
 0x1bb   : > { %v1008_v1 = vpop.f32.mrf.mxu0 }
 0x1bc   : > { %v1014_v2 = vsel %vm1013_vm9, %v1008_v1, -inf }
 0x1bd   : > { %1015 = vmax.xlane.f32.xlu2 %v1014_v2 }
 0x1c3   : > { %v1010_v4 = vpop.f32.mrf.mxu0 }
 0x1c4   : > { %v1017_v5 = vsel %vm1013_vm9, %v1010_v4, -inf }
 0x1c5   : > { %1018 = vmax.xlane.f32.xlu2 %v1017_v5 }
 0x1dd   : > { %1044 = vperm.xlu2 %3238, %v924_v21  }
 0x230   : > { %v1016_v9 = vpop.xlane.xlu2 %1015 }
 0x231   : > { %v1020_v10 = vsub.f32 %v1008_v1, %v1016_v9 }
 0x233   : > { %v1022_v11 = vmul.f32 1.442695, %v1020_v10 }
 0x235   : > { %3272 = vpow2.f32 %v1022_v11 }
 0x238   : > { %v1019_v12 = vpop.xlane.xlu2 %1018 }
 0x239   : > { %v1021_v14 = vsub.f32 %v1010_v4, %v1019_v12  ;;  %v3825_v4 = vld [vmem:[%s3616_s29 + $0x1] ss:$0 sm:$0xff]  ;;  %v1105_v12 = vpop.f32.mrf.mxu2 }
 0x23a   : > { %v3831_v6 = vadd.f32 %v3825_v4, %v3621_v0 }
 0x23b   : > { %v3273_v15 = vpop.eup %3272  ;;  %v1024_v16 = vmul.f32 1.442695, %v1021_v14 }
 0x23c   : > { %v1026_v17 = vsel %vm1013_vm9, %v3273_v15, 0.0  ;;  %v1552_v10 = vsel %vm931_vm0, %v3831_v6, 0.0 }
 0x23d   : > { %3274 = vpow2.f32 %v1024_v16  ;;  %1027 = vadd.xlane.f32.xlu0 %v1026_v17 }
 0x240   : > { %v3822_v2 = vpop.permute.xlu2 %1044 }
 0x241   : > { %v1053_v8 = vmul.f32 %v3820_v63, %v3822_v2 }
 0x243   : > { %v3275_v18 = vpop.eup %3274  ;;  %v1108_v16 = vadd.f32 %v1103_v60, %v1053_v8  ;;  %v3248_v60 = vld [vmem:[%s3854_s8] ss:$0 sm:$0xff] }
 0x244   : > { %v1029_v19 = vsel %vm1013_vm9, %v3275_v18, 0.0 }
 0x245   : > { %1030 = vadd.xlane.f32.xlu1 %v1029_v19  ;;  %v3221_v19 = vld [vmem:[%s4535_s2] sm:$0xff]   ;;  %s3863_s2 = scalar_lea.vmem %s4537_s15, %s3610_s7  ;;  %s4539_s15 = sld [smem:[#allocation12_spill]] }
 0x246   : > { %v3846_v21 = vunpack.c.l.bf16 %v3221_v19 }
 0x251   : > { %1049 = vperm.xlu0 %3239, %v925_v20  }
 0x27b   : > { %1553 = vadd.xlane.f32.xlu0 %v1552_v10 }
 0x2b0   : > { %v1028_v22 = vpop.xlane.xlu0 %1027 }
 0x2b1   : > { %3276 = vrcp.f32 %v1028_v22 }
 0x2b7   : > { %v3277_v24 = vpop.eup %3276 }
 0x2b8   : > { %v1031_v26 = vpop.xlane.xlu1 %1030  ;;  %v1034_v27 = vmul.f32 %v3277_v24, %v3273_v15  ;;  %v3848_v24 = vunpack.c.h.bf16 %v3221_v19 }
 0x2b9   : > { %3278 = vrcp.f32 %v1031_v26 }
 0x2ba   : > { %v1058_v28 = vmul.f32 %v3708_v23, %v1034_v27 }
 0x2bc   : > { %v1060_v29 = vsel %vm1013_vm9, %v1058_v28, 0.0 }
 0x2bd   : > { %1061 = vadd.xlane.f32.xlu1 %v1060_v29 }
 0x2bf   : > { %v3279_v30 = vpop.eup %3278 }
 0x2c0   : > { %v1035_v31 = vmul.f32 %v3279_v30, %v3275_v18 }
 0x2c2   : > { %v1040_v32 = vpack.c.bf16 %v1035_v31, %v1034_v27  ;;  %v1059_v33 = vmul.f32 %v3708_v23, %v1035_v31 }
 0x2c3   : > { %v3827_v5 = vpop.permute.xlu0 %1049 }
 0x2c4   : > { %3054 = vmatmul.msk.bf16.vlgmr.msra.gmra.mxu1 %vm1013_vm9, %v1040_v32  ;;  %v1063_v34 = vsel %vm1013_vm9, %v1059_v33, 0.0  ;;  %v1054_v11 = vmul.f32 %v3820_v63, %v3827_v5  ;;  %v3146_v33 = vld [vmem:[%s3703_s10 + $0x18] sm:$0xff] }
 0x2c5   : > { %1064 = vadd.xlane.f32.xlu1 %v1063_v34  ;;  %1649 = vperm.xlu0 %3239, %v3146_v33  }
 0x2c6   : > { %v1109_v17 = vadd.f32 %v1105_v12, %v1054_v11 }
 0x330   : > { %v1062_v62 = vpop.xlane.xlu1 %1061 }
 0x338   : > { %v1065_v14 = vpop.xlane.xlu1 %1064 }
 0x341   : > { %v1082_v39 = vpop.f32.mrf.mxu1 }
 0x349   : > { %v1084_v44 = vpop.f32.mrf.mxu1 }
 0x34a   : > { %v1112_v47 = vpack.c.bf16 %v1084_v44, %v1082_v39 }
 0x34c   : > { %3055 = vmatmul.msk.bf16.vlgmr.msra.gmra.mxu3 %vm931_vm0, %v1112_v47 }
 0x35c   : > { %3124 = vmatmul.msk.bf16.vlgmr.msrb.gmra.mxu3 %vm931_vm0, %v3676_v61  ;;  %v1038_v61 = vld [vmem:[%s4534_s14] sm:$0x1] }
 0x35d   : > { %v1066_v1 = vunpack.c.l.bf16 %v1038_v61 }
 0x35f   : > { %v3835_v9 = vperm.slane %v1066_v1, 0 }
 0x361   : > { %v1068_v0 = vmul.f32 %v3835_v9, %v1062_v62  ;;  %v1069_v18 = vmul.f32 %v3835_v9, %v1065_v14 }
 0x363   : > { %v1110_v20 = vadd.f32 %v1108_v16, %v1068_v0  ;;  %v1111_v26 = vadd.f32 %v1109_v17, %v1069_v18 }
 0x3cf   : > { %v1128_v15 = vpop.f32.mrf.mxu3 }
 0x3d0   : > { %v1133_v22 = vadd.f32 %v1128_v15, %v1110_v20  ;;  %v1399_v15 = vld [vmem:[%s4499_s19] sm:$0xf] }
 0x3d1   : > { %v3876_v16 = vsel %vm1090_vm2, %v1399_v15, 0 }
 0x3d2   : > { %v1137_v29 = vmul.f32 %v3846_v21, %v1133_v22  ;;  %1450 = vmatpush.bf16.msra.mxu3 %v3876_v16 }
 0x3d7   : > { %v1130_v27 = vpop.f32.mrf.mxu3 }
 0x3d8   : > { %v1134_v28 = vadd.f32 %v1130_v27, %v1111_v26  ;;  %v1554_v26 = vpop.xlane.xlu0 %1553 }
 0x3da   : > { %v1138_v30 = vmul.f32 %v3848_v24, %v1134_v28  ;;  %v1558_v28 = vmul.f32 %v1554_v26, %v3633_v13 }
 0x3dc   : > { %v1139_v31 = vpack.c.bf16 %v1138_v30, %v1137_v29  ;;  %v1551_v29 = vadd.f32 %v3825_v4, %v3628_v3 }
 0x3de   : > { %1198 = vmatmul.bf16.vlgmr.msrb.gmra.mxu1 %v1139_v31  ;;  %1300 = vmatmul.bf16.vlgmr.msrb.gmra.mxu2 %v1139_v31  ;;  %v3884_v31 = vsub.f32 %v3831_v6, %v1558_v28 }
 0x3df   : > { %v1369_v32 = vpop.f32.mrf.mxu3 }
 0x3e0   : > { %v1374_v34 = vsel %vm1013_vm9, %v1369_v32, -inf }
 0x3e1   : > { %1375 = vmax.xlane.f32.xlu1 %v1374_v34 }
 0x3e7   : > { %v1371_v39 = vpop.f32.mrf.mxu3 }
 0x3e8   : > { %v1377_v44 = vsel %vm1013_vm9, %v1371_v39, -inf }
 0x3e9   : > { %1378 = vmax.xlane.f32.xlu2 %v1377_v44  ;;  %v1562_v44 = vmul.f32 %v3884_v31, %v3884_v31 }
 0x454   : > { %v1376_v47 = vpop.xlane.xlu1 %1375 }
 0x455   : > { %v1380_v58 = vsub.f32 %v1369_v32, %v1376_v47  ;;  %v1555_v32 = vsel %vm931_vm0, %v1551_v29, 0.0 }
 0x457   : > { %v1382_v59 = vmul.f32 1.442695, %v1380_v58 }
 0x459   : > { %3280 = vpow2.f32 %v1382_v59  ;;  %v1564_v59 = vsel %vm931_vm0, %v1562_v44, 0.0 }
 0x45b   : > { %v1199_v61 = vpop.f32.mrf.mxu1 }
 0x45c   : > { %v1200_v62 = vadd.f32 %v3248_v60, %v1199_v61  ;;  %v1379_v1 = vpop.xlane.xlu2 %1378 }
 0x45d   : > { %v1381_v8 = vsub.f32 %v1371_v39, %v1379_v1 }
 0x45e   : > { %v3088_v10 = vmul.f32 -1.442695, %v1200_v62 }
 0x45f   : > { %v3868_v11 = vpop.eup %3280  ;;  %v1384_v12 = vmul.f32 1.442695, %v1381_v8 }
 0x460   : > { %3282 = vpow2.f32 %v3088_v10  ;;  %v1386_v14 = vsel %vm1013_vm9, %v3868_v11, 0.0 }
 0x461   : > { %3284 = vpow2.f32 %v1384_v12  ;;  %1387 = vadd.xlane.f32.xlu1 %v1386_v14 }
 0x463   : > { %v1201_v0 = vpop.f32.mrf.mxu1 }
 0x464   : > { %v1202_v17 = vadd.f32 %v3248_v60, %v1201_v0 }
 0x466   : > { %v3283_v18 = vpop.eup %3282  ;;  %v3089_v19 = vmul.f32 -1.442695, %v1202_v17 }
 0x467   : > { %v3285_v20 = vpop.eup %3284  ;;  %v1210_v22 = vadd.f32 1.0, %v3283_v18 }
 0x468   : > { %3286 = vpow2.f32 %v3089_v19  ;;  %v1389_v27 = vsel %vm1013_vm9, %v3285_v20, 0.0 }
 0x469   : > { %3288 = vrcp.f32 %v1210_v22  ;;  %1390 = vadd.xlane.f32.xlu1 %v1389_v27  ;;  %v1223_v6 = vand.u32 2147483648, %v1210_v22  ;;  %vm1217_vm11 = vweird.f32 %v1210_v22  ;;  %v1221_v61 = vand.u32 2147483647, %v1210_v22 }
 0x46b   : > { %v1224_v14 = vor.u32 1.1754944e-38, %v1223_v6  ;;  %vm1222_vm14 = vcmp.eq.f32.partialorder %v1221_v61, 8.507059e+37 }
 0x46e   : > { %v3287_v30 = vpop.eup %3286 }
 0x46f   : > { %v3289_v33 = vpop.eup %3288  ;;  %v1211_v34 = vadd.f32 1.0, %v3287_v30 }
 0x470   : > { %v1213_v39 = vmul.f32 %v3289_v33, %v1210_v22  ;;  %vm1218_vm10 = vweird.f32 %v3289_v33 }
 0x471   : > { %3290 = vrcp.f32 %v1211_v34  ;;  %1556 = vadd.xlane.f32.xlu1 %v1555_v32  ;;  %vm1219_vm12 = vmor %vm1217_vm11, %vm1218_vm10  ;;  %v1238_v1 = vand.u32 2147483648, %v1211_v34  ;;  %v1236_v12 = vand.u32 2147483647, %v1211_v34  ;;  %vm1232_vm15 = vweird.f32 %v1211_v34 }
 0x472   : > { %v1214_v47 = vsub.f32 1.0, %v1213_v39  ;;  %vm1515_vm11 = vcmask 523264  }
 0x473   : > { %v1239_v17 = vor.u32 1.1754944e-38, %v1238_v1  ;;  %vm1237_vm3 = vcmp.eq.f32.partialorder %v1236_v12, 8.507059e+37 }
 0x474   : > { %v1215_v58 = vmul.f32 %v3289_v33, %v1214_v47 }
 0x476   : > { %v1216_v3 = vadd.f32 %v3289_v33, %v1215_v58 }
 0x477   : > { %v3291_v60 = vpop.eup %3290 }
 0x478   : > { %v1228_v4 = vmul.f32 %v3291_v60, %v1211_v34  ;;  %v1220_v8 = vsel %vm1219_vm12, %v3289_v33, %v1216_v3  ;;  %vm1233_vm13 = vweird.f32 %v3291_v60 }
 0x479   : > { %1565 = vadd.xlane.f32.xlu1 %v1564_v59  ;;  %v1225_v0 = vsel %vm1222_vm14, %v1224_v14, %v1220_v8  ;;  %vm1234_vm1 = vmor %vm1232_vm15, %vm1233_vm13 }
 0x47a   : > { %v1229_v62 = vsub.f32 1.0, %v1228_v4  ;;  %v1396_v26 = vmul.f32 0.0, %v1225_v0 }
 0x47c   : > { %v1230_v10 = vmul.f32 %v3291_v60, %v1229_v62 }
 0x47e   : > { %v1231_v15 = vadd.f32 %v3291_v60, %v1230_v10 }
 0x480   : > { %v1235_v18 = vsel %vm1234_vm1, %v3291_v60, %v1231_v15 }
 0x481   : > { %v1240_v19 = vsel %vm1237_vm3, %v1239_v17, %v1235_v18 }
 0x482   : > { %v1397_v27 = vmul.f32 0.0, %v1240_v19 }
 0x484   : > { %v1402_v22 = vpack.c.bf16 %v1397_v27, %v1396_v26 }
 0x486   : > { %1430 = vmatpush.bf16.msrb.mxu0 %v1402_v22  ;;  %3126 = vmatmul.msk.bf16.vlgmr.msra.gmra.mxu3 %vm931_vm0, %v1402_v22 }
 0x4d4   : > { %v1388_v28 = vpop.xlane.xlu1 %1387 }
 0x4d5   : > { %3292 = vrcp.f32 %v1388_v28 }
 0x4db   : > { %v3293_v30 = vpop.eup %3292 }
 0x4dc   : > { %v1391_v32 = vpop.xlane.xlu1 %1390  ;;  %v1394_v33 = vmul.f32 %v3293_v30, %v3868_v11 }
 0x4dd   : > { %3294 = vrcp.f32 %v1391_v32 }
 0x4de   : > { %v1408_v34 = vmul.f32 %v3708_v23, %v1394_v33 }
 0x4e0   : > { %v1410_v39 = vsel %vm1013_vm9, %v1408_v34, 0.0 }
 0x4e1   : > { %1411 = vadd.xlane.f32.xlu2 %v1410_v39 }
 0x4e3   : > { %v3295_v44 = vpop.eup %3294 }
 0x4e4   : > { %v1395_v47 = vmul.f32 %v3295_v44, %v3285_v20  ;;  %v1557_v58 = vpop.xlane.xlu1 %1556  ;;  %v1401_v20 = vld [vmem:[%s4501_s21] sm:$0xf] }
 0x4e5   : > { %v1559_v59 = vmul.f32 %v1557_v58, %v3633_v13 }
 0x4e6   : > { %v1403_v60 = vpack.c.bf16 %v1395_v47, %v1394_v33  ;;  %v1409_v11 = vmul.f32 %v3708_v23, %v1395_v47 }
 0x4e7   : > { %v1561_v3 = vsub.f32 %v1551_v29, %v1559_v59  ;;  %v3904_v29 = vsel %vm1090_vm2, %v1401_v20, 0 }
 0x4e8   : > { %3125 = vmatmul.msk.bf16.vlgmr.msrb.gmra.mxu0 %vm1013_vm9, %v1403_v60  ;;  %v1413_v61 = vsel %vm1013_vm9, %v1409_v11, 0.0 }
 0x4e9   : > { %v1563_v4 = vmul.f32 %v1561_v3, %v1561_v3  ;;  %1475 = vmatpush.bf16.msra.mxu0 %v3904_v29 }
 0x4eb   : > { %v1567_v6 = vsel %vm931_vm0, %v1563_v4, 0.0 }
 0x4ec   : > { %1568 = vadd.xlane.f32.xlu1 %v1567_v6  ;;  %v1566_v62 = vpop.xlane.xlu1 %1565 }
 0x4ed   : > { %v1570_v1 = vmul.f32 %v1566_v62, %v3633_v13  ;;  %1694 = vmatpush.bf16.msrb.mxu0 %v3688_v7 }
 0x4ef   : > { %v1572_v8 = vadd.f32 1e-12, %v1570_v1 }
 0x4f1   : > { %3296 = vrsqrt.f32 %v1572_v8  ;;  %vm1580_vm4 = vweird.f32 %v1572_v8 }
 0x4f4   : > { %1414 = vadd.xlane.f32.xlu1 %v1413_v61 }
 0x4f7   : > { %v3297_v23 = vpop.eup %3296 }
 0x4f8   : > { %v1575_v10 = vmul.f32 %v3297_v23, %v1572_v8  ;;  %vm1581_vm5 = vweird.f32 %v3297_v23 }
 0x4f9   : > { %vm1582_vm6 = vmor %vm1580_vm4, %vm1581_vm5 }
 0x4fa   : > { %v1576_v12 = vmul.f32 %v3297_v23, %v1575_v10 }
 0x4fc   : > { %v1577_v17 = vmul.f32 0.5, %v1576_v12 }
 0x4fe   : > { %v1578_v19 = vsub.f32 1.5, %v1577_v17 }
 0x500   : > { %v1579_v27 = vmul.f32 %v3297_v23, %v1578_v19 }
 0x502   : > { %v1583_v33 = vsel %vm1582_vm6, %v3297_v23, %v1579_v27 }
 0x503   : > { %v1594_v44 = vmul.f32 %v1583_v33, %v3884_v31 }
 0x505   : > { %v1596_v60 = vmul.f32 %v3651_v45, %v1594_v44  ;;  %v1836_v4 = vmul.f32 %v3656_v46, %v1594_v44 }
 0x507   : > { %v1598_v61 = vadd.f32 %v3662_v51, %v1596_v60  ;;  %v1838_v31 = vadd.f32 %v3668_v53, %v1836_v4 }
 0x55f   : > { %v1569_v14 = vpop.xlane.xlu1 %1568 }
 0x560   : > { %v1571_v15 = vmul.f32 %v1569_v14, %v3633_v13 }
 0x562   : > { %v1573_v0 = vadd.f32 1e-12, %v1571_v15 }
 0x564   : > { %3298 = vrsqrt.f32 %v1573_v0  ;;  %vm1590_vm8 = vweird.f32 %v1573_v0 }
 0x565   : > { %v1432_v18 = vpop.f32.mrf.mxu0 }
 0x567   : > { %v1415_v10 = vpop.xlane.xlu1 %1414 }
 0x56a   : > { %v3299_v26 = vpop.eup %3298 }
 0x56b   : > { %v1585_v22 = vmul.f32 %v3299_v26, %v1573_v0  ;;  %vm1591_vm7 = vweird.f32 %v3299_v26 }
 0x56c   : > { %vm1592_vm10 = vmor %vm1590_vm8, %vm1591_vm7 }
 0x56d   : > { %v1586_v28 = vmul.f32 %v3299_v26, %v1585_v22  ;;  %v1434_v30 = vpop.f32.mrf.mxu0 }
 0x56e   : > { %v1461_v32 = vpack.c.bf16 %v1434_v30, %v1432_v18 }
 0x56f   : > { %v1587_v34 = vmul.f32 0.5, %v1586_v28 }
 0x570   : > { %3127 = vmatmul.msk.bf16.vlgmr.msra.gmra.mxu0 %vm931_vm0, %v1461_v32 }
 0x571   : > { %v1588_v39 = vsub.f32 1.5, %v1587_v34 }
 0x573   : > { %v1589_v47 = vmul.f32 %v3299_v26, %v1588_v39  ;;  %v1301_v39 = vpop.f32.mrf.mxu2 }
 0x575   : > { %v1593_v58 = vsel %vm1592_vm10, %v3299_v26, %v1589_v47  ;;  %v3225_v26 = vld [vmem:[%s4539_s15] sm:$0xff]  }
 0x576   : > { %v1595_v59 = vmul.f32 %v1593_v58, %v1561_v3  ;;  %v3987_v28 = vunpack.c.l.bf16 %v3225_v26  ;;  %v3989_v32 = vunpack.c.h.bf16 %v3225_v26 }
 0x578   : > { %v1597_v6 = vmul.f32 %v3651_v45, %v1595_v59  ;;  %v1837_v11 = vmul.f32 %v3656_v46, %v1595_v59  ;;  %v3942_v45 = vld [vmem:[%s4491_s11 + $0x18] sm:$0xff]  ;;  %v3949_v46 = vld [vmem:[%s4491_s11 + $0x10] sm:$0xff] }
 0x579   : > { %1523 = vmatpush.bf16.msra.mxu1 %v3942_v45 }
 0x57a   : > { %v1599_v62 = vadd.f32 %v3662_v51, %v1597_v6  ;;  %v1839_v1 = vadd.f32 %v3668_v53, %v1837_v11  ;;  %v3956_v51 = vld [vmem:[%s4491_s11 + $0x8] sm:$0xff]  ;;  %v3963_v53 = vld [vmem:[%s4491_s11] sm:$0xff] }
 0x57b   : > { %v1303_v58 = vpop.f32.mrf.mxu2  ;;  %v3249_v11 = vld [vmem:[%s3863_s2] ss:$0 sm:$0xff] }
 0x57c   : > { %v1600_v20 = vpack.c.bf16 %v1599_v62, %v1598_v61  ;;  %v3919_v8 = vpack.c.bf16 %v1839_v1, %v1838_v31  ;;  %v1302_v61 = vadd.f32 %v3249_v11, %v1301_v39  ;;  %v1304_v62 = vadd.f32 %v3249_v11, %v1303_v58 }
 0x57d   : > { %1524 = vmatpush.bf16.msra.mxu1 %v3949_v46 }
 0x57e   : > { %v1602_v3 = vsel %vm931_vm0, %v1600_v20, 0  ;;  %v1842_v23 = vsel %vm931_vm0, %v3919_v8, 0  ;;  %v3122_v31 = vmul.f32 -1.442695, %v1302_v61  ;;  %v3123_v1 = vmul.f32 -1.442695, %v1304_v62 }
 0x57f   : > { %1611 = vmatpush.bf16.xpose.msra.mxu2 %v1602_v3  ;;  %1851 = vmatpush.bf16.xpose.msra.mxu0 %v1842_v23 }
 0x580   : > { %3300 = vpow2.f32 %v3122_v31 }
 0x581   : > { %1525 = vmatpush.bf16.msra.mxu1 %v3956_v51  ;;  %3302 = vpow2.f32 %v3123_v1 }
 0x585   : > { %1526 = vmatpush.bf16.msra.mxu1 %v3963_v53 }
 0x586   : > { %3148 = vmatmul.msk.bf16.vlgmr.msra.gmra.mxu2 %vm931_vm0, %v1600_v20  ;;  %v3301_v20 = vpop.eup %3300 }
 0x587   : > { %1730 = vmatpush.bf16.msrb.mxu2 %v3718_v35  ;;  %v1398_v35 = vld [vmem:[%s4498_s18] sm:$0x1]  ;;  %v3303_v3 = vpop.eup %3302  ;;  %v1312_v23 = vadd.f32 1.0, %v3301_v20 }
 0x589   : > { %1716 = vmatpush.bf16.msrb.mxu1 %v3643_v25  ;;  %3304 = vrcp.f32 %v1312_v23  ;;  %vm1319_vm13 = vweird.f32 %v1312_v23 }
 0x58b   : > { %1731 = vmatpush.bf16.msrb.mxu2 %v3730_v37  ;;  %v1400_v37 = vld [vmem:[%s4500_s20] sm:$0x1] }
 0x58f   : > { %1732 = vmatpush.bf16.msrb.mxu2 %v3742_v40  ;;  %v1452_v40 = vpop.f32.mrf.mxu3 }
 0x593   : > { %1733 = vmatpush.bf16.msrb.mxu2 %v3754_v42  ;;  %v1404_v42 = vunpack.c.l.bf16 %v1398_v35  ;;  %v1313_v35 = vadd.f32 1.0, %v3303_v3 }
 0x595   : > { %3306 = vrcp.f32 %v1313_v35  ;;  %vm1334_vm1 = vweird.f32 %v1313_v35  ;;  %v1338_v39 = vand.u32 2147483647, %v1313_v35 }
 0x597   : > { %1734 = vmatpush.bf16.msrb.mxu2 %v3769_v48  ;;  %v1416_v48 = vunpack.c.l.bf16 %v1400_v37  ;;  %v1454_v0 = vpop.f32.mrf.mxu3  ;;  %v3305_v37 = vpop.eup %3304  ;;  %vm1339_vm5 = vcmp.eq.f32.partialorder %v1338_v39, 8.507059e+37 }
 0x598   : > { %vm1320_vm12 = vweird.f32 %v3305_v37 }
 0x599   : > { %vm1321_vm15 = vmor %vm1319_vm13, %vm1320_vm12 }
 0x59b   : > { %1735 = vmatpush.bf16.msrb.mxu2 %v3781_v50  ;;  %v3974_v50 = vperm.slane %v1404_v42, 0  ;;  %v1315_v42 = vmul.f32 %v3305_v37, %v1312_v23 }
 0x59d   : > { %v1406_v14 = vmul.f32 %v3974_v50, %v3822_v2  ;;  %v1407_v17 = vmul.f32 %v3974_v50, %v3827_v5 }
 0x59f   : > { %1736 = vmatpush.bf16.msrb.mxu2 %v3793_v54  ;;  %v3976_v54 = vperm.slane %v1416_v48, 0  ;;  %v1457_v18 = vadd.f32 %v1452_v40, %v1406_v14  ;;  %v1458_v27 = vadd.f32 %v1454_v0, %v1407_v17  ;;  %v3307_v40 = vpop.eup %3306 }
 0x5a0   : > { %v1330_v48 = vmul.f32 %v3307_v40, %v1313_v35  ;;  %vm1335_vm14 = vweird.f32 %v3307_v40 }
 0x5a1   : > { %v1419_v19 = vmul.f32 %v3976_v54, %v1415_v10  ;;  %vm1336_vm3 = vmor %vm1334_vm1, %vm1335_vm14 }
 0x5a2   : > { %v1331_v10 = vsub.f32 1.0, %v1330_v48 }
 0x5a3   : > { %1737 = vmatpush.bf16.msrb.mxu2 %v3805_v56  ;;  %v1412_v56 = vpop.xlane.xlu2 %1411  ;;  %v1460_v2 = vadd.f32 %v1458_v27, %v1419_v19  ;;  %v1325_v19 = vand.u32 2147483648, %v1312_v23  ;;  %v1323_v27 = vand.u32 2147483647, %v1312_v23 }
 0x5a4   : > { %v1418_v15 = vmul.f32 %v3976_v54, %v1412_v56  ;;  %v1316_v56 = vsub.f32 1.0, %v1315_v42  ;;  %v1332_v0 = vmul.f32 %v3307_v40, %v1331_v10 }
 0x5a5   : > { %vm1324_vm4 = vcmp.eq.f32.partialorder %v1323_v27, 8.507059e+37 }
 0x5a6   : > { %v1459_v22 = vadd.f32 %v1457_v18, %v1418_v15  ;;  %v1317_v14 = vmul.f32 %v3305_v37, %v1316_v56 }
 0x5a7   : > { %1966 = vmatpush.bf16.msra.mxu2 %v3942_v45 }
 0x5a8   : > { %v1318_v18 = vadd.f32 %v3305_v37, %v1317_v14 }
 0x5ab   : > { %1967 = vmatpush.bf16.msra.mxu2 %v3949_v46 }
 0x5af   : > { %1968 = vmatpush.bf16.msra.mxu2 %v3956_v51 }
 0x5b3   : > { %1969 = vmatpush.bf16.msra.mxu2 %v3963_v53 }
 0x5ed   : > { %v1477_v12 = vpop.f32.mrf.mxu0 }
 0x5ee   : > { %v1482_v30 = vadd.f32 %v1477_v12, %v1459_v22  ;;  %v3250_v12 = vld [vmem:[%s3934_s6] ss:$0 sm:$0xff] }
 0x5f0   : > { %v1486_v5 = vmul.f32 %v3987_v28, %v1482_v30  ;;  %v1333_v30 = vadd.f32 %v3307_v40, %v1332_v0 }
 0x5f2   : > { %v1337_v58 = vsel %vm1336_vm3, %v3307_v40, %v1333_v30 }
 0x5f5   : > { %v1479_v33 = vpop.f32.mrf.mxu0 }
 0x5f6   : > { %v1483_v34 = vadd.f32 %v1479_v33, %v1460_v2  ;;  %v1340_v2 = vand.u32 2147483648, %v1313_v35  ;;  %v1322_v33 = vsel %vm1321_vm15, %v3305_v37, %v1318_v18 }
 0x5f8   : > { %v1487_v44 = vmul.f32 %v3989_v32, %v1483_v34 }
 0x5fa   : > { %v1488_v47 = vpack.c.bf16 %v1487_v44, %v1486_v5  ;;  %v1326_v44 = vor.u32 1.1754944e-38, %v1325_v19 }
 0x5fc   : > { %3144 = vmatmul.msk.bf16.vlgmr.msra.gmra.mxu1 %vm1515_vm11, %v1488_v47 }
 0x609   : > { %v1613_v59 = vpop.f32.mrf.mxu2 }
 0x60a   : > { %v1618_v60 = vsel %vm1013_vm9, %v1613_v59, -inf }
 0x60b   : > { %1619 = vmax.xlane.f32.xlu2 %v1618_v60  ;;  %v1327_v60 = vsel %vm1324_vm4, %v1326_v44, %v1322_v33 }
 0x60c   : > { %v1537_v62 = vsub.f32 1.0, %v1327_v60  ;;  %v1535_v42 = vmul.f32 0.0, %v1327_v60 }
 0x611   : > { %v1615_v4 = vpop.f32.mrf.mxu2 }
 0x612   : > { %v1621_v6 = vsel %vm1013_vm9, %v1615_v4, -inf }
 0x613   : > { %1622 = vmax.xlane.f32.xlu1 %v1621_v6  ;;  %v1341_v6 = vor.u32 1.1754944e-38, %v1340_v2 }
 0x615   : > { %v1342_v11 = vsel %vm1339_vm5, %v1341_v6, %v1337_v58  ;;  %v4034_v58 = vpop.permute.xlu0 %1649 }
 0x616   : > { %v1538_v3 = vsub.f32 1.0, %v1342_v11  ;;  %v1536_v48 = vmul.f32 0.0, %v1342_v11  ;;  %v1653_v60 = vmul.f32 %v4034_v58, %v3820_v63 }
 0x679   : > { %v1528_v15 = vpop.f32.mrf.mxu1 }
 0x67a   : > { %v1529_v17 = vadd.f32 %v3250_v12, %v1528_v15  ;;  %v3145_v15 = vld [vmem:[%s3703_s10 + $0x10] sm:$0xff] }
 0x67c   : > { %3308 = vtanh.f32 %v1529_v17 }
 0x67e   : > { %v1620_v26 = vpop.xlane.xlu2 %1619 }
 0x67f   : > { %v1624_v22 = vsub.f32 %v1613_v59, %v1620_v26 }
 0x681   : > { %v1626_v34 = vmul.f32 1.442695, %v1624_v22  ;;  %v1530_v5 = vpop.f32.mrf.mxu1 }
 0x682   : > { %v1531_v47 = vadd.f32 %v3250_v12, %v1530_v5  ;;  %v3309_v59 = vpop.eup %3308 }
 0x683   : > { %3310 = vpow2.f32 %v1626_v34  ;;  %v1539_v20 = vmul.f32 %v3309_v59, %v1537_v62 }
 0x684   : > { %3312 = vtanh.f32 %v1531_v47 }
 0x685   : > { %v3999_v40 = vadd.f32 %v1539_v20, %v1535_v42 }
 0x686   : > { %v1623_v61 = vpop.xlane.xlu1 %1622 }
 0x687   : > { %v1625_v31 = vsub.f32 %v1615_v4, %v1623_v61 }
 0x689   : > { %v3311_v1 = vpop.eup %3310  ;;  %v1628_v23 = vmul.f32 1.442695, %v1625_v31 }
 0x68a   : > { %v3313_v35 = vpop.eup %3312  ;;  %v1630_v37 = vsel %vm1013_vm9, %v3311_v1, 0.0 }
 0x68b   : > { %v1540_v56 = vmul.f32 %v3313_v35, %v1538_v3  ;;  %3314 = vpow2.f32 %v1628_v23  ;;  %1631 = vadd.xlane.f32.xlu2 %v1630_v37 }
 0x68d   : > { %v4001_v10 = vadd.f32 %v1540_v56, %v1536_v48 }
 0x68f   : > { %v1640_v4 = vpack.c.bf16 %v4001_v10, %v3999_v40 }
 0x691   : > { %v3315_v12 = vpop.eup %3314  ;;  %1677 = vmatpush.bf16.msrb.mxu3 %v1640_v4  ;;  %3150 = vmatmul.msk.bf16.vlgmr.msrb.gmra.mxu0 %vm931_vm0, %v1640_v4  ;;  %v3252_v4 = vld [vmem:[%s3616_s29 + $0x2] ss:$0 sm:$0xff] }
 0x692   : > { %v1633_v14 = vsel %vm1013_vm9, %v3315_v12, 0.0  ;;  %1923 = vmatpush.bf16.msrb.mxu0 %v3876_v16 }
 0x693   : > { %1634 = vadd.xlane.f32.xlu1 %v1633_v14 }
 0x695   : > { %1784 = vmatpush.bf16.msra.mxu3 %v3723_v36 }
 0x699   : > { %1785 = vmatpush.bf16.msra.mxu3 %v3735_v38  ;;  %v4020_v38 = vld [vmem:[%s3695_s4 + $0x1] ss:$0 sm:$0xff] }
 0x69d   : > { %1786 = vmatpush.bf16.msra.mxu3 %v3747_v41 }
 0x6a1   : > { %1787 = vmatpush.bf16.msra.mxu3 %v3759_v43  ;;  %3156 = vmatmul.msk.bf16.vlgmr.msra.gmra.mxu0 %vm931_vm0, %v3919_v8 }
 0x6a3   : > { %1644 = vperm.xlu2 %3238, %v3145_v15   ;;  %v4046_v15 = vld [vmem:[%s4526_s30] sm:$0xff] }
 0x6a5   : > { %1788 = vmatpush.bf16.msra.mxu3 %v3774_v49 }
 0x6a9   : > { %1789 = vmatpush.bf16.msra.mxu3 %v3786_v52 }
 0x6ad   : > { %1790 = vmatpush.bf16.msra.mxu3 %v3798_v55 }
 0x6b1   : > { %1791 = vmatpush.bf16.msra.mxu3 %v3810_v57 }
 0x6fe   : > { %v1632_v36 = vpop.xlane.xlu2 %1631 }
 0x6ff   : > { %3316 = vrcp.f32 %v1632_v36  ;;  %v1993_v36 = vadd.f32 %v4046_v15, %v3252_v4 }
 0x705   : > { %v3317_v41 = vpop.eup %3316 }
 0x706   : > { %v1635_v0 = vpop.xlane.xlu1 %1634  ;;  %v1638_v43 = vmul.f32 %v3317_v41, %v3311_v1  ;;  %v4029_v33 = vpop.permute.xlu2 %1644  ;;  %v1995_v41 = vsel %vm931_vm0, %v1993_v36, 0.0 }
 0x707   : > { %3318 = vrcp.f32 %v1635_v0  ;;  %v1652_v34 = vmul.f32 %v4029_v33, %v3820_v63  ;;  %v4053_v0 = vld [vmem:[%s4526_s30 + $0x8] sm:$0xff] }
 0x708   : > { %v1657_v17 = vmul.f32 %v4020_v38, %v1638_v43 }
 0x70a   : > { %v1659_v8 = vsel %vm1013_vm9, %v1657_v17, 0.0 }
 0x70b   : > { %1660 = vadd.xlane.f32.xlu1 %v1659_v8 }
 0x70d   : > { %v3319_v49 = vpop.eup %3318 }
 0x70e   : > { %v1639_v18 = vmul.f32 %v3319_v49, %v3315_v12  ;;  %v1696_v52 = vpop.f32.mrf.mxu0 }
 0x70f   : > { %v1701_v5 = vadd.f32 %v1696_v52, %v1652_v34 }
 0x710   : > { %v1641_v19 = vpack.c.bf16 %v1639_v18, %v1638_v43  ;;  %v1658_v55 = vmul.f32 %v4020_v38, %v1639_v18  ;;  %v1994_v43 = vadd.f32 %v4053_v0, %v3252_v4 }
 0x712   : > { %3149 = vmatmul.msk.bf16.vlgmr.msrb.gmra.mxu3 %vm1013_vm9, %v1641_v19  ;;  %v1662_v57 = vsel %vm1013_vm9, %v1658_v55, 0.0  ;;  %v1998_v17 = vsel %vm931_vm0, %v1994_v43, 0.0 }
 0x713   : > { %1663 = vadd.xlane.f32.xlu1 %v1662_v57 }
 0x716   : > { %v1698_v26 = vpop.f32.mrf.mxu0 }
 0x717   : > { %v1702_v59 = vadd.f32 %v1698_v26, %v1653_v60 }
 0x71e   : > { %v1853_v27 = vpop.f32.mrf.mxu0 }
 0x71f   : > { %v1858_v22 = vsel %vm1013_vm9, %v1853_v27, -inf }
 0x720   : > { %1859 = vmax.xlane.f32.xlu0 %v1858_v22 }
 0x726   : > { %v1855_v30 = vpop.f32.mrf.mxu0 }
 0x727   : > { %v1861_v2 = vsel %vm1013_vm9, %v1855_v30, -inf }
 0x728   : > { %1862 = vmax.xlane.f32.xlu1 %v1861_v2 }
 0x77e   : > { %v1661_v39 = vpop.xlane.xlu1 %1660 }
 0x77f   : > { %v1665_v44 = vmul.f32 %v1661_v39, %v3835_v9 }
 0x781   : > { %v1703_v47 = vadd.f32 %v1701_v5, %v1665_v44 }
 0x786   : > { %v1664_v6 = vpop.xlane.xlu1 %1663 }
 0x787   : > { %v1666_v11 = vmul.f32 %v1664_v6, %v3835_v9 }
 0x789   : > { %v1704_v61 = vadd.f32 %v1702_v59, %v1666_v11 }
 0x793   : > { %v1860_v62 = vpop.xlane.xlu0 %1859 }
 0x794   : > { %v1864_v31 = vsub.f32 %v1853_v27, %v1860_v62 }
 0x795   : > { %v1679_v1 = vpop.f32.mrf.mxu3 }
 0x796   : > { %v1866_v20 = vmul.f32 1.442695, %v1864_v31 }
 0x798   : > { %3320 = vpow2.f32 %v1866_v20 }
 0x79b   : > { %v1863_v3 = vpop.xlane.xlu1 %1862 }
 0x79c   : > { %v1865_v23 = vsub.f32 %v1855_v30, %v1863_v3 }
 0x79d   : > { %v1681_v35 = vpop.f32.mrf.mxu3 }
 0x79e   : > { %v3321_v37 = vpop.eup %3320  ;;  %v1868_v42 = vmul.f32 1.442695, %v1865_v23  ;;  %v1705_v48 = vpack.c.bf16 %v1681_v35, %v1679_v1 }
 0x79f   : > { %v1870_v56 = vsel %vm1013_vm9, %v3321_v37, 0.0 }
 0x7a0   : > { %3322 = vpow2.f32 %v1868_v42  ;;  %1871 = vadd.xlane.f32.xlu2 %v1870_v56  ;;  %3151 = vmatmul.msk.bf16.vlgmr.msrb.gmra.mxu1 %vm931_vm0, %v1705_v48 }
 0x7a6   : > { %v3323_v12 = vpop.eup %3322 }
 0x7a7   : > { %v1873_v14 = vsel %vm1013_vm9, %v3323_v12, 0.0 }
 0x7a8   : > { %1874 = vadd.xlane.f32.xlu1 %v1873_v14 }
 0x7b0   : > { %1996 = vadd.xlane.f32.xlu1 %v1995_v41 }
 0x7b8   : > { %1999 = vadd.xlane.f32.xlu1 %v1998_v17 }
 0x813   : > { %v1872_v8 = vpop.xlane.xlu2 %1871 }
 0x814   : > { %3324 = vrcp.f32 %v1872_v8 }
 0x81a   : > { %v3325_v52 = vpop.eup %3324 }
 0x81b   : > { %v1875_v49 = vpop.xlane.xlu1 %1874  ;;  %v4059_v26 = vmul.f32 %v3325_v52, %v3321_v37 }
 0x81c   : > { %3326 = vrcp.f32 %v1875_v49 }
 0x81d   : > { %v1718_v18 = vpop.f32.mrf.mxu1  ;;  %v1886_v1 = vmul.f32 %v4020_v38, %v4059_v26 }
 0x81e   : > { %v1723_v27 = vadd.f32 %v1718_v18, %v1703_v47 }
 0x81f   : > { %v1888_v23 = vsel %vm1013_vm9, %v1886_v1, 0.0 }
 0x820   : > { %v1725_v60 = vmul.f32 %v3846_v21, %v1723_v27 }
 0x822   : > { %v3327_v19 = vpop.eup %3326 }
 0x823   : > { %v1997_v55 = vpop.xlane.xlu1 %1996  ;;  %v4057_v57 = vmul.f32 %v3327_v19, %v3323_v12 }
 0x824   : > { %v2001_v22 = vmul.f32 %v1997_v55, %v3633_v13 }
 0x825   : > { %v1720_v30 = vpop.f32.mrf.mxu1  ;;  %v1887_v2 = vmul.f32 %v4020_v38, %v4057_v57  ;;  %v1883_v34 = vpack.c.bf16 %v4057_v57, %v4059_v26 }
 0x826   : > { %v2003_v39 = vsub.f32 %v1993_v36, %v2001_v22  ;;  %v1724_v5 = vadd.f32 %v1720_v30, %v1704_v61  ;;  %v3253_v36 = vld [vmem:[%s3854_s8 + $0x1] ss:$0 sm:$0xff] }
 0x827   : > { %v1891_v44 = vsel %vm1013_vm9, %v1887_v2, 0.0 }
 0x828   : > { %v1726_v6 = vmul.f32 %v3848_v24, %v1724_v5  ;;  %1892 = vadd.xlane.f32.xlu2 %v1891_v44  ;;  %v2005_v59 = vmul.f32 %v2003_v39, %v2003_v39 }
 0x82a   : > { %v1727_v47 = vpack.c.bf16 %v1726_v6, %v1725_v60  ;;  %v2007_v11 = vsel %vm931_vm0, %v2005_v59, 0.0 }
 0x82b   : > { %2008 = vadd.xlane.f32.xlu1 %v2007_v11  ;;  %v2000_v62 = vpop.xlane.xlu1 %1999 }
 0x82c   : > { %v2002_v31 = vmul.f32 %v2000_v62, %v3633_v13  ;;  %1738 = vmatmul.bf16.vlgmr.msrb.gmra.mxu2 %v1727_v47  ;;  %1792 = vmatmul.bf16.vlgmr.msra.gmra.mxu3 %v1727_v47 }
 0x82d   : > { %2159 = vmatpush.bf16.msrb.mxu2 %v3643_v25 }
 0x82e   : > { %v2004_v61 = vsub.f32 %v1994_v43, %v2002_v31  ;;  %v4082_v31 = vld [vmem:[%s4496_s16] ss:$0 sm:$0xff] }
 0x830   : > { %v2006_v20 = vmul.f32 %v2004_v61, %v2004_v61 }
 0x832   : > { %v2010_v3 = vsel %vm931_vm0, %v2006_v20, 0.0 }
 0x833   : > { %2011 = vadd.xlane.f32.xlu0 %v2010_v3  ;;  %1889 = vadd.xlane.f32.xlu1 %v1888_v23 }
 0x89e   : > { %v2009_v35 = vpop.xlane.xlu1 %2008 }
 0x89f   : > { %v2013_v37 = vmul.f32 %v2009_v35, %v3633_v13 }
 0x8a1   : > { %v2015_v42 = vadd.f32 1e-12, %v2013_v37 }
 0x8a3   : > { %3328 = vrsqrt.f32 %v2015_v42  ;;  %vm2023_vm6 = vweird.f32 %v2015_v42 }
 0x8a6   : > { %v2012_v48 = vpop.xlane.xlu0 %2011 }
 0x8a7   : > { %v2014_v56 = vmul.f32 %v2012_v48, %v3633_v13 }
 0x8a9   : > { %v3329_v4 = vpop.eup %3328  ;;  %v2016_v12 = vadd.f32 1e-12, %v2014_v56 }
 0x8aa   : > { %v2018_v14 = vmul.f32 %v3329_v4, %v2015_v42  ;;  %vm2024_vm7 = vweird.f32 %v3329_v4  ;;  %v4103_v42 = vld [vmem:[%s4503_s23] ss:$0 sm:$0xff] }
 0x8ab   : > { %3330 = vrsqrt.f32 %v2016_v12  ;;  %vm2025_vm8 = vmor %vm2023_vm6, %vm2024_vm7  ;;  %vm2033_vm10 = vweird.f32 %v2016_v12 }
 0x8ac   : > { %v2019_v38 = vmul.f32 %v3329_v4, %v2018_v14 }
 0x8ae   : > { %v2020_v41 = vmul.f32 0.5, %v2019_v38 }
 0x8af   : > { %v1739_v43 = vpop.f32.mrf.mxu2  ;;  %v1793_v57 = vpop.f32.mrf.mxu3 }
 0x8b0   : > { %v2021_v17 = vsub.f32 1.5, %v2020_v41  ;;  %v1740_v8 = vadd.f32 %v3253_v36, %v1739_v43 }
 0x8b1   : > { %v3331_v49 = vpop.eup %3330 }
 0x8b2   : > { %v2022_v18 = vmul.f32 %v3329_v4, %v2021_v17  ;;  %v2028_v52 = vmul.f32 %v3331_v49, %v2016_v12  ;;  %v3152_v19 = vmul.f32 -1.442695, %v1740_v8  ;;  %vm2034_vm12 = vweird.f32 %v3331_v49  ;;  %v4113_v8 = vld [vmem:[%s4531_s28 + $0x38] sm:$0xff] }
 0x8b3   : > { %vm2035_vm13 = vmor %vm2033_vm10, %vm2034_vm12 }
 0x8b4   : > { %v2029_v55 = vmul.f32 %v3331_v49, %v2028_v52  ;;  %3332 = vpow2.f32 %v3152_v19  ;;  %v2026_v27 = vsel %vm2025_vm8, %v3329_v4, %v2022_v18  ;;  %v4119_v52 = vld [vmem:[%s4531_s28 + $0x30] sm:$0xff] }
 0x8b5   : > { %v2037_v44 = vmul.f32 %v2026_v27, %v2003_v39  ;;  %v4088_v39 = vld [vmem:[%s4502_s22] ss:$0 sm:$0xff] }
 0x8b6   : > { %v2030_v22 = vmul.f32 0.5, %v2029_v55 }
 0x8b7   : > { %v1741_v30 = vpop.f32.mrf.mxu2  ;;  %v2039_v1 = vmul.f32 %v4082_v31, %v2037_v44  ;;  %v2279_v20 = vmul.f32 %v4088_v39, %v2037_v44  ;;  %v1795_v26 = vpop.f32.mrf.mxu3 }
 0x8b8   : > { %v2031_v2 = vsub.f32 1.5, %v2030_v22  ;;  %v1742_v5 = vadd.f32 %v3253_v36, %v1741_v30 }
 0x8b9   : > { %v2281_v48 = vadd.f32 %v4103_v42, %v2279_v20 }
 0x8ba   : > { %v3333_v60 = vpop.eup %3332  ;;  %v2032_v6 = vmul.f32 %v3331_v49, %v2031_v2  ;;  %v3153_v59 = vmul.f32 -1.442695, %v1742_v5  ;;  %v4126_v5 = vld [vmem:[%s4531_s28 + $0x28] sm:$0xff] }
 0x8bb   : > { %v1750_v47 = vadd.f32 1.0, %v3333_v60 }
 0x8bc   : > { %v2036_v11 = vsel %vm2035_vm13, %v3331_v49, %v2032_v6  ;;  %3334 = vpow2.f32 %v3153_v59 }
 0x8bd   : > { %v2038_v62 = vmul.f32 %v2036_v11, %v2004_v61  ;;  %3336 = vrcp.f32 %v1750_v47  ;;  %v4096_v61 = vld [vmem:[%s4497_s17] ss:$0 sm:$0xff]  ;;  %v1763_v27 = vand.u32 2147483648, %v1750_v47  ;;  %vm1757_vm15 = vweird.f32 %v1750_v47 }
 0x8be   : > { %v2041_v35 = vadd.f32 %v4096_v61, %v2039_v1  ;;  %v1761_v30 = vand.u32 2147483647, %v1750_v47  ;;  %v4132_v1 = vld [vmem:[%s4531_s28 + $0x20] sm:$0xff] }
 0x8bf   : > { %v2040_v3 = vmul.f32 %v4082_v31, %v2038_v62  ;;  %v2280_v23 = vmul.f32 %v4088_v39, %v2038_v62  ;;  %v1764_v59 = vor.u32 1.1754944e-38, %v1763_v27 }
 0x8c0   : > { %vm1762_vm5 = vcmp.eq.f32.partialorder %v1761_v30, 8.507059e+37 }
 0x8c1   : > { %v2042_v37 = vadd.f32 %v4096_v61, %v2040_v3  ;;  %v2282_v56 = vadd.f32 %v4103_v42, %v2280_v23 }
 0x8c2   : > { %v3335_v4 = vpop.eup %3334 }
 0x8c3   : > { %v3337_v12 = vpop.eup %3336  ;;  %v1751_v14 = vadd.f32 1.0, %v3335_v4  ;;  %v2043_v38 = vpack.c.bf16 %v2042_v37, %v2041_v35  ;;  %v4107_v36 = vpack.c.bf16 %v2282_v56, %v2281_v48  ;;  %v4140_v37 = vld [vmem:[%s4531_s28 + $0x18] sm:$0xff]  ;;  %v4148_v56 = vld [vmem:[%s4531_s28 + $0x10] sm:$0xff]  ;;  %v4159_v4 = vld [vmem:[%s4531_s28 + $0x8] sm:$0xff] }
 0x8c4   : > { %v1753_v41 = vmul.f32 %v3337_v12, %v1750_v47  ;;  %vm1758_vm14 = vweird.f32 %v3337_v12 }
 0x8c5   : > { %3338 = vrcp.f32 %v1751_v14  ;;  %v2045_v43 = vsel %vm931_vm0, %v2043_v38, 0  ;;  %vm1759_vm1 = vmor %vm1757_vm15, %vm1758_vm14  ;;  %v1778_v2 = vand.u32 2147483648, %v1751_v14  ;;  %v1776_v6 = vand.u32 2147483647, %v1751_v14 }
 0x8c6   : > { %v1754_v17 = vsub.f32 1.0, %v1753_v41  ;;  %2054 = vmatpush.bf16.xpose.msrb.mxu3 %v2045_v43  ;;  %vm1772_vm4 = vweird.f32 %v1751_v14 }
 0x8c7   : > { %v1779_v47 = vor.u32 1.1754944e-38, %v1778_v2  ;;  %vm1777_vm7 = vcmp.eq.f32.partialorder %v1776_v6, 8.507059e+37  ;;  %v1884_v6 = vmul.f32 %v4029_v33, %v3974_v50 }
 0x8c8   : > { %v1755_v49 = vmul.f32 %v3337_v12, %v1754_v17 }
 0x8ca   : > { %v1756_v55 = vadd.f32 %v3337_v12, %v1755_v49 }
 0x8cb   : > { %v3339_v18 = vpop.eup %3338 }
 0x8cc   : > { %v1768_v19 = vmul.f32 %v3339_v18, %v1751_v14  ;;  %v1760_v60 = vsel %vm1759_vm1, %v3337_v12, %v1756_v55  ;;  %vm1773_vm3 = vweird.f32 %v3339_v18  ;;  %v4165_v12 = vld [vmem:[%s4531_s28] sm:$0xff] }
 0x8cd   : > { %3164 = vmatmul.msk.bf16.vlgmr.msrb.gmra.mxu3 %vm931_vm0, %v2043_v38  ;;  %v1765_v62 = vsel %vm1762_vm5, %v1764_v59, %v1760_v60  ;;  %vm1774_vm6 = vmor %vm1772_vm4, %vm1773_vm3 }
 0x8ce   : > { %2173 = vmatpush.bf16.msra.mxu3 %v4113_v8  ;;  %v1769_v22 = vsub.f32 1.0, %v1768_v19  ;;  %v1880_v23 = vmul.f32 %v1765_v62, %v3999_v40  ;;  %v1885_v62 = vmul.f32 %v4034_v58, %v3974_v50 }
 0x8d0   : > { %v1770_v44 = vmul.f32 %v3339_v18, %v1769_v22 }
 0x8d2   : > { %2174 = vmatpush.bf16.msra.mxu3 %v4119_v52  ;;  %v1771_v11 = vadd.f32 %v3339_v18, %v1770_v44 }
 0x8d4   : > { %v1775_v20 = vsel %vm1774_vm6, %v3339_v18, %v1771_v11 }
 0x8d5   : > { %v1780_v3 = vsel %vm1777_vm7, %v1779_v47, %v1775_v20  ;;  %v1893_v20 = vpop.xlane.xlu2 %1892 }
 0x8d6   : > { %2175 = vmatpush.bf16.msra.mxu3 %v4126_v5  ;;  %v1881_v35 = vmul.f32 %v1780_v3, %v4001_v10 }
 0x8d8   : > { %v1882_v48 = vpack.c.bf16 %v1881_v35, %v1880_v23  ;;  %v1895_v35 = vmul.f32 %v1893_v20, %v3976_v54 }
 0x8da   : > { %2176 = vmatpush.bf16.msra.mxu3 %v4132_v1  ;;  %1906 = vmatpush.bf16.msra.mxu1 %v1882_v48 }
 0x8db   : > { %3158 = vmatmul.msk.bf16.vlgmr.msrb.gmra.mxu0 %vm931_vm0, %v1882_v48 }
 0x8dd   : > { %3157 = vmatmul.msk.bf16.vlgmr.msra.gmra.mxu1 %vm1013_vm9, %v1883_v34 }
 0x8de   : > { %2177 = vmatpush.bf16.msra.mxu3 %v4140_v37  ;;  %1945 = vmatpush.bf16.msrb.mxu1 %v3904_v29 }
 0x8e2   : > { %2178 = vmatpush.bf16.msra.mxu3 %v4148_v56  ;;  %2137 = vmatpush.bf16.msra.mxu1 %v3688_v7 }
 0x8e6   : > { %2179 = vmatpush.bf16.msra.mxu3 %v4159_v4 }
 0x8ea   : > { %2180 = vmatpush.bf16.msra.mxu3 %v4165_v12 }
 0x8ee   : > { %2409 = vmatpush.bf16.msrb.mxu3 %v3942_v45  ;;  %v2285_v45 = vsel %vm931_vm0, %v4107_v36, 0 }
 0x8f2   : > { %2410 = vmatpush.bf16.msrb.mxu3 %v3949_v46  ;;  %v1890_v46 = vpop.xlane.xlu1 %1889 }
 0x8f3   : > { %v1894_v3 = vmul.f32 %v1890_v46, %v3976_v54  ;;  %v4191_v46 = vld [vmem:[%s3695_s4 + $0x2] ss:$0 sm:$0xff] }
 0x8f6   : > { %2411 = vmatpush.bf16.msrb.mxu3 %v3956_v51 }
 0x8fa   : > { %2412 = vmatpush.bf16.msrb.mxu3 %v3963_v53 }
 0x950   : > { %v2056_v34 = vpop.f32.mrf.mxu3 }
 0x951   : > { %v2061_v14 = vsel %vm1013_vm9, %v2056_v34, -inf }
 0x952   : > { %2062 = vmax.xlane.f32.xlu0 %v2061_v14 }
 0x958   : > { %v2058_v38 = vpop.f32.mrf.mxu3  ;;  %v1925_v44 = vpop.f32.mrf.mxu0 }
 0x959   : > { %v2064_v41 = vsel %vm1013_vm9, %v2058_v38, -inf  ;;  %v1930_v47 = vadd.f32 %v1925_v44, %v1884_v6 }
 0x95a   : > { %2065 = vmax.xlane.f32.xlu1 %v2064_v41  ;;  %v1908_v43 = vpop.f32.mrf.mxu1 }
 0x95b   : > { %v1932_v48 = vadd.f32 %v1930_v47, %v1894_v3 }
 0x960   : > { %v1927_v59 = vpop.f32.mrf.mxu0 }
 0x961   : > { %v1931_v23 = vadd.f32 %v1927_v59, %v1885_v62 }
 0x962   : > { %v1910_v17 = vpop.f32.mrf.mxu1 }
 0x963   : > { %v1934_v49 = vpack.c.bf16 %v1910_v17, %v1908_v43 }
 0x965   : > { %3159 = vmatmul.msk.bf16.vlgmr.msrb.gmra.mxu1 %vm931_vm0, %v1934_v49 }
 0x966   : > { %2294 = vmatpush.bf16.xpose.msrb.mxu1 %v2285_v45  ;;  %v3254_v45 = vld [vmem:[%s3863_s2 + $0x1] ss:$0 sm:$0xff] }
 0x9c5   : > { %v2063_v51 = vpop.xlane.xlu0 %2062 }
 0x9c6   : > { %v2067_v53 = vsub.f32 %v2056_v34, %v2063_v51  ;;  %v3162_v34 = vld [vmem:[%s3703_s10 + $0x28] sm:$0xff] }
 0x9c8   : > { %v2069_v18 = vmul.f32 1.442695, %v2067_v53 }
 0x9ca   : > { %3340 = vpow2.f32 %v2069_v18 }
 0x9cd   : > { %v2066_v19 = vpop.xlane.xlu1 %2065 }
 0x9ce   : > { %v2068_v55 = vsub.f32 %v2058_v38, %v2066_v19  ;;  %v1933_v38 = vadd.f32 %v1931_v23, %v1895_v35  ;;  %v1794_v19 = vadd.f32 %v3254_v45, %v1793_v57  ;;  %v3161_v35 = vld [vmem:[%s3703_s10 + $0x20] sm:$0xff] }
 0x9cf   : > { %2087 = vperm.xlu1 %3240, %v3161_v35  }
 0x9d0   : > { %v3341_v27 = vpop.eup %3340  ;;  %v2071_v22 = vmul.f32 1.442695, %v2068_v55  ;;  %v3154_v44 = vmul.f32 -1.442695, %v1794_v19 }
 0x9d1   : > { %v2073_v30 = vsel %vm1013_vm9, %v3341_v27, 0.0 }
 0x9d2   : > { %3342 = vpow2.f32 %v2071_v22  ;;  %2074 = vadd.xlane.f32.xlu2 %v2073_v30  ;;  %v1796_v22 = vadd.f32 %v3254_v45, %v1795_v26 }
 0x9d4   : > { %v3155_v6 = vmul.f32 -1.442695, %v1796_v22 }
 0x9d8   : > { %v3343_v2 = vpop.eup %3342 }
 0x9d9   : > { %v2076_v60 = vsel %vm1013_vm9, %v3343_v2, 0.0 }
 0x9da   : > { %2077 = vadd.xlane.f32.xlu0 %v2076_v60 }
 0x9e2   : > { %v1947_v11 = vpop.f32.mrf.mxu1 }
 0x9e3   : > { %v1952_v14 = vadd.f32 %v1947_v11, %v1932_v48 }
 0x9e5   : > { %v1954_v43 = vmul.f32 %v3987_v28, %v1952_v14  ;;  %v3256_v14 = vld [vmem:[%s3934_s6 + $0x1] ss:$0 sm:$0xff] }
 0x9ea   : > { %2092 = vperm.xlu2 %3238, %v3162_v34   ;;  %v1949_v33 = vpop.f32.mrf.mxu1 }
 0x9eb   : > { %v1953_v41 = vadd.f32 %v1949_v33, %v1933_v38 }
 0x9ed   : > { %v1955_v58 = vmul.f32 %v3989_v32, %v1953_v41 }
 0x9ef   : > { %v1956_v17 = vpack.c.bf16 %v1955_v58, %v1954_v43 }
 0x9f1   : > { %3160 = vmatmul.msk.bf16.vlgmr.msra.gmra.mxu2 %vm1515_vm11, %v1956_v17 }
 0xa45   : > { %v2075_v49 = vpop.xlane.xlu2 %2074 }
 0xa46   : > { %3344 = vrcp.f32 %v2075_v49 }
 0xa4c   : > { %v3345_v51 = vpop.eup %3344 }
 0xa4d   : > { %v2078_v53 = vpop.xlane.xlu0 %2077  ;;  %v4193_v18 = vmul.f32 %v3345_v51, %v3341_v27 }
 0xa4e   : > { %3346 = vrcp.f32 %v2078_v53 }
 0xa4f   : > { %v2100_v55 = vmul.f32 %v4191_v46, %v4193_v18  ;;  %3348 = vpow2.f32 %v3154_v44 }
 0xa50   : > { %3350 = vpow2.f32 %v3155_v6 }
 0xa51   : > { %v2102_v30 = vsel %vm1013_vm9, %v2100_v55, 0.0 }
 0xa52   : > { %2103 = vadd.xlane.f32.xlu0 %v2102_v30 }
 0xa54   : > { %v3347_v60 = vpop.eup %3346 }
 0xa55   : > { %v4198_v59 = vmul.f32 %v3347_v60, %v3343_v2  ;;  %v3349_v11 = vpop.eup %3348 }
 0xa56   : > { %v3351_v26 = vpop.eup %3350  ;;  %v1804_v62 = vadd.f32 1.0, %v3349_v11 }
 0xa57   : > { %v2101_v27 = vmul.f32 %v4191_v46, %v4198_v59  ;;  %v1805_v47 = vadd.f32 1.0, %v3351_v26 }
 0xa58   : > { %3352 = vrcp.f32 %v1804_v62  ;;  %v1817_v17 = vand.u32 2147483648, %v1804_v62  ;;  %vm1811_vm10 = vweird.f32 %v1804_v62  ;;  %v1815_v49 = vand.u32 2147483647, %v1804_v62 }
 0xa59   : > { %v2105_v57 = vsel %vm1013_vm9, %v2101_v27, 0.0  ;;  %3354 = vrcp.f32 %v1805_v47  ;;  %v1832_v51 = vand.u32 2147483648, %v1805_v47  ;;  %vm1826_vm14 = vweird.f32 %v1805_v47 }
 0xa5a   : > { %2106 = vadd.xlane.f32.xlu0 %v2105_v57  ;;  %v1830_v19 = vand.u32 2147483647, %v1805_v47  ;;  %v1818_v22 = vor.u32 1.1754944e-38, %v1817_v17  ;;  %vm1816_vm1 = vcmp.eq.f32.partialorder %v1815_v49, 8.507059e+37 }
 0xa5b   : > { %v1833_v6 = vor.u32 1.1754944e-38, %v1832_v51 }
 0xa5c   : > { %vm1831_vm3 = vcmp.eq.f32.partialorder %v1830_v19, 8.507059e+37 }
 0xa5e   : > { %v3353_v20 = vpop.eup %3352 }
 0xa5f   : > { %v3355_v3 = vpop.eup %3354  ;;  %v1807_v2 = vmul.f32 %v3353_v20, %v1804_v62  ;;  %vm1812_vm8 = vweird.f32 %v3353_v20 }
 0xa60   : > { %v1822_v23 = vmul.f32 %v3355_v3, %v1805_v47  ;;  %vm1827_vm12 = vweird.f32 %v3355_v3  ;;  %vm1813_vm13 = vmor %vm1811_vm10, %vm1812_vm8 }
 0xa61   : > { %v1808_v48 = vsub.f32 1.0, %v1807_v2  ;;  %vm1828_vm15 = vmor %vm1826_vm14, %vm1827_vm12 }
 0xa62   : > { %v1823_v34 = vsub.f32 1.0, %v1822_v23 }
 0xa63   : > { %v1809_v38 = vmul.f32 %v3353_v20, %v1808_v48 }
 0xa64   : > { %v1824_v41 = vmul.f32 %v3355_v3, %v1823_v34  ;;  %v2084_v34 = vpack.c.bf16 %v4198_v59, %v4193_v18  ;;  %v4233_v18 = vld [vmem:[%s4532_s9 + $0x28] sm:$0xff]  ;;  %v4239_v59 = vld [vmem:[%s4532_s9 + $0x20] sm:$0xff] }
 0xa65   : > { %v1810_v58 = vadd.f32 %v3353_v20, %v1809_v38  ;;  %v4253_v38 = vld [vmem:[%s4532_s9 + $0x10] sm:$0xff] }
 0xa66   : > { %v1825_v45 = vadd.f32 %v3355_v3, %v1824_v41 }
 0xa67   : > { %v1814_v53 = vsel %vm1813_vm13, %v3353_v20, %v1810_v58 }
 0xa68   : > { %v1829_v44 = vsel %vm1828_vm15, %v3355_v3, %v1825_v45  ;;  %v1819_v60 = vsel %vm1816_vm1, %v1818_v22, %v1814_v53 }
 0xa69   : > { %v1834_v57 = vsel %vm1831_vm3, %v1833_v6, %v1829_v44  ;;  %v1980_v11 = vsub.f32 1.0, %v1819_v60  ;;  %v1978_v23 = vmul.f32 %v1819_v60, %v3999_v40  ;;  %v4219_v40 = vld [vmem:[%s4532_s9 + $0x38] sm:$0xff] }
 0xa6a   : > { %v1981_v62 = vsub.f32 1.0, %v1834_v57  ;;  %v1979_v47 = vmul.f32 %v1834_v57, %v4001_v10  ;;  %v4227_v10 = vld [vmem:[%s4532_s9 + $0x30] sm:$0xff] }
 0xa74   : > { %v1971_v33 = vpop.f32.mrf.mxu2 }
 0xa75   : > { %v1972_v43 = vadd.f32 %v3256_v14, %v1971_v33  ;;  %v4259_v33 = vld [vmem:[%s4532_s9 + $0x8] sm:$0xff] }
 0xa77   : > { %3356 = vtanh.f32 %v1972_v43 }
 0xa7c   : > { %v1973_v55 = vpop.f32.mrf.mxu2 }
 0xa7d   : > { %v1974_v30 = vadd.f32 %v3256_v14, %v1973_v55  ;;  %v3357_v27 = vpop.eup %3356  ;;  %v4247_v14 = vld [vmem:[%s4532_s9 + $0x18] sm:$0xff] }
 0xa7e   : > { %v1982_v26 = vmul.f32 %v3357_v27, %v1980_v11 }
 0xa7f   : > { %3358 = vtanh.f32 %v1974_v30  ;;  %v4271_v30 = vpop.permute.xlu1 %2087 }
 0xa80   : > { %v4207_v35 = vadd.f32 %v1982_v26, %v1978_v23  ;;  %v2095_v57 = vmul.f32 %v4271_v30, %v3820_v63  ;;  %v4275_v26 = vpop.permute.xlu2 %2092 }
 0xa85   : > { %v3359_v2 = vpop.eup %3358 }
 0xa86   : > { %v1983_v20 = vmul.f32 %v3359_v2, %v1981_v62 }
 0xa88   : > { %v4209_v48 = vadd.f32 %v1983_v20, %v1979_v47  ;;  %v2096_v20 = vmul.f32 %v4275_v26, %v3820_v63 }
 0xa8a   : > { %v2083_v3 = vpack.c.bf16 %v4209_v48, %v4207_v35 }
 0xa8c   : > { %2120 = vmatpush.bf16.msra.mxu0 %v2083_v3  ;;  %3166 = vmatmul.msk.bf16.vlgmr.msra.gmra.mxu1 %vm931_vm0, %v2083_v3 }
 0xa8d   : > { %2366 = vmatpush.bf16.msra.mxu1 %v3876_v16 }
 0xa8f   : > { %3165 = vmatmul.msk.bf16.vlgmr.msra.gmra.mxu0 %vm1013_vm9, %v2084_v34 }
 0xa90   : > { %2227 = vmatpush.bf16.msrb.mxu0 %v4219_v40 }
 0xa94   : > { %2228 = vmatpush.bf16.msrb.mxu0 %v4227_v10 }
 0xa98   : > { %2229 = vmatpush.bf16.msrb.mxu0 %v4233_v18 }
 0xa9c   : > { %2230 = vmatpush.bf16.msrb.mxu0 %v4239_v59  ;;  %3172 = vmatmul.msk.bf16.vlgmr.msrb.gmra.mxu1 %vm931_vm0, %v4107_v36  ;;  %v4265_v36 = vld [vmem:[%s4532_s9] sm:$0xff] }
 0xaa0   : > { %2231 = vmatpush.bf16.msrb.mxu0 %v4247_v14 }
 0xaa4   : > { %2232 = vmatpush.bf16.msrb.mxu0 %v4253_v38 }
 0xaa8   : > { %2233 = vmatpush.bf16.msrb.mxu0 %v4259_v33 }
 0xaac   : > { %2234 = vmatpush.bf16.msrb.mxu0 %v4265_v36 }
 0xac5   : > { %v2104_v55 = vpop.xlane.xlu0 %2103 }
 0xac6   : > { %v2108_v34 = vmul.f32 %v2104_v55, %v3835_v9 }
 0xacd   : > { %v2107_v22 = vpop.xlane.xlu0 %2106 }
 0xb09   : > { %v2139_v41 = vpop.f32.mrf.mxu1 }
 0xb0a   : > { %v2144_v3 = vadd.f32 %v2139_v41, %v2095_v57 }
 0xb0c   : > { %v2122_v43 = vpop.f32.mrf.mxu0 }
 0xb11   : > { %v2141_v58 = vpop.f32.mrf.mxu1 }
 0xb14   : > { %v2124_v17 = vpop.f32.mrf.mxu0 }
 0xb15   : > { %v2148_v49 = vpack.c.bf16 %v2124_v17, %v2122_v43  ;;  %v2145_v43 = vadd.f32 %v2141_v58, %v2096_v20  ;;  %v2109_v17 = vmul.f32 %v2107_v22, %v3835_v9 }
 0xb17   : > { %3167 = vmatmul.msk.bf16.vlgmr.msrb.gmra.mxu2 %vm931_vm0, %v2148_v49  ;;  %v2146_v49 = vadd.f32 %v2144_v3, %v2108_v34 }
 0xb19   : > { %v2296_v45 = vpop.f32.mrf.mxu1 }
 0xb1a   : > { %v2301_v51 = vsel %vm1013_vm9, %v2296_v45, -inf }
 0xb1b   : > { %2302 = vmax.xlane.f32.xlu0 %v2301_v51 }
 0xb21   : > { %v2298_v53 = vpop.f32.mrf.mxu1 }
 0xb22   : > { %v2304_v19 = vsel %vm1013_vm9, %v2298_v53, -inf }
 0xb23   : > { %2305 = vmax.xlane.f32.xlu1 %v2304_v19  ;;  %v2147_v19 = vadd.f32 %v2145_v43, %v2109_v17 }
 0xb8e   : > { %v2303_v44 = vpop.xlane.xlu0 %2302 }
 0xb8f   : > { %v2307_v60 = vsub.f32 %v2296_v45, %v2303_v44  ;;  %v3257_v45 = vld [vmem:[%s3616_s29 + $0x3] ss:$0 sm:$0xff]  ;;  %s3199_s29 = sshll.u32 %s4541_s3, 4 }
 0xb90   : > { %v2437_v22 = vadd.f32 %v4053_v0, %v3257_v45  ;;  %s876_s13 = scalar_lea.vmem %s4506_s26, %s3199_s29 }
 0xb91   : > { %v2309_v6 = vmul.f32 1.442695, %v2307_v60 }
 0xb93   : > { %3360 = vpow2.f32 %v2309_v6 }
 0xb96   : > { %v2306_v27 = vpop.xlane.xlu1 %2305 }
 0xb97   : > { %v2308_v11 = vsub.f32 %v2298_v53, %v2306_v27  ;;  %v2436_v27 = vadd.f32 %v4046_v15, %v3257_v45 }
 0xb99   : > { %v3361_v62 = vpop.eup %3360  ;;  %v2311_v2 = vmul.f32 1.442695, %v2308_v11  ;;  %v2438_v58 = vsel %vm931_vm0, %v2436_v27, 0.0  ;;  %v2441_v11 = vsel %vm931_vm0, %v2437_v22, 0.0 }
 0xb9a   : > { %v2161_v23 = vpop.f32.mrf.mxu2  ;;  %v2313_v47 = vsel %vm1013_vm9, %v3361_v62, 0.0 }
 0xb9b   : > { %3362 = vpow2.f32 %v2311_v2  ;;  %2314 = vadd.xlane.f32.xlu2 %v2313_v47  ;;  %v2166_v53 = vadd.f32 %v2161_v23, %v2146_v49 }
 0xb9d   : > { %v2168_v41 = vmul.f32 %v3846_v21, %v2166_v53 }
 0xba1   : > { %v3363_v51 = vpop.eup %3362 }
 0xba2   : > { %v2163_v44 = vpop.f32.mrf.mxu2  ;;  %v2316_v60 = vsel %vm1013_vm9, %v3363_v51, 0.0 }
 0xba3   : > { %v2167_v6 = vadd.f32 %v2163_v44, %v2147_v19  ;;  %2317 = vadd.xlane.f32.xlu0 %v2316_v60  ;;  %v3259_v60 = vld [vmem:[%s3854_s8 + $0x2] ss:$0 sm:$0xff] }
 0xba5   : > { %v2169_v57 = vmul.f32 %v3848_v24, %v2167_v6 }
 0xba7   : > { %v2170_v55 = vpack.c.bf16 %v2169_v57, %v2168_v41 }
 0xba9   : > { %2181 = vmatmul.bf16.vlgmr.msra.gmra.mxu3 %v2170_v55  ;;  %2235 = vmatmul.bf16.vlgmr.msrb.gmra.mxu0 %v2170_v55 }
 0xbaa   : > { %2602 = vmatpush.bf16.msra.mxu3 %v3643_v25 }
 0xbab   : > { %2439 = vadd.xlane.f32.xlu0 %v2438_v58 }
 0xbb3   : > { %2442 = vadd.xlane.f32.xlu0 %v2441_v11 }
 0xc0e   : > { %v2315_v2 = vpop.xlane.xlu2 %2314 }
 0xc0f   : > { %3364 = vrcp.f32 %v2315_v2 }
 0xc15   : > { %v3365_v15 = vpop.eup %3364 }
 0xc16   : > { %v2318_v23 = vpop.xlane.xlu0 %2317  ;;  %v4291_v47 = vmul.f32 %v3365_v15, %v3361_v62 }
 0xc17   : > { %3366 = vrcp.f32 %v2318_v23 }
 0xc18   : > { %v2329_v20 = vmul.f32 %v4191_v46, %v4291_v47 }
 0xc1a   : > { %v2331_v3 = vsel %vm1013_vm9, %v2329_v20, 0.0 }
 0xc1b   : > { %2332 = vadd.xlane.f32.xlu1 %v2331_v3 }
 0xc1d   : > { %v3367_v25 = vpop.eup %3366 }
 0xc1e   : > { %v2440_v34 = vpop.xlane.xlu0 %2439  ;;  %v4296_v0 = vmul.f32 %v3367_v25, %v3363_v51 }
 0xc1f   : > { %v2444_v43 = vmul.f32 %v2440_v34, %v3633_v13 }
 0xc20   : > { %v2330_v17 = vmul.f32 %v4191_v46, %v4296_v0 }
 0xc21   : > { %v4301_v49 = vsub.f32 %v2436_v27, %v2444_v43 }
 0xc22   : > { %v2334_v62 = vsel %vm1013_vm9, %v2330_v17, 0.0 }
 0xc23   : > { %2335 = vadd.xlane.f32.xlu2 %v2334_v62  ;;  %v2448_v45 = vmul.f32 %v4301_v49, %v4301_v49 }
 0xc25   : > { %v2450_v53 = vsel %vm931_vm0, %v2448_v45, 0.0 }
 0xc26   : > { %2451 = vadd.xlane.f32.xlu0 %v2450_v53  ;;  %v2443_v19 = vpop.xlane.xlu0 %2442 }
 0xc27   : > { %v2445_v51 = vmul.f32 %v2443_v19, %v3633_v13 }
 0xc29   : > { %v4308_v44 = vsub.f32 %v2437_v22, %v2445_v51 }
 0xc2b   : > { %v2449_v46 = vmul.f32 %v4308_v44, %v4308_v44 }
 0xc2c   : > { %v2182_v6 = vpop.f32.mrf.mxu3 }
 0xc2d   : > { %v2183_v27 = vadd.f32 %v3259_v60, %v2182_v6  ;;  %v2453_v41 = vsel %vm931_vm0, %v2449_v46, 0.0 }
 0xc2e   : > { %2454 = vadd.xlane.f32.xlu0 %v2453_v41 }
 0xc2f   : > { %v3168_v57 = vmul.f32 -1.442695, %v2183_v27 }
 0xc31   : > { %3368 = vpow2.f32 %v3168_v57 }
 0xc34   : > { %v2184_v55 = vpop.f32.mrf.mxu3 }
 0xc35   : > { %v2185_v58 = vadd.f32 %v3259_v60, %v2184_v55 }
 0xc37   : > { %v3369_v11 = vpop.eup %3368  ;;  %v3169_v2 = vmul.f32 -1.442695, %v2185_v58 }
 0xc38   : > { %v2193_v15 = vadd.f32 1.0, %v3369_v11 }
 0xc39   : > { %3370 = vpow2.f32 %v3169_v2 }
 0xc3a   : > { %3372 = vrcp.f32 %v2193_v15  ;;  %v2206_v45 = vand.u32 2147483648, %v2193_v15  ;;  %vm2200_vm5 = vweird.f32 %v2193_v15  ;;  %v2204_v19 = vand.u32 2147483647, %v2193_v15 }
 0xc3c   : > { %v2207_v27 = vor.u32 1.1754944e-38, %v2206_v45  ;;  %vm2205_vm10 = vcmp.eq.f32.partialorder %v2204_v19, 8.507059e+37 }
 0xc3f   : > { %v3371_v22 = vpop.eup %3370 }
 0xc40   : > { %v3373_v23 = vpop.eup %3372  ;;  %v2194_v20 = vadd.f32 1.0, %v3371_v22 }
 0xc41   : > { %v2196_v3 = vmul.f32 %v3373_v23, %v2193_v15  ;;  %vm2201_vm4 = vweird.f32 %v3373_v23 }
 0xc42   : > { %3374 = vrcp.f32 %v2194_v20  ;;  %vm2202_vm6 = vmor %vm2200_vm5, %vm2201_vm4  ;;  %v2221_v51 = vand.u32 2147483648, %v2194_v20  ;;  %v2219_v6 = vand.u32 2147483647, %v2194_v20  ;;  %vm2215_vm8 = vweird.f32 %v2194_v20 }
 0xc43   : > { %v2197_v25 = vsub.f32 1.0, %v2196_v3 }
 0xc44   : > { %v2222_v55 = vor.u32 1.1754944e-38, %v2221_v51  ;;  %vm2220_vm13 = vcmp.eq.f32.partialorder %v2219_v6, 8.507059e+37 }
 0xc45   : > { %v2198_v34 = vmul.f32 %v3373_v23, %v2197_v25 }
 0xc47   : > { %v2199_v62 = vadd.f32 %v3373_v23, %v2198_v34 }
 0xc48   : > { %v3375_v43 = vpop.eup %3374 }
 0xc49   : > { %v2211_v17 = vmul.f32 %v3375_v43, %v2194_v20  ;;  %v2203_v46 = vsel %vm2202_vm6, %v3373_v23, %v2199_v62  ;;  %vm2216_vm7 = vweird.f32 %v3375_v43  ;;  %v2326_v23 = vpack.c.bf16 %v4296_v0, %v4291_v47 }
 0xc4a   : > { %v2208_v57 = vsel %vm2205_vm10, %v2207_v27, %v2203_v46  ;;  %vm2217_vm12 = vmor %vm2215_vm8, %vm2216_vm7 }
 0xc4b   : > { %v2212_v53 = vsub.f32 1.0, %v2211_v17  ;;  %v2323_v2 = vmul.f32 %v2208_v57, %v4207_v35 }
 0xc4d   : > { %v2213_v60 = vmul.f32 %v3375_v43, %v2212_v53 }
 0xc4f   : > { %v2214_v41 = vadd.f32 %v3375_v43, %v2213_v60 }
 0xc51   : > { %v2218_v58 = vsel %vm2217_vm12, %v3375_v43, %v2214_v41 }
 0xc52   : > { %v2223_v11 = vsel %vm2220_vm13, %v2222_v55, %v2218_v58 }
 0xc53   : > { %v2324_v15 = vmul.f32 %v2223_v11, %v4209_v48 }
 0xc55   : > { %v2325_v22 = vpack.c.bf16 %v2324_v15, %v2323_v2 }
 0xc57   : > { %2349 = vmatpush.bf16.msra.mxu2 %v2325_v22  ;;  %3174 = vmatmul.msk.bf16.vlgmr.msra.gmra.mxu1 %vm931_vm0, %v2325_v22 }
 0xc5a   : > { %3173 = vmatmul.msk.bf16.vlgmr.msra.gmra.mxu2 %vm1013_vm9, %v2326_v23 }
 0xc5b   : > { %2388 = vmatpush.bf16.msrb.mxu2 %v3904_v29 }
 0xc5f   : > { %2580 = vmatpush.bf16.msra.mxu2 %v3688_v7 }
 0xc99   : > { %v2452_v20 = vpop.xlane.xlu0 %2451 }
 0xc9a   : > { %v2456_v3 = vmul.f32 %v2452_v20, %v3633_v13 }
 0xc9c   : > { %v2458_v25 = vadd.f32 1e-12, %v2456_v3 }
 0xc9e   : > { %3376 = vrsqrt.f32 %v2458_v25  ;;  %vm2466_vm15 = vweird.f32 %v2458_v25 }
 0xca1   : > { %v2455_v34 = vpop.xlane.xlu0 %2454 }
 0xca2   : > { %v2457_v43 = vmul.f32 %v2455_v34, %v3633_v13 }
 0xca4   : > { %v3377_v17 = vpop.eup %3376  ;;  %v2459_v62 = vadd.f32 1e-12, %v2457_v43 }
 0xca5   : > { %v2461_v45 = vmul.f32 %v3377_v17, %v2458_v25  ;;  %vm2467_vm14 = vweird.f32 %v3377_v17 }
 0xca6   : > { %3378 = vrsqrt.f32 %v2459_v62  ;;  %vm2468_vm1 = vmor %vm2466_vm15, %vm2467_vm14  ;;  %vm2476_vm4 = vweird.f32 %v2459_v62 }
 0xca7   : > { %v2462_v53 = vmul.f32 %v3377_v17, %v2461_v45  ;;  %v2327_v45 = vmul.f32 %v4271_v30, %v3974_v50 }
 0xca9   : > { %v2463_v47 = vmul.f32 0.5, %v2462_v53  ;;  %v2333_v53 = vpop.xlane.xlu1 %2332 }
 0xcab   : > { %v2464_v0 = vsub.f32 1.5, %v2463_v47 }
 0xcac   : > { %v3379_v19 = vpop.eup %3378 }
 0xcad   : > { %v2465_v51 = vmul.f32 %v3377_v17, %v2464_v0  ;;  %v2471_v60 = vmul.f32 %v3379_v19, %v2459_v62  ;;  %vm2477_vm3 = vweird.f32 %v3379_v19  ;;  %v3177_v62 = vld [vmem:[%s3703_s10 + $0x30] sm:$0xff] }
 0xcae   : > { %vm2478_vm5 = vmor %vm2476_vm4, %vm2477_vm3 }
 0xcaf   : > { %v2472_v7 = vmul.f32 %v3379_v19, %v2471_v60  ;;  %v2469_v46 = vsel %vm2468_vm1, %v3377_v17, %v2465_v51  ;;  %v2336_v60 = vpop.xlane.xlu2 %2335 }
 0xcb0   : > { %v2480_v13 = vmul.f32 %v2469_v46, %v4301_v49 }
 0xcb1   : > { %v2473_v6 = vmul.f32 0.5, %v2472_v7  ;;  %v2337_v7 = vmul.f32 %v2333_v53, %v3976_v54 }
 0xcb2   : > { %v2482_v58 = vmul.f32 %v4082_v31, %v2480_v13  ;;  %v2722_v49 = vmul.f32 %v4088_v39, %v2480_v13 }
 0xcb3   : > { %v2474_v27 = vsub.f32 1.5, %v2473_v6  ;;  %v2338_v6 = vmul.f32 %v2336_v60, %v3976_v54 }
 0xcb4   : > { %v2484_v2 = vadd.f32 %v4096_v61, %v2482_v58 }
 0xcb5   : > { %v2475_v41 = vmul.f32 %v3379_v19, %v2474_v27 }
 0xcb7   : > { %v2479_v57 = vsel %vm2478_vm5, %v3379_v19, %v2475_v41  ;;  %v2328_v19 = vmul.f32 %v4275_v26, %v3974_v50 }
 0xcb8   : > { %v2481_v55 = vmul.f32 %v2479_v57, %v4308_v44  ;;  %v2236_v44 = vpop.f32.mrf.mxu0 }
 0xcba   : > { %v2483_v11 = vmul.f32 %v4082_v31, %v2481_v55  ;;  %v2723_v31 = vmul.f32 %v4088_v39, %v2481_v55 }
 0xcbc   : > { %v2485_v15 = vadd.f32 %v4096_v61, %v2483_v11 }
 0xcbe   : > { %v2486_v22 = vpack.c.bf16 %v2485_v15, %v2484_v2 }
 0xcc0   : > { %v2488_v23 = vsel %vm931_vm0, %v2486_v22, 0  ;;  %v2238_v20 = vpop.f32.mrf.mxu0 }
 0xcc1   : > { %2497 = vmatpush.bf16.xpose.msra.mxu0 %v2488_v23 }
 0xcc8   : > { %3180 = vmatmul.msk.bf16.vlgmr.msra.gmra.mxu0 %vm931_vm0, %v2486_v22 }
 0xcc9   : > { %2616 = vmatpush.bf16.msrb.mxu0 %v4113_v8  ;;  %v3450_v8 = vld [vmem:[%s4491_s11 + $0x18] sm:$0xff] }
 0xccd   : > { %2617 = vmatpush.bf16.msrb.mxu0 %v4119_v52  ;;  %v2725_v52 = vadd.f32 %v4103_v42, %v2723_v31 }
 0xcd1   : > { %2618 = vmatpush.bf16.msrb.mxu0 %v4126_v5  ;;  %v2724_v5 = vadd.f32 %v4103_v42, %v2722_v49 }
 0xcd4   : > { %v2368_v17 = vpop.f32.mrf.mxu1 }
 0xcd5   : > { %2619 = vmatpush.bf16.msrb.mxu0 %v4132_v1  ;;  %v3451_v1 = vld [vmem:[%s4491_s11 + $0x10] sm:$0xff]  ;;  %v2373_v51 = vadd.f32 %v2368_v17, %v2327_v45 }
 0xcd7   : > { %v2375_v27 = vadd.f32 %v2373_v51, %v2337_v7 }
 0xcd9   : > { %2620 = vmatpush.bf16.msrb.mxu0 %v4140_v37  ;;  %v4350_v37 = vpack.c.bf16 %v2725_v52, %v2724_v5  ;;  %v3258_v5 = vld [vmem:[%s3863_s2 + $0x2] ss:$0 sm:$0xff] }
 0xcdb   : > { %v2728_v42 = vsel %vm931_vm0, %v4350_v37, 0 }
 0xcdc   : > { %v2370_v47 = vpop.f32.mrf.mxu1 }
 0xcdd   : > { %2621 = vmatpush.bf16.msrb.mxu0 %v4148_v56  ;;  %v2351_v61 = vpop.f32.mrf.mxu2  ;;  %v2374_v46 = vadd.f32 %v2370_v47, %v2328_v19 }
 0xcdf   : > { %v2376_v41 = vadd.f32 %v2374_v46, %v2338_v6 }
 0xce1   : > { %2622 = vmatpush.bf16.msrb.mxu0 %v4159_v4  ;;  %v3452_v4 = vld [vmem:[%s4491_s11 + $0x8] sm:$0xff] }
 0xce5   : > { %2623 = vmatpush.bf16.msrb.mxu0 %v4165_v12  ;;  %v2353_v56 = vpop.f32.mrf.mxu2  ;;  %v3453_v12 = vld [vmem:[%s4491_s11] sm:$0xff] }
 0xce6   : > { %v2377_v39 = vpack.c.bf16 %v2353_v56, %v2351_v61  ;;  %v2239_v56 = vadd.f32 %v3258_v5, %v2238_v20  ;;  %v3260_v20 = vld [vmem:[%s3934_s6 + $0x2] ss:$0 sm:$0xff] }
 0xce8   : > { %3175 = vmatmul.msk.bf16.vlgmr.msrb.gmra.mxu2 %vm931_vm0, %v2377_v39 }
 0xce9   : > { %2852 = vmatpush.bf16.msra.mxu0 %v3450_v8  ;;  %2737 = vmatpush.bf16.xpose.msrb.mxu2 %v2728_v42  ;;  %v3171_v42 = vmul.f32 -1.442695, %v2239_v56 }
 0xced   : > { %2853 = vmatpush.bf16.msra.mxu0 %v3451_v1  ;;  %v2237_v1 = vadd.f32 %v3258_v5, %v2236_v44 }
 0xcef   : > { %v3170_v39 = vmul.f32 -1.442695, %v2237_v1 }
 0xcf1   : > { %2854 = vmatpush.bf16.msra.mxu0 %v3452_v4  ;;  %v3178_v4 = vld [vmem:[%s3703_s10 + $0x38] sm:$0xff] }
 0xcf5   : > { %2855 = vmatpush.bf16.msra.mxu0 %v3453_v12 }
 0xd45   : > { %v2499_v3 = vpop.f32.mrf.mxu0 }
 0xd46   : > { %v2504_v25 = vsel %vm1013_vm9, %v2499_v3, -inf }
 0xd47   : > { %2505 = vmax.xlane.f32.xlu0 %v2504_v25 }
 0xd4d   : > { %v2501_v34 = vpop.f32.mrf.mxu0 }
 0xd4e   : > { %v2507_v43 = vsel %vm1013_vm9, %v2501_v34, -inf }
 0xd4f   : > { %2508 = vmax.xlane.f32.xlu1 %v2507_v43 }
 0xd68   : > { %2530 = vperm.xlu1 %3240, %v3177_v62  }
 0xd6b   : > { %v2390_v0 = vpop.f32.mrf.mxu2 }
 0xd6c   : > { %v2395_v13 = vadd.f32 %v2390_v0, %v2375_v27 }
 0xd6e   : > { %v2397_v30 = vmul.f32 %v3987_v28, %v2395_v13 }
 0xd73   : > { %v2392_v57 = vpop.f32.mrf.mxu2 }
 0xd74   : > { %v2396_v55 = vadd.f32 %v2392_v57, %v2376_v41 }
 0xd76   : > { %v2398_v58 = vmul.f32 %v3989_v32, %v2396_v55 }
 0xd78   : > { %v2399_v11 = vpack.c.bf16 %v2398_v58, %v2397_v30 }
 0xd7a   : > { %3176 = vmatmul.msk.bf16.vlgmr.msrb.gmra.mxu3 %vm1515_vm11, %v2399_v11 }
 0xdba   : > { %v2506_v26 = vpop.xlane.xlu0 %2505 }
 0xdbb   : > { %v2510_v2 = vsub.f32 %v2499_v3, %v2506_v26 }
 0xdbd   : > { %v2512_v15 = vmul.f32 1.442695, %v2510_v2 }
 0xdbf   : > { %3380 = vpow2.f32 %v2512_v15 }
 0xdc2   : > { %v2509_v22 = vpop.xlane.xlu1 %2508 }
 0xdc3   : > { %v2511_v23 = vsub.f32 %v2501_v34, %v2509_v22 }
 0xdc5   : > { %v4373_v31 = vpop.eup %3380  ;;  %v2514_v61 = vmul.f32 1.442695, %v2511_v23 }
 0xdc6   : > { %v2516_v49 = vsel %vm1013_vm9, %v4373_v31, 0.0 }
 0xdc7   : > { %3382 = vpow2.f32 %v2514_v61  ;;  %2517 = vadd.xlane.f32.xlu2 %v2516_v49 }
 0xdc8   : > { %3384 = vpow2.f32 %v3170_v39 }
 0xdc9   : > { %3386 = vpow2.f32 %v3171_v42 }
 0xdcd   : > { %v4377_v8 = vpop.eup %3382 }
 0xdce   : > { %v2519_v52 = vsel %vm1013_vm9, %v4377_v8, 0.0  ;;  %v3385_v12 = vpop.eup %3384 }
 0xdcf   : > { %2520 = vadd.xlane.f32.xlu0 %v2519_v52  ;;  %v3387_v3 = vpop.eup %3386  ;;  %v2247_v25 = vadd.f32 1.0, %v3385_v12 }
 0xdd0   : > { %v2248_v34 = vadd.f32 1.0, %v3387_v3 }
 0xdd1   : > { %3388 = vrcp.f32 %v2247_v25  ;;  %v2260_v7 = vand.u32 2147483648, %v2247_v25  ;;  %vm2254_vm7 = vweird.f32 %v2247_v25  ;;  %v2258_v46 = vand.u32 2147483647, %v2247_v25 }
 0xdd2   : > { %3390 = vrcp.f32 %v2248_v34  ;;  %v2275_v27 = vand.u32 2147483648, %v2248_v34  ;;  %vm2269_vm12 = vweird.f32 %v2248_v34  ;;  %v2273_v41 = vand.u32 2147483647, %v2248_v34 }
 0xdd3   : > { %v2261_v55 = vor.u32 1.1754944e-38, %v2260_v7  ;;  %vm2259_vm14 = vcmp.eq.f32.partialorder %v2258_v46, 8.507059e+37 }
 0xdd4   : > { %v2276_v26 = vor.u32 1.1754944e-38, %v2275_v27  ;;  %vm2274_vm15 = vcmp.eq.f32.partialorder %v2273_v41, 8.507059e+37 }
 0xdd7   : > { %v3389_v43 = vpop.eup %3388 }
 0xdd8   : > { %v3391_v17 = vpop.eup %3390  ;;  %v2250_v62 = vmul.f32 %v3389_v43, %v2247_v25  ;;  %vm2255_vm6 = vweird.f32 %v3389_v43 }
 0xdd9   : > { %v2265_v45 = vmul.f32 %v3391_v17, %v2248_v34  ;;  %vm2270_vm8 = vweird.f32 %v3391_v17  ;;  %vm2256_vm10 = vmor %vm2254_vm7, %vm2255_vm6 }
 0xdda   : > { %v2251_v53 = vsub.f32 1.0, %v2250_v62  ;;  %vm2271_vm13 = vmor %vm2269_vm12, %vm2270_vm8 }
 0xddb   : > { %v2266_v44 = vsub.f32 1.0, %v2265_v45 }
 0xddc   : > { %v2252_v47 = vmul.f32 %v3389_v43, %v2251_v53 }
 0xddd   : > { %v2267_v19 = vmul.f32 %v3391_v17, %v2266_v44 }
 0xdde   : > { %v2253_v60 = vadd.f32 %v3389_v43, %v2252_v47 }
 0xddf   : > { %2535 = vperm.xlu2 %3238, %v3178_v4   ;;  %v2268_v6 = vadd.f32 %v3391_v17, %v2267_v19 }
 0xde0   : > { %v2257_v13 = vsel %vm2256_vm10, %v3389_v43, %v2253_v60  ;;  %v4420_v43 = vpop.permute.xlu1 %2530 }
 0xde1   : > { %v2272_v58 = vsel %vm2271_vm13, %v3391_v17, %v2268_v6  ;;  %v2262_v11 = vsel %vm2259_vm14, %v2261_v55, %v2257_v13 }
 0xde2   : > { %v2277_v15 = vsel %vm2274_vm15, %v2276_v26, %v2272_v58  ;;  %v2423_v22 = vsub.f32 1.0, %v2262_v11  ;;  %v2421_v52 = vmul.f32 %v2262_v11, %v4207_v35 }
 0xde3   : > { %v2424_v61 = vsub.f32 1.0, %v2277_v15  ;;  %v2422_v5 = vmul.f32 %v2277_v15, %v4209_v48 }
 0xdfd   : > { %v2414_v0 = vpop.f32.mrf.mxu3 }
 0xdfe   : > { %v2415_v51 = vadd.f32 %v3260_v20, %v2414_v0 }
 0xe00   : > { %3392 = vtanh.f32 %v2415_v51 }
 0xe05   : > { %v2416_v57 = vpop.f32.mrf.mxu3 }
 0xe06   : > { %v2417_v30 = vadd.f32 %v3260_v20, %v2416_v57  ;;  %v3393_v2 = vpop.eup %3392 }
 0xe07   : > { %v2425_v23 = vmul.f32 %v3393_v2, %v2423_v22 }
 0xe08   : > { %3394 = vtanh.f32 %v2417_v30  ;;  %v2873_v30 = vld [vmem:[%s4504_s24] sm:$0xf] }
 0xe09   : > { %v4386_v56 = vadd.f32 %v2425_v23, %v2421_v52  ;;  %v2875_v58 = vsel %vm1090_vm2, %v2873_v30, 0 }
 0xe0e   : > { %v3395_v49 = vpop.eup %3394 }
 0xe0f   : > { %v2426_v1 = vmul.f32 %v3395_v49, %v2424_v61 }
 0xe11   : > { %v4388_v39 = vadd.f32 %v2426_v1, %v2422_v5 }
 0xe13   : > { %v4392_v4 = vpack.c.bf16 %v4388_v39, %v4386_v56 }
 0xe15   : > { %2563 = vmatpush.bf16.msrb.mxu1 %v4392_v4  ;;  %3182 = vmatmul.msk.bf16.vlgmr.msra.gmra.mxu2 %vm931_vm0, %v4392_v4 }
 0xe16   : > { %2809 = vmatpush.bf16.msra.mxu2 %v3876_v16  ;;  %v4409_v16 = vld [vmem:[%s3695_s4 + $0x3] ss:$0 sm:$0xff] }
 0xe19   : > { %2670 = vmatpush.bf16.msra.mxu1 %v4219_v40 }
 0xe1d   : > { %2671 = vmatpush.bf16.msra.mxu1 %v4227_v10 }
 0xe21   : > { %2672 = vmatpush.bf16.msra.mxu1 %v4233_v18 }
 0xe25   : > { %2673 = vmatpush.bf16.msra.mxu1 %v4239_v59  ;;  %3188 = vmatmul.msk.bf16.vlgmr.msrb.gmra.mxu2 %vm931_vm0, %v4350_v37 }
 0xe29   : > { %2674 = vmatpush.bf16.msra.mxu1 %v4247_v14 }
 0xe2d   : > { %2675 = vmatpush.bf16.msra.mxu1 %v4253_v38 }
 0xe31   : > { %2676 = vmatpush.bf16.msra.mxu1 %v4259_v33 }
 0xe35   : > { %2677 = vmatpush.bf16.msra.mxu1 %v4265_v36 }
 0xe3a   : > { %v2518_v35 = vpop.xlane.xlu2 %2517 }
 0xe3b   : > { %3396 = vrcp.f32 %v2518_v35 }
 0xe41   : > { %v3397_v48 = vpop.eup %3396 }
 0xe42   : > { %v2521_v40 = vpop.xlane.xlu0 %2520  ;;  %v2524_v10 = vmul.f32 %v3397_v48, %v4373_v31  ;;  %v4426_v19 = vpop.permute.xlu2 %2535 }
 0xe43   : > { %3398 = vrcp.f32 %v2521_v40  ;;  %v2539_v26 = vmul.f32 %v4426_v19, %v3820_v63 }
 0xe44   : > { %v2543_v18 = vmul.f32 %v4409_v16, %v2524_v10 }
 0xe46   : > { %v2545_v59 = vsel %vm1013_vm9, %v2543_v18, 0.0 }
 0xe47   : > { %2546 = vadd.xlane.f32.xlu0 %v2545_v59 }
 0xe49   : > { %v3399_v14 = vpop.eup %3398 }
 0xe4a   : > { %v2525_v38 = vmul.f32 %v3399_v14, %v4377_v8  ;;  %v2538_v8 = vmul.f32 %v4420_v43, %v3820_v63 }
 0xe4c   : > { %v2527_v33 = vpack.c.bf16 %v2525_v38, %v2524_v10  ;;  %v2544_v36 = vmul.f32 %v4409_v16, %v2525_v38 }
 0xe4e   : > { %3181 = vmatmul.msk.bf16.vlgmr.msrb.gmra.mxu1 %vm1013_vm9, %v2527_v33  ;;  %v2548_v37 = vsel %vm1013_vm9, %v2544_v36, 0.0 }
 0xe4f   : > { %2549 = vadd.xlane.f32.xlu0 %v2548_v37  ;;  %2884 = vmatpush.bf16.msrb.mxu1 %v2875_v58 }
 0xe98   : > { %v2582_v42 = vpop.f32.mrf.mxu2 }
 0xe99   : > { %v2587_v62 = vadd.f32 %v2582_v42, %v2538_v8 }
 0xea0   : > { %v2584_v12 = vpop.f32.mrf.mxu2 }
 0xea1   : > { %v2588_v15 = vadd.f32 %v2584_v12, %v2539_v26 }
 0xea8   : > { %v2739_v31 = vpop.f32.mrf.mxu2 }
 0xea9   : > { %v2744_v3 = vsel %vm1013_vm9, %v2739_v31, -inf }
 0xeaa   : > { %2745 = vmax.xlane.f32.xlu0 %v2744_v3 }
 0xeb0   : > { %v2741_v25 = vpop.f32.mrf.mxu2 }
 0xeb1   : > { %v2747_v34 = vsel %vm1013_vm9, %v2741_v25, -inf }
 0xeb2   : > { %2748 = vmax.xlane.f32.xlu2 %v2747_v34 }
 0xeba   : > { %v2547_v17 = vpop.xlane.xlu0 %2546 }
 0xebb   : > { %v2551_v45 = vmul.f32 %v2547_v17, %v3835_v9 }
 0xebd   : > { %v2589_v53 = vadd.f32 %v2587_v62, %v2551_v45 }
 0xec2   : > { %v2550_v0 = vpop.xlane.xlu0 %2549 }
 0xec3   : > { %v2552_v2 = vmul.f32 %v2550_v0, %v3835_v9 }
 0xec5   : > { %v2590_v23 = vadd.f32 %v2588_v15, %v2552_v2 }
 0xecb   : > { %v2565_v44 = vpop.f32.mrf.mxu1 }
 0xed3   : > { %v2567_v20 = vpop.f32.mrf.mxu1 }
 0xed4   : > { %v2591_v47 = vpack.c.bf16 %v2567_v20, %v2565_v44 }
 0xed6   : > { %3183 = vmatmul.msk.bf16.vlgmr.msra.gmra.mxu3 %vm931_vm0, %v2591_v47 }
 0xf1d   : > { %v2746_v51 = vpop.xlane.xlu0 %2745 }
 0xf1e   : > { %v2750_v60 = vsub.f32 %v2739_v31, %v2746_v51 }
 0xf20   : > { %v2752_v7 = vmul.f32 1.442695, %v2750_v60 }
 0xf22   : > { %3400 = vpow2.f32 %v2752_v7 }
 0xf25   : > { %v2749_v46 = vpop.xlane.xlu2 %2748 }
 0xf26   : > { %v2751_v6 = vsub.f32 %v2741_v25, %v2749_v46 }
 0xf28   : > { %v3401_v27 = vpop.eup %3400  ;;  %v2754_v13 = vmul.f32 1.442695, %v2751_v6 }
 0xf29   : > { %v2756_v41 = vsel %vm1013_vm9, %v3401_v27, 0.0 }
 0xf2a   : > { %3402 = vpow2.f32 %v2754_v13  ;;  %2757 = vadd.xlane.f32.xlu1 %v2756_v41 }
 0xf30   : > { %v3403_v57 = vpop.eup %3402 }
 0xf31   : > { %v2759_v55 = vsel %vm1013_vm9, %v3403_v57, 0.0 }
 0xf32   : > { %2760 = vadd.xlane.f32.xlu0 %v2759_v55 }
 0xf59   : > { %v2604_v11 = vpop.f32.mrf.mxu3 }
 0xf5a   : > { %v2609_v22 = vadd.f32 %v2604_v11, %v2589_v53 }
 0xf5c   : > { %v2611_v52 = vmul.f32 %v3846_v21, %v2609_v22 }
 0xf61   : > { %v2606_v61 = vpop.f32.mrf.mxu3 }
 0xf62   : > { %v2610_v49 = vadd.f32 %v2606_v61, %v2590_v23  ;;  %v2770_v61 = vmul.f32 %v4420_v43, %v3974_v50 }
 0xf64   : > { %v2612_v5 = vmul.f32 %v3848_v24, %v2610_v49 }
 0xf66   : > { %v2613_v1 = vpack.c.bf16 %v2612_v5, %v2611_v52  ;;  %v2771_v5 = vmul.f32 %v4426_v19, %v3974_v50  ;;  %v3263_v19 = vld [vmem:[%s3863_s2 + $0x3] ss:$0 sm:$0xff] }
 0xf68   : > { %2624 = vmatmul.bf16.vlgmr.msrb.gmra.mxu0 %v2613_v1  ;;  %2678 = vmatmul.bf16.vlgmr.msra.gmra.mxu1 %v2613_v1 }
 0xf78   : > { %3193 = vmatmul.msk.bf16.vlgmr.msrb.gmra.mxu1 %vm931_vm0, %v4392_v4  ;;  %v3262_v4 = vld [vmem:[%s3854_s8 + $0x3] ss:$0 sm:$0xff] }
 0xf9d   : > { %v2758_v35 = vpop.xlane.xlu1 %2757 }
 0xf9e   : > { %3404 = vrcp.f32 %v2758_v35 }
 0xfa4   : > { %v3405_v63 = vpop.eup %3404 }
 0xfa5   : > { %v2761_v9 = vpop.xlane.xlu0 %2760  ;;  %v2764_v48 = vmul.f32 %v3405_v63, %v3401_v27 }
 0xfa6   : > { %3406 = vrcp.f32 %v2761_v9 }
 0xfa7   : > { %v2772_v40 = vmul.f32 %v4409_v16, %v2764_v48 }
 0xfa9   : > { %v2774_v10 = vsel %vm1013_vm9, %v2772_v40, 0.0 }
 0xfaa   : > { %2775 = vadd.xlane.f32.xlu0 %v2774_v10 }
 0xfac   : > { %v3407_v21 = vpop.eup %3406 }
 0xfad   : > { %v2765_v24 = vmul.f32 %v3407_v21, %v3403_v57 }
 0xfaf   : > { %v2773_v18 = vmul.f32 %v4409_v16, %v2765_v24  ;;  %v2769_v59 = vpack.c.bf16 %v2765_v24, %v2764_v48 }
 0xfb1   : > { %v2777_v14 = vsel %vm1013_vm9, %v2773_v18, 0.0 }
 0xfb2   : > { %2778 = vadd.xlane.f32.xlu0 %v2777_v14 }
 0xfe5   : > { %v2625_v38 = vpop.f32.mrf.mxu0  ;;  %v2679_v50 = vpop.f32.mrf.mxu1 }
 0xfe6   : > { %v2626_v33 = vadd.f32 %v3262_v4, %v2625_v38 }
 0xfe8   : > { %v3184_v36 = vmul.f32 -1.442695, %v2626_v33 }
 0xfea   : > { %3408 = vpow2.f32 %v3184_v36 }
 0xfed   : > { %v2627_v37 = vpop.f32.mrf.mxu0  ;;  %v2681_v14 = vpop.f32.mrf.mxu1 }
 0xfee   : > { %v2628_v42 = vadd.f32 %v3262_v4, %v2627_v37  ;;  %v2680_v4 = vadd.f32 %v3263_v19, %v2679_v50  ;;  %v2682_v38 = vadd.f32 %v3263_v19, %v2681_v14 }
 0xff0   : > { %v3409_v12 = vpop.eup %3408  ;;  %v3185_v31 = vmul.f32 -1.442695, %v2628_v42  ;;  %v3186_v33 = vmul.f32 -1.442695, %v2680_v4  ;;  %v3187_v36 = vmul.f32 -1.442695, %v2682_v38 }
 0xff1   : > { %v2636_v3 = vadd.f32 1.0, %v3409_v12 }
 0xff2   : > { %3410 = vpow2.f32 %v3185_v31 }
 0xff3   : > { %3412 = vrcp.f32 %v2636_v3  ;;  %v2649_v20 = vand.u32 2147483648, %v2636_v3  ;;  %vm2643_vm3 = vweird.f32 %v2636_v3  ;;  %v2647_v0 = vand.u32 2147483647, %v2636_v3 }
 0xff5   : > { %v2650_v6 = vor.u32 1.1754944e-38, %v2649_v20  ;;  %vm2648_vm7 = vcmp.eq.f32.partialorder %v2647_v0, 8.507059e+37 }
 0xff8   : > { %v3411_v25 = vpop.eup %3410 }
 0xff9   : > { %v3413_v34 = vpop.eup %3412  ;;  %v2637_v8 = vadd.f32 1.0, %v3411_v25 }
 0xffa   : > { %v2639_v16 = vmul.f32 %v3413_v34, %v2636_v3  ;;  %vm2644_vm1 = vweird.f32 %v3413_v34 }
 0xffb   : > { %3414 = vrcp.f32 %v2637_v8  ;;  %vm2645_vm4 = vmor %vm2643_vm3, %vm2644_vm1  ;;  %v2664_v51 = vand.u32 2147483648, %v2637_v8  ;;  %v2662_v46 = vand.u32 2147483647, %v2637_v8  ;;  %vm2658_vm6 = vweird.f32 %v2637_v8 }
 0xffc   : > { %v2640_v17 = vsub.f32 1.0, %v2639_v16  ;;  %3416 = vpow2.f32 %v3186_v33  ;;  %vm2921_vm3 = vcmask 31744  }
 0xffd   : > { %v2665_v41 = vor.u32 1.1754944e-38, %v2664_v51  ;;  %vm2663_vm10 = vcmp.eq.f32.partialorder %v2662_v46, 8.507059e+37  ;;  %3418 = vpow2.f32 %v3187_v36 }
 0xffe   : > { %v2641_v62 = vmul.f32 %v3413_v34, %v2640_v17  ;;  %v3265_v17 = vld [vmem:[%s3934_s6 + $0x3] ss:$0 sm:$0xff] }
0x1000   : > { %v2642_v44 = vadd.f32 %v3413_v34, %v2641_v62 }
0x1001   : > { %v3415_v45 = vpop.eup %3414 }
0x1002   : > { %v2654_v53 = vmul.f32 %v3415_v45, %v2637_v8  ;;  %v2646_v7 = vsel %vm2645_vm4, %v3413_v34, %v2642_v44  ;;  %vm2659_vm5 = vweird.f32 %v3415_v45 }
0x1003   : > { %v2651_v13 = vsel %vm2648_vm7, %v2650_v6, %v2646_v7  ;;  %vm2660_vm8 = vmor %vm2658_vm6, %vm2659_vm5 }
0x1004   : > { %v2655_v47 = vsub.f32 1.0, %v2654_v53  ;;  %v2766_v30 = vmul.f32 %v2651_v13, %v4386_v56 }
0x1006   : > { %v2656_v60 = vmul.f32 %v3415_v45, %v2655_v47 }
0x1008   : > { %v2657_v27 = vadd.f32 %v3415_v45, %v2656_v60 }
0x100a   : > { %v2661_v57 = vsel %vm2660_vm8, %v3415_v45, %v2657_v27 }
0x100b   : > { %v2666_v55 = vsel %vm2663_vm10, %v2665_v41, %v2661_v57 }
0x100c   : > { %v2767_v58 = vmul.f32 %v2666_v55, %v4388_v39 }
0x100e   : > { %v2768_v11 = vpack.c.bf16 %v2767_v58, %v2766_v30 }
0x1010   : > { %2792 = vmatpush.bf16.msrb.mxu3 %v2768_v11  ;;  %3190 = vmatmul.msk.bf16.vlgmr.msra.gmra.mxu2 %vm931_vm0, %v2768_v11 }
0x1013   : > { %3189 = vmatmul.msk.bf16.vlgmr.msrb.gmra.mxu3 %vm1013_vm9, %v2769_v59 }
0x1014   : > { %2831 = vmatpush.bf16.msra.mxu3 %v3904_v29 }
0x101d   : > { %v2776_v23 = vpop.xlane.xlu0 %2775 }
0x101e   : > { %v2780_v35 = vmul.f32 %v2776_v23, %v3976_v54 }
0x1025   : > { %v2779_v29 = vpop.xlane.xlu0 %2778 }
0x1026   : > { %v2781_v9 = vmul.f32 %v2779_v29, %v3976_v54  ;;  %v3417_v54 = vpop.eup %3416  ;;  %v3264_v29 = vld [vmem:[%s4505_s25] ss:$0 sm:$0xff] }
0x1027   : > { %v3419_v37 = vpop.eup %3418  ;;  %v2690_v42 = vadd.f32 1.0, %v3417_v54 }
0x1028   : > { %v2691_v12 = vadd.f32 1.0, %v3419_v37 }
0x1029   : > { %3420 = vrcp.f32 %v2690_v42  ;;  %v2703_v47 = vand.u32 2147483648, %v2690_v42  ;;  %v2701_v0 = vand.u32 2147483647, %v2690_v42 }
0x102a   : > { %3422 = vrcp.f32 %v2691_v12  ;;  %v2718_v60 = vand.u32 2147483648, %v2691_v12  ;;  %vm2712_vm13 = vweird.f32 %v2691_v12  ;;  %v2716_v46 = vand.u32 2147483647, %v2691_v12 }
0x102b   : > { %v2704_v27 = vor.u32 1.1754944e-38, %v2703_v47  ;;  %vm2702_vm15 = vcmp.eq.f32.partialorder %v2701_v0, 8.507059e+37 }
0x102c   : > { %v2719_v55 = vor.u32 1.1754944e-38, %v2718_v60  ;;  %vm2717_vm1 = vcmp.eq.f32.partialorder %v2716_v46, 8.507059e+37 }
0x1093   : > { %v2811_v22 = vpop.f32.mrf.mxu2 }
0x1094   : > { %v2816_v1 = vadd.f32 %v2811_v22, %v2770_v61 }
0x1096   : > { %v2794_v26 = vpop.f32.mrf.mxu3  ;;  %v2818_v48 = vadd.f32 %v2816_v1, %v2780_v35  ;;  %v2886_v1 = vpop.f32.mrf.mxu1 }
0x1097   : > { %v2894_v35 = vadd.f32 %v3264_v29, %v2886_v1 }
0x109b   : > { %v2813_v49 = vpop.f32.mrf.mxu2 }
0x109c   : > { %v2817_v63 = vadd.f32 %v2813_v49, %v2771_v5 }
0x109e   : > { %v2796_v2 = vpop.f32.mrf.mxu3  ;;  %v2819_v10 = vadd.f32 %v2817_v63, %v2781_v9  ;;  %v2888_v63 = vpop.f32.mrf.mxu1 }
0x109f   : > { %v2820_v15 = vpack.c.bf16 %v2796_v2, %v2794_v26  ;;  %v2895_v9 = vadd.f32 %v3264_v29, %v2888_v63 }
0x10a1   : > { %3191 = vmatmul.msk.bf16.vlgmr.msra.gmra.mxu3 %vm931_vm0, %v2820_v15 }
0x1124   : > { %v2833_v52 = vpop.f32.mrf.mxu3 }
0x1125   : > { %v2838_v40 = vadd.f32 %v2833_v52, %v2818_v48 }
0x1127   : > { %v2840_v43 = vmul.f32 %v3987_v28, %v2838_v40  ;;  %v3194_v28 = vld [vmem:[%s4504_s24 + $0x4] sm:$0xf] }
0x1128   : > { %v2903_v31 = vsel %vm1090_vm2, %v3194_v28, 0 }
0x1129   : > { %2912 = vmatpush.bf16.msrb.mxu2 %v2903_v31 }
0x112c   : > { %v2835_v21 = vpop.f32.mrf.mxu3 }
0x112d   : > { %v2839_v24 = vadd.f32 %v2835_v21, %v2819_v10 }
0x112f   : > { %v2841_v18 = vmul.f32 %v3989_v32, %v2839_v24  ;;  %v3421_v32 = vpop.eup %3420 }
0x1130   : > { %v3423_v3 = vpop.eup %3422  ;;  %v2693_v25 = vmul.f32 %v3421_v32, %v2690_v42  ;;  %vm2698_vm9 = vweird.f32 %v3421_v32 }
0x1131   : > { %v2842_v59 = vpack.c.bf16 %v2841_v18, %v2840_v43  ;;  %v2708_v34 = vmul.f32 %v3423_v3, %v2691_v12  ;;  %vm2713_vm12 = vweird.f32 %v3423_v3 }
0x1132   : > { %v2694_v8 = vsub.f32 1.0, %v2693_v25  ;;  %vm2714_vm14 = vmor %vm2712_vm13, %vm2713_vm12 }
0x1133   : > { %3192 = vmatmul.msk.bf16.vlgmr.msra.gmra.mxu0 %vm1515_vm11, %v2842_v59  ;;  %v2709_v16 = vsub.f32 1.0, %v2708_v34  ;;  %vm2697_vm11 = vweird.f32 %v2690_v42 }
0x1134   : > { %v2695_v62 = vmul.f32 %v3421_v32, %v2694_v8  ;;  %vm2699_vm2 = vmor %vm2697_vm11, %vm2698_vm9 }
0x1135   : > { %v2710_v53 = vmul.f32 %v3423_v3, %v2709_v16 }
0x1136   : > { %v2696_v20 = vadd.f32 %v3421_v32, %v2695_v62 }
0x1137   : > { %v2711_v51 = vadd.f32 %v3423_v3, %v2710_v53 }
0x1138   : > { %v2700_v7 = vsel %vm2699_vm2, %v3421_v32, %v2696_v20 }
0x1139   : > { %v2715_v41 = vsel %vm2714_vm14, %v3423_v3, %v2711_v51  ;;  %v2705_v57 = vsel %vm2702_vm15, %v2704_v27, %v2700_v7 }
0x113a   : > { %v2720_v58 = vsel %vm2717_vm1, %v2719_v55, %v2715_v41  ;;  %v2866_v11 = vsub.f32 1.0, %v2705_v57  ;;  %v2864_v22 = vmul.f32 %v2705_v57, %v4386_v56 }
0x113b   : > { %v2867_v2 = vsub.f32 1.0, %v2720_v58  ;;  %v2865_v23 = vmul.f32 %v2720_v58, %v4388_v39 }
0x11b0   : > { %v2857_v45 = vpop.f32.mrf.mxu0 }
0x11b1   : > { %v2858_v44 = vadd.f32 %v3265_v17, %v2857_v45 }
0x11b3   : > { %3424 = vtanh.f32 %v2858_v44 }
0x11b8   : > { %v2859_v6 = vpop.f32.mrf.mxu0 }
0x11b9   : > { %v2860_v13 = vadd.f32 %v3265_v17, %v2859_v6  ;;  %v3425_v30 = vpop.eup %3424 }
0x11ba   : > { %v2868_v26 = vmul.f32 %v3425_v30, %v2866_v11 }
0x11bb   : > { %3426 = vtanh.f32 %v2860_v13 }
0x11bc   : > { %v2870_v49 = vadd.f32 %v2868_v26, %v2864_v22 }
0x11c1   : > { %v3427_v15 = vpop.eup %3426 }
0x11c2   : > { %v2869_v61 = vmul.f32 %v3427_v15, %v2867_v2 }
0x11c4   : > { %v2871_v52 = vadd.f32 %v2869_v61, %v2865_v23 }
0x11c6   : > { %v2896_v5 = vpack.c.bf16 %v2871_v52, %v2870_v49 }
0x11c8   : > { %3195 = vmatmul.msk.bf16.vlgmr.msrb.gmra.mxu2 %vm931_vm0, %v2896_v5 }
0x124b   : > { %v2914_v56 = vpop.f32.mrf.mxu2 }
0x124c   : > { %v2919_v39 = vadd.f32 %v2914_v56, %v2894_v35 }
0x124e   : > { %2922 = vst.msk [vmem:[%s876_s13] sm:$0xff] %vm2921_vm3, %v2919_v39 }
0x1253   : > { %v2916_v48 = vpop.f32.mrf.mxu2 }
0x1254   : > { %v2920_v40 = vadd.f32 %v2916_v48, %v2895_v9 }
0x1256   : > { %2923 = vst.msk [vmem:[%s876_s13 + $0x8] sm:$0xff] %vm2921_vm3, %v2920_v40 }
0x1257 PF: > { %s36_s27 = sadd.s32 1, %s3460_s27  }
0x1258   : > { %p33_p4 = scmp.ge.s32.totalorder %s36_s27, 4  }
0x125a   :  { %35 = sbr.rel (!%p33_p4) target bundleno = 16 (0x10), region = 176 }

</bundles_post_ra>
